<compile_context>
chip_gen: v7x
topology: tpu7x:2x2x1
jax: 0.10.0
libtpu: 0.0.40
codegen_flags: <defaults>
</compile_context>

<pallas_src>
import functools

import jax
import jax.numpy as jnp
from jax.experimental import pallas as pl
from jax.experimental.pallas import tpu as pltpu


# ----------------------------------------------------------------------------
# Pallas kernels
# ----------------------------------------------------------------------------
def _conv_kernel(x3_ref, w_ref, b_ref, o_ref, *, W, d, n_rows, relu):
    # x3_ref: ((H+2d)*W, 3*Cin) bf16   width-shifted, channel-concatenated taps
    # w_ref : (9*Cin, Cout)     bf16   K order = (ky, kx, cin)
    # b_ref : (1, Cout)         f32
    # o_ref : (H*W, Cout)
    slabs = [x3_ref[pl.ds(ky * d * W, n_rows), :] for ky in range(3)]
    patch = jnp.concatenate(slabs, axis=-1)                  # (H*W, 9*Cin)
    acc = jnp.dot(patch, w_ref[...], preferred_element_type=jnp.float32)
    acc = acc + b_ref[...]
    if relu:
        acc = jnp.maximum(acc, 0.0)
    o_ref[...] = acc.astype(o_ref.dtype)


def _gru_gates_kernel(h3_ref, w_ref, ax_ref, rh_ref, z_ref, *, W, n_rows, C):
    # Fused:  [a_hr | a_hz] = conv(H_{t-1}) ;  R, Z gates ;  R * H_{t-1}
    slabs = [h3_ref[pl.ds(ky * W, n_rows), :] for ky in range(3)]   # d = 1
    patch = jnp.concatenate(slabs, axis=-1)                  # (H*W, 9*C) bf16
    a_h = jnp.dot(patch, w_ref[...], preferred_element_type=jnp.float32)
    ax = ax_ref[...]                                         # (H*W, 3*C) f32
    r = jax.nn.sigmoid(ax[:, 0:C] + a_h[:, 0:C])
    z = jax.nn.sigmoid(ax[:, C:2 * C] + a_h[:, C:2 * C])
    h_prev = slabs[1][:, C:2 * C].astype(jnp.float32)        # centre tap = H_{t-1}
    rh_ref[...] = (r * h_prev).astype(rh_ref.dtype)
    z_ref[...] = z


def _gru_out_kernel(rh3_ref, w_ref, ax_ref, z_ref, h_ref, ht_ref, *, W, n_rows, C):
    # Fused:  a_hh = conv(R*H_{t-1}) ; H~ = tanh(a_xh + a_hh) ; GRU update.
    slabs = [rh3_ref[pl.ds(ky * W, n_rows), :] for ky in range(3)]  # d = 1
    patch = jnp.concatenate(slabs, axis=-1)
    a_hh = jnp.dot(patch, w_ref[...], preferred_element_type=jnp.float32)
    a_xh = ax_ref[...][:, 2 * C:3 * C]
    h_tilde = jnp.tanh(a_xh + a_hh)
    z = z_ref[...]
    h_prev = h_ref[...].astype(jnp.float32)
    ht_ref[...] = (z * h_prev + (1.0 - z) * h_tilde).astype(ht_ref.dtype)


# ----------------------------------------------------------------------------
# Wrappers
# ----------------------------------------------------------------------------
def _width_taps(x_nhwc, d):
    """(B,H,W,C) -> (B*(H+2d)*W, 3*C): zero-pad spatially, concat the 3
    width (kx) taps along channels; the 3 height (ky) taps are taken in-kernel."""
    B, H, W, C = x_nhwc.shape
    Hp = H + 2 * d
    xp = jnp.pad(x_nhwc, ((0, 0), (d, d), (d, d), (0, 0)))
    cols = [xp[:, :, kx * d:kx * d + W, :] for kx in range(3)]
    xw = jnp.concatenate(cols, axis=-1)                      # (B, Hp, W, 3C)
    return xw.reshape(B * Hp * W, 3 * C)


def conv3x3_pallas(x_nhwc, w_taps, bias, d, relu, out_dtype=jnp.bfloat16):
    """Same-padded dilated 3x3 conv.  x: (B,H,W,Cin); w_taps: (9,Cin,Cout)."""
    B, H, W, Cin = x_nhwc.shape
    Cout = w_taps.shape[-1]
    assert W % 8 == 0, "W must be a multiple of 8 for aligned in-kernel row taps"
    HW, HpW = H * W, (H + 2 * d) * W

    x3 = _width_taps(x_nhwc.astype(jnp.bfloat16), d)         # (B*HpW, 3*Cin)
    wf = w_taps.reshape(9 * Cin, Cout).astype(jnp.bfloat16)
    b2 = bias.reshape(1, Cout).astype(jnp.float32)

    out = pl.pallas_call(
        functools.partial(_conv_kernel, W=W, d=d, n_rows=HW, relu=relu),
        out_shape=jax.ShapeDtypeStruct((B * HW, Cout), out_dtype),
        grid_spec=pltpu.PrefetchScalarGridSpec(
            num_scalar_prefetch=0,
            grid=(B,),
            in_specs=[
                pl.BlockSpec((HpW, 3 * Cin), lambda b: (b, 0)),
                pl.BlockSpec((9 * Cin, Cout), lambda b: (0, 0)),
                pl.BlockSpec((1, Cout), lambda b: (0, 0)),
            ],
            out_specs=pl.BlockSpec((HW, Cout), lambda b: (b, 0)),
        ),
        compiler_params=pltpu.CompilerParams(dimension_semantics=("parallel",)),
    )(x3, wf, b2)
    return out.reshape(B, H, W, Cout)


def gru_gates_pallas(h_img, w_hrz, ax_flat):
    """h_img: (B,H,W,C); w_hrz: (9,C,2C); ax_flat: (B*H*W, 3C) f32.
    Returns (R*H_{t-1} bf16, Z f32), both (B*H*W, C)."""
    B, H, W, C = h_img.shape
    HW, HpW = H * W, (H + 2) * W
    h3 = _width_taps(h_img.astype(jnp.bfloat16), 1)
    wf = w_hrz.reshape(9 * C, 2 * C).astype(jnp.bfloat16)
    rh, z = pl.pallas_call(
        functools.partial(_gru_gates_kernel, W=W, n_rows=HW, C=C),
        out_shape=(jax.ShapeDtypeStruct((B * HW, C), jnp.bfloat16),
                   jax.ShapeDtypeStruct((B * HW, C), jnp.float32)),
        grid_spec=pltpu.PrefetchScalarGridSpec(
            num_scalar_prefetch=0,
            grid=(B,),
            in_specs=[
                pl.BlockSpec((HpW, 3 * C), lambda b: (b, 0)),
                pl.BlockSpec((9 * C, 2 * C), lambda b: (0, 0)),
                pl.BlockSpec((HW, 3 * C), lambda b: (b, 0)),
            ],
            out_specs=[pl.BlockSpec((HW, C), lambda b: (b, 0)),
                       pl.BlockSpec((HW, C), lambda b: (b, 0))],
        ),
        compiler_params=pltpu.CompilerParams(dimension_semantics=("parallel",)),
    )(h3, wf, ax_flat)
    return rh, z


def gru_out_pallas(rh_img, w_hh, ax_flat, z_flat, h_flat):
    """rh_img: (B,H,W,C) bf16; returns H_t (B*H*W, C) f32."""
    B, H, W, C = rh_img.shape
    HW, HpW = H * W, (H + 2) * W
    rh3 = _width_taps(rh_img.astype(jnp.bfloat16), 1)
    wf = w_hh.reshape(9 * C, C).astype(jnp.bfloat16)
    return pl.pallas_call(
        functools.partial(_gru_out_kernel, W=W, n_rows=HW, C=C),
        out_shape=jax.ShapeDtypeStruct((B * HW, C), jnp.float32),
        grid_spec=pltpu.PrefetchScalarGridSpec(
            num_scalar_prefetch=0,
            grid=(B,),
            in_specs=[
                pl.BlockSpec((HpW, 3 * C), lambda b: (b, 0)),
                pl.BlockSpec((9 * C, C), lambda b: (0, 0)),
                pl.BlockSpec((HW, 3 * C), lambda b: (b, 0)),
                pl.BlockSpec((HW, C), lambda b: (b, 0)),
                pl.BlockSpec((HW, C), lambda b: (b, 0)),
            ],
            out_specs=pl.BlockSpec((HW, C), lambda b: (b, 0)),
        ),
        compiler_params=pltpu.CompilerParams(dimension_semantics=("parallel",)),
    )(rh3, wf, ax_flat, z_flat, h_flat)


# ----------------------------------------------------------------------------
# Full forward pass (mirrors MyFCN.forward)
# ----------------------------------------------------------------------------
def myfcn_forward(params, x_in_nchw):
    B, _, H, W = x_in_nchw.shape
    HW = H * W
    x_img = jnp.transpose(x_in_nchw[:, 0:1, :, :], (0, 2, 3, 1)).astype(jnp.bfloat16)
    h_prev = jnp.transpose(x_in_nchw[:, -64:, :, :], (0, 2, 3, 1)).astype(jnp.bfloat16)

    # conv_1: pad Cin 1 -> 8 (zeros) for a lane-friendly K (numerically exact).
    x8 = jnp.pad(x_img, ((0, 0), (0, 0), (0, 0), (0, 7)))
    w1, b1 = params["conv_1"]
    w1p = jnp.pad(w1, ((0, 0), (0, 7), (0, 0)))
    X = conv3x3_pallas(x8, w1p, b1, 1, True)
    X = conv3x3_pallas(X, *params["conv_2"], 2, True)
    X = conv3x3_pallas(X, *params["conv_3"], 3, True)
    X = conv3x3_pallas(X, *params["conv_4"], 4, True)

    X_t = conv3x3_pallas(X, *params["conv_5_pi"], 3, True)
    X_t = conv3x3_pallas(X_t, *params["conv_6_pi"], 2, True)

    # Fused x-side gate conv: [a_xr | a_xz | a_xh], Cout = 192 (lane dense).
    w_x = jnp.concatenate(
        [params["W_xr"][0], params["W_xz"][0], params["W_xh"][0]], axis=-1)
    ax = conv3x3_pallas(X_t, w_x, jnp.zeros((192,), jnp.float32), 1, False,
                        out_dtype=jnp.float32)               # (B,H,W,192) f32
    ax_flat = ax.reshape(B * HW, 192)

    # Fused h-side gate conv (W_hr | W_hz) + sigmoid gates + R*H_{t-1} + Z.
    w_hrz = jnp.concatenate([params["W_hr"][0], params["W_hz"][0]], axis=-1)
    rh_flat, z_flat = gru_gates_pallas(h_prev, w_hrz, ax_flat)

    # W_hh conv on R*H_{t-1} fused with tanh + GRU state update.
    rh_img = rh_flat.reshape(B, H, W, 64)
    h_flat = h_prev.reshape(B * HW, 64)
    h_t_flat = gru_out_pallas(rh_img, params["W_hh"][0], ax_flat, z_flat, h_flat)
    h_t_img = h_t_flat.reshape(B, H, W, 64)

    pi = conv3x3_pallas(h_t_img, *params["conv_7_pi"], 1, False,
                        out_dtype=jnp.float32)

    X_v = conv3x3_pallas(X, *params["conv_5_v"], 3, True)
    X_v = conv3x3_pallas(X_v, *params["conv_6_v"], 2, True)
    v = conv3x3_pallas(X_v, *params["conv_7_v"], 1, False, out_dtype=jnp.float32)

    to_nchw = lambda t: jnp.transpose(t, (0, 3, 1, 2))
    return to_nchw(pi), to_nchw(v), to_nchw(h_t_img)


# ----------------------------------------------------------------------------
# Pure-JAX reference (same bf16 inputs / f32 accumulation, for validation)
# ----------------------------------------------------------------------------
def conv3x3_ref(x_nhwc, w_taps, bias, d, relu, out_dtype=jnp.bfloat16):
    Cin, Cout = w_taps.shape[1], w_taps.shape[2]
    w_hwio = w_taps.reshape(3, 3, Cin, Cout).astype(jnp.bfloat16)
    out = jax.lax.conv_general_dilated(
        x_nhwc.astype(jnp.bfloat16), w_hwio, window_strides=(1, 1),
        padding=[(d, d), (d, d)], rhs_dilation=(d, d),
        dimension_numbers=("NHWC", "HWIO", "NHWC"),
        preferred_element_type=jnp.float32)
    out = out + bias.astype(jnp.float32)
    if relu:
        out = jnp.maximum(out, 0.0)
    return out.astype(out_dtype)


def myfcn_forward_ref(params, x_in_nchw):
    x_img = jnp.transpose(x_in_nchw[:, 0:1, :, :], (0, 2, 3, 1)).astype(jnp.bfloat16)
    h_prev = jnp.transpose(x_in_nchw[:, -64:, :, :], (0, 2, 3, 1)).astype(jnp.bfloat16)

    X = conv3x3_ref(x_img, *params["conv_1"], 1, True)
    X = conv3x3_ref(X, *params["conv_2"], 2, True)
    X = conv3x3_ref(X, *params["conv_3"], 3, True)
    X = conv3x3_ref(X, *params["conv_4"], 4, True)
    X_t = conv3x3_ref(X, *params["conv_5_pi"], 3, True)
    X_t = conv3x3_ref(X_t, *params["conv_6_pi"], 2, True)

    a_xr = conv3x3_ref(X_t, *params["W_xr"], 1, False, jnp.float32)
    a_xz = conv3x3_ref(X_t, *params["W_xz"], 1, False, jnp.float32)
    a_xh = conv3x3_ref(X_t, *params["W_xh"], 1, False, jnp.float32)
    a_hr = conv3x3_ref(h_prev, *params["W_hr"], 1, False, jnp.float32)
    a_hz = conv3x3_ref(h_prev, *params["W_hz"], 1, False, jnp.float32)

    r = jax.nn.sigmoid(a_xr + a_hr)
    z = jax.nn.sigmoid(a_xz + a_hz)
    h32 = h_prev.astype(jnp.float32)
    rh = (r * h32).astype(jnp.bfloat16)
    a_hh = conv3x3_ref(rh, *params["W_hh"], 1, False, jnp.float32)
    h_tilde = jnp.tanh(a_xh + a_hh)
    h_t = z * h32 + (1.0 - z) * h_tilde

    pi = conv3x3_ref(h_t, *params["conv_7_pi"], 1, False, jnp.float32)
    X_v = conv3x3_ref(X, *params["conv_5_v"], 3, True)
    X_v = conv3x3_ref(X_v, *params["conv_6_v"], 2, True)
    v = conv3x3_ref(X_v, *params["conv_7_v"], 1, False, jnp.float32)

    to_nchw = lambda t: jnp.transpose(t, (0, 3, 1, 2))
    return to_nchw(pi), to_nchw(v), to_nchw(h_t)


# ----------------------------------------------------------------------------
# Deterministic parameter init (weights stored as (9, Cin, Cout) taps, f32)
# ----------------------------------------------------------------------------
def init_params(key, n_actions):
    specs = {
        "conv_1": (1, 64, True), "conv_2": (64, 64, True),
        "conv_3": (64, 64, True), "conv_4": (64, 64, True),
        "conv_5_pi": (64, 64, True), "conv_6_pi": (64, 64, True),
        "W_xr": (64, 64, False), "W_hr": (64, 64, False),
        "W_xz": (64, 64, False), "W_hz": (64, 64, False),
        "W_xh": (64, 64, False), "W_hh": (64, 64, False),
        "conv_7_pi": (64, n_actions, True),
        "conv_5_v": (64, 64, True), "conv_6_v": (64, 64, True),
        "conv_7_v": (64, 1, True),
    }
    params = {}
    keys = jax.random.split(key, len(specs))
    for k_sub, (name, (cin, cout, has_b)) in zip(keys, specs.items()):
        kw, kb = jax.random.split(k_sub)
        bound = 1.0 / float(cin * 9) ** 0.5
        w = jax.random.uniform(kw, (9, cin, cout), jnp.float32, -bound, bound)
        if has_b:
            b = jax.random.uniform(kb, (cout,), jnp.float32, -bound, bound)
        else:
            b = jnp.zeros((cout,), jnp.float32)
        params[name] = (w, b)
    return params


if __name__ == "__main__":
    n_actions = 9
    B, H, W = 2, 16, 16
    key = jax.random.PRNGKey(0)
    k_in, k_p = jax.random.split(key)
    # X_in channels: [image(1), hidden state H_{t-1}(64)] -> NCHW
    x_in = jax.random.normal(k_in, (B, 1 + 64, H, W), jnp.float32)
    params = init_params(k_p, n_actions)

    fwd = jax.jit(myfcn_forward)
    pi, v, h_t = fwd(params, x_in)
    jax.block_until_ready((pi, v, h_t))

    assert pi.shape == (B, n_actions, H, W)
    assert v.shape == (B, 1, H, W)
    assert h_t.shape == (B, 64, H, W)

    # Cross-check against a pure-JAX reference using the same bf16 inputs and
    # f32 accumulation.
    pi_r, v_r, h_r = jax.jit(myfcn_forward_ref)(params, x_in)
    jax.block_until_ready((pi_r, v_r, h_r))
    for name, got, ref in (("pi", pi, pi_r), ("v", v, v_r), ("h_t", h_t, h_r)):
        err = float(jnp.max(jnp.abs(got - ref)))
        assert jnp.allclose(got, ref, atol=5e-3, rtol=5e-3), (name, err)

    print("KERNEL_OK")
</pallas_src>

<mosaic_0001>
module attributes {stable_mosaic.version = 11 : i64} {
  func.func @_conv_kernel(%arg0: i32, %arg1: memref<288x24xbf16, #tpu.memory_space<vmem>>, %arg2: memref<72x64xbf16, #tpu.memory_space<vmem>>, %arg3: memref<1x64xf32, #tpu.memory_space<vmem>>, %arg4: memref<256x64xbf16, #tpu.memory_space<vmem>>) attributes {dimension_semantics = [#tpu.dimension_semantics<parallel>], iteration_bounds = array<i64: 2>, scalar_prefetch = 0 : i64, scratch_operands = 0 : i64, tpu.core_type = #tpu.core_type<tc>, window_params = [{transform_indices = @transform_0, window_bounds = array<i64: 288, 24>}, {pipeline_mode = #tpu.pipeline_mode<synchronous>, transform_indices = @transform_1, window_bounds = array<i64: 72, 64>}, {pipeline_mode = #tpu.pipeline_mode<synchronous>, transform_indices = @transform_2, window_bounds = array<i64: 1, 64>}, {transform_indices = @transform_3, window_bounds = array<i64: 256, 64>}]} {
    %c0 = arith.constant 0 : index
    %c0_0 = arith.constant 0 : index
    %0 = vector.load %arg1[%c0, %c0_0] : memref<288x24xbf16, #tpu.memory_space<vmem>>, vector<256x24xbf16>
    %c16 = arith.constant 16 : index
    %c0_1 = arith.constant 0 : index
    %1 = vector.load %arg1[%c16, %c0_1] : memref<288x24xbf16, #tpu.memory_space<vmem>>, vector<256x24xbf16>
    %c32 = arith.constant 32 : index
    %c0_2 = arith.constant 0 : index
    %2 = vector.load %arg1[%c32, %c0_2] : memref<288x24xbf16, #tpu.memory_space<vmem>>, vector<256x24xbf16>
    %3 = tpu.concatenate %0, %1, %2 in 1 : vector<256x24xbf16>, vector<256x24xbf16>, vector<256x24xbf16> -> vector<256x72xbf16>
    %c0_3 = arith.constant 0 : index
    %c0_4 = arith.constant 0 : index
    %4 = vector.load %arg2[%c0_3, %c0_4] : memref<72x64xbf16, #tpu.memory_space<vmem>>, vector<72x64xbf16>
    %cst = arith.constant dense<0.000000e+00> : vector<256x64xf32>
    %5 = tpu.matmul %3, %4, %cst {dimension_numbers = #tpu.dot_dimension_numbers<[1], [0], [0], [1], [0, 0, 1, 1], [], []>} : vector<256x72xbf16>, vector<72x64xbf16>, vector<256x64xf32> -> vector<256x64xf32>
    %c0_5 = arith.constant 0 : index
    %c0_6 = arith.constant 0 : index
    %6 = vector.load %arg3[%c0_5, %c0_6] : memref<1x64xf32, #tpu.memory_space<vmem>>, vector<1x64xf32>
    %7 = vector.broadcast %6 : vector<1x64xf32> to vector<256x64xf32>
    %8 = arith.addf %5, %7 : vector<256x64xf32>
    %cst_7 = arith.constant 0.000000e+00 : f32
    %9 = vector.broadcast %cst_7 : f32 to vector<256x64xf32>
    %10 = arith.maximumf %8, %9 : vector<256x64xf32>
    %11 = arith.truncf %10 : vector<256x64xf32> to vector<256x64xbf16>
    %c0_8 = arith.constant 0 : index
    %c0_9 = arith.constant 0 : index
    %12 = vector.load %arg4[%c0_8, %c0_9] : memref<256x64xbf16, #tpu.memory_space<vmem>>, vector<256x64xbf16>
    tpu.vector_store %arg4[%c0_8, %c0_9], %11 {strides = array<i32>} : memref<256x64xbf16, #tpu.memory_space<vmem>>, vector<256x64xbf16>,
    return
  }
  func.func @transform_0(%arg0: i32) -> (i32, i32) {
    %c0_i32 = arith.constant 0 : i32
    %c0_i32_0 = arith.constant 0 : i32
    return %arg0, %c0_i32 : i32, i32
  }
  func.func @transform_1(%arg0: i32) -> (i32, i32) {
    %c0_i32 = arith.constant 0 : i32
    %c0_i32_0 = arith.constant 0 : i32
    %c0_i32_1 = arith.constant 0 : i32
    return %c0_i32, %c0_i32_0 : i32, i32
  }
  func.func @transform_2(%arg0: i32) -> (i32, i32) {
    %c0_i32 = arith.constant 0 : i32
    %c0_i32_0 = arith.constant 0 : i32
    %c0_i32_1 = arith.constant 0 : i32
    return %c0_i32, %c0_i32_0 : i32, i32
  }
  func.func @transform_3(%arg0: i32) -> (i32, i32) {
    %c0_i32 = arith.constant 0 : i32
    %c0_i32_0 = arith.constant 0 : i32
    return %arg0, %c0_i32 : i32, i32
  }
}

module attributes {stable_mosaic.version = 11 : i64} {
  func.func @_conv_kernel(%arg0: i32, %arg1: memref<320x192xbf16, #tpu.memory_space<vmem>>, %arg2: memref<576x64xbf16, #tpu.memory_space<vmem>>, %arg3: memref<1x64xf32, #tpu.memory_space<vmem>>, %arg4: memref<256x64xbf16, #tpu.memory_space<vmem>>) attributes {dimension_semantics = [#tpu.dimension_semantics<parallel>], iteration_bounds = array<i64: 2>, scalar_prefetch = 0 : i64, scratch_operands = 0 : i64, tpu.core_type = #tpu.core_type<tc>, window_params = [{transform_indices = @transform_0, window_bounds = array<i64: 320, 192>}, {pipeline_mode = #tpu.pipeline_mode<synchronous>, transform_indices = @transform_1, window_bounds = array<i64: 576, 64>}, {pipeline_mode = #tpu.pipeline_mode<synchronous>, transform_indices = @transform_2, window_bounds = array<i64: 1, 64>}, {transform_indices = @transform_3, window_bounds = array<i64: 256, 64>}]} {
    %c0 = arith.constant 0 : index
    %c0_0 = arith.constant 0 : index
    %0 = vector.load %arg1[%c0, %c0_0] : memref<320x192xbf16, #tpu.memory_space<vmem>>, vector<256x192xbf16>
    %c32 = arith.constant 32 : index
    %c0_1 = arith.constant 0 : index
    %1 = vector.load %arg1[%c32, %c0_1] : memref<320x192xbf16, #tpu.memory_space<vmem>>, vector<256x192xbf16>
    %c64 = arith.constant 64 : index
    %c0_2 = arith.constant 0 : index
    %2 = vector.load %arg1[%c64, %c0_2] : memref<320x192xbf16, #tpu.memory_space<vmem>>, vector<256x192xbf16>
    %3 = tpu.concatenate %0, %1, %2 in 1 : vector<256x192xbf16>, vector<256x192xbf16>, vector<256x192xbf16> -> vector<256x576xbf16>
    %c0_3 = arith.constant 0 : index
    %c0_4 = arith.constant 0 : index
    %4 = vector.load %arg2[%c0_3, %c0_4] : memref<576x64xbf16, #tpu.memory_space<vmem>>, vector<576x64xbf16>
    %cst = arith.constant dense<0.000000e+00> : vector<256x64xf32>
    %5 = tpu.matmul %3, %4, %cst {dimension_numbers = #tpu.dot_dimension_numbers<[1], [0], [0], [1], [0, 0, 1, 1], [], []>} : vector<256x576xbf16>, vector<576x64xbf16>, vector<256x64xf32> -> vector<256x64xf32>
    %c0_5 = arith.constant 0 : index
    %c0_6 = arith.constant 0 : index
    %6 = vector.load %arg3[%c0_5, %c0_6] : memref<1x64xf32, #tpu.memory_space<vmem>>, vector<1x64xf32>
    %7 = vector.broadcast %6 : vector<1x64xf32> to vector<256x64xf32>
    %8 = arith.addf %5, %7 : vector<256x64xf32>
    %cst_7 = arith.constant 0.000000e+00 : f32
    %9 = vector.broadcast %cst_7 : f32 to vector<256x64xf32>
    %10 = arith.maximumf %8, %9 : vector<256x64xf32>
    %11 = arith.truncf %10 : vector<256x64xf32> to vector<256x64xbf16>
    %c0_8 = arith.constant 0 : index
    %c0_9 = arith.constant 0 : index
    %12 = vector.load %arg4[%c0_8, %c0_9] : memref<256x64xbf16, #tpu.memory_space<vmem>>, vector<256x64xbf16>
    tpu.vector_store %arg4[%c0_8, %c0_9], %11 {strides = array<i32>} : memref<256x64xbf16, #tpu.memory_space<vmem>>, vector<256x64xbf16>,
    return
  }
  func.func @transform_0(%arg0: i32) -> (i32, i32) {
    %c0_i32 = arith.constant 0 : i32
    %c0_i32_0 = arith.constant 0 : i32
    return %arg0, %c0_i32 : i32, i32
  }
  func.func @transform_1(%arg0: i32) -> (i32, i32) {
    %c0_i32 = arith.constant 0 : i32
    %c0_i32_0 = arith.constant 0 : i32
    %c0_i32_1 = arith.constant 0 : i32
    return %c0_i32, %c0_i32_0 : i32, i32
  }
  func.func @transform_2(%arg0: i32) -> (i32, i32) {
    %c0_i32 = arith.constant 0 : i32
    %c0_i32_0 = arith.constant 0 : i32
    %c0_i32_1 = arith.constant 0 : i32
    return %c0_i32, %c0_i32_0 : i32, i32
  }
  func.func @transform_3(%arg0: i32) -> (i32, i32) {
    %c0_i32 = arith.constant 0 : i32
    %c0_i32_0 = arith.constant 0 : i32
    return %arg0, %c0_i32 : i32, i32
  }
}

module attributes {stable_mosaic.version = 11 : i64} {
  func.func @_conv_kernel(%arg0: i32, %arg1: memref<352x192xbf16, #tpu.memory_space<vmem>>, %arg2: memref<576x64xbf16, #tpu.memory_space<vmem>>, %arg3: memref<1x64xf32, #tpu.memory_space<vmem>>, %arg4: memref<256x64xbf16, #tpu.memory_space<vmem>>) attributes {dimension_semantics = [#tpu.dimension_semantics<parallel>], iteration_bounds = array<i64: 2>, scalar_prefetch = 0 : i64, scratch_operands = 0 : i64, tpu.core_type = #tpu.core_type<tc>, window_params = [{transform_indices = @transform_0, window_bounds = array<i64: 352, 192>}, {pipeline_mode = #tpu.pipeline_mode<synchronous>, transform_indices = @transform_1, window_bounds = array<i64: 576, 64>}, {pipeline_mode = #tpu.pipeline_mode<synchronous>, transform_indices = @transform_2, window_bounds = array<i64: 1, 64>}, {transform_indices = @transform_3, window_bounds = array<i64: 256, 64>}]} {
    %c0 = arith.constant 0 : index
    %c0_0 = arith.constant 0 : index
    %0 = vector.load %arg1[%c0, %c0_0] : memref<352x192xbf16, #tpu.memory_space<vmem>>, vector<256x192xbf16>
    %c48 = arith.constant 48 : index
    %c0_1 = arith.constant 0 : index
    %1 = vector.load %arg1[%c48, %c0_1] : memref<352x192xbf16, #tpu.memory_space<vmem>>, vector<256x192xbf16>
    %c96 = arith.constant 96 : index
    %c0_2 = arith.constant 0 : index
    %2 = vector.load %arg1[%c96, %c0_2] : memref<352x192xbf16, #tpu.memory_space<vmem>>, vector<256x192xbf16>
    %3 = tpu.concatenate %0, %1, %2 in 1 : vector<256x192xbf16>, vector<256x192xbf16>, vector<256x192xbf16> -> vector<256x576xbf16>
    %c0_3 = arith.constant 0 : index
    %c0_4 = arith.constant 0 : index
    %4 = vector.load %arg2[%c0_3, %c0_4] : memref<576x64xbf16, #tpu.memory_space<vmem>>, vector<576x64xbf16>
    %cst = arith.constant dense<0.000000e+00> : vector<256x64xf32>
    %5 = tpu.matmul %3, %4, %cst {dimension_numbers = #tpu.dot_dimension_numbers<[1], [0], [0], [1], [0, 0, 1, 1], [], []>} : vector<256x576xbf16>, vector<576x64xbf16>, vector<256x64xf32> -> vector<256x64xf32>
    %c0_5 = arith.constant 0 : index
    %c0_6 = arith.constant 0 : index
    %6 = vector.load %arg3[%c0_5, %c0_6] : memref<1x64xf32, #tpu.memory_space<vmem>>, vector<1x64xf32>
    %7 = vector.broadcast %6 : vector<1x64xf32> to vector<256x64xf32>
    %8 = arith.addf %5, %7 : vector<256x64xf32>
    %cst_7 = arith.constant 0.000000e+00 : f32
    %9 = vector.broadcast %cst_7 : f32 to vector<256x64xf32>
    %10 = arith.maximumf %8, %9 : vector<256x64xf32>
    %11 = arith.truncf %10 : vector<256x64xf32> to vector<256x64xbf16>
    %c0_8 = arith.constant 0 : index
    %c0_9 = arith.constant 0 : index
    %12 = vector.load %arg4[%c0_8, %c0_9] : memref<256x64xbf16, #tpu.memory_space<vmem>>, vector<256x64xbf16>
    tpu.vector_store %arg4[%c0_8, %c0_9], %11 {strides = array<i32>} : memref<256x64xbf16, #tpu.memory_space<vmem>>, vector<256x64xbf16>,
    return
  }
  func.func @transform_0(%arg0: i32) -> (i32, i32) {
    %c0_i32 = arith.constant 0 : i32
    %c0_i32_0 = arith.constant 0 : i32
    return %arg0, %c0_i32 : i32, i32
  }
  func.func @transform_1(%arg0: i32) -> (i32, i32) {
    %c0_i32 = arith.constant 0 : i32
    %c0_i32_0 = arith.constant 0 : i32
    %c0_i32_1 = arith.constant 0 : i32
    return %c0_i32, %c0_i32_0 : i32, i32
  }
  func.func @transform_2(%arg0: i32) -> (i32, i32) {
    %c0_i32 = arith.constant 0 : i32
    %c0_i32_0 = arith.constant 0 : i32
    %c0_i32_1 = arith.constant 0 : i32
    return %c0_i32, %c0_i32_0 : i32, i32
  }
  func.func @transform_3(%arg0: i32) -> (i32, i32) {
    %c0_i32 = arith.constant 0 : i32
    %c0_i32_0 = arith.constant 0 : i32
    return %arg0, %c0_i32 : i32, i32
  }
}

module attributes {stable_mosaic.version = 11 : i64} {
  func.func @_conv_kernel(%arg0: i32, %arg1: memref<384x192xbf16, #tpu.memory_space<vmem>>, %arg2: memref<576x64xbf16, #tpu.memory_space<vmem>>, %arg3: memref<1x64xf32, #tpu.memory_space<vmem>>, %arg4: memref<256x64xbf16, #tpu.memory_space<vmem>>) attributes {dimension_semantics = [#tpu.dimension_semantics<parallel>], iteration_bounds = array<i64: 2>, scalar_prefetch = 0 : i64, scratch_operands = 0 : i64, tpu.core_type = #tpu.core_type<tc>, window_params = [{transform_indices = @transform_0, window_bounds = array<i64: 384, 192>}, {pipeline_mode = #tpu.pipeline_mode<synchronous>, transform_indices = @transform_1, window_bounds = array<i64: 576, 64>}, {pipeline_mode = #tpu.pipeline_mode<synchronous>, transform_indices = @transform_2, window_bounds = array<i64: 1, 64>}, {transform_indices = @transform_3, window_bounds = array<i64: 256, 64>}]} {
    %c0 = arith.constant 0 : index
    %c0_0 = arith.constant 0 : index
    %0 = vector.load %arg1[%c0, %c0_0] : memref<384x192xbf16, #tpu.memory_space<vmem>>, vector<256x192xbf16>
    %c64 = arith.constant 64 : index
    %c0_1 = arith.constant 0 : index
    %1 = vector.load %arg1[%c64, %c0_1] : memref<384x192xbf16, #tpu.memory_space<vmem>>, vector<256x192xbf16>
    %c128 = arith.constant 128 : index
    %c0_2 = arith.constant 0 : index
    %2 = vector.load %arg1[%c128, %c0_2] : memref<384x192xbf16, #tpu.memory_space<vmem>>, vector<256x192xbf16>
    %3 = tpu.concatenate %0, %1, %2 in 1 : vector<256x192xbf16>, vector<256x192xbf16>, vector<256x192xbf16> -> vector<256x576xbf16>
    %c0_3 = arith.constant 0 : index
    %c0_4 = arith.constant 0 : index
    %4 = vector.load %arg2[%c0_3, %c0_4] : memref<576x64xbf16, #tpu.memory_space<vmem>>, vector<576x64xbf16>
    %cst = arith.constant dense<0.000000e+00> : vector<256x64xf32>
    %5 = tpu.matmul %3, %4, %cst {dimension_numbers = #tpu.dot_dimension_numbers<[1], [0], [0], [1], [0, 0, 1, 1], [], []>} : vector<256x576xbf16>, vector<576x64xbf16>, vector<256x64xf32> -> vector<256x64xf32>
    %c0_5 = arith.constant 0 : index
    %c0_6 = arith.constant 0 : index
    %6 = vector.load %arg3[%c0_5, %c0_6] : memref<1x64xf32, #tpu.memory_space<vmem>>, vector<1x64xf32>
    %7 = vector.broadcast %6 : vector<1x64xf32> to vector<256x64xf32>
    %8 = arith.addf %5, %7 : vector<256x64xf32>
    %cst_7 = arith.constant 0.000000e+00 : f32
    %9 = vector.broadcast %cst_7 : f32 to vector<256x64xf32>
    %10 = arith.maximumf %8, %9 : vector<256x64xf32>
    %11 = arith.truncf %10 : vector<256x64xf32> to vector<256x64xbf16>
    %c0_8 = arith.constant 0 : index
    %c0_9 = arith.constant 0 : index
    %12 = vector.load %arg4[%c0_8, %c0_9] : memref<256x64xbf16, #tpu.memory_space<vmem>>, vector<256x64xbf16>
    tpu.vector_store %arg4[%c0_8, %c0_9], %11 {strides = array<i32>} : memref<256x64xbf16, #tpu.memory_space<vmem>>, vector<256x64xbf16>,
    return
  }
  func.func @transform_0(%arg0: i32) -> (i32, i32) {
    %c0_i32 = arith.constant 0 : i32
    %c0_i32_0 = arith.constant 0 : i32
    return %arg0, %c0_i32 : i32, i32
  }
  func.func @transform_1(%arg0: i32) -> (i32, i32) {
    %c0_i32 = arith.constant 0 : i32
    %c0_i32_0 = arith.constant 0 : i32
    %c0_i32_1 = arith.constant 0 : i32
    return %c0_i32, %c0_i32_0 : i32, i32
  }
  func.func @transform_2(%arg0: i32) -> (i32, i32) {
    %c0_i32 = arith.constant 0 : i32
    %c0_i32_0 = arith.constant 0 : i32
    %c0_i32_1 = arith.constant 0 : i32
    return %c0_i32, %c0_i32_0 : i32, i32
  }
  func.func @transform_3(%arg0: i32) -> (i32, i32) {
    %c0_i32 = arith.constant 0 : i32
    %c0_i32_0 = arith.constant 0 : i32
    return %arg0, %c0_i32 : i32, i32
  }
}

module attributes {stable_mosaic.version = 11 : i64} {
  func.func @_conv_kernel(%arg0: i32, %arg1: memref<288x192xbf16, #tpu.memory_space<vmem>>, %arg2: memref<576x192xbf16, #tpu.memory_space<vmem>>, %arg3: memref<1x192xf32, #tpu.memory_space<vmem>>, %arg4: memref<256x192xf32, #tpu.memory_space<vmem>>) attributes {dimension_semantics = [#tpu.dimension_semantics<parallel>], iteration_bounds = array<i64: 2>, scalar_prefetch = 0 : i64, scratch_operands = 0 : i64, tpu.core_type = #tpu.core_type<tc>, window_params = [{transform_indices = @transform_0, window_bounds = array<i64: 288, 192>}, {pipeline_mode = #tpu.pipeline_mode<synchronous>, transform_indices = @transform_1, window_bounds = array<i64: 576, 192>}, {pipeline_mode = #tpu.pipeline_mode<synchronous>, transform_indices = @transform_2, window_bounds = array<i64: 1, 192>}, {transform_indices = @transform_3, window_bounds = array<i64: 256, 192>}]} {
    %c0 = arith.constant 0 : index
    %c0_0 = arith.constant 0 : index
    %0 = vector.load %arg1[%c0, %c0_0] : memref<288x192xbf16, #tpu.memory_space<vmem>>, vector<256x192xbf16>
    %c16 = arith.constant 16 : index
    %c0_1 = arith.constant 0 : index
    %1 = vector.load %arg1[%c16, %c0_1] : memref<288x192xbf16, #tpu.memory_space<vmem>>, vector<256x192xbf16>
    %c32 = arith.constant 32 : index
    %c0_2 = arith.constant 0 : index
    %2 = vector.load %arg1[%c32, %c0_2] : memref<288x192xbf16, #tpu.memory_space<vmem>>, vector<256x192xbf16>
    %3 = tpu.concatenate %0, %1, %2 in 1 : vector<256x192xbf16>, vector<256x192xbf16>, vector<256x192xbf16> -> vector<256x576xbf16>
    %c0_3 = arith.constant 0 : index
    %c0_4 = arith.constant 0 : index
    %4 = vector.load %arg2[%c0_3, %c0_4] : memref<576x192xbf16, #tpu.memory_space<vmem>>, vector<576x192xbf16>
    %cst = arith.constant dense<0.000000e+00> : vector<256x192xf32>
    %5 = tpu.matmul %3, %4, %cst {dimension_numbers = #tpu.dot_dimension_numbers<[1], [0], [0], [1], [0, 0, 1, 1], [], []>} : vector<256x576xbf16>, vector<576x192xbf16>, vector<256x192xf32> -> vector<256x192xf32>
    %c0_5 = arith.constant 0 : index
    %c0_6 = arith.constant 0 : index
    %6 = vector.load %arg3[%c0_5, %c0_6] : memref<1x192xf32, #tpu.memory_space<vmem>>, vector<1x192xf32>
    %7 = vector.broadcast %6 : vector<1x192xf32> to vector<256x192xf32>
    %8 = arith.addf %5, %7 : vector<256x192xf32>
    %c0_7 = arith.constant 0 : index
    %c0_8 = arith.constant 0 : index
    %9 = vector.load %arg4[%c0_7, %c0_8] : memref<256x192xf32, #tpu.memory_space<vmem>>, vector<256x192xf32>
    tpu.vector_store %arg4[%c0_7, %c0_8], %8 {strides = array<i32>} : memref<256x192xf32, #tpu.memory_space<vmem>>, vector<256x192xf32>,
    return
  }
  func.func @transform_0(%arg0: i32) -> (i32, i32) {
    %c0_i32 = arith.constant 0 : i32
    %c0_i32_0 = arith.constant 0 : i32
    return %arg0, %c0_i32 : i32, i32
  }
  func.func @transform_1(%arg0: i32) -> (i32, i32) {
    %c0_i32 = arith.constant 0 : i32
    %c0_i32_0 = arith.constant 0 : i32
    %c0_i32_1 = arith.constant 0 : i32
    return %c0_i32, %c0_i32_0 : i32, i32
  }
  func.func @transform_2(%arg0: i32) -> (i32, i32) {
    %c0_i32 = arith.constant 0 : i32
    %c0_i32_0 = arith.constant 0 : i32
    %c0_i32_1 = arith.constant 0 : i32
    return %c0_i32, %c0_i32_0 : i32, i32
  }
  func.func @transform_3(%arg0: i32) -> (i32, i32) {
    %c0_i32 = arith.constant 0 : i32
    %c0_i32_0 = arith.constant 0 : i32
    return %arg0, %c0_i32 : i32, i32
  }
}

module attributes {stable_mosaic.version = 11 : i64} {
  func.func @_gru_gates_kernel(%arg0: i32, %arg1: memref<288x192xbf16, #tpu.memory_space<vmem>>, %arg2: memref<576x128xbf16, #tpu.memory_space<vmem>>, %arg3: memref<256x192xf32, #tpu.memory_space<vmem>>, %arg4: memref<256x64xbf16, #tpu.memory_space<vmem>>, %arg5: memref<256x64xf32, #tpu.memory_space<vmem>>) attributes {dimension_semantics = [#tpu.dimension_semantics<parallel>], iteration_bounds = array<i64: 2>, scalar_prefetch = 0 : i64, scratch_operands = 0 : i64, tpu.core_type = #tpu.core_type<tc>, window_params = [{transform_indices = @transform_0, window_bounds = array<i64: 288, 192>}, {pipeline_mode = #tpu.pipeline_mode<synchronous>, transform_indices = @transform_1, window_bounds = array<i64: 576, 128>}, {transform_indices = @transform_2, window_bounds = array<i64: 256, 192>}, {transform_indices = @transform_3, window_bounds = array<i64: 256, 64>}, {transform_indices = @transform_4, window_bounds = array<i64: 256, 64>}]} {
    %c0 = arith.constant 0 : index
    %c0_0 = arith.constant 0 : index
    %0 = vector.load %arg1[%c0, %c0_0] : memref<288x192xbf16, #tpu.memory_space<vmem>>, vector<256x192xbf16>
    %c16 = arith.constant 16 : index
    %c0_1 = arith.constant 0 : index
    %1 = vector.load %arg1[%c16, %c0_1] : memref<288x192xbf16, #tpu.memory_space<vmem>>, vector<256x192xbf16>
    %c32 = arith.constant 32 : index
    %c0_2 = arith.constant 0 : index
    %2 = vector.load %arg1[%c32, %c0_2] : memref<288x192xbf16, #tpu.memory_space<vmem>>, vector<256x192xbf16>
    %3 = tpu.concatenate %0, %1, %2 in 1 : vector<256x192xbf16>, vector<256x192xbf16>, vector<256x192xbf16> -> vector<256x576xbf16>
    %c0_3 = arith.constant 0 : index
    %c0_4 = arith.constant 0 : index
    %4 = vector.load %arg2[%c0_3, %c0_4] : memref<576x128xbf16, #tpu.memory_space<vmem>>, vector<576x128xbf16>
    %cst = arith.constant dense<0.000000e+00> : vector<256x128xf32>
    %5 = tpu.matmul %3, %4, %cst {dimension_numbers = #tpu.dot_dimension_numbers<[1], [0], [0], [1], [0, 0, 1, 1], [], []>} : vector<256x576xbf16>, vector<576x128xbf16>, vector<256x128xf32> -> vector<256x128xf32>
    %c0_5 = arith.constant 0 : index
    %c0_6 = arith.constant 0 : index
    %6 = vector.load %arg3[%c0_5, %c0_6] : memref<256x192xf32, #tpu.memory_space<vmem>>, vector<256x192xf32>
    %7 = vector.extract_strided_slice %6 {offsets = [0, 0], sizes = [256, 64], strides = [1, 1]} : vector<256x192xf32> to vector<256x64xf32>
    %8 = vector.extract_strided_slice %5 {offsets = [0, 0], sizes = [256, 64], strides = [1, 1]} : vector<256x128xf32> to vector<256x64xf32>
    %9 = arith.addf %7, %8 : vector<256x64xf32>
    %10 = arith.negf %9 : vector<256x64xf32>
    %11 = math.exp %10 : vector<256x64xf32>
    %cst_7 = arith.constant 1.000000e+00 : f32
    %12 = vector.broadcast %cst_7 : f32 to vector<256x64xf32>
    %13 = arith.addf %12, %11 : vector<256x64xf32>
    %14 = arith.divf %12, %13 : vector<256x64xf32>
    %15 = vector.extract_strided_slice %6 {offsets = [0, 64], sizes = [256, 64], strides = [1, 1]} : vector<256x192xf32> to vector<256x64xf32>
    %16 = vector.extract_strided_slice %5 {offsets = [0, 64], sizes = [256, 64], strides = [1, 1]} : vector<256x128xf32> to vector<256x64xf32>
    %17 = arith.addf %15, %16 : vector<256x64xf32>
    %18 = arith.negf %17 : vector<256x64xf32>
    %19 = math.exp %18 : vector<256x64xf32>
    %cst_8 = arith.constant 1.000000e+00 : f32
    %20 = vector.broadcast %cst_8 : f32 to vector<256x64xf32>
    %21 = arith.addf %20, %19 : vector<256x64xf32>
    %22 = arith.divf %20, %21 : vector<256x64xf32>
    %23 = vector.extract_strided_slice %1 {offsets = [0, 64], sizes = [256, 64], strides = [1, 1]} : vector<256x192xbf16> to vector<256x64xbf16>
    %24 = arith.extf %23 : vector<256x64xbf16> to vector<256x64xf32>
    %25 = arith.mulf %14, %24 : vector<256x64xf32>
    %26 = arith.truncf %25 : vector<256x64xf32> to vector<256x64xbf16>
    %c0_9 = arith.constant 0 : index
    %c0_10 = arith.constant 0 : index
    %27 = vector.load %arg4[%c0_9, %c0_10] : memref<256x64xbf16, #tpu.memory_space<vmem>>, vector<256x64xbf16>
    tpu.vector_store %arg4[%c0_9, %c0_10], %26 {strides = array<i32>} : memref<256x64xbf16, #tpu.memory_space<vmem>>, vector<256x64xbf16>,
    %c0_11 = arith.constant 0 : index
    %c0_12 = arith.constant 0 : index
    %28 = vector.load %arg5[%c0_11, %c0_12] : memref<256x64xf32, #tpu.memory_space<vmem>>, vector<256x64xf32>
    tpu.vector_store %arg5[%c0_11, %c0_12], %22 {strides = array<i32>} : memref<256x64xf32, #tpu.memory_space<vmem>>, vector<256x64xf32>,
    return
  }
  func.func @transform_0(%arg0: i32) -> (i32, i32) {
    %c0_i32 = arith.constant 0 : i32
    %c0_i32_0 = arith.constant 0 : i32
    return %arg0, %c0_i32 : i32, i32
  }
  func.func @transform_1(%arg0: i32) -> (i32, i32) {
    %c0_i32 = arith.constant 0 : i32
    %c0_i32_0 = arith.constant 0 : i32
    %c0_i32_1 = arith.constant 0 : i32
    return %c0_i32, %c0_i32_0 : i32, i32
  }
  func.func @transform_2(%arg0: i32) -> (i32, i32) {
    %c0_i32 = arith.constant 0 : i32
    %c0_i32_0 = arith.constant 0 : i32
    return %arg0, %c0_i32 : i32, i32
  }
  func.func @transform_3(%arg0: i32) -> (i32, i32) {
    %c0_i32 = arith.constant 0 : i32
    %c0_i32_0 = arith.constant 0 : i32
    return %arg0, %c0_i32 : i32, i32
  }
  func.func @transform_4(%arg0: i32) -> (i32, i32) {
    %c0_i32 = arith.constant 0 : i32
    %c0_i32_0 = arith.constant 0 : i32
    return %arg0, %c0_i32 : i32, i32
  }
}

module attributes {stable_mosaic.version = 11 : i64} {
  func.func @_gru_out_kernel(%arg0: i32, %arg1: memref<288x192xbf16, #tpu.memory_space<vmem>>, %arg2: memref<576x64xbf16, #tpu.memory_space<vmem>>, %arg3: memref<256x192xf32, #tpu.memory_space<vmem>>, %arg4: memref<256x64xf32, #tpu.memory_space<vmem>>, %arg5: memref<256x64xbf16, #tpu.memory_space<vmem>>, %arg6: memref<256x64xf32, #tpu.memory_space<vmem>>) attributes {dimension_semantics = [#tpu.dimension_semantics<parallel>], iteration_bounds = array<i64: 2>, scalar_prefetch = 0 : i64, scratch_operands = 0 : i64, tpu.core_type = #tpu.core_type<tc>, window_params = [{transform_indices = @transform_0, window_bounds = array<i64: 288, 192>}, {pipeline_mode = #tpu.pipeline_mode<synchronous>, transform_indices = @transform_1, window_bounds = array<i64: 576, 64>}, {transform_indices = @transform_2, window_bounds = array<i64: 256, 192>}, {transform_indices = @transform_3, window_bounds = array<i64: 256, 64>}, {transform_indices = @transform_4, window_bounds = array<i64: 256, 64>}, {transform_indices = @transform_5, window_bounds = array<i64: 256, 64>}]} {
    %c0 = arith.constant 0 : index
    %c0_0 = arith.constant 0 : index
    %0 = vector.load %arg1[%c0, %c0_0] : memref<288x192xbf16, #tpu.memory_space<vmem>>, vector<256x192xbf16>
    %c16 = arith.constant 16 : index
    %c0_1 = arith.constant 0 : index
    %1 = vector.load %arg1[%c16, %c0_1] : memref<288x192xbf16, #tpu.memory_space<vmem>>, vector<256x192xbf16>
    %c32 = arith.constant 32 : index
    %c0_2 = arith.constant 0 : index
    %2 = vector.load %arg1[%c32, %c0_2] : memref<288x192xbf16, #tpu.memory_space<vmem>>, vector<256x192xbf16>
    %3 = tpu.concatenate %0, %1, %2 in 1 : vector<256x192xbf16>, vector<256x192xbf16>, vector<256x192xbf16> -> vector<256x576xbf16>
    %c0_3 = arith.constant 0 : index
    %c0_4 = arith.constant 0 : index
    %4 = vector.load %arg2[%c0_3, %c0_4] : memref<576x64xbf16, #tpu.memory_space<vmem>>, vector<576x64xbf16>
    %cst = arith.constant dense<0.000000e+00> : vector<256x64xf32>
    %5 = tpu.matmul %3, %4, %cst {dimension_numbers = #tpu.dot_dimension_numbers<[1], [0], [0], [1], [0, 0, 1, 1], [], []>} : vector<256x576xbf16>, vector<576x64xbf16>, vector<256x64xf32> -> vector<256x64xf32>
    %c0_5 = arith.constant 0 : index
    %c0_6 = arith.constant 0 : index
    %6 = vector.load %arg3[%c0_5, %c0_6] : memref<256x192xf32, #tpu.memory_space<vmem>>, vector<256x192xf32>
    %7 = vector.extract_strided_slice %6 {offsets = [0, 128], sizes = [256, 64], strides = [1, 1]} : vector<256x192xf32> to vector<256x64xf32>
    %8 = arith.addf %7, %5 : vector<256x64xf32>
    %9 = math.tanh %8 : vector<256x64xf32>
    %c0_7 = arith.constant 0 : index
    %c0_8 = arith.constant 0 : index
    %10 = vector.load %arg4[%c0_7, %c0_8] : memref<256x64xf32, #tpu.memory_space<vmem>>, vector<256x64xf32>
    %c0_9 = arith.constant 0 : index
    %c0_10 = arith.constant 0 : index
    %11 = vector.load %arg5[%c0_9, %c0_10] : memref<256x64xbf16, #tpu.memory_space<vmem>>, vector<256x64xbf16>
    %12 = arith.extf %11 : vector<256x64xbf16> to vector<256x64xf32>
    %13 = arith.mulf %10, %12 : vector<256x64xf32>
    %cst_11 = arith.constant 1.000000e+00 : f32
    %14 = vector.broadcast %cst_11 : f32 to vector<256x64xf32>
    %15 = arith.subf %14, %10 : vector<256x64xf32>
    %16 = arith.mulf %15, %9 : vector<256x64xf32>
    %17 = arith.addf %13, %16 : vector<256x64xf32>
    %c0_12 = arith.constant 0 : index
    %c0_13 = arith.constant 0 : index
    %18 = vector.load %arg6[%c0_12, %c0_13] : memref<256x64xf32, #tpu.memory_space<vmem>>, vector<256x64xf32>
    tpu.vector_store %arg6[%c0_12, %c0_13], %17 {strides = array<i32>} : memref<256x64xf32, #tpu.memory_space<vmem>>, vector<256x64xf32>,
    return
  }
  func.func @transform_0(%arg0: i32) -> (i32, i32) {
    %c0_i32 = arith.constant 0 : i32
    %c0_i32_0 = arith.constant 0 : i32
    return %arg0, %c0_i32 : i32, i32
  }
  func.func @transform_1(%arg0: i32) -> (i32, i32) {
    %c0_i32 = arith.constant 0 : i32
    %c0_i32_0 = arith.constant 0 : i32
    %c0_i32_1 = arith.constant 0 : i32
    return %c0_i32, %c0_i32_0 : i32, i32
  }
  func.func @transform_2(%arg0: i32) -> (i32, i32) {
    %c0_i32 = arith.constant 0 : i32
    %c0_i32_0 = arith.constant 0 : i32
    return %arg0, %c0_i32 : i32, i32
  }
  func.func @transform_3(%arg0: i32) -> (i32, i32) {
    %c0_i32 = arith.constant 0 : i32
    %c0_i32_0 = arith.constant 0 : i32
    return %arg0, %c0_i32 : i32, i32
  }
  func.func @transform_4(%arg0: i32) -> (i32, i32) {
    %c0_i32 = arith.constant 0 : i32
    %c0_i32_0 = arith.constant 0 : i32
    return %arg0, %c0_i32 : i32, i32
  }
  func.func @transform_5(%arg0: i32) -> (i32, i32) {
    %c0_i32 = arith.constant 0 : i32
    %c0_i32_0 = arith.constant 0 : i32
    return %arg0, %c0_i32 : i32, i32
  }
}

module attributes {stable_mosaic.version = 11 : i64} {
  func.func @_conv_kernel(%arg0: i32, %arg1: memref<288x192xbf16, #tpu.memory_space<vmem>>, %arg2: memref<576x9xbf16, #tpu.memory_space<vmem>>, %arg3: memref<1x9xf32, #tpu.memory_space<vmem>>, %arg4: memref<256x9xf32, #tpu.memory_space<vmem>>) attributes {dimension_semantics = [#tpu.dimension_semantics<parallel>], iteration_bounds = array<i64: 2>, scalar_prefetch = 0 : i64, scratch_operands = 0 : i64, tpu.core_type = #tpu.core_type<tc>, window_params = [{transform_indices = @transform_0, window_bounds = array<i64: 288, 192>}, {pipeline_mode = #tpu.pipeline_mode<synchronous>, transform_indices = @transform_1, window_bounds = array<i64: 576, 9>}, {pipeline_mode = #tpu.pipeline_mode<synchronous>, transform_indices = @transform_2, window_bounds = array<i64: 1, 9>}, {transform_indices = @transform_3, window_bounds = array<i64: 256, 9>}]} {
    %c0 = arith.constant 0 : index
    %c0_0 = arith.constant 0 : index
    %0 = vector.load %arg1[%c0, %c0_0] : memref<288x192xbf16, #tpu.memory_space<vmem>>, vector<256x192xbf16>
    %c16 = arith.constant 16 : index
    %c0_1 = arith.constant 0 : index
    %1 = vector.load %arg1[%c16, %c0_1] : memref<288x192xbf16, #tpu.memory_space<vmem>>, vector<256x192xbf16>
    %c32 = arith.constant 32 : index
    %c0_2 = arith.constant 0 : index
    %2 = vector.load %arg1[%c32, %c0_2] : memref<288x192xbf16, #tpu.memory_space<vmem>>, vector<256x192xbf16>
    %3 = tpu.concatenate %0, %1, %2 in 1 : vector<256x192xbf16>, vector<256x192xbf16>, vector<256x192xbf16> -> vector<256x576xbf16>
    %c0_3 = arith.constant 0 : index
    %c0_4 = arith.constant 0 : index
    %4 = vector.load %arg2[%c0_3, %c0_4] : memref<576x9xbf16, #tpu.memory_space<vmem>>, vector<576x9xbf16>
    %cst = arith.constant dense<0.000000e+00> : vector<256x9xf32>
    %5 = tpu.matmul %3, %4, %cst {dimension_numbers = #tpu.dot_dimension_numbers<[1], [0], [0], [1], [0, 0, 1, 1], [], []>} : vector<256x576xbf16>, vector<576x9xbf16>, vector<256x9xf32> -> vector<256x9xf32>
    %c0_5 = arith.constant 0 : index
    %c0_6 = arith.constant 0 : index
    %6 = vector.load %arg3[%c0_5, %c0_6] : memref<1x9xf32, #tpu.memory_space<vmem>>, vector<1x9xf32>
    %7 = vector.broadcast %6 : vector<1x9xf32> to vector<256x9xf32>
    %8 = arith.addf %5, %7 : vector<256x9xf32>
    %c0_7 = arith.constant 0 : index
    %c0_8 = arith.constant 0 : index
    %9 = vector.load %arg4[%c0_7, %c0_8] : memref<256x9xf32, #tpu.memory_space<vmem>>, vector<256x9xf32>
    tpu.vector_store %arg4[%c0_7, %c0_8], %8 {strides = array<i32>} : memref<256x9xf32, #tpu.memory_space<vmem>>, vector<256x9xf32>,
    return
  }
  func.func @transform_0(%arg0: i32) -> (i32, i32) {
    %c0_i32 = arith.constant 0 : i32
    %c0_i32_0 = arith.constant 0 : i32
    return %arg0, %c0_i32 : i32, i32
  }
  func.func @transform_1(%arg0: i32) -> (i32, i32) {
    %c0_i32 = arith.constant 0 : i32
    %c0_i32_0 = arith.constant 0 : i32
    %c0_i32_1 = arith.constant 0 : i32
    return %c0_i32, %c0_i32_0 : i32, i32
  }
  func.func @transform_2(%arg0: i32) -> (i32, i32) {
    %c0_i32 = arith.constant 0 : i32
    %c0_i32_0 = arith.constant 0 : i32
    %c0_i32_1 = arith.constant 0 : i32
    return %c0_i32, %c0_i32_0 : i32, i32
  }
  func.func @transform_3(%arg0: i32) -> (i32, i32) {
    %c0_i32 = arith.constant 0 : i32
    %c0_i32_0 = arith.constant 0 : i32
    return %arg0, %c0_i32 : i32, i32
  }
}

module attributes {stable_mosaic.version = 11 : i64} {
  func.func @_conv_kernel(%arg0: i32, %arg1: memref<288x192xbf16, #tpu.memory_space<vmem>>, %arg2: memref<576x1xbf16, #tpu.memory_space<vmem>>, %arg3: memref<1x1xf32, #tpu.memory_space<vmem>>, %arg4: memref<256x1xf32, #tpu.memory_space<vmem>>) attributes {dimension_semantics = [#tpu.dimension_semantics<parallel>], iteration_bounds = array<i64: 2>, scalar_prefetch = 0 : i64, scratch_operands = 0 : i64, tpu.core_type = #tpu.core_type<tc>, window_params = [{transform_indices = @transform_0, window_bounds = array<i64: 288, 192>}, {pipeline_mode = #tpu.pipeline_mode<synchronous>, transform_indices = @transform_1, window_bounds = array<i64: 576, 1>}, {pipeline_mode = #tpu.pipeline_mode<synchronous>, transform_indices = @transform_2, window_bounds = array<i64: 1, 1>}, {transform_indices = @transform_3, window_bounds = array<i64: 256, 1>}]} {
    %c0 = arith.constant 0 : index
    %c0_0 = arith.constant 0 : index
    %0 = vector.load %arg1[%c0, %c0_0] : memref<288x192xbf16, #tpu.memory_space<vmem>>, vector<256x192xbf16>
    %c16 = arith.constant 16 : index
    %c0_1 = arith.constant 0 : index
    %1 = vector.load %arg1[%c16, %c0_1] : memref<288x192xbf16, #tpu.memory_space<vmem>>, vector<256x192xbf16>
    %c32 = arith.constant 32 : index
    %c0_2 = arith.constant 0 : index
    %2 = vector.load %arg1[%c32, %c0_2] : memref<288x192xbf16, #tpu.memory_space<vmem>>, vector<256x192xbf16>
    %3 = tpu.concatenate %0, %1, %2 in 1 : vector<256x192xbf16>, vector<256x192xbf16>, vector<256x192xbf16> -> vector<256x576xbf16>
    %c0_3 = arith.constant 0 : index
    %c0_4 = arith.constant 0 : index
    %4 = vector.load %arg2[%c0_3, %c0_4] : memref<576x1xbf16, #tpu.memory_space<vmem>>, vector<576x1xbf16>
    %cst = arith.constant dense<0.000000e+00> : vector<256x1xf32>
    %5 = tpu.matmul %3, %4, %cst {dimension_numbers = #tpu.dot_dimension_numbers<[1], [0], [0], [1], [0, 0, 1, 1], [], []>} : vector<256x576xbf16>, vector<576x1xbf16>, vector<256x1xf32> -> vector<256x1xf32>
    %c0_5 = arith.constant 0 : index
    %c0_6 = arith.constant 0 : index
    %6 = vector.load %arg3[%c0_5, %c0_6] : memref<1x1xf32, #tpu.memory_space<vmem>>, vector<1x1xf32>
    %7 = vector.broadcast %6 : vector<1x1xf32> to vector<256x1xf32>
    %8 = arith.addf %5, %7 : vector<256x1xf32>
    %c0_7 = arith.constant 0 : index
    %c0_8 = arith.constant 0 : index
    %9 = vector.load %arg4[%c0_7, %c0_8] : memref<256x1xf32, #tpu.memory_space<vmem>>, vector<256x1xf32>
    tpu.vector_store %arg4[%c0_7, %c0_8], %8 {strides = array<i32>} : memref<256x1xf32, #tpu.memory_space<vmem>>, vector<256x1xf32>,
    return
  }
  func.func @transform_0(%arg0: i32) -> (i32, i32) {
    %c0_i32 = arith.constant 0 : i32
    %c0_i32_0 = arith.constant 0 : i32
    return %arg0, %c0_i32 : i32, i32
  }
  func.func @transform_1(%arg0: i32) -> (i32, i32) {
    %c0_i32 = arith.constant 0 : i32
    %c0_i32_0 = arith.constant 0 : i32
    %c0_i32_1 = arith.constant 0 : i32
    return %c0_i32, %c0_i32_0 : i32, i32
  }
  func.func @transform_2(%arg0: i32) -> (i32, i32) {
    %c0_i32 = arith.constant 0 : i32
    %c0_i32_0 = arith.constant 0 : i32
    %c0_i32_1 = arith.constant 0 : i32
    return %c0_i32, %c0_i32_0 : i32, i32
  }
  func.func @transform_3(%arg0: i32) -> (i32, i32) {
    %c0_i32 = arith.constant 0 : i32
    %c0_i32_0 = arith.constant 0 : i32
    return %arg0, %c0_i32 : i32, i32
  }
}

</mosaic_0001>

<bundles_post_ra>
// kernel: myfcn_forward.13
= control target key start
LH: loop header
LB: loop body
LE: loop exit
PB: predicated region body
PF: predicated region fallthrough
CT: control target
= control target key end

     0   :  { %s1189_s12 = smov 0   ;;  %s1497_s0 = inlined_call_operand.vmem [shape: bf16[576,24], index: 0, kind: input, shape index: {}]   ;;  %s1498_s1 = inlined_call_operand.vmem [shape: bf16[72,64], index: 1, kind: input, shape index: {}]   ;;  %s1499_s2 = inlined_call_operand.vmem [shape: f32[1,64], index: 2, kind: input, shape index: {}]   ;;  %s1500_s3 = inlined_call_operand.vmem [shape: bf16[512,64], index: 3, kind: output, shape index: {}]  }
   0x1 LB: > { %s937_s13 = sadd.s32 4294967295, %s1165_s12   ;;  %p941_p0 = scmp.ge.s32.totalorder %s1165_s12, 1  ;;  %s1165_s12 = sphi %s1189_s12, %s13_s12  }
   0x2   : > { %p138_p1 = scmp.lt.s32.totalorder %s1165_s12, 3 }
   0x4   : > { %p139_p2 = pnand %p941_p0, %p138_p1 }
   0x5   : > { %s162_s14 = smul.u32 (!%p139_p2), 36, %s937_s13  ;;  %v1153_v0 = vld [vmem:[%s1498_s1] sm:$0xff] (!%p139_p2)   ;;  %v1154_v1 = vld [vmem:[%s1498_s1 + $0x8] sm:$0xff] (!%p139_p2)   ;;  %v1156_v2 = vld [vmem:[%s1498_s1 + $0x10] sm:$0xff] (!%p139_p2)   ;;  %s1167_s27 = smov (!%p139_p2), 24   ;;  %vm523_vm0 = vcmask (!%p139_p2), 1043456  }
   0x6   : > { %142 = sbr.rel (%p139_p2) target bundleno = 415 (0x19f), region = 32  ;;  %1072 = vmatprep.subr.bf16.mxu0 (!%p139_p2), %v1153_v0  ;;  %1114 = vmatprep.subr.bf16.mxu1 (!%p139_p2), %v1153_v0  ;;  %v1157_v3 = vld [vmem:[%s1498_s1 + $0x18] sm:$0xff] (!%p139_p2)   ;;  %v1158_v8 = vld [vmem:[%s1498_s1 + $0x20] ss:$0 sps:$4 sm:$0xff] (!%p139_p2)   ;;  %s1168_s30 = smov (!%p139_p2), 48   ;;  %vm365_vm1 = vcmask (!%p139_p2), 195584  }
   0x7   : > { %p163_p3 = scmp.lt.s32.totalorder (!%p139_p2), %s162_s14, 71  ;;  %1073 = vmatpush3.bf16.msra.mxu0 (!%p139_p2), %v1153_v0  ;;  %1119 = vmatpush3.bf16.msra.mxu1 (!%p139_p2), %v1153_v0  ;;  %v525_v9 = vsel (!%p139_p2), %vm523_vm0, %v1158_v8, 0  ;;  %vm414_vm2 = vcmask (!%p139_p2), 392192   ;;  %vm490_vm3 = vcmask (!%p139_p2), 588800   ;;  %s943_s4 = sshll.u32 (!%p139_p2), %s937_s13, 5  ;;  %vm848_vm4 = vcmask (!%p139_p2), 519168  }
   0x8   : > { %1074 = vmatprep.subr.bf16.mxu0 (!%p139_p2), %v1154_v1  ;;  %1115 = vmatprep.subr.bf16.mxu1 (!%p139_p2), %v1154_v1  ;;  %p169_p4 = scmp.lt.s32.totalorder (!%p139_p2), %s943_s4, 63 }
   0xb   : > { %1075 = vmatpush3.bf16.msra.mxu0 (!%p139_p2), %v1154_v1  ;;  %1120 = vmatpush3.bf16.msra.mxu1 (!%p139_p2), %v1154_v1 }
   0xc   : > { %1076 = vmatprep.subr.bf16.mxu0 (!%p139_p2), %v1156_v2  ;;  %1116 = vmatprep.subr.bf16.mxu1 (!%p139_p2), %v1156_v2 }
   0xd   : > { %s1502_s14 = smov (!%p163_p3, %s162_s14), 71  ;;  %s1504_s4 = smov (!%p169_p4, %s943_s4), 63 }
   0xe   : > { %s942_s21 = sshll.u32 %s1502_s14, 2  ;;  %s944_s7 = sshll.u32 %s1504_s4, 2 }
   0xf   : > { %s1211_s24 = scalar_lea.vmem %s1497_s0, %s942_s21  ;;  %1077 = vmatpush3.bf16.msra.mxu0 %v1156_v2  ;;  %1121 = vmatpush3.bf16.msra.mxu1 %v1156_v2  ;;  %s1401_s10 = scalar_lea.vmem %s1500_s3, %s944_s7 }
  0x10   : > { %v1217_v4 = vld [vmem:[%s1211_s24 + $0x10] sm:$0xff]   ;;  %v1220_v5 = vld [vmem:[%s1211_s24 + $0x8] sm:$0xff]   ;;  %1078 = vmatprep.subr.bf16.mxu0 %v1157_v3  ;;  %1117 = vmatprep.subr.bf16.mxu1 %v1157_v3  ;;  %v1242_v10 = vld [vmem:[%s1211_s24 + $0x58] sm:$0xff]  }
  0x11   : > { %298 = vrot.lane.b32.xlu1 %v1217_v4, %s1167_s27  ;;  %v1225_v6 = vld [vmem:[%s1211_s24 + $0x50] sm:$0xff]   ;;  %296 = vrot.lane.b32.xlu0 %v1220_v5, %s1167_s27  ;;  %v1230_v7 = vld [vmem:[%s1211_s24 + $0x48] sm:$0xff]  }
  0x12   : > { %v1247_v11 = vld [vmem:[%s1211_s24 + $0x18] sm:$0xff]   ;;  %v1256_v12 = vld [vmem:[%s1211_s24 + $0x60] sm:$0xff]   ;;  %v1270_v14 = vld [vmem:[%s1211_s24 + $0x68] sm:$0xff]  }
  0x13   : > { %1079 = vmatpush3.bf16.msra.mxu0 %v1157_v3  ;;  %1122 = vmatpush3.bf16.msra.mxu1 %v1157_v3  ;;  %v1261_v13 = vld [vmem:[%s1211_s24 + $0x20] sm:$0xff]   ;;  %v1275_v15 = vld [vmem:[%s1211_s24 + $0x28] sm:$0xff]   ;;  %v1284_v16 = vld [vmem:[%s1211_s24 + $0x70] sm:$0xff]  }
  0x14   : > { %1124 = vmatprep.subr.msk.bf16.mxu0 %vm523_vm0, %v1158_v8  ;;  %1125 = vmatprep.subr.msk.bf16.mxu1 %vm523_vm0, %v1158_v8  ;;  %v1289_v17 = vld [vmem:[%s1211_s24 + $0x30] sm:$0xff]   ;;  %v1298_v18 = vld [vmem:[%s1211_s24 + $0x78] sm:$0xff]   ;;  %v1150_v20 = vld [vmem:[%s1211_s24 + $0x80] sm:$0xff]  }
  0x15   : > { %314 = vrot.lane.b32.xlu1 %v1225_v6, %s1167_s27  ;;  %312 = vrot.lane.b32.xlu0 %v1230_v7, %s1167_s27  ;;  %v1303_v19 = vld [vmem:[%s1211_s24 + $0x38] sm:$0xff]   ;;  %v1151_v21 = vld [vmem:[%s1211_s24 + $0x40] sm:$0xff]  }
  0x16   : > { %v1152_v22 = vld [vmem:[%s1211_s24 + $0x88] sm:$0xff]   ;;  %v1155_v26 = vld [vmem:[%s1211_s24] sm:$0xff]  }
  0x17   : > { %1081 = vmatpush3.bf16.msra.mxu0 %v525_v9  ;;  %1123 = vmatpush3.bf16.msra.mxu1 %v525_v9 }
  0x19   : > { %349 = vrot.lane.b32.xlu1 %v1225_v6, %s1168_s30  ;;  %333 = vrot.lane.b32.xlu0 %v1217_v4, %s1168_s30 }
  0x1d   : > { %351 = vrot.lane.b32.xlu1 %v1242_v10, %s1168_s30  ;;  %335 = vrot.lane.b32.xlu0 %v1247_v11, %s1168_s30 }
  0x21   : > { %316 = vrot.lane.b32.xlu1 %v1242_v10, %s1167_s27  ;;  %300 = vrot.lane.b32.xlu0 %v1247_v11, %s1167_s27 }
  0x25   : > { %318 = vrot.lane.b32.xlu1 %v1256_v12, %s1167_s27  ;;  %302 = vrot.lane.b32.xlu0 %v1261_v13, %s1167_s27 }
  0x29   : > { %353 = vrot.lane.b32.xlu1 %v1256_v12, %s1168_s30  ;;  %337 = vrot.lane.b32.xlu0 %v1261_v13, %s1168_s30 }
  0x2d   : > { %355 = vrot.lane.b32.xlu1 %v1270_v14, %s1168_s30  ;;  %339 = vrot.lane.b32.xlu0 %v1275_v15, %s1168_s30 }
  0x31   : > { %320 = vrot.lane.b32.xlu1 %v1270_v14, %s1167_s27  ;;  %304 = vrot.lane.b32.xlu0 %v1275_v15, %s1167_s27 }
  0x35   : > { %322 = vrot.lane.b32.xlu1 %v1284_v16, %s1167_s27  ;;  %306 = vrot.lane.b32.xlu0 %v1289_v17, %s1167_s27 }
  0x39   : > { %357 = vrot.lane.b32.xlu1 %v1284_v16, %s1168_s30  ;;  %341 = vrot.lane.b32.xlu0 %v1289_v17, %s1168_s30 }
  0x3d   : > { %359 = vrot.lane.b32.xlu1 %v1298_v18, %s1168_s30  ;;  %343 = vrot.lane.b32.xlu0 %v1303_v19, %s1168_s30 }
  0x41   : > { %324 = vrot.lane.b32.xlu1 %v1298_v18, %s1167_s27  ;;  %308 = vrot.lane.b32.xlu0 %v1303_v19, %s1167_s27 }
  0x45   : > { %326 = vrot.lane.b32.xlu1 %v1150_v20, %s1167_s27  ;;  %310 = vrot.lane.b32.xlu0 %v1151_v21, %s1167_s27 }
  0x49   : > { %361 = vrot.lane.b32.xlu1 %v1150_v20, %s1168_s30  ;;  %345 = vrot.lane.b32.xlu0 %v1151_v21, %s1168_s30 }
  0x4d   : > { %363 = vrot.lane.b32.xlu1 %v1152_v22, %s1168_s30  ;;  %347 = vrot.lane.b32.xlu0 %v1230_v7, %s1168_s30 }
  0x83   : > { %v299_v23 = vpop.permute.xlu1 %298  ;;  %v297_v24 = vpop.permute.xlu0 %296 }
  0x84   : > { %v368_v30 = vsel %vm365_vm1, %v1155_v26, %v297_v24  ;;  %v371_v36 = vsel %vm365_vm1, %v1220_v5, %v299_v23 }
  0x87   : > { %v315_v25 = vpop.permute.xlu1 %314  ;;  %v313_v27 = vpop.permute.xlu0 %312 }
  0x88   : > { %v392_v28 = vsel %vm365_vm1, %v1151_v21, %v313_v27  ;;  %v395_v34 = vsel %vm365_vm1, %v1230_v7, %v315_v25 }
  0x8b   : > { %v350_v29 = vpop.permute.xlu1 %349  ;;  %v334_v31 = vpop.permute.xlu0 %333 }
  0x8c   : > { %v432_v32 = vsel %vm414_vm2, %v392_v28, %v350_v29  ;;  %v416_v33 = vsel %vm414_vm2, %v368_v30, %v334_v31 }
  0x8d   : > { %1098 = vmatprep.mubr.msk.bf16.mxu1 %vm490_vm3, %v432_v32  ;;  %1082 = vmatprep.mubr.msk.bf16.mxu0 %vm490_vm3, %v416_v33 }
  0x8f   : > { %v352_v35 = vpop.permute.xlu1 %351  ;;  %v336_v38 = vpop.permute.xlu0 %335 }
  0x90   : > { %v434_v37 = vsel %vm414_vm2, %v395_v34, %v352_v35  ;;  %v418_v39 = vsel %vm414_vm2, %v371_v36, %v336_v38 }
  0x91   : > { %1099 = vmatmul.mubr.msk.bf16.vlgmr.msra.gmra.mrb[0].mxu1 %vm490_vm3, %v434_v37  ;;  %1083 = vmatmul.mubr.msk.bf16.vlgmr.msra.gmra.mrb[0].mxu0 %vm490_vm3, %v418_v39 }
  0x93   : > { %v317_v40 = vpop.permute.xlu1 %316  ;;  %v301_v41 = vpop.permute.xlu0 %300 }
  0x94   : > { %v398_v44 = vsel %vm365_vm1, %v1225_v6, %v317_v40  ;;  %v374_v46 = vsel %vm365_vm1, %v1217_v4, %v301_v41 }
  0x97   : > { %v319_v42 = vpop.permute.xlu1 %318  ;;  %v303_v43 = vpop.permute.xlu0 %302 }
  0x98   : > { %v401_v50 = vsel %vm365_vm1, %v1242_v10, %v319_v42  ;;  %v377_v52 = vsel %vm365_vm1, %v1247_v11, %v303_v43 }
  0x9b   : > { %v354_v45 = vpop.permute.xlu1 %353  ;;  %v338_v48 = vpop.permute.xlu0 %337 }
  0x9c   : > { %v436_v47 = vsel %vm414_vm2, %v398_v44, %v354_v45  ;;  %v420_v49 = vsel %vm414_vm2, %v374_v46, %v338_v48 }
  0x9d   : > { %1102 = vmatprep.mubr.msk.bf16.mxu1 %vm490_vm3, %v436_v47  ;;  %1086 = vmatprep.mubr.msk.bf16.mxu0 %vm490_vm3, %v420_v49 }
  0x9f   : > { %v356_v51 = vpop.permute.xlu1 %355  ;;  %v340_v54 = vpop.permute.xlu0 %339 }
  0xa0   : > { %v438_v53 = vsel %vm414_vm2, %v401_v50, %v356_v51  ;;  %v422_v55 = vsel %vm414_vm2, %v377_v52, %v340_v54 }
  0xa1   : > { %1103 = vmatmul.mubr.msk.bf16.gmra.mrb[4].mxu1 %vm490_vm3, %v438_v53  ;;  %1087 = vmatmul.mubr.msk.bf16.gmra.mrb[4].mxu0 %vm490_vm3, %v422_v55 }
  0xa3   : > { %v321_v56 = vpop.permute.xlu1 %320  ;;  %v305_v57 = vpop.permute.xlu0 %304 }
  0xa4   : > { %v404_v60 = vsel %vm365_vm1, %v1256_v12, %v321_v56  ;;  %v380_v62 = vsel %vm365_vm1, %v1261_v13, %v305_v57 }
  0xa7   : > { %v323_v58 = vpop.permute.xlu1 %322  ;;  %v307_v59 = vpop.permute.xlu0 %306 }
  0xa8   : > { %v407_v2 = vsel %vm365_vm1, %v1270_v14, %v323_v58  ;;  %v383_v4 = vsel %vm365_vm1, %v1275_v15, %v307_v59 }
  0xab   : > { %v358_v61 = vpop.permute.xlu1 %357  ;;  %v342_v0 = vpop.permute.xlu0 %341 }
  0xac   : > { %v440_v63 = vsel %vm414_vm2, %v404_v60, %v358_v61  ;;  %v424_v1 = vsel %vm414_vm2, %v380_v62, %v342_v0 }
  0xad   : > { %1106 = vmatprep.mubr.msk.bf16.mxu1 %vm490_vm3, %v440_v63  ;;  %1090 = vmatprep.mubr.msk.bf16.mxu0 %vm490_vm3, %v424_v1 }
  0xaf   : > { %v360_v3 = vpop.permute.xlu1 %359  ;;  %v344_v6 = vpop.permute.xlu0 %343 }
  0xb0   : > { %v442_v5 = vsel %vm414_vm2, %v407_v2, %v360_v3  ;;  %v426_v7 = vsel %vm414_vm2, %v383_v4, %v344_v6 }
  0xb1   : > { %1107 = vmatmul.mubr.msk.bf16.gmra.mrb[8].mxu1 %vm490_vm3, %v442_v5  ;;  %1091 = vmatmul.mubr.msk.bf16.gmra.mrb[8].mxu0 %vm490_vm3, %v426_v7 }
  0xb3   : > { %v325_v8 = vpop.permute.xlu1 %324  ;;  %v309_v9 = vpop.permute.xlu0 %308 }
  0xb4   : > { %v410_v12 = vsel %vm365_vm1, %v1284_v16, %v325_v8  ;;  %v386_v14 = vsel %vm365_vm1, %v1289_v17, %v309_v9 }
  0xb7   : > { %v327_v10 = vpop.permute.xlu1 %326  ;;  %v311_v11 = vpop.permute.xlu0 %310 }
  0xb8   : > { %v413_v22 = vsel %vm365_vm1, %v1298_v18, %v327_v10  ;;  %v389_v16 = vsel %vm365_vm1, %v1303_v19, %v311_v11  ;;  %v1391_v18 = vld [vmem:[%s1499_s2] ss:$0 sm:$0xff] }
  0xbb   : > { %v362_v13 = vpop.permute.xlu1 %361  ;;  %v346_v20 = vpop.permute.xlu0 %345 }
  0xbc   : > { %v444_v15 = vsel %vm414_vm2, %v410_v12, %v362_v13  ;;  %v428_v21 = vsel %vm414_vm2, %v386_v14, %v346_v20 }
  0xbd   : > { %1110 = vmatprep.mubr.msk.bf16.mxu1 %vm490_vm3, %v444_v15  ;;  %1094 = vmatprep.mubr.msk.bf16.mxu0 %vm490_vm3, %v428_v21 }
  0xbf   : > { %v364_v23 = vpop.permute.xlu1 %363  ;;  %v348_v25 = vpop.permute.xlu0 %347 }
  0xc0   : > { %v446_v24 = vsel %vm414_vm2, %v413_v22, %v364_v23  ;;  %v430_v17 = vsel %vm414_vm2, %v389_v16, %v348_v25 }
  0xc1   : > { %1111 = vmatmul.mubr.msk.bf16.gmra.mrb[12].mxu1 %vm490_vm3, %v446_v24  ;;  %1095 = vmatmul.mubr.msk.bf16.gmra.mrb[12].mxu0 %vm490_vm3, %v430_v17 }
 0x164   : > { %v1100_v26 = vpop.f32.mrb[0].mxu1  ;;  %v1084_v19 = vpop.f32.mrb[0].mxu0 }
 0x165   : > { %v634_v27 = vadd.f32 %v1100_v26, %v1391_v18  ;;  %v625_v28 = vpop.f32.mrb[1].mxu1  ;;  %v570_v29 = vadd.f32 %v1084_v19, %v1391_v18  ;;  %v561_v30 = vpop.f32.mrb[1].mxu0 }
 0x166   : > { %v626_v31 = vadd.f32 %v1391_v18, %v625_v28  ;;  %v1101_v32 = vpop.f32.mrb[2].mxu1  ;;  %v562_v34 = vadd.f32 %v1391_v18, %v561_v30  ;;  %v1085_v35 = vpop.f32.mrb[2].mxu0 }
 0x167   : > { %v706_v33 = vmax.f32 %v634_v27, 0.0  ;;  %v637_v36 = vadd.f32 %v1101_v32, %v1391_v18  ;;  %v628_v37 = vpop.f32.mrb[3].mxu1  ;;  %v690_v38 = vmax.f32 %v570_v29, 0.0  ;;  %v573_v40 = vadd.f32 %v1085_v35, %v1391_v18  ;;  %v564_v41 = vpop.f32.mrb[3].mxu0 }
 0x168   : > { %v704_v39 = vmax.f32 %v626_v31, 0.0  ;;  %v629_v42 = vadd.f32 %v1391_v18, %v628_v37  ;;  %v688_v44 = vmax.f32 %v562_v34, 0.0  ;;  %v565_v46 = vadd.f32 %v1391_v18, %v564_v41 }
 0x169   : > { %v1037_v43 = vpack.c.bf16 %v706_v33, %v706_v33  ;;  %v707_v45 = vmax.f32 %v637_v36, 0.0  ;;  %v1021_v47 = vpack.c.bf16 %v690_v38, %v690_v38  ;;  %v691_v49 = vmax.f32 %v573_v40, 0.0 }
 0x16a   : > { %v1035_v48 = vpack.c.bf16 %v704_v39, %v704_v39  ;;  %v705_v50 = vmax.f32 %v629_v42, 0.0  ;;  %v1019_v51 = vpack.c.bf16 %v688_v44, %v688_v44  ;;  %v689_v53 = vmax.f32 %v565_v46, 0.0 }
 0x16b   : > { %867 = vst.msk [vmem:[%s1401_s10 + $0x48] sm:$0xf] %vm848_vm4, %v1037_v43  ;;  %v1038_v52 = vpack.c.bf16 %v707_v45, %v707_v45  ;;  %851 = vst.msk [vmem:[%s1401_s10 + $0x8] sm:$0xf] %vm848_vm4, %v1021_v47  ;;  %v1022_v54 = vpack.c.bf16 %v691_v49, %v691_v49 }
 0x16c   : > { %865 = vst.msk [vmem:[%s1401_s10 + $0x40] sm:$0xf] %vm848_vm4, %v1035_v48  ;;  %v1036_v55 = vpack.c.bf16 %v705_v50, %v705_v50  ;;  %849 = vst.msk [vmem:[%s1401_s10] sm:$0xf] %vm848_vm4, %v1019_v51  ;;  %v1020_v56 = vpack.c.bf16 %v689_v53, %v689_v53 }
 0x16d   : > { %868 = vst.msk [vmem:[%s1401_s10 + $0x4c] sm:$0xf] %vm848_vm4, %v1038_v52  ;;  %852 = vst.msk [vmem:[%s1401_s10 + $0xc] sm:$0xf] %vm848_vm4, %v1022_v54 }
 0x16e   : > { %866 = vst.msk [vmem:[%s1401_s10 + $0x44] sm:$0xf] %vm848_vm4, %v1036_v55  ;;  %850 = vst.msk [vmem:[%s1401_s10 + $0x4] sm:$0xf] %vm848_vm4, %v1020_v56 }
 0x174   : > { %v1104_v57 = vpop.f32.mrb[4].mxu1  ;;  %v1088_v58 = vpop.f32.mrb[4].mxu0 }
 0x175   : > { %v650_v59 = vadd.f32 %v1104_v57, %v1391_v18  ;;  %v641_v60 = vpop.f32.mrb[5].mxu1  ;;  %v586_v61 = vadd.f32 %v1088_v58, %v1391_v18  ;;  %v577_v62 = vpop.f32.mrb[5].mxu0 }
 0x176   : > { %v642_v63 = vadd.f32 %v1391_v18, %v641_v60  ;;  %v1105_v0 = vpop.f32.mrb[6].mxu1  ;;  %v578_v2 = vadd.f32 %v1391_v18, %v577_v62  ;;  %v1089_v3 = vpop.f32.mrb[6].mxu0 }
 0x177   : > { %v710_v1 = vmax.f32 %v650_v59, 0.0  ;;  %v653_v4 = vadd.f32 %v1105_v0, %v1391_v18  ;;  %v644_v5 = vpop.f32.mrb[7].mxu1  ;;  %v694_v6 = vmax.f32 %v586_v61, 0.0  ;;  %v589_v8 = vadd.f32 %v1089_v3, %v1391_v18  ;;  %v580_v9 = vpop.f32.mrb[7].mxu0 }
 0x178   : > { %v708_v7 = vmax.f32 %v642_v63, 0.0  ;;  %v645_v10 = vadd.f32 %v1391_v18, %v644_v5  ;;  %v692_v12 = vmax.f32 %v578_v2, 0.0  ;;  %v581_v14 = vadd.f32 %v1391_v18, %v580_v9 }
 0x179   : > { %v1041_v11 = vpack.c.bf16 %v710_v1, %v710_v1  ;;  %v711_v13 = vmax.f32 %v653_v4, 0.0  ;;  %v1025_v15 = vpack.c.bf16 %v694_v6, %v694_v6  ;;  %v695_v21 = vmax.f32 %v589_v8, 0.0 }
 0x17a   : > { %v1039_v20 = vpack.c.bf16 %v708_v7, %v708_v7  ;;  %v709_v22 = vmax.f32 %v645_v10, 0.0  ;;  %v1023_v23 = vpack.c.bf16 %v692_v12, %v692_v12  ;;  %v693_v24 = vmax.f32 %v581_v14, 0.0 }
 0x17b   : > { %871 = vst.msk [vmem:[%s1401_s10 + $0x58] sm:$0xf] %vm848_vm4, %v1041_v11  ;;  %v1042_v16 = vpack.c.bf16 %v711_v13, %v711_v13  ;;  %855 = vst.msk [vmem:[%s1401_s10 + $0x18] sm:$0xf] %vm848_vm4, %v1025_v15  ;;  %v1026_v25 = vpack.c.bf16 %v695_v21, %v695_v21 }
 0x17c   : > { %869 = vst.msk [vmem:[%s1401_s10 + $0x50] sm:$0xf] %vm848_vm4, %v1039_v20  ;;  %v1040_v17 = vpack.c.bf16 %v709_v22, %v709_v22  ;;  %853 = vst.msk [vmem:[%s1401_s10 + $0x10] sm:$0xf] %vm848_vm4, %v1023_v23  ;;  %v1024_v26 = vpack.c.bf16 %v693_v24, %v693_v24 }
 0x17d   : > { %872 = vst.msk [vmem:[%s1401_s10 + $0x5c] sm:$0xf] %vm848_vm4, %v1042_v16  ;;  %856 = vst.msk [vmem:[%s1401_s10 + $0x1c] sm:$0xf] %vm848_vm4, %v1026_v25 }
 0x17e   : > { %870 = vst.msk [vmem:[%s1401_s10 + $0x54] sm:$0xf] %vm848_vm4, %v1040_v17  ;;  %854 = vst.msk [vmem:[%s1401_s10 + $0x14] sm:$0xf] %vm848_vm4, %v1024_v26 }
 0x184   : > { %v1108_v19 = vpop.f32.mrb[8].mxu1  ;;  %v1092_v27 = vpop.f32.mrb[8].mxu0 }
 0x185   : > { %v666_v28 = vadd.f32 %v1108_v19, %v1391_v18  ;;  %v657_v29 = vpop.f32.mrb[9].mxu1  ;;  %v602_v30 = vadd.f32 %v1092_v27, %v1391_v18  ;;  %v593_v31 = vpop.f32.mrb[9].mxu0 }
 0x186   : > { %v658_v32 = vadd.f32 %v1391_v18, %v657_v29  ;;  %v1109_v33 = vpop.f32.mrb[10].mxu1  ;;  %v594_v35 = vadd.f32 %v1391_v18, %v593_v31  ;;  %v1093_v36 = vpop.f32.mrb[10].mxu0 }
 0x187   : > { %v714_v34 = vmax.f32 %v666_v28, 0.0  ;;  %v669_v37 = vadd.f32 %v1109_v33, %v1391_v18  ;;  %v660_v38 = vpop.f32.mrb[11].mxu1  ;;  %v698_v39 = vmax.f32 %v602_v30, 0.0  ;;  %v605_v41 = vadd.f32 %v1093_v36, %v1391_v18  ;;  %v596_v42 = vpop.f32.mrb[11].mxu0 }
 0x188   : > { %v712_v40 = vmax.f32 %v658_v32, 0.0  ;;  %v661_v43 = vadd.f32 %v1391_v18, %v660_v38  ;;  %v696_v45 = vmax.f32 %v594_v35, 0.0  ;;  %v597_v47 = vadd.f32 %v1391_v18, %v596_v42 }
 0x189   : > { %v1045_v44 = vpack.c.bf16 %v714_v34, %v714_v34  ;;  %v715_v46 = vmax.f32 %v669_v37, 0.0  ;;  %v1029_v48 = vpack.c.bf16 %v698_v39, %v698_v39  ;;  %v699_v50 = vmax.f32 %v605_v41, 0.0 }
 0x18a   : > { %v1043_v49 = vpack.c.bf16 %v712_v40, %v712_v40  ;;  %v713_v51 = vmax.f32 %v661_v43, 0.0  ;;  %v1027_v52 = vpack.c.bf16 %v696_v45, %v696_v45  ;;  %v697_v54 = vmax.f32 %v597_v47, 0.0 }
 0x18b   : > { %875 = vst.msk [vmem:[%s1401_s10 + $0x68] sm:$0xf] %vm848_vm4, %v1045_v44  ;;  %v1046_v53 = vpack.c.bf16 %v715_v46, %v715_v46  ;;  %859 = vst.msk [vmem:[%s1401_s10 + $0x28] sm:$0xf] %vm848_vm4, %v1029_v48  ;;  %v1030_v55 = vpack.c.bf16 %v699_v50, %v699_v50 }
 0x18c   : > { %873 = vst.msk [vmem:[%s1401_s10 + $0x60] sm:$0xf] %vm848_vm4, %v1043_v49  ;;  %v1044_v56 = vpack.c.bf16 %v713_v51, %v713_v51  ;;  %857 = vst.msk [vmem:[%s1401_s10 + $0x20] sm:$0xf] %vm848_vm4, %v1027_v52  ;;  %v1028_v57 = vpack.c.bf16 %v697_v54, %v697_v54 }
 0x18d   : > { %876 = vst.msk [vmem:[%s1401_s10 + $0x6c] sm:$0xf] %vm848_vm4, %v1046_v53  ;;  %860 = vst.msk [vmem:[%s1401_s10 + $0x2c] sm:$0xf] %vm848_vm4, %v1030_v55 }
 0x18e   : > { %874 = vst.msk [vmem:[%s1401_s10 + $0x64] sm:$0xf] %vm848_vm4, %v1044_v56  ;;  %858 = vst.msk [vmem:[%s1401_s10 + $0x24] sm:$0xf] %vm848_vm4, %v1028_v57 }
 0x194   : > { %v1112_v58 = vpop.f32.mrb[12].mxu1  ;;  %v1096_v59 = vpop.f32.mrb[12].mxu0 }
 0x195   : > { %v682_v60 = vadd.f32 %v1112_v58, %v1391_v18  ;;  %v673_v61 = vpop.f32.mrb[13].mxu1  ;;  %v618_v62 = vadd.f32 %v1096_v59, %v1391_v18  ;;  %v609_v63 = vpop.f32.mrb[13].mxu0 }
 0x196   : > { %v674_v0 = vadd.f32 %v1391_v18, %v673_v61  ;;  %v1113_v1 = vpop.f32.mrb[14].mxu1  ;;  %v610_v3 = vadd.f32 %v1391_v18, %v609_v63  ;;  %v1097_v4 = vpop.f32.mrb[14].mxu0 }
 0x197   : > { %v718_v2 = vmax.f32 %v682_v60, 0.0  ;;  %v685_v5 = vadd.f32 %v1113_v1, %v1391_v18  ;;  %v676_v6 = vpop.f32.mrb[15].mxu1  ;;  %v702_v7 = vmax.f32 %v618_v62, 0.0  ;;  %v621_v9 = vadd.f32 %v1097_v4, %v1391_v18  ;;  %v612_v10 = vpop.f32.mrb[15].mxu0 }
 0x198   : > { %v716_v8 = vmax.f32 %v674_v0, 0.0  ;;  %v677_v11 = vadd.f32 %v1391_v18, %v676_v6  ;;  %v700_v13 = vmax.f32 %v610_v3, 0.0  ;;  %v613_v15 = vadd.f32 %v1391_v18, %v612_v10 }
 0x199   : > { %v1049_v12 = vpack.c.bf16 %v718_v2, %v718_v2  ;;  %v719_v14 = vmax.f32 %v685_v5, 0.0  ;;  %v1033_v20 = vpack.c.bf16 %v702_v7, %v702_v7  ;;  %v703_v22 = vmax.f32 %v621_v9, 0.0 }
 0x19a   : > { %v1047_v21 = vpack.c.bf16 %v716_v8, %v716_v8  ;;  %v717_v23 = vmax.f32 %v677_v11, 0.0  ;;  %v1031_v16 = vpack.c.bf16 %v700_v13, %v700_v13  ;;  %v701_v25 = vmax.f32 %v613_v15, 0.0 }
 0x19b   : > { %879 = vst.msk [vmem:[%s1401_s10 + $0x78] sm:$0xf] %vm848_vm4, %v1049_v12  ;;  %v1050_v24 = vpack.c.bf16 %v719_v14, %v719_v14  ;;  %863 = vst.msk [vmem:[%s1401_s10 + $0x38] sm:$0xf] %vm848_vm4, %v1033_v20  ;;  %v1034_v17 = vpack.c.bf16 %v703_v22, %v703_v22 }
 0x19c   : > { %877 = vst.msk [vmem:[%s1401_s10 + $0x70] sm:$0xf] %vm848_vm4, %v1047_v21  ;;  %v1048_v26 = vpack.c.bf16 %v717_v23, %v717_v23  ;;  %861 = vst.msk [vmem:[%s1401_s10 + $0x30] sm:$0xf] %vm848_vm4, %v1031_v16  ;;  %v1032_v18 = vpack.c.bf16 %v701_v25, %v701_v25 }
 0x19d   : > { %880 = vst.msk [vmem:[%s1401_s10 + $0x7c] sm:$0xf] %vm848_vm4, %v1050_v24  ;;  %864 = vst.msk [vmem:[%s1401_s10 + $0x3c] sm:$0xf] %vm848_vm4, %v1034_v17 }
 0x19e   : > { %878 = vst.msk [vmem:[%s1401_s10 + $0x74] sm:$0xf] %vm848_vm4, %v1048_v26  ;;  %862 = vst.msk [vmem:[%s1401_s10 + $0x34] sm:$0xf] %vm848_vm4, %v1032_v18 }
 0x19f PF: > { %s13_s12 = sadd.s32 1, %s1165_s12  }
 0x1a0   : > { %p10_p5 = scmp.ge.s32.totalorder %s13_s12, 4  }
 0x1a2   :  { %12 = sbr.rel (!%p10_p5) target bundleno = 1 (0x1), region = 62 }

// kernel: myfcn_forward.14
= control target key start
LH: loop header
LB: loop body
LE: loop exit
PB: predicated region body
PF: predicated region fallthrough
CT: control target
= control target key end

     0   :  { %s2226_s12 = smov 0   ;;  %s2874_s0 = inlined_call_operand.vmem [shape: bf16[640,192], index: 0, kind: input, shape index: {}]   ;;  %s2875_s1 = inlined_call_operand.vmem [shape: bf16[576,64], index: 1, kind: input, shape index: {}]   ;;  %s2876_s2 = inlined_call_operand.vmem [shape: f32[1,64], index: 2, kind: input, shape index: {}]   ;;  %s2877_s3 = inlined_call_operand.vmem [shape: bf16[512,64], index: 3, kind: output, shape index: {}]  }
   0x1 LB: > { %s1623_s13 = sadd.s32 4294967295, %s2203_s12   ;;  %p1627_p0 = scmp.ge.s32.totalorder %s2203_s12, 1  ;;  %s2203_s12 = sphi %s2226_s12, %s13_s12  }
   0x2   : > { %p139_p1 = scmp.lt.s32.totalorder %s2203_s12, 3 }
   0x4   : > { %p140_p2 = pnand %p1627_p0, %p139_p1 }
   0x5   : > { %s164_s14 = smul.u32 (!%p140_p2), 40, %s1623_s13  ;;  %v2149_v0 = vld [vmem:[%s2875_s1 + $0x40] sm:$0xff] (!%p140_p2)   ;;  %v2151_v2 = vld [vmem:[%s2875_s1 + $0x48] sm:$0xff] (!%p140_p2)   ;;  %v2153_v4 = vld [vmem:[%s2875_s1 + $0x50] sm:$0xff] (!%p140_p2)   ;;  %s2205_s6 = smov (!%p140_p2), 64   ;;  %vm442_vm0 = vcmask (!%p140_p2), 523264  }
   0x6   : > { %143 = sbr.rel (%p140_p2) target bundleno = 512 (0x200), region = 32  ;;  %v2150_v1 = vld [vmem:[%s2875_s1] sm:$0xff] (!%p140_p2)   ;;  %2076 = vmatprep.subr.bf16.mxu1 (!%p140_p2), %v2149_v0  ;;  %1792 = vmatprep.subr.bf16.mxu0 (!%p140_p2), %v2149_v0  ;;  %v2152_v3 = vld [vmem:[%s2875_s1 + $0x8] sm:$0xff] (!%p140_p2)   ;;  %v2154_v5 = vld [vmem:[%s2875_s1 + $0x10] sm:$0xff] (!%p140_p2)   ;;  %s1630_s20 = sshll.u32 (!%p140_p2), %s1623_s13, 5  ;;  %vm1534_vm1 = vcmask (!%p140_p2), 519168  }
   0x7   : > { %p165_p3 = scmp.lt.s32.totalorder (!%p140_p2), %s164_s14, 79  ;;  %2084 = vmatpush3.bf16.msra.mxu1 (!%p140_p2), %v2150_v1  ;;  %1793 = vmatpush3.bf16.msra.mxu0 (!%p140_p2), %v2150_v1  ;;  %v2155_v6 = vld [vmem:[%s2875_s1 + $0x58] sm:$0xff] (!%p140_p2)   ;;  %v2157_v22 = vld [vmem:[%s2875_s1 + $0x60] sm:$0xff] (!%p140_p2)   ;;  %v2159_v24 = vld [vmem:[%s2875_s1 + $0x68] sm:$0xff] (!%p140_p2)   ;;  %p172_p4 = scmp.lt.s32.totalorder (!%p140_p2), %s1630_s20, 63 }
   0x8   : > { %2077 = vmatprep.subr.bf16.mxu1 (!%p140_p2), %v2151_v2  ;;  %1794 = vmatprep.subr.bf16.mxu0 (!%p140_p2), %v2151_v2  ;;  %v2156_v21 = vld [vmem:[%s2875_s1 + $0x18] sm:$0xff] (!%p140_p2)   ;;  %v2158_v23 = vld [vmem:[%s2875_s1 + $0x20] sm:$0xff] (!%p140_p2)   ;;  %v2160_v27 = vld [vmem:[%s2875_s1 + $0x28] sm:$0xff] (!%p140_p2)  }
   0x9   : > { %v2161_v28 = vld [vmem:[%s2875_s1 + $0x70] sm:$0xff] (!%p140_p2)   ;;  %v2163_v32 = vld [vmem:[%s2875_s1 + $0x78] sm:$0xff] (!%p140_p2)   ;;  %v2165_v36 = vld [vmem:[%s2875_s1 + $0xc0] sm:$0xff] (!%p140_p2)  }
   0xa   : > { %v2162_v31 = vld [vmem:[%s2875_s1 + $0x30] sm:$0xff] (!%p140_p2)   ;;  %v2164_v35 = vld [vmem:[%s2875_s1 + $0x38] sm:$0xff] (!%p140_p2)   ;;  %v2170_v37 = vld [vmem:[%s2875_s1 + $0x100] sm:$0xff] (!%p140_p2)  }
   0xb   : > { %2085 = vmatpush3.bf16.msra.mxu1 (!%p140_p2), %v2152_v3  ;;  %1795 = vmatpush3.bf16.msra.mxu0 (!%p140_p2), %v2152_v3  ;;  %v2166_v52 = vld [vmem:[%s2875_s1 + $0x80] sm:$0xff] (!%p140_p2)   ;;  %v2169_v55 = vld [vmem:[%s2875_s1 + $0xc8] sm:$0xff] (!%p140_p2)   ;;  %v2173_v63 = vld [vmem:[%s2875_s1 + $0xd0] sm:$0xff] (!%p140_p2)  }
   0xc   : > { %2078 = vmatprep.subr.bf16.mxu1 (!%p140_p2), %v2153_v4  ;;  %1796 = vmatprep.subr.bf16.mxu0 (!%p140_p2), %v2153_v4  ;;  %v2172_v60 = vld [vmem:[%s2875_s1 + $0x88] sm:$0xff] (!%p140_p2)   ;;  %v2174_v3 = vld [vmem:[%s2875_s1 + $0x90] sm:$0xff] (!%p140_p2)   ;;  %v2177_v4 = vld [vmem:[%s2875_s1 + $0xd8] sm:$0xff] (!%p140_p2)  }
   0xd   : > { %s2879_s14 = smov (!%p165_p3, %s164_s14), 79  ;;  %v2187_v1 = vld [vmem:[%s2875_s1 + $0x108] sm:$0xff]   ;;  %s2881_s20 = smov (!%p172_p4, %s1630_s20), 63 }
   0xe   : > { %s1759_s25 = sshll.u32 %s2879_s14, 3  ;;  %s1631_s13 = sshll.u32 %s2881_s20, 2 }
   0xf   : > { %s2257_s30 = scalar_lea.vmem %s2874_s0, %s1759_s25  ;;  %2086 = vmatpush3.bf16.msra.mxu1 %v2154_v5  ;;  %1797 = vmatpush3.bf16.msra.mxu0 %v2154_v5  ;;  %s2744_s23 = scalar_lea.vmem %s2877_s3, %s1631_s13 }
  0x10   : > { %v2263_v7 = vld [vmem:[%s2257_s30 + $0xf0] ss:$8 sps:$4 sm:$0xff]   ;;  %v2266_v8 = vld [vmem:[%s2257_s30 + $0xe0] ss:$8 sps:$4 sm:$0xff]   ;;  %2079 = vmatprep.subr.bf16.mxu1 %v2155_v6  ;;  %1798 = vmatprep.subr.bf16.mxu0 %v2155_v6  ;;  %v2306_v16 = vld [vmem:[%s2257_s30 + $0x24] ss:$8 sps:$4 sm:$0xff]  }
  0x11   : > { %430 = vrot.lane.b32.xlu1 %v2263_v7, %s2205_s6  ;;  %v2271_v9 = vld [vmem:[%s2257_s30 + $0x30] ss:$8 sps:$4 sm:$0xff]   ;;  %426 = vrot.lane.b32.xlu0 %v2266_v8, %s2205_s6  ;;  %v2276_v10 = vld [vmem:[%s2257_s30 + $0x20] ss:$8 sps:$4 sm:$0xff]  }
  0x12   : > { %v2281_v11 = vld [vmem:[%s2257_s30 + $0x40] ss:$8 sps:$4 sm:$0xff]   ;;  %v2291_v13 = vld [vmem:[%s2257_s30 + $0x50] ss:$8 sps:$4 sm:$0xff]   ;;  %v2316_v18 = vld [vmem:[%s2257_s30 + $0x34] ss:$8 sps:$4 sm:$0xff]  }
  0x13   : > { %v2286_v12 = vld [vmem:[%s2257_s30 + $0x100] ss:$8 sps:$4 sm:$0xff]   ;;  %v2296_v14 = vld [vmem:[%s2257_s30 + $0x110] ss:$8 sps:$4 sm:$0xff]   ;;  %v2322_v20 = vld [vmem:[%s2257_s30 + $0x44] ss:$8 sps:$4 sm:$0xff]   ;;  %2087 = vmatpush3.bf16.msra.mxu1 %v2156_v21  ;;  %1799 = vmatpush3.bf16.msra.mxu0 %v2156_v21 }
  0x14   : > { %v2301_v15 = vld [vmem:[%s2257_s30 + $0x60] ss:$8 sps:$4 sm:$0xff]   ;;  %v2311_v17 = vld [vmem:[%s2257_s30 + $0x70] ss:$8 sps:$4 sm:$0xff]   ;;  %2080 = vmatprep.subr.bf16.mxu1 %v2157_v22  ;;  %1800 = vmatprep.subr.bf16.mxu0 %v2157_v22  ;;  %v2346_v26 = vld [vmem:[%s2257_s30 + $0x54] ss:$8 sps:$4 sm:$0xff]  }
  0x15   : > { %382 = vrot.lane.b32.xlu1 %v2271_v9, %s2205_s6  ;;  %378 = vrot.lane.b32.xlu0 %v2276_v10, %s2205_s6  ;;  %v2319_v19 = vld [vmem:[%s2257_s30 + $0x80] ss:$8 sps:$4 sm:$0xff]   ;;  %v2341_v25 = vld [vmem:[%s2257_s30 + $0x90] ss:$8 sps:$4 sm:$0xff]  }
  0x16   : > { %v2357_v29 = vld [vmem:[%s2257_s30 + $0xa0] ss:$8 sps:$4 sm:$0xff]   ;;  %v2362_v30 = vld [vmem:[%s2257_s30 + $0x64] ss:$8 sps:$4 sm:$0xff]   ;;  %v2375_v33 = vld [vmem:[%s2257_s30 + $0xb0] ss:$8 sps:$4 sm:$0xff]  }
  0x17   : > { %2088 = vmatpush3.bf16.msra.mxu1 %v2158_v23  ;;  %1801 = vmatpush3.bf16.msra.mxu0 %v2158_v23  ;;  %v2378_v34 = vld [vmem:[%s2257_s30 + $0x74] ss:$8 sps:$4 sm:$0xff]   ;;  %v2394_v38 = vld [vmem:[%s2257_s30 + $0xc0] ss:$8 sps:$4 sm:$0xff]   ;;  %v2399_v39 = vld [vmem:[%s2257_s30 + $0x84] ss:$8 sps:$4 sm:$0xff]  }
  0x18   : > { %2081 = vmatprep.subr.bf16.mxu1 %v2159_v24  ;;  %1802 = vmatprep.subr.bf16.mxu0 %v2159_v24  ;;  %v2404_v40 = vld [vmem:[%s2257_s30 + $0xd0] ss:$8 sps:$4 sm:$0xff]   ;;  %v2409_v41 = vld [vmem:[%s2257_s30 + $0x94] ss:$8 sps:$4 sm:$0xff]   ;;  %v2419_v43 = vld [vmem:[%s2257_s30 + $0xa4] ss:$8 sps:$4 sm:$0xff]  }
  0x19   : > { %386 = vrot.lane.b32.xlu1 %v2281_v11, %s2205_s6  ;;  %434 = vrot.lane.b32.xlu0 %v2286_v12, %s2205_s6  ;;  %v2414_v42 = vld [vmem:[%s2257_s30 + $0xb4] ss:$8 sps:$4 sm:$0xff]   ;;  %v2429_v45 = vld [vmem:[%s2257_s30 + $0xc4] ss:$8 sps:$4 sm:$0xff]  }
  0x1a   : > { %v2424_v44 = vld [vmem:[%s2257_s30 + $0xd4] ss:$8 sps:$4 sm:$0xff]   ;;  %v2439_v47 = vld [vmem:[%s2257_s30 + $0xe4] ss:$8 sps:$4 sm:$0xff]   ;;  %v2171_v58 = vld [vmem:[%s2257_s30] ss:$8 sps:$4 sm:$0xff]  }
  0x1b   : > { %2089 = vmatpush3.bf16.msra.mxu1 %v2160_v27  ;;  %1803 = vmatpush3.bf16.msra.mxu0 %v2160_v27  ;;  %v2434_v46 = vld [vmem:[%s2257_s30 + $0xf4] ss:$8 sps:$4 sm:$0xff]   ;;  %v2449_v49 = vld [vmem:[%s2257_s30 + $0x104] ss:$8 sps:$4 sm:$0xff]   ;;  %v2178_v21 = vld [vmem:[%s2257_s30 + $0x10] ss:$8 sps:$4 sm:$0xff]  }
  0x1c   : > { %2082 = vmatprep.subr.bf16.mxu1 %v2161_v28  ;;  %1804 = vmatprep.subr.bf16.mxu0 %v2161_v28  ;;  %v2444_v48 = vld [vmem:[%s2257_s30 + $0x114] ss:$8 sps:$4 sm:$0xff]   ;;  %v2167_v54 = vld [vmem:[%s2257_s30 + $0x4] ss:$8 sps:$4 sm:$0xff]  }
  0x1d   : > { %390 = vrot.lane.b32.xlu1 %v2291_v13, %s2205_s6  ;;  %438 = vrot.lane.b32.xlu0 %v2296_v14, %s2205_s6  ;;  %v2175_v57 = vld [vmem:[%s2257_s30 + $0x14] ss:$8 sps:$4 sm:$0xff]   ;;  %v2180_v24 = vld [vmem:[%s2875_s1 + $0xe0] sm:$0xff]  }
  0x1e   : > { %v2189_v6 = vld [vmem:[%s2875_s1 + $0x110] sm:$0xff]   ;;  %v2179_v23 = vld [vmem:[%s2875_s1 + $0x98] sm:$0xff]  }
  0x1f   : > { %2090 = vmatpush3.bf16.msra.mxu1 %v2162_v31  ;;  %1805 = vmatpush3.bf16.msra.mxu0 %v2162_v31  ;;  %v2190_v28 = vld [vmem:[%s2875_s1 + $0x118] sm:$0xff]  }
  0x20   : > { %2083 = vmatprep.subr.bf16.mxu1 %v2163_v32  ;;  %1806 = vmatprep.subr.bf16.mxu0 %v2163_v32  ;;  %v2181_v32 = vld [vmem:[%s2875_s1 + $0xa0] sm:$0xff]  }
  0x21   : > { %394 = vrot.lane.b32.xlu1 %v2301_v15, %s2205_s6  ;;  %380 = vrot.lane.b32.xlu0 %v2306_v16, %s2205_s6 }
  0x23   : > { %2091 = vmatpush3.bf16.msra.mxu1 %v2164_v35  ;;  %1807 = vmatpush3.bf16.msra.mxu0 %v2164_v35 }
  0x24   : > { %1904 = vmatprep.subr.bf16.mxu1 %v2165_v36  ;;  %2036 = vmatprep.subr.bf16.mxu0 %v2170_v37 }
  0x25   : > { %398 = vrot.lane.b32.xlu1 %v2311_v17, %s2205_s6  ;;  %384 = vrot.lane.b32.xlu0 %v2316_v18, %s2205_s6 }
  0x29   : > { %402 = vrot.lane.b32.xlu1 %v2319_v19, %s2205_s6  ;;  %388 = vrot.lane.b32.xlu0 %v2322_v20, %s2205_s6 }
  0x2d   : > { %406 = vrot.lane.b32.xlu1 %v2341_v25, %s2205_s6  ;;  %392 = vrot.lane.b32.xlu0 %v2346_v26, %s2205_s6 }
  0x31   : > { %410 = vrot.lane.b32.xlu1 %v2357_v29, %s2205_s6  ;;  %396 = vrot.lane.b32.xlu0 %v2362_v30, %s2205_s6 }
  0x35   : > { %414 = vrot.lane.b32.xlu1 %v2375_v33, %s2205_s6  ;;  %400 = vrot.lane.b32.xlu0 %v2378_v34, %s2205_s6 }
  0x39   : > { %418 = vrot.lane.b32.xlu1 %v2394_v38, %s2205_s6  ;;  %404 = vrot.lane.b32.xlu0 %v2399_v39, %s2205_s6 }
  0x3d   : > { %422 = vrot.lane.b32.xlu1 %v2404_v40, %s2205_s6  ;;  %408 = vrot.lane.b32.xlu0 %v2409_v41, %s2205_s6 }
  0x41   : > { %416 = vrot.lane.b32.xlu1 %v2414_v42, %s2205_s6  ;;  %412 = vrot.lane.b32.xlu0 %v2419_v43, %s2205_s6 }
  0x45   : > { %424 = vrot.lane.b32.xlu1 %v2424_v44, %s2205_s6  ;;  %420 = vrot.lane.b32.xlu0 %v2429_v45, %s2205_s6 }
  0x49   : > { %432 = vrot.lane.b32.xlu1 %v2434_v46, %s2205_s6  ;;  %428 = vrot.lane.b32.xlu0 %v2439_v47, %s2205_s6 }
  0x4d   : > { %440 = vrot.lane.b32.xlu1 %v2444_v48, %s2205_s6  ;;  %436 = vrot.lane.b32.xlu0 %v2449_v49, %s2205_s6 }
  0x83   : > { %v2455_v50 = vpop.permute.xlu1 %430  ;;  %v2457_v51 = vpop.permute.xlu0 %426 }
  0x84   : > { %v546_v53 = vsel %vm442_vm0, %v2429_v45, %v2457_v51  ;;  %v550_v56 = vsel %vm442_vm0, %v2424_v44, %v2455_v50 }
  0x85   : > { %1019 = vmatprep.mubr.bf16.mxu1 %v546_v53 }
  0x86   : > { %1020 = vmatmul.mubr.bf16.vlgmr.msra.gmra.mrb[0].mxu1 %v2394_v38 }
  0x87   : > { %1905 = vmatpush3.bf16.msra.mxu1 %v2166_v52  ;;  %v2475_v59 = vpop.permute.xlu0 %378  ;;  %1027 = vmatprep.mubr.bf16.mxu1 %v550_v56  ;;  %v2480_v61 = vpop.permute.xlu1 %382  ;;  %v2184_v52 = vld [vmem:[%s2875_s1 + $0xf0] sm:$0xff]  }
  0x88   : > { %v498_v62 = vsel %vm442_vm0, %v2167_v54, %v2475_v59  ;;  %1906 = vmatprep.subr.bf16.mxu1 %v2169_v55  ;;  %v502_v0 = vsel %vm442_vm0, %v2175_v57, %v2480_v61  ;;  %v2185_v54 = vld [vmem:[%s2875_s1 + $0xb0] sm:$0xff]   ;;  %v2186_v55 = vld [vmem:[%s2875_s1 + $0xf8] sm:$0xff]  }
  0x89   : > { %923 = vmatprep.mubr.bf16.mxu0 %v498_v62 }
  0x8a   : > { %924 = vmatmul.mubr.bf16.vlgmr.msra.gmra.mrb[0].mxu0 %v2171_v58 }
  0x8b   : > { %1907 = vmatpush3.bf16.msra.mxu1 %v2172_v60  ;;  %2037 = vmatpush3.bf16.msra.mxu0 %v2170_v37  ;;  %v2492_v2 = vpop.permute.xlu0 %434  ;;  %v2508_v22 = vpop.permute.xlu1 %386  ;;  %v2183_v37 = vld [vmem:[%s2875_s1 + $0xa8] sm:$0xff]  }
  0x8c   : > { %1908 = vmatprep.subr.bf16.mxu1 %v2173_v63  ;;  %931 = vmatprep.mubr.bf16.mxu0 %v502_v0  ;;  %v554_v5 = vsel %vm442_vm0, %v2439_v47, %v2492_v2  ;;  %v506_v27 = vsel %vm442_vm0, %v2306_v16, %v2508_v22  ;;  %v2182_v16 = vld [vmem:[%s2875_s1 + $0xe8] sm:$0xff]  }
  0x8d   : > { %2038 = vmatprep.subr.bf16.mxu0 %v2187_v1 }
  0x8e   : > { %1028 = vmatmul.mubr.bf16.gmra.mrb[4].mxu1 %v2404_v40 }
  0x8f   : > { %1909 = vmatpush3.bf16.msra.mxu1 %v2174_v3  ;;  %1035 = vmatprep.mubr.bf16.mxu1 %v554_v5  ;;  %v2522_v31 = vpop.permute.xlu0 %438  ;;  %v391_v36 = vpop.permute.xlu1 %390 }
  0x90   : > { %1910 = vmatprep.subr.bf16.mxu1 %v2177_v4  ;;  %2039 = vmatpush3.bf16.msra.mxu0 %v2187_v1  ;;  %v558_v35 = vsel %vm442_vm0, %v2434_v46, %v2522_v31  ;;  %v510_v53 = vsel %vm442_vm0, %v2316_v18, %v391_v36  ;;  %v2188_v18 = vld [vmem:[%s2875_s1 + $0xb8] sm:$0xff]  }
  0x91   : > { %2040 = vmatprep.subr.bf16.mxu0 %v2189_v6 }
  0x92   : > { %932 = vmatmul.mubr.bf16.gmra.mrb[4].mxu0 %v2178_v21 }
  0x93   : > { %1911 = vmatpush3.bf16.msra.mxu1 %v2179_v23  ;;  %939 = vmatprep.mubr.bf16.mxu0 %v506_v27  ;;  %v395_v56 = vpop.permute.xlu1 %394  ;;  %v381_v57 = vpop.permute.xlu0 %380 }
  0x94   : > { %1912 = vmatprep.subr.bf16.mxu1 %v2180_v24  ;;  %2041 = vmatpush3.bf16.msra.mxu0 %v2189_v6  ;;  %v443_v58 = vsel %vm442_vm0, %v2475_v59, %v381_v57 }
  0x95   : > { %2042 = vmatprep.subr.bf16.mxu0 %v2190_v28 }
  0x96   : > { %1036 = vmatmul.mubr.bf16.gmra.mrb[8].mxu1 %v2266_v8 }
  0x97   : > { %1913 = vmatpush3.bf16.msra.mxu1 %v2181_v32  ;;  %1043 = vmatprep.mubr.bf16.mxu1 %v558_v35  ;;  %v399_v60 = vpop.permute.xlu1 %398  ;;  %v385_v63 = vpop.permute.xlu0 %384 }
  0x98   : > { %1914 = vmatprep.subr.bf16.mxu1 %v2182_v16  ;;  %2043 = vmatpush3.bf16.msra.mxu0 %v2190_v28  ;;  %v518_v62 = vsel %vm442_vm0, %v2346_v26, %v399_v60  ;;  %v444_v0 = vsel %vm442_vm0, %v2480_v61, %v385_v63 }
  0x9a   : > { %940 = vmatmul.mubr.bf16.gmra.mrb[8].mxu0 %v2276_v10  ;;  %v514_v10 = vsel %vm442_vm0, %v2322_v20, %v395_v56 }
  0x9b   : > { %1915 = vmatpush3.bf16.msra.mxu1 %v2183_v37  ;;  %947 = vmatprep.mubr.bf16.mxu0 %v510_v53  ;;  %v389_v1 = vpop.permute.xlu0 %388 }
  0x9c   : > { %1916 = vmatprep.subr.bf16.mxu1 %v2184_v52  ;;  %v445_v3 = vsel %vm442_vm0, %v2508_v22, %v389_v1 }
  0x9e   : > { %1044 = vmatmul.mubr.bf16.gmra.mrb[12].mxu1 %v2263_v7 }
  0x9f   : > { %1917 = vmatpush3.bf16.msra.mxu1 %v2185_v54  ;;  %1084 = vmatprep.mubr.bf16.mxu1 %v2281_v11  ;;  %v393_v4 = vpop.permute.xlu0 %392 }
  0xa0   : > { %1918 = vmatprep.subr.bf16.mxu1 %v2186_v55  ;;  %v446_v5 = vsel %vm442_vm0, %v391_v36, %v393_v4 }
  0xa2   : > { %948 = vmatmul.mubr.bf16.gmra.mrb[12].mxu0 %v2271_v9  ;;  %v403_v9 = vpop.permute.xlu1 %402 }
  0xa3   : > { %1919 = vmatpush3.bf16.msra.mxu1 %v2188_v18  ;;  %955 = vmatprep.mubr.bf16.mxu0 %v514_v10  ;;  %v522_v59 = vsel %vm442_vm0, %v2362_v30, %v403_v9  ;;  %v397_v21 = vpop.permute.xlu0 %396 }
  0xa4   : > { %v447_v22 = vsel %vm442_vm0, %v395_v56, %v397_v21 }
  0xa6   : > { %1085 = vmatmul.mubr.bf16.vlgmr.msra.gmra.mrb[16].mxu1 %v443_v58 }
  0xa7   : > { %1092 = vmatprep.mubr.bf16.mxu1 %v2291_v13  ;;  %v401_v24 = vpop.permute.xlu0 %400 }
  0xa8   : > { %v448_v27 = vsel %vm442_vm0, %v399_v60, %v401_v24 }
  0xaa   : > { %956 = vmatmul.mubr.bf16.gmra.mrb[16].mxu0 %v2281_v11  ;;  %v407_v11 = vpop.permute.xlu1 %406 }
  0xab   : > { %963 = vmatprep.mubr.bf16.mxu0 %v518_v62  ;;  %v526_v61 = vsel %vm442_vm0, %v2378_v34, %v407_v11  ;;  %v405_v32 = vpop.permute.xlu0 %404 }
  0xac   : > { %v449_v16 = vsel %vm442_vm0, %v403_v9, %v405_v32 }
  0xae   : > { %1093 = vmatmul.mubr.bf16.gmra.mrb[20].mxu1 %v444_v0  ;;  %v411_v6 = vpop.permute.xlu1 %410 }
  0xaf   : > { %1100 = vmatprep.mubr.bf16.mxu1 %v2301_v15  ;;  %v409_v36 = vpop.permute.xlu0 %408 }
  0xb0   : > { %v450_v37 = vsel %vm442_vm0, %v407_v11, %v409_v36 }
  0xb2   : > { %964 = vmatmul.mubr.bf16.gmra.mrb[20].mxu0 %v2291_v13  ;;  %v530_v13 = vsel %vm442_vm0, %v2399_v39, %v411_v6  ;;  %v415_v23 = vpop.permute.xlu1 %414 }
  0xb3   : > { %971 = vmatprep.mubr.bf16.mxu0 %v522_v59 }
  0xb6   : > { %1101 = vmatmul.mubr.bf16.gmra.mrb[24].mxu1 %v445_v3  ;;  %v419_v28 = vpop.permute.xlu1 %418 }
  0xb7   : > { %1108 = vmatprep.mubr.bf16.mxu1 %v2311_v17 }
  0xba   : > { %972 = vmatmul.mubr.bf16.gmra.mrb[24].mxu0 %v2301_v15  ;;  %v534_v15 = vsel %vm442_vm0, %v2409_v41, %v415_v23  ;;  %v423_v35 = vpop.permute.xlu1 %422 }
  0xbb   : > { %979 = vmatprep.mubr.bf16.mxu0 %v526_v61 }
  0xbe   : > { %1109 = vmatmul.mubr.bf16.gmra.mrb[28].mxu1 %v446_v5 }
  0xbf   : > { %1116 = vmatprep.mubr.bf16.mxu1 %v2319_v19 }
  0xc2   : > { %980 = vmatmul.mubr.bf16.gmra.mrb[28].mxu0 %v2311_v17  ;;  %v538_v17 = vsel %vm442_vm0, %v2419_v43, %v419_v28 }
  0xc3   : > { %987 = vmatprep.mubr.bf16.mxu0 %v530_v13 }
  0xc6   : > { %1117 = vmatmul.mubr.bf16.gmra.mrb[32].mxu1 %v447_v22 }
  0xc7   : > { %1124 = vmatprep.mubr.bf16.mxu1 %v2341_v25 }
  0xca   : > { %988 = vmatmul.mubr.bf16.gmra.mrb[32].mxu0 %v2319_v19  ;;  %v542_v19 = vsel %vm442_vm0, %v2414_v42, %v423_v35 }
  0xcb   : > { %995 = vmatprep.mubr.bf16.mxu0 %v534_v15 }
  0xce   : > { %1125 = vmatmul.mubr.bf16.gmra.mrb[36].mxu1 %v448_v27 }
  0xcf   : > { %1132 = vmatprep.mubr.bf16.mxu1 %v2357_v29 }
  0xd2   : > { %996 = vmatmul.mubr.bf16.gmra.mrb[36].mxu0 %v2341_v25  ;;  %v413_v25 = vpop.permute.xlu0 %412 }
  0xd3   : > { %1003 = vmatprep.mubr.bf16.mxu0 %v538_v17  ;;  %v451_v52 = vsel %vm442_vm0, %v411_v6, %v413_v25 }
  0xd6   : > { %1133 = vmatmul.mubr.bf16.gmra.mrb[40].mxu1 %v449_v16 }
  0xd7   : > { %1140 = vmatprep.mubr.bf16.mxu1 %v2375_v33 }
  0xda   : > { %1004 = vmatmul.mubr.bf16.gmra.mrb[40].mxu0 %v2357_v29  ;;  %v417_v29 = vpop.permute.xlu1 %416 }
  0xdb   : > { %1011 = vmatprep.mubr.bf16.mxu0 %v542_v19 }
  0xde   : > { %1141 = vmatmul.mubr.bf16.gmra.mrb[44].mxu1 %v450_v37 }
  0xdf   : > { %1148 = vmatprep.mubr.bf16.mxu1 %v2394_v38  ;;  %v452_v38 = vsel %vm442_vm0, %v415_v23, %v417_v29 }
  0xe2   : > { %1012 = vmatmul.mubr.bf16.gmra.mrb[44].mxu0 %v2375_v33 }
  0xe3   : > { %2044 = vmatprep.mubr.msk.bf16.mxu0 %vm442_vm0, %v2322_v20  ;;  %v421_v20 = vpop.permute.xlu0 %420 }
  0xe4   : > { %v453_v33 = vsel %vm442_vm0, %v419_v28, %v421_v20 }
  0xe6   : > { %1149 = vmatmul.mubr.bf16.gmra.mrb[48].mxu1 %v451_v52 }
  0xe7   : > { %1156 = vmatprep.mubr.bf16.mxu1 %v2404_v40 }
  0xea   : > { %2045 = vmatmul.mubr.msk.bf16.vlgmr.msra.gmra.mrb[48].mxu0 %vm442_vm0, %v2346_v26 }
  0xeb   : > { %2048 = vmatprep.mubr.msk.bf16.mxu0 %vm442_vm0, %v2362_v30  ;;  %v429_v30 = vpop.permute.xlu0 %428 }
  0xee   : > { %1157 = vmatmul.mubr.bf16.gmra.mrb[52].mxu1 %v452_v38 }
  0xef   : > { %1164 = vmatprep.mubr.bf16.mxu1 %v2266_v8  ;;  %v425_v8 = vpop.permute.xlu1 %424  ;;  %v437_v40 = vpop.permute.xlu0 %436 }
  0xf0   : > { %v454_v26 = vsel %vm442_vm0, %v423_v35, %v425_v8 }
  0xf2   : > { %2049 = vmatmul.mubr.msk.bf16.gmra.mrb[52].mxu0 %vm442_vm0, %v2378_v34 }
  0xf3   : > { %2052 = vmatprep.mubr.msk.bf16.mxu0 %vm442_vm0, %v2399_v39  ;;  %v433_v34 = vpop.permute.xlu1 %432 }
  0xf4   : > { %v456_v39 = vsel %vm442_vm0, %v2455_v50, %v433_v34 }
  0xf6   : > { %1165 = vmatmul.mubr.bf16.gmra.mrb[56].mxu1 %v453_v33  ;;  %v2668_v33 = vld [vmem:[%s2876_s2] ss:$0 sm:$0xff] }
  0xf7   : > { %1172 = vmatprep.mubr.bf16.mxu1 %v2263_v7  ;;  %v455_v7 = vsel %vm442_vm0, %v2457_v51, %v429_v30 }
  0xfa   : > { %2053 = vmatmul.mubr.msk.bf16.gmra.mrb[56].mxu0 %vm442_vm0, %v2409_v41  ;;  %v457_v41 = vsel %vm442_vm0, %v2492_v2, %v437_v40 }
  0xfb   : > { %2056 = vmatprep.mubr.msk.bf16.mxu0 %vm442_vm0, %v2419_v43  ;;  %v441_v43 = vpop.permute.xlu1 %440 }
  0xfe   : > { %1173 = vmatmul.mubr.bf16.gmra.mrb[60].mxu1 %v454_v26 }
  0xff   : > { %1180 = vmatprep.mubr.bf16.mxu1 %v2286_v12  ;;  %v2191_v12 = vld [vmem:[%s2257_s30 + $0x120] ss:$8 sps:$4 sm:$0xff]  }
 0x102   : > { %2057 = vmatmul.mubr.msk.bf16.gmra.mrb[60].mxu0 %vm442_vm0, %v2414_v42  ;;  %v2193_v42 = vld [vmem:[%s2257_s30 + $0x124] ss:$8 sps:$4 sm:$0xff]  }
 0x103   : > { %2060 = vmatprep.mubr.msk.bf16.mxu0 %vm442_vm0, %v2429_v45  ;;  %v2196_v45 = vld [vmem:[%s2257_s30 + $0x134] ss:$8 sps:$4 sm:$0xff]  }
 0x106   : > { %1181 = vmatmul.mubr.bf16.gmra.mrb[64].mxu1 %v455_v7 }
 0x107   : > { %1188 = vmatprep.mubr.bf16.mxu1 %v2296_v14  ;;  %v2194_v14 = vld [vmem:[%s2257_s30 + $0x130] ss:$8 sps:$4 sm:$0xff]  }
 0x10a   : > { %2061 = vmatmul.mubr.msk.bf16.gmra.mrb[64].mxu0 %vm442_vm0, %v2424_v44  ;;  %v458_v44 = vsel %vm442_vm0, %v2522_v31, %v441_v43 }
 0x10b   : > { %2064 = vmatprep.mubr.msk.bf16.mxu0 %vm442_vm0, %v2439_v47 }
 0x10e   : > { %1189 = vmatmul.mubr.bf16.gmra.mrb[68].mxu1 %v456_v39 }
 0x10f   : > { %1196 = vmatprep.mubr.bf16.mxu1 %v2191_v12 }
 0x112   : > { %2065 = vmatmul.mubr.msk.bf16.gmra.mrb[68].mxu0 %vm442_vm0, %v2434_v46 }
 0x113   : > { %2068 = vmatprep.mubr.msk.bf16.mxu0 %vm442_vm0, %v2449_v49 }
 0x116   : > { %1197 = vmatmul.mubr.bf16.gmra.mrb[72].mxu1 %v457_v41 }
 0x117   : > { %1204 = vmatprep.mubr.bf16.mxu1 %v2194_v14 }
 0x11a   : > { %2069 = vmatmul.mubr.msk.bf16.gmra.mrb[72].mxu0 %vm442_vm0, %v2444_v48 }
 0x11b   : > { %2072 = vmatprep.mubr.msk.bf16.mxu0 %vm442_vm0, %v2193_v42 }
 0x11e   : > { %1205 = vmatmul.mubr.bf16.gmra.mrb[76].mxu1 %v458_v44 }
 0x122   : > { %2073 = vmatmul.mubr.msk.bf16.gmra.mrb[76].mxu0 %vm442_vm0, %v2196_v45 }
 0x159   : > { %v1880_v46 = vpop.f32.mrb[0].mxu1 }
 0x15a   : > { %v1881_v47 = vpop.f32.mrb[1].mxu1 }
 0x15b   : > { %v2649_v49 = vadd.f32 %v1881_v47, %v1880_v46  ;;  %v1883_v50 = vpop.f32.mrb[2].mxu1 }
 0x15c   : > { %v1884_v51 = vpop.f32.mrb[3].mxu1 }
 0x15d   : > { %v2651_v2 = vadd.f32 %v1884_v51, %v1883_v50  ;;  %v1808_v53 = vpop.f32.mrb[0].mxu0 }
 0x15e   : > { %v1809_v54 = vpop.f32.mrb[1].mxu0 }
 0x15f   : > { %v1810_v48 = vadd.f32 %v1809_v54, %v1808_v53  ;;  %v1811_v55 = vpop.f32.mrb[2].mxu0 }
 0x160   : > { %v1812_v56 = vpop.f32.mrb[3].mxu0 }
 0x161   : > { %v1813_v18 = vadd.f32 %v1812_v56, %v1811_v55  ;;  %v1886_v10 = vpop.f32.mrb[4].mxu1  ;;  %v926_v26 = vadd.f32 %v1810_v48, %v2668_v33 }
 0x162   : > { %v1887_v31 = vpop.f32.mrb[5].mxu1 }
 0x163   : > { %v2653_v57 = vadd.f32 %v1887_v31, %v1886_v10  ;;  %v1889_v58 = vpop.f32.mrb[6].mxu1  ;;  %v929_v12 = vadd.f32 %v1813_v18, %v2668_v33 }
 0x164   : > { %v1890_v60 = vpop.f32.mrb[7].mxu1 }
 0x165   : > { %v2655_v62 = vadd.f32 %v1890_v60, %v1889_v58  ;;  %v1814_v63 = vpop.f32.mrb[4].mxu0 }
 0x166   : > { %v1815_v0 = vpop.f32.mrb[5].mxu0 }
 0x167   : > { %v1816_v9 = vadd.f32 %v1815_v0, %v1814_v63  ;;  %v1817_v59 = vpop.f32.mrb[6].mxu0 }
 0x168   : > { %v1818_v1 = vpop.f32.mrb[7].mxu0 }
 0x169   : > { %v1819_v3 = vadd.f32 %v1818_v1, %v1817_v59  ;;  %v1892_v11 = vpop.f32.mrb[8].mxu1  ;;  %v934_v51 = vadd.f32 %v1816_v9, %v2668_v33 }
 0x16a   : > { %v1893_v61 = vpop.f32.mrb[9].mxu1 }
 0x16b   : > { %v2657_v4 = vadd.f32 %v1893_v61, %v1892_v11  ;;  %v1895_v5 = vpop.f32.mrb[10].mxu1  ;;  %v937_v55 = vadd.f32 %v1819_v3, %v2668_v33 }
 0x16c   : > { %v1896_v6 = vpop.f32.mrb[11].mxu1 }
 0x16d   : > { %v2659_v13 = vadd.f32 %v1896_v6, %v1895_v5  ;;  %v1820_v21 = vpop.f32.mrb[8].mxu0 }
 0x16e   : > { %v1821_v22 = vpop.f32.mrb[9].mxu0 }
 0x16f   : > { %v1822_v23 = vadd.f32 %v1821_v22, %v1820_v21  ;;  %v1823_v15 = vpop.f32.mrb[10].mxu0 }
 0x170   : > { %v1824_v24 = vpop.f32.mrb[11].mxu0 }
 0x171   : > { %v1825_v27 = vadd.f32 %v1824_v24, %v1823_v15  ;;  %v1898_v28 = vpop.f32.mrb[12].mxu1  ;;  %v942_v9 = vadd.f32 %v1822_v23, %v2668_v33 }
 0x172   : > { %v1899_v17 = vpop.f32.mrb[13].mxu1 }
 0x173   : > { %v2661_v32 = vadd.f32 %v1899_v17, %v1898_v28  ;;  %v1901_v16 = vpop.f32.mrb[14].mxu1  ;;  %v945_v3 = vadd.f32 %v1825_v27, %v2668_v33 }
 0x174   : > { %v1902_v35 = vpop.f32.mrb[15].mxu1 }
 0x175   : > { %v2663_v19 = vadd.f32 %v1902_v35, %v1901_v16  ;;  %v1826_v36 = vpop.f32.mrb[12].mxu0 }
 0x176   : > { %v1827_v37 = vpop.f32.mrb[13].mxu0 }
 0x177   : > { %v1828_v25 = vadd.f32 %v1827_v37, %v1826_v36  ;;  %v1829_v52 = vpop.f32.mrb[14].mxu0 }
 0x178   : > { %v1830_v29 = vpop.f32.mrb[15].mxu0 }
 0x179   : > { %v1831_v38 = vadd.f32 %v1830_v29, %v1829_v52  ;;  %v1920_v20 = vpop.f32.mrb[16].mxu1  ;;  %v950_v23 = vadd.f32 %v1828_v25, %v2668_v33 }
 0x17a   : > { %v1921_v8 = vpop.f32.mrb[17].mxu1 }
 0x17b   : > { %v1922_v30 = vadd.f32 %v1921_v8, %v1920_v20  ;;  %v1923_v7 = vpop.f32.mrb[18].mxu1  ;;  %v953_v27 = vadd.f32 %v1831_v38, %v2668_v33 }
 0x17c   : > { %v1924_v34 = vpop.f32.mrb[19].mxu1 }
 0x17d   : > { %v1925_v39 = vadd.f32 %v1924_v34, %v1923_v7  ;;  %v1832_v40 = vpop.f32.mrb[16].mxu0  ;;  %v2672_v14 = vadd.f32 %v1922_v30, %v926_v26 }
 0x17e   : > { %v1833_v41 = vpop.f32.mrb[17].mxu0 }
 0x17f   : > { %v1834_v42 = vadd.f32 %v1833_v41, %v1832_v40  ;;  %v1835_v43 = vpop.f32.mrb[18].mxu0  ;;  %v2674_v44 = vadd.f32 %v1925_v39, %v929_v12 }
 0x180   : > { %v1836_v45 = vpop.f32.mrb[19].mxu0 }
 0x181   : > { %v1837_v46 = vadd.f32 %v1836_v45, %v1835_v43  ;;  %v1926_v47 = vpop.f32.mrb[20].mxu1  ;;  %v958_v25 = vadd.f32 %v1834_v42, %v2668_v33 }
 0x182   : > { %v1927_v50 = vpop.f32.mrb[21].mxu1 }
 0x183   : > { %v1928_v53 = vadd.f32 %v1927_v50, %v1926_v47  ;;  %v1929_v54 = vpop.f32.mrb[22].mxu1  ;;  %v961_v38 = vadd.f32 %v1837_v46, %v2668_v33 }
 0x184   : > { %v1930_v48 = vpop.f32.mrb[23].mxu1 }
 0x185   : > { %v1931_v56 = vadd.f32 %v1930_v48, %v1929_v54  ;;  %v1838_v18 = vpop.f32.mrb[20].mxu0  ;;  %v2678_v10 = vadd.f32 %v1928_v53, %v934_v51 }
 0x186   : > { %v1839_v31 = vpop.f32.mrb[21].mxu0 }
 0x187   : > { %v1840_v58 = vadd.f32 %v1839_v31, %v1838_v18  ;;  %v1841_v60 = vpop.f32.mrb[22].mxu0  ;;  %v2680_v63 = vadd.f32 %v1931_v56, %v937_v55 }
 0x188   : > { %v1842_v0 = vpop.f32.mrb[23].mxu0 }
 0x189   : > { %v1843_v59 = vadd.f32 %v1842_v0, %v1841_v60  ;;  %v1932_v1 = vpop.f32.mrb[24].mxu1  ;;  %v966_v42 = vadd.f32 %v1840_v58, %v2668_v33 }
 0x18a   : > { %v1933_v11 = vpop.f32.mrb[25].mxu1 }
 0x18b   : > { %v1934_v61 = vadd.f32 %v1933_v11, %v1932_v1  ;;  %v1935_v5 = vpop.f32.mrb[26].mxu1  ;;  %v969_v46 = vadd.f32 %v1843_v59, %v2668_v33 }
 0x18c   : > { %v1936_v6 = vpop.f32.mrb[27].mxu1 }
 0x18d   : > { %v1937_v21 = vadd.f32 %v1936_v6, %v1935_v5  ;;  %v1844_v22 = vpop.f32.mrb[24].mxu0  ;;  %v2684_v15 = vadd.f32 %v1934_v61, %v942_v9 }
 0x18e   : > { %v1845_v24 = vpop.f32.mrb[25].mxu0 }
 0x18f   : > { %v1846_v28 = vadd.f32 %v1845_v24, %v1844_v22  ;;  %v1847_v17 = vpop.f32.mrb[26].mxu0  ;;  %v2686_v16 = vadd.f32 %v1937_v21, %v945_v3 }
 0x190   : > { %v1848_v35 = vpop.f32.mrb[27].mxu0 }
 0x191   : > { %v1849_v36 = vadd.f32 %v1848_v35, %v1847_v17  ;;  %v1938_v37 = vpop.f32.mrb[28].mxu1 }
 0x192   : > { %v1939_v52 = vpop.f32.mrb[29].mxu1 }
 0x193   : > { %v1940_v29 = vadd.f32 %v1939_v52, %v1938_v37  ;;  %v1941_v20 = vpop.f32.mrb[30].mxu1 }
 0x194   : > { %v1942_v8 = vpop.f32.mrb[31].mxu1 }
 0x195   : > { %v1943_v26 = vadd.f32 %v1942_v8, %v1941_v20  ;;  %v1850_v30 = vpop.f32.mrb[28].mxu0  ;;  %v2690_v7 = vadd.f32 %v1940_v29, %v950_v23  ;;  %v974_v20 = vadd.f32 %v1846_v28, %v2668_v33 }
 0x196   : > { %v1851_v34 = vpop.f32.mrb[29].mxu0 }
 0x197   : > { %v1852_v12 = vadd.f32 %v1851_v34, %v1850_v30  ;;  %v1853_v39 = vpop.f32.mrb[30].mxu0  ;;  %v2692_v40 = vadd.f32 %v1943_v26, %v953_v27  ;;  %v977_v26 = vadd.f32 %v1849_v36, %v2668_v33 }
 0x198   : > { %v1854_v41 = vpop.f32.mrb[31].mxu0 }
 0x199   : > { %v1855_v43 = vadd.f32 %v1854_v41, %v1853_v39  ;;  %v1944_v45 = vpop.f32.mrb[32].mxu1 }
 0x19a   : > { %v1945_v47 = vpop.f32.mrb[33].mxu1 }
 0x19b   : > { %v1946_v50 = vadd.f32 %v1945_v47, %v1944_v45  ;;  %v1947_v51 = vpop.f32.mrb[34].mxu1 }
 0x19c   : > { %v1948_v53 = vpop.f32.mrb[35].mxu1 }
 0x19d   : > { %v1949_v54 = vadd.f32 %v1948_v53, %v1947_v51  ;;  %v1856_v48 = vpop.f32.mrb[32].mxu0  ;;  %v2696_v55 = vadd.f32 %v1946_v50, %v958_v25 }
 0x19e   : > { %v1857_v56 = vpop.f32.mrb[33].mxu0 }
 0x19f   : > { %v1858_v18 = vadd.f32 %v1857_v56, %v1856_v48  ;;  %v1859_v31 = vpop.f32.mrb[34].mxu0  ;;  %v2698_v60 = vadd.f32 %v1949_v54, %v961_v38  ;;  %v982_v38 = vadd.f32 %v1852_v12, %v2668_v33  ;;  %v985_v56 = vadd.f32 %v1855_v43, %v2668_v33 }
 0x1a0   : > { %v1860_v0 = vpop.f32.mrb[35].mxu0 }
 0x1a1   : > { %v1861_v1 = vadd.f32 %v1860_v0, %v1859_v31  ;;  %v1950_v11 = vpop.f32.mrb[36].mxu1 }
 0x1a2   : > { %v1951_v9 = vpop.f32.mrb[37].mxu1 }
 0x1a3   : > { %v1952_v61 = vadd.f32 %v1951_v9, %v1950_v11  ;;  %v1953_v5 = vpop.f32.mrb[38].mxu1 }
 0x1a4   : > { %v1954_v6 = vpop.f32.mrb[39].mxu1 }
 0x1a5   : > { %v1955_v3 = vadd.f32 %v1954_v6, %v1953_v5  ;;  %v1862_v21 = vpop.f32.mrb[36].mxu0  ;;  %v2702_v22 = vadd.f32 %v1952_v61, %v966_v42 }
 0x1a6   : > { %v1863_v24 = vpop.f32.mrb[37].mxu0 }
 0x1a7   : > { %v2704_v17 = vadd.f32 %v1863_v24, %v1862_v21  ;;  %v1865_v35 = vpop.f32.mrb[38].mxu0  ;;  %v2706_v37 = vadd.f32 %v1955_v3, %v969_v46  ;;  %v990_v21 = vadd.f32 %v1858_v18, %v2668_v33 }
 0x1a8   : > { %v1866_v52 = vpop.f32.mrb[39].mxu0 }
 0x1a9   : > { %v2708_v23 = vadd.f32 %v1866_v52, %v1865_v35  ;;  %v1956_v29 = vpop.f32.mrb[40].mxu1  ;;  %v993_v52 = vadd.f32 %v1861_v1, %v2668_v33 }
 0x1aa   : > { %v1957_v58 = vpop.f32.mrb[41].mxu1 }
 0x1ab   : > { %v1958_v8 = vadd.f32 %v1957_v58, %v1956_v29  ;;  %v1959_v27 = vpop.f32.mrb[42].mxu1 }
 0x1ac   : > { %v1960_v59 = vpop.f32.mrb[43].mxu1 }
 0x1ad   : > { %v1961_v30 = vadd.f32 %v1960_v59, %v1959_v27  ;;  %v1868_v34 = vpop.f32.mrb[40].mxu0  ;;  %v2712_v39 = vadd.f32 %v1958_v8, %v974_v20 }
 0x1ae   : > { %v1869_v41 = vpop.f32.mrb[41].mxu0 }
 0x1af   : > { %v2714_v45 = vadd.f32 %v1869_v41, %v1868_v34  ;;  %v1871_v47 = vpop.f32.mrb[42].mxu0  ;;  %v2716_v25 = vadd.f32 %v1961_v30, %v977_v26 }
 0x1b0   : > { %v1872_v50 = vpop.f32.mrb[43].mxu0 }
 0x1b1   : > { %v2718_v51 = vadd.f32 %v1872_v50, %v1871_v47  ;;  %v1962_v28 = vpop.f32.mrb[44].mxu1 }
 0x1b2   : > { %v1963_v53 = vpop.f32.mrb[45].mxu1 }
 0x1b3   : > { %v1964_v54 = vadd.f32 %v1963_v53, %v1962_v28  ;;  %v1965_v48 = vpop.f32.mrb[46].mxu1 }
 0x1b4   : > { %v1966_v36 = vpop.f32.mrb[47].mxu1 }
 0x1b5   : > { %v1967_v31 = vadd.f32 %v1966_v36, %v1965_v48  ;;  %v1874_v0 = vpop.f32.mrb[44].mxu0  ;;  %v2724_v11 = vadd.f32 %v1964_v54, %v982_v38 }
 0x1b6   : > { %v1875_v9 = vpop.f32.mrb[45].mxu0 }
 0x1b7   : > { %v2726_v42 = vadd.f32 %v1875_v9, %v1874_v0  ;;  %v1877_v61 = vpop.f32.mrb[46].mxu0  ;;  %v2728_v5 = vadd.f32 %v1967_v31, %v985_v56 }
 0x1b8   : > { %v1878_v6 = vpop.f32.mrb[47].mxu0 }
 0x1b9   : > { %v2730_v12 = vadd.f32 %v1878_v6, %v1877_v61  ;;  %v1968_v46 = vpop.f32.mrb[48].mxu1 }
 0x1ba   : > { %v1969_v3 = vpop.f32.mrb[49].mxu1 }
 0x1bb   : > { %v1970_v43 = vadd.f32 %v1969_v3, %v1968_v46  ;;  %v1971_v24 = vpop.f32.mrb[50].mxu1 }
 0x1bc   : > { %v1972_v35 = vpop.f32.mrb[51].mxu1 }
 0x1bd   : > { %v1973_v29 = vadd.f32 %v1972_v35, %v1971_v24  ;;  %v2046_v58 = vpop.f32.mrb[48].mxu0  ;;  %v2734_v20 = vadd.f32 %v1970_v43, %v990_v21 }
 0x1be   : > { %v1256_v8 = vadd.f32 %v2046_v58, %v2678_v10  ;;  %v1247_v27 = vpop.f32.mrb[49].mxu0 }
 0x1bf   : > { %v1248_v59 = vadd.f32 %v1247_v27, %v2672_v14  ;;  %v2047_v26 = vpop.f32.mrb[50].mxu0  ;;  %v2738_v30 = vadd.f32 %v1973_v29, %v993_v52 }
 0x1c0   : > { %v1376_v34 = vmax.f32 %v1256_v8, 0.0  ;;  %v1259_v18 = vadd.f32 %v2047_v26, %v2680_v63  ;;  %v1250_v41 = vpop.f32.mrb[51].mxu0  ;;  %v998_v63 = vadd.f32 %v2704_v17, %v2668_v33 }
 0x1c1   : > { %v1374_v1 = vmax.f32 %v1248_v59, 0.0  ;;  %v1251_v10 = vadd.f32 %v1250_v41, %v2674_v44  ;;  %v1974_v47 = vpop.f32.mrb[52].mxu1  ;;  %v1001_v44 = vadd.f32 %v2708_v23, %v2668_v33 }
 0x1c2   : > { %v1762_v14 = vpack.c.bf16 %v1376_v34, %v1376_v34  ;;  %v1377_v50 = vmax.f32 %v1259_v18, 0.0  ;;  %v1975_v28 = vpop.f32.mrb[53].mxu1 }
 0x1c3   : > { %v1760_v53 = vpack.c.bf16 %v1374_v1, %v1374_v1  ;;  %v1375_v38 = vmax.f32 %v1251_v10, 0.0  ;;  %v1976_v54 = vadd.f32 %v1975_v28, %v1974_v47  ;;  %v1977_v48 = vpop.f32.mrb[54].mxu1 }
 0x1c4   : > { %1537 = vst.msk [vmem:[%s2744_s23 + $0x8] sm:$0xf] %vm1534_vm1, %v1762_v14  ;;  %v1763_v36 = vpack.c.bf16 %v1377_v50, %v1377_v50  ;;  %v1978_v56 = vpop.f32.mrb[55].mxu1 }
 0x1c5   : > { %1535 = vst.msk [vmem:[%s2744_s23] sm:$0xf] %vm1534_vm1, %v1760_v53  ;;  %v1761_v31 = vpack.c.bf16 %v1375_v38, %v1375_v38  ;;  %v1979_v0 = vadd.f32 %v1978_v56, %v1977_v48  ;;  %v2050_v9 = vpop.f32.mrb[52].mxu0  ;;  %v2755_v61 = vadd.f32 %v1976_v54, %v998_v63 }
 0x1c6   : > { %1538 = vst.msk [vmem:[%s2744_s23 + $0xc] sm:$0xf] %vm1534_vm1, %v1763_v36  ;;  %v1272_v17 = vadd.f32 %v2050_v9, %v2690_v7  ;;  %v1263_v6 = vpop.f32.mrb[53].mxu0 }
 0x1c7   : > { %1536 = vst.msk [vmem:[%s2744_s23 + $0x4] sm:$0xf] %vm1534_vm1, %v1761_v31  ;;  %v1264_v46 = vadd.f32 %v1263_v6, %v2684_v15  ;;  %v2051_v3 = vpop.f32.mrb[54].mxu0  ;;  %v2763_v21 = vadd.f32 %v1979_v0, %v1001_v44  ;;  %v1006_v15 = vadd.f32 %v2714_v45, %v2668_v33 }
 0x1c8   : > { %v1380_v23 = vmax.f32 %v1272_v17, 0.0  ;;  %v1275_v43 = vadd.f32 %v2051_v3, %v2692_v40  ;;  %v1266_v24 = vpop.f32.mrb[55].mxu0 }
 0x1c9   : > { %v1378_v35 = vmax.f32 %v1264_v46, 0.0  ;;  %v1267_v52 = vadd.f32 %v1266_v24, %v2686_v16  ;;  %v1980_v29 = vpop.f32.mrb[56].mxu1  ;;  %v1009_v16 = vadd.f32 %v2718_v51, %v2668_v33 }
 0x1ca   : > { %v1766_v58 = vpack.c.bf16 %v1380_v23, %v1380_v23  ;;  %v1381_v7 = vmax.f32 %v1275_v43, 0.0  ;;  %v1981_v8 = vpop.f32.mrb[57].mxu1 }
 0x1cb   : > { %v1764_v27 = vpack.c.bf16 %v1378_v35, %v1378_v35  ;;  %v1379_v59 = vmax.f32 %v1267_v52, 0.0  ;;  %v1982_v26 = vadd.f32 %v1981_v8, %v1980_v29  ;;  %v1983_v34 = vpop.f32.mrb[58].mxu1 }
 0x1cc   : > { %1541 = vst.msk [vmem:[%s2744_s23 + $0x18] sm:$0xf] %vm1534_vm1, %v1766_v58  ;;  %v1767_v40 = vpack.c.bf16 %v1381_v7, %v1381_v7  ;;  %v1984_v18 = vpop.f32.mrb[59].mxu1 }
 0x1cd   : > { %1539 = vst.msk [vmem:[%s2744_s23 + $0x10] sm:$0xf] %vm1534_vm1, %v1764_v27  ;;  %v1765_v41 = vpack.c.bf16 %v1379_v59, %v1379_v59  ;;  %v1985_v1 = vadd.f32 %v1984_v18, %v1983_v34  ;;  %v2054_v10 = vpop.f32.mrb[56].mxu0  ;;  %v2775_v47 = vadd.f32 %v1982_v26, %v1006_v15  ;;  %v1022_v34 = vadd.f32 %v2649_v49, %v2668_v33 }
 0x1ce   : > { %1542 = vst.msk [vmem:[%s2744_s23 + $0x1c] sm:$0xf] %vm1534_vm1, %v1767_v40  ;;  %v1288_v45 = vadd.f32 %v2054_v10, %v2702_v22  ;;  %v1279_v14 = vpop.f32.mrb[57].mxu0 }
 0x1cf   : > { %1540 = vst.msk [vmem:[%s2744_s23 + $0x14] sm:$0xf] %vm1534_vm1, %v1765_v41  ;;  %v1280_v50 = vadd.f32 %v1279_v14, %v2696_v55  ;;  %v2055_v28 = vpop.f32.mrb[58].mxu0  ;;  %v2783_v63 = vadd.f32 %v1985_v1, %v1009_v16  ;;  %v1014_v55 = vadd.f32 %v2726_v42, %v2668_v33 }
 0x1d0   : > { %v1384_v51 = vmax.f32 %v1288_v45, 0.0  ;;  %v1291_v53 = vadd.f32 %v2055_v28, %v2706_v37  ;;  %v1282_v38 = vpop.f32.mrb[59].mxu0 }
 0x1d1   : > { %v1382_v54 = vmax.f32 %v1280_v50, 0.0  ;;  %v1283_v48 = vadd.f32 %v1282_v38, %v2698_v60  ;;  %v1986_v36 = vpop.f32.mrb[60].mxu1  ;;  %v1017_v60 = vadd.f32 %v2730_v12, %v2668_v33 }
 0x1d2   : > { %v1770_v56 = vpack.c.bf16 %v1384_v51, %v1384_v51  ;;  %v1385_v22 = vmax.f32 %v1291_v53, 0.0  ;;  %v1987_v44 = vpop.f32.mrb[61].mxu1 }
 0x1d3   : > { %v1768_v31 = vpack.c.bf16 %v1382_v54, %v1382_v54  ;;  %v1383_v0 = vmax.f32 %v1283_v48, 0.0  ;;  %v1988_v9 = vadd.f32 %v1987_v44, %v1986_v36  ;;  %v1989_v17 = vpop.f32.mrb[62].mxu1 }
 0x1d4   : > { %1545 = vst.msk [vmem:[%s2744_s23 + $0x28] sm:$0xf] %vm1534_vm1, %v1770_v56  ;;  %v1771_v37 = vpack.c.bf16 %v1385_v22, %v1385_v22  ;;  %v1990_v6 = vpop.f32.mrb[63].mxu1 }
 0x1d5   : > { %1543 = vst.msk [vmem:[%s2744_s23 + $0x20] sm:$0xf] %vm1534_vm1, %v1768_v31  ;;  %v1769_v46 = vpack.c.bf16 %v1383_v0, %v1383_v0  ;;  %v1991_v3 = vadd.f32 %v1990_v6, %v1989_v17  ;;  %v2058_v23 = vpop.f32.mrb[60].mxu0  ;;  %v1175_v43 = vadd.f32 %v1988_v9, %v1014_v55 }
 0x1d6   : > { %1546 = vst.msk [vmem:[%s2744_s23 + $0x2c] sm:$0xf] %vm1534_vm1, %v1771_v37  ;;  %v1304_v42 = vadd.f32 %v2058_v23, %v2724_v11  ;;  %v1295_v24 = vpop.f32.mrb[61].mxu0 }
 0x1d7   : > { %1544 = vst.msk [vmem:[%s2744_s23 + $0x24] sm:$0xf] %vm1534_vm1, %v1769_v46  ;;  %v1296_v35 = vadd.f32 %v1295_v24, %v2712_v39  ;;  %v2059_v52 = vpop.f32.mrb[62].mxu0  ;;  %v1178_v29 = vadd.f32 %v1991_v3, %v1017_v60 }
 0x1d8   : > { %v1388_v58 = vmax.f32 %v1304_v42, 0.0  ;;  %v1307_v12 = vadd.f32 %v2059_v52, %v2728_v5  ;;  %v1298_v7 = vpop.f32.mrb[63].mxu0 }
 0x1d9   : > { %v1386_v8 = vmax.f32 %v1296_v35, 0.0  ;;  %v1299_v15 = vadd.f32 %v1298_v7, %v2716_v25  ;;  %v1992_v27 = vpop.f32.mrb[64].mxu1  ;;  %v1025_v25 = vadd.f32 %v2651_v2, %v2668_v33 }
 0x1da   : > { %v1774_v59 = vpack.c.bf16 %v1388_v58, %v1388_v58  ;;  %v1389_v26 = vmax.f32 %v1307_v12, 0.0  ;;  %v1993_v11 = vpop.f32.mrb[65].mxu1 }
 0x1db   : > { %v1772_v39 = vpack.c.bf16 %v1386_v8, %v1386_v8  ;;  %v1387_v40 = vmax.f32 %v1299_v15, 0.0  ;;  %v1994_v18 = vadd.f32 %v1993_v11, %v1992_v27  ;;  %v1995_v16 = vpop.f32.mrb[66].mxu1  ;;  %v1038_v27 = vadd.f32 %v2657_v4, %v2668_v33 }
 0x1dc   : > { %1549 = vst.msk [vmem:[%s2744_s23 + $0x38] sm:$0xf] %vm1534_vm1, %v1774_v59  ;;  %v1775_v5 = vpack.c.bf16 %v1389_v26, %v1389_v26  ;;  %v1996_v41 = vpop.f32.mrb[67].mxu1 }
 0x1dd   : > { %1547 = vst.msk [vmem:[%s2744_s23 + $0x30] sm:$0xf] %vm1534_vm1, %v1772_v39  ;;  %v1773_v1 = vpack.c.bf16 %v1387_v40, %v1387_v40  ;;  %v1997_v10 = vadd.f32 %v1996_v41, %v1995_v16  ;;  %v2062_v45 = vpop.f32.mrb[64].mxu0  ;;  %v2811_v14 = vadd.f32 %v1994_v18, %v1022_v34 }
 0x1de   : > { %1550 = vst.msk [vmem:[%s2744_s23 + $0x3c] sm:$0xf] %vm1534_vm1, %v1775_v5  ;;  %v1320_v49 = vadd.f32 %v2062_v45, %v2755_v61  ;;  %v1311_v50 = vpop.f32.mrb[65].mxu0 }
 0x1df   : > { %1548 = vst.msk [vmem:[%s2744_s23 + $0x34] sm:$0xf] %vm1534_vm1, %v1773_v1  ;;  %v1312_v28 = vadd.f32 %v1311_v50, %v2734_v20  ;;  %v2063_v51 = vpop.f32.mrb[66].mxu0  ;;  %v2819_v53 = vadd.f32 %v1997_v10, %v1025_v25  ;;  %v1030_v20 = vadd.f32 %v2653_v57, %v2668_v33 }
 0x1e0   : > { %v1392_v2 = vmax.f32 %v1320_v49, 0.0  ;;  %v1323_v38 = vadd.f32 %v2063_v51, %v2763_v21  ;;  %v1314_v54 = vpop.f32.mrb[67].mxu0 }
 0x1e1   : > { %v1390_v48 = vmax.f32 %v1312_v28, 0.0  ;;  %v1315_v36 = vadd.f32 %v1314_v54, %v2738_v30  ;;  %v1998_v56 = vpop.f32.mrb[68].mxu1  ;;  %v1033_v30 = vadd.f32 %v2655_v62, %v2668_v33  ;;  %v1046_v54 = vadd.f32 %v2661_v32, %v2668_v33 }
 0x1e2   : > { %v1778_v22 = vpack.c.bf16 %v1392_v2, %v1392_v2  ;;  %v1393_v61 = vmax.f32 %v1323_v38, 0.0  ;;  %v1999_v44 = vpop.f32.mrb[69].mxu1 }
 0x1e3   : > { %v1776_v55 = vpack.c.bf16 %v1390_v48, %v1390_v48  ;;  %v1391_v31 = vmax.f32 %v1315_v36, 0.0  ;;  %v2000_v0 = vadd.f32 %v1999_v44, %v1998_v56  ;;  %v2001_v9 = vpop.f32.mrb[70].mxu1 }
 0x1e4   : > { %1553 = vst.msk [vmem:[%s2744_s23 + $0x48] sm:$0xf] %vm1534_vm1, %v1778_v22  ;;  %v1779_v21 = vpack.c.bf16 %v1393_v61, %v1393_v61  ;;  %v2002_v17 = vpop.f32.mrb[71].mxu1 }
 0x1e5   : > { %1551 = vst.msk [vmem:[%s2744_s23 + $0x40] sm:$0xf] %vm1534_vm1, %v1776_v55  ;;  %v1777_v37 = vpack.c.bf16 %v1391_v31, %v1391_v31  ;;  %v2003_v6 = vadd.f32 %v2002_v17, %v2001_v9  ;;  %v2066_v60 = vpop.f32.mrb[68].mxu0  ;;  %v1191_v46 = vadd.f32 %v2000_v0, %v1030_v20 }
 0x1e6   : > { %1554 = vst.msk [vmem:[%s2744_s23 + $0x4c] sm:$0xf] %vm1534_vm1, %v1779_v21  ;;  %v1336_v57 = vadd.f32 %v2066_v60, %v1175_v43  ;;  %v1327_v3 = vpop.f32.mrb[69].mxu0 }
 0x1e7   : > { %1552 = vst.msk [vmem:[%s2744_s23 + $0x44] sm:$0xf] %vm1534_vm1, %v1777_v37  ;;  %v1328_v23 = vadd.f32 %v1327_v3, %v2775_v47  ;;  %v2067_v42 = vpop.f32.mrb[70].mxu0  ;;  %v1194_v24 = vadd.f32 %v2003_v6, %v1033_v30 }
 0x1e8   : > { %v1396_v35 = vmax.f32 %v1336_v57, 0.0  ;;  %v1339_v52 = vadd.f32 %v2067_v42, %v1178_v29  ;;  %v1330_v62 = vpop.f32.mrb[71].mxu0 }
 0x1e9   : > { %v1394_v58 = vmax.f32 %v1328_v23, 0.0  ;;  %v1331_v12 = vadd.f32 %v1330_v62, %v2783_v63  ;;  %v2004_v7 = vpop.f32.mrb[72].mxu1  ;;  %v1041_v63 = vadd.f32 %v2659_v13, %v2668_v33 }
 0x1ea   : > { %v1782_v8 = vpack.c.bf16 %v1396_v35, %v1396_v35  ;;  %v1397_v15 = vmax.f32 %v1339_v52, 0.0  ;;  %v2005_v43 = vpop.f32.mrb[73].mxu1 }
 0x1eb   : > { %v1780_v59 = vpack.c.bf16 %v1394_v58, %v1394_v58  ;;  %v1395_v47 = vmax.f32 %v1331_v12, 0.0  ;;  %v2006_v26 = vadd.f32 %v2005_v43, %v2004_v7  ;;  %v2007_v11 = vpop.f32.mrb[74].mxu1 }
 0x1ec   : > { %1557 = vst.msk [vmem:[%s2744_s23 + $0x58] sm:$0xf] %vm1534_vm1, %v1782_v8  ;;  %v1783_v29 = vpack.c.bf16 %v1397_v15, %v1397_v15  ;;  %v2008_v34 = vpop.f32.mrb[75].mxu1 }
 0x1ed   : > { %1555 = vst.msk [vmem:[%s2744_s23 + $0x50] sm:$0xf] %vm1534_vm1, %v1780_v59  ;;  %v1781_v39 = vpack.c.bf16 %v1395_v47, %v1395_v47  ;;  %v2009_v40 = vadd.f32 %v2008_v34, %v2007_v11  ;;  %v2070_v18 = vpop.f32.mrb[72].mxu0  ;;  %v1199_v16 = vadd.f32 %v2006_v26, %v1038_v27 }
 0x1ee   : > { %1558 = vst.msk [vmem:[%s2744_s23 + $0x5c] sm:$0xf] %vm1534_vm1, %v1783_v29  ;;  %v1352_v4 = vadd.f32 %v2070_v18, %v1191_v46  ;;  %v1343_v5 = vpop.f32.mrb[73].mxu0 }
 0x1ef   : > { %1556 = vst.msk [vmem:[%s2744_s23 + $0x54] sm:$0xf] %vm1534_vm1, %v1781_v39  ;;  %v1344_v41 = vadd.f32 %v1343_v5, %v2811_v14  ;;  %v2071_v25 = vpop.f32.mrb[74].mxu0  ;;  %v1202_v1 = vadd.f32 %v2009_v40, %v1041_v63 }
 0x1f0   : > { %v1400_v10 = vmax.f32 %v1352_v4, 0.0  ;;  %v1355_v45 = vadd.f32 %v2071_v25, %v1194_v24  ;;  %v1346_v13 = vpop.f32.mrb[75].mxu0 }
 0x1f1   : > { %v1398_v49 = vmax.f32 %v1344_v41, 0.0  ;;  %v1347_v50 = vadd.f32 %v1346_v13, %v2819_v53  ;;  %v2010_v28 = vpop.f32.mrb[76].mxu1  ;;  %v1049_v53 = vadd.f32 %v2663_v19, %v2668_v33 }
 0x1f2   : > { %v1786_v51 = vpack.c.bf16 %v1400_v10, %v1400_v10  ;;  %v1401_v2 = vmax.f32 %v1355_v45, 0.0  ;;  %v2011_v38 = vpop.f32.mrb[77].mxu1 }
 0x1f3   : > { %v1784_v14 = vpack.c.bf16 %v1398_v49, %v1398_v49  ;;  %v1399_v48 = vmax.f32 %v1347_v50, 0.0  ;;  %v2012_v36 = vadd.f32 %v2011_v38, %v2010_v28  ;;  %v2013_v56 = vpop.f32.mrb[78].mxu1 }
 0x1f4   : > { %1561 = vst.msk [vmem:[%s2744_s23 + $0x68] sm:$0xf] %vm1534_vm1, %v1786_v51  ;;  %v1787_v22 = vpack.c.bf16 %v1401_v2, %v1401_v2  ;;  %v2014_v61 = vpop.f32.mrb[79].mxu1 }
 0x1f5   : > { %1559 = vst.msk [vmem:[%s2744_s23 + $0x60] sm:$0xf] %vm1534_vm1, %v1784_v14  ;;  %v1785_v44 = vpack.c.bf16 %v1399_v48, %v1399_v48  ;;  %v2015_v20 = vadd.f32 %v2014_v61, %v2013_v56  ;;  %v1207_v55 = vadd.f32 %v2012_v36, %v1046_v54  ;;  %v2074_v31 = vpop.f32.mrb[76].mxu0 }
 0x1f6   : > { %1562 = vst.msk [vmem:[%s2744_s23 + $0x6c] sm:$0xf] %vm1534_vm1, %v1787_v22  ;;  %v1359_v32 = vpop.f32.mrb[77].mxu0 }
 0x1f7   : > { %1560 = vst.msk [vmem:[%s2744_s23 + $0x64] sm:$0xf] %vm1534_vm1, %v1785_v44  ;;  %v1368_v0 = vadd.f32 %v2074_v31, %v1207_v55  ;;  %v1360_v9 = vadd.f32 %v1359_v32, %v1199_v16  ;;  %v1210_v21 = vadd.f32 %v2015_v20, %v1049_v53  ;;  %v2075_v17 = vpop.f32.mrb[78].mxu0 }
 0x1f8   : > { %v1362_v19 = vpop.f32.mrb[79].mxu0 }
 0x1f9   : > { %v1404_v33 = vmax.f32 %v1368_v0, 0.0  ;;  %v1402_v30 = vmax.f32 %v1360_v9, 0.0  ;;  %v1371_v37 = vadd.f32 %v2075_v17, %v1210_v21  ;;  %v1363_v6 = vadd.f32 %v1362_v19, %v1202_v1 }
 0x1fb   : > { %v1790_v60 = vpack.c.bf16 %v1404_v33, %v1404_v33  ;;  %v1788_v46 = vpack.c.bf16 %v1402_v30, %v1402_v30  ;;  %v1405_v57 = vmax.f32 %v1371_v37, 0.0  ;;  %v1403_v3 = vmax.f32 %v1363_v6, 0.0 }
 0x1fd   : > { %1565 = vst.msk [vmem:[%s2744_s23 + $0x78] sm:$0xf] %vm1534_vm1, %v1790_v60  ;;  %1563 = vst.msk [vmem:[%s2744_s23 + $0x70] sm:$0xf] %vm1534_vm1, %v1788_v46  ;;  %v1791_v23 = vpack.c.bf16 %v1405_v57, %v1405_v57  ;;  %v1789_v42 = vpack.c.bf16 %v1403_v3, %v1403_v3 }
 0x1ff   : > { %1566 = vst.msk [vmem:[%s2744_s23 + $0x7c] sm:$0xf] %vm1534_vm1, %v1791_v23  ;;  %1564 = vst.msk [vmem:[%s2744_s23 + $0x74] sm:$0xf] %vm1534_vm1, %v1789_v42 }
 0x200 PF: > { %s13_s12 = sadd.s32 1, %s2203_s12  }
 0x201   : > { %p10_p5 = scmp.ge.s32.totalorder %s13_s12, 4  }
 0x203   :  { %12 = sbr.rel (!%p10_p5) target bundleno = 1 (0x1), region = 62 }

// kernel: myfcn_forward.15
= control target key start
LH: loop header
LB: loop body
LE: loop exit
PB: predicated region body
PF: predicated region fallthrough
CT: control target
= control target key end

     0   :  { %s2260_s12 = smov 0   ;;  %s2908_s0 = inlined_call_operand.vmem [shape: bf16[704,192], index: 0, kind: input, shape index: {}]   ;;  %s2909_s1 = inlined_call_operand.vmem [shape: bf16[576,64], index: 1, kind: input, shape index: {}]   ;;  %s2910_s2 = inlined_call_operand.vmem [shape: f32[1,64], index: 2, kind: input, shape index: {}]   ;;  %s2911_s3 = inlined_call_operand.vmem [shape: bf16[512,64], index: 3, kind: output, shape index: {}]  }
   0x1 LB: > { %s1647_s13 = sadd.s32 4294967295, %s2237_s12   ;;  %p1651_p0 = scmp.ge.s32.totalorder %s2237_s12, 1  ;;  %s2237_s12 = sphi %s2260_s12, %s13_s12  }
   0x2   : > { %p139_p1 = scmp.lt.s32.totalorder %s2237_s12, 3 }
   0x4   : > { %p140_p2 = pnand %p1651_p0, %p139_p1 }
   0x5   : > { %s164_s14 = smul.u32 (!%p140_p2), 44, %s1647_s13  ;;  %v2177_v0 = vld [vmem:[%s2909_s1 + $0x40] sm:$0xff] (!%p140_p2)   ;;  %v2179_v2 = vld [vmem:[%s2909_s1 + $0x48] sm:$0xff] (!%p140_p2)   ;;  %v2181_v4 = vld [vmem:[%s2909_s1 + $0x50] sm:$0xff] (!%p140_p2)   ;;  %s2239_s6 = smov (!%p140_p2), 64   ;;  %vm454_vm0 = vcmask (!%p140_p2), 523264  }
   0x6   : > { %143 = sbr.rel (%p140_p2) target bundleno = 512 (0x200), region = 32  ;;  %v2178_v1 = vld [vmem:[%s2909_s1] sm:$0xff] (!%p140_p2)   ;;  %2104 = vmatprep.subr.bf16.mxu1 (!%p140_p2), %v2177_v0  ;;  %1820 = vmatprep.subr.bf16.mxu0 (!%p140_p2), %v2177_v0  ;;  %v2180_v3 = vld [vmem:[%s2909_s1 + $0x8] sm:$0xff] (!%p140_p2)   ;;  %v2182_v5 = vld [vmem:[%s2909_s1 + $0x10] sm:$0xff] (!%p140_p2)   ;;  %s1654_s20 = sshll.u32 (!%p140_p2), %s1647_s13, 5  ;;  %vm1558_vm1 = vcmask (!%p140_p2), 519168  }
   0x7   : > { %p165_p3 = scmp.lt.s32.totalorder (!%p140_p2), %s164_s14, 87  ;;  %2112 = vmatpush3.bf16.msra.mxu1 (!%p140_p2), %v2178_v1  ;;  %1821 = vmatpush3.bf16.msra.mxu0 (!%p140_p2), %v2178_v1  ;;  %v2183_v7 = vld [vmem:[%s2909_s1 + $0x58] sm:$0xff] (!%p140_p2)   ;;  %v2185_v22 = vld [vmem:[%s2909_s1 + $0x60] sm:$0xff] (!%p140_p2)   ;;  %v2187_v24 = vld [vmem:[%s2909_s1 + $0x68] sm:$0xff] (!%p140_p2)   ;;  %p172_p4 = scmp.lt.s32.totalorder (!%p140_p2), %s1654_s20, 63 }
   0x8   : > { %2105 = vmatprep.subr.bf16.mxu1 (!%p140_p2), %v2179_v2  ;;  %1822 = vmatprep.subr.bf16.mxu0 (!%p140_p2), %v2179_v2  ;;  %v2184_v20 = vld [vmem:[%s2909_s1 + $0x18] sm:$0xff] (!%p140_p2)   ;;  %v2186_v23 = vld [vmem:[%s2909_s1 + $0x20] sm:$0xff] (!%p140_p2)   ;;  %v2188_v27 = vld [vmem:[%s2909_s1 + $0x28] sm:$0xff] (!%p140_p2)  }
   0x9   : > { %v2189_v28 = vld [vmem:[%s2909_s1 + $0x70] sm:$0xff] (!%p140_p2)   ;;  %v2191_v32 = vld [vmem:[%s2909_s1 + $0x78] sm:$0xff] (!%p140_p2)   ;;  %v2193_v36 = vld [vmem:[%s2909_s1 + $0xc0] sm:$0xff] (!%p140_p2)  }
   0xa   : > { %v2190_v31 = vld [vmem:[%s2909_s1 + $0x30] sm:$0xff] (!%p140_p2)   ;;  %v2192_v35 = vld [vmem:[%s2909_s1 + $0x38] sm:$0xff] (!%p140_p2)   ;;  %v2198_v37 = vld [vmem:[%s2909_s1 + $0x100] sm:$0xff] (!%p140_p2)  }
   0xb   : > { %2113 = vmatpush3.bf16.msra.mxu1 (!%p140_p2), %v2180_v3  ;;  %1823 = vmatpush3.bf16.msra.mxu0 (!%p140_p2), %v2180_v3  ;;  %v2194_v52 = vld [vmem:[%s2909_s1 + $0x80] sm:$0xff] (!%p140_p2)   ;;  %v2197_v55 = vld [vmem:[%s2909_s1 + $0xc8] sm:$0xff] (!%p140_p2)   ;;  %v2201_v63 = vld [vmem:[%s2909_s1 + $0xd0] sm:$0xff] (!%p140_p2)  }
   0xc   : > { %2106 = vmatprep.subr.bf16.mxu1 (!%p140_p2), %v2181_v4  ;;  %1824 = vmatprep.subr.bf16.mxu0 (!%p140_p2), %v2181_v4  ;;  %v2200_v60 = vld [vmem:[%s2909_s1 + $0x88] sm:$0xff] (!%p140_p2)   ;;  %v2202_v3 = vld [vmem:[%s2909_s1 + $0x90] sm:$0xff] (!%p140_p2)   ;;  %v2205_v4 = vld [vmem:[%s2909_s1 + $0xd8] sm:$0xff] (!%p140_p2)  }
   0xd   : > { %s2913_s14 = smov (!%p165_p3, %s164_s14), 87  ;;  %v2218_v1 = vld [vmem:[%s2909_s1 + $0x108] sm:$0xff]   ;;  %s2915_s20 = smov (!%p172_p4, %s1654_s20), 63 }
   0xe   : > { %s1787_s25 = sshll.u32 %s2913_s14, 3  ;;  %s1655_s13 = sshll.u32 %s2915_s20, 2 }
   0xf   : > { %s2288_s28 = scalar_lea.vmem %s2908_s0, %s1787_s25  ;;  %2114 = vmatpush3.bf16.msra.mxu1 %v2182_v5  ;;  %1825 = vmatpush3.bf16.msra.mxu0 %v2182_v5  ;;  %s2778_s23 = scalar_lea.vmem %s2911_s3, %s1655_s13 }
  0x10   : > { %v2294_v6 = vld [vmem:[%s2288_s28 + $0x100] ss:$8 sps:$4 sm:$0xff]   ;;  %v2302_v8 = vld [vmem:[%s2288_s28 + $0xf0] ss:$8 sps:$4 sm:$0xff]   ;;  %2107 = vmatprep.subr.bf16.mxu1 %v2183_v7  ;;  %1826 = vmatprep.subr.bf16.mxu0 %v2183_v7  ;;  %v2340_v16 = vld [vmem:[%s2288_s28 + $0x34] ss:$8 sps:$4 sm:$0xff]  }
  0x11   : > { %442 = vrot.lane.b32.xlu1 %v2294_v6, %s2239_s6  ;;  %v2305_v9 = vld [vmem:[%s2288_s28 + $0x40] ss:$8 sps:$4 sm:$0xff]   ;;  %438 = vrot.lane.b32.xlu0 %v2302_v8, %s2239_s6  ;;  %v2310_v10 = vld [vmem:[%s2288_s28 + $0x30] ss:$8 sps:$4 sm:$0xff]  }
  0x12   : > { %v2315_v11 = vld [vmem:[%s2288_s28 + $0x50] ss:$8 sps:$4 sm:$0xff]   ;;  %v2325_v13 = vld [vmem:[%s2288_s28 + $0x60] ss:$8 sps:$4 sm:$0xff]   ;;  %v2350_v18 = vld [vmem:[%s2288_s28 + $0x44] ss:$8 sps:$4 sm:$0xff]  }
  0x13   : > { %v2320_v12 = vld [vmem:[%s2288_s28 + $0x110] ss:$8 sps:$4 sm:$0xff]   ;;  %v2330_v14 = vld [vmem:[%s2288_s28 + $0x120] ss:$8 sps:$4 sm:$0xff]   ;;  %v2361_v21 = vld [vmem:[%s2288_s28 + $0x54] ss:$8 sps:$4 sm:$0xff]   ;;  %2115 = vmatpush3.bf16.msra.mxu1 %v2184_v20  ;;  %1827 = vmatpush3.bf16.msra.mxu0 %v2184_v20 }
  0x14   : > { %v2335_v15 = vld [vmem:[%s2288_s28 + $0x70] ss:$8 sps:$4 sm:$0xff]   ;;  %v2345_v17 = vld [vmem:[%s2288_s28 + $0x80] ss:$8 sps:$4 sm:$0xff]   ;;  %2108 = vmatprep.subr.bf16.mxu1 %v2185_v22  ;;  %1828 = vmatprep.subr.bf16.mxu0 %v2185_v22  ;;  %v2380_v26 = vld [vmem:[%s2288_s28 + $0x64] ss:$8 sps:$4 sm:$0xff]  }
  0x15   : > { %394 = vrot.lane.b32.xlu1 %v2305_v9, %s2239_s6  ;;  %390 = vrot.lane.b32.xlu0 %v2310_v10, %s2239_s6  ;;  %v2353_v19 = vld [vmem:[%s2288_s28 + $0x90] ss:$8 sps:$4 sm:$0xff]   ;;  %v2375_v25 = vld [vmem:[%s2288_s28 + $0xa0] ss:$8 sps:$4 sm:$0xff]  }
  0x16   : > { %v2391_v29 = vld [vmem:[%s2288_s28 + $0xb0] ss:$8 sps:$4 sm:$0xff]   ;;  %v2396_v30 = vld [vmem:[%s2288_s28 + $0x74] ss:$8 sps:$4 sm:$0xff]   ;;  %v2409_v33 = vld [vmem:[%s2288_s28 + $0xc0] ss:$8 sps:$4 sm:$0xff]  }
  0x17   : > { %2116 = vmatpush3.bf16.msra.mxu1 %v2186_v23  ;;  %1829 = vmatpush3.bf16.msra.mxu0 %v2186_v23  ;;  %v2412_v34 = vld [vmem:[%s2288_s28 + $0x84] ss:$8 sps:$4 sm:$0xff]   ;;  %v2428_v38 = vld [vmem:[%s2288_s28 + $0xd0] ss:$8 sps:$4 sm:$0xff]   ;;  %v2433_v39 = vld [vmem:[%s2288_s28 + $0x94] ss:$8 sps:$4 sm:$0xff]  }
  0x18   : > { %2109 = vmatprep.subr.bf16.mxu1 %v2187_v24  ;;  %1830 = vmatprep.subr.bf16.mxu0 %v2187_v24  ;;  %v2438_v40 = vld [vmem:[%s2288_s28 + $0xe0] ss:$8 sps:$4 sm:$0xff]   ;;  %v2443_v41 = vld [vmem:[%s2288_s28 + $0xa4] ss:$8 sps:$4 sm:$0xff]   ;;  %v2453_v43 = vld [vmem:[%s2288_s28 + $0xb4] ss:$8 sps:$4 sm:$0xff]  }
  0x19   : > { %398 = vrot.lane.b32.xlu1 %v2315_v11, %s2239_s6  ;;  %446 = vrot.lane.b32.xlu0 %v2320_v12, %s2239_s6  ;;  %v2448_v42 = vld [vmem:[%s2288_s28 + $0xc4] ss:$8 sps:$4 sm:$0xff]   ;;  %v2466_v46 = vld [vmem:[%s2288_s28 + $0xd4] ss:$8 sps:$4 sm:$0xff]  }
  0x1a   : > { %v2458_v44 = vld [vmem:[%s2288_s28 + $0xe4] ss:$8 sps:$4 sm:$0xff]   ;;  %v2473_v47 = vld [vmem:[%s2288_s28 + $0xf4] ss:$8 sps:$4 sm:$0xff]   ;;  %v2199_v58 = vld [vmem:[%s2288_s28] ss:$8 sps:$4 sm:$0xff]  }
  0x1b   : > { %2117 = vmatpush3.bf16.msra.mxu1 %v2188_v27  ;;  %1831 = vmatpush3.bf16.msra.mxu0 %v2188_v27  ;;  %v2461_v45 = vld [vmem:[%s2288_s28 + $0x104] ss:$8 sps:$4 sm:$0xff]   ;;  %v2483_v49 = vld [vmem:[%s2288_s28 + $0x114] ss:$8 sps:$4 sm:$0xff]   ;;  %v2206_v22 = vld [vmem:[%s2288_s28 + $0x10] ss:$8 sps:$4 sm:$0xff]  }
  0x1c   : > { %2110 = vmatprep.subr.bf16.mxu1 %v2189_v28  ;;  %1832 = vmatprep.subr.bf16.mxu0 %v2189_v28  ;;  %v2478_v48 = vld [vmem:[%s2288_s28 + $0x124] ss:$8 sps:$4 sm:$0xff]   ;;  %v2203_v57 = vld [vmem:[%s2288_s28 + $0x14] ss:$8 sps:$4 sm:$0xff]  }
  0x1d   : > { %402 = vrot.lane.b32.xlu1 %v2325_v13, %s2239_s6  ;;  %450 = vrot.lane.b32.xlu0 %v2330_v14, %s2239_s6  ;;  %v2195_v54 = vld [vmem:[%s2288_s28 + $0x4] ss:$8 sps:$4 sm:$0xff]   ;;  %v2220_v20 = vld [vmem:[%s2909_s1 + $0x110] sm:$0xff]  }
  0x1e   : > { %v2210_v7 = vld [vmem:[%s2288_s28 + $0x24] ss:$8 sps:$4 sm:$0xff]   ;;  %v2207_v24 = vld [vmem:[%s2909_s1 + $0x98] sm:$0xff]  }
  0x1f   : > { %2118 = vmatpush3.bf16.msra.mxu1 %v2190_v31  ;;  %1833 = vmatpush3.bf16.msra.mxu0 %v2190_v31  ;;  %v2208_v27 = vld [vmem:[%s2909_s1 + $0xe0] sm:$0xff]   ;;  %v2221_v31 = vld [vmem:[%s2909_s1 + $0x118] sm:$0xff]  }
  0x20   : > { %2111 = vmatprep.subr.bf16.mxu1 %v2191_v32  ;;  %1834 = vmatprep.subr.bf16.mxu0 %v2191_v32 }
  0x21   : > { %406 = vrot.lane.b32.xlu1 %v2335_v15, %s2239_s6  ;;  %392 = vrot.lane.b32.xlu0 %v2340_v16, %s2239_s6 }
  0x23   : > { %2119 = vmatpush3.bf16.msra.mxu1 %v2192_v35  ;;  %1835 = vmatpush3.bf16.msra.mxu0 %v2192_v35  ;;  %v2209_v35 = vld [vmem:[%s2909_s1 + $0xa0] sm:$0xff]  }
  0x24   : > { %1932 = vmatprep.subr.bf16.mxu1 %v2193_v36  ;;  %2064 = vmatprep.subr.bf16.mxu0 %v2198_v37  ;;  %v2212_v36 = vld [vmem:[%s2909_s1 + $0xe8] sm:$0xff]  }
  0x25   : > { %410 = vrot.lane.b32.xlu1 %v2345_v17, %s2239_s6  ;;  %396 = vrot.lane.b32.xlu0 %v2350_v18, %s2239_s6 }
  0x29   : > { %414 = vrot.lane.b32.xlu1 %v2353_v19, %s2239_s6  ;;  %400 = vrot.lane.b32.xlu0 %v2361_v21, %s2239_s6 }
  0x2d   : > { %418 = vrot.lane.b32.xlu1 %v2375_v25, %s2239_s6  ;;  %404 = vrot.lane.b32.xlu0 %v2380_v26, %s2239_s6 }
  0x31   : > { %422 = vrot.lane.b32.xlu1 %v2391_v29, %s2239_s6  ;;  %408 = vrot.lane.b32.xlu0 %v2396_v30, %s2239_s6 }
  0x35   : > { %426 = vrot.lane.b32.xlu1 %v2409_v33, %s2239_s6  ;;  %412 = vrot.lane.b32.xlu0 %v2412_v34, %s2239_s6 }
  0x39   : > { %430 = vrot.lane.b32.xlu1 %v2428_v38, %s2239_s6  ;;  %416 = vrot.lane.b32.xlu0 %v2433_v39, %s2239_s6 }
  0x3d   : > { %434 = vrot.lane.b32.xlu1 %v2438_v40, %s2239_s6  ;;  %420 = vrot.lane.b32.xlu0 %v2443_v41, %s2239_s6 }
  0x41   : > { %428 = vrot.lane.b32.xlu1 %v2448_v42, %s2239_s6  ;;  %424 = vrot.lane.b32.xlu0 %v2453_v43, %s2239_s6 }
  0x45   : > { %436 = vrot.lane.b32.xlu1 %v2458_v44, %s2239_s6  ;;  %432 = vrot.lane.b32.xlu0 %v2466_v46, %s2239_s6 }
  0x49   : > { %444 = vrot.lane.b32.xlu1 %v2461_v45, %s2239_s6  ;;  %440 = vrot.lane.b32.xlu0 %v2473_v47, %s2239_s6 }
  0x4d   : > { %452 = vrot.lane.b32.xlu1 %v2478_v48, %s2239_s6  ;;  %448 = vrot.lane.b32.xlu0 %v2483_v49, %s2239_s6 }
  0x83   : > { %v2489_v50 = vpop.permute.xlu1 %442  ;;  %v2491_v51 = vpop.permute.xlu0 %438 }
  0x84   : > { %v568_v53 = vsel %vm454_vm0, %v2448_v42, %v2491_v51  ;;  %v572_v56 = vsel %vm454_vm0, %v2466_v46, %v2489_v50 }
  0x85   : > { %1043 = vmatprep.mubr.bf16.mxu1 %v568_v53 }
  0x86   : > { %1044 = vmatmul.mubr.bf16.vlgmr.msra.gmra.mrb[0].mxu1 %v2409_v33 }
  0x87   : > { %1933 = vmatpush3.bf16.msra.mxu1 %v2194_v52  ;;  %v2509_v59 = vpop.permute.xlu0 %390  ;;  %1051 = vmatprep.mubr.bf16.mxu1 %v572_v56  ;;  %v2514_v61 = vpop.permute.xlu1 %394  ;;  %v2213_v52 = vld [vmem:[%s2288_s28 + $0x20] ss:$8 sps:$4 sm:$0xff]  }
  0x88   : > { %v520_v62 = vsel %vm454_vm0, %v2195_v54, %v2509_v59  ;;  %1934 = vmatprep.subr.bf16.mxu1 %v2197_v55  ;;  %v524_v0 = vsel %vm454_vm0, %v2203_v57, %v2514_v61  ;;  %v2214_v54 = vld [vmem:[%s2909_s1 + $0xa8] sm:$0xff]   ;;  %v2215_v55 = vld [vmem:[%s2909_s1 + $0xf0] sm:$0xff]  }
  0x89   : > { %947 = vmatprep.mubr.bf16.mxu0 %v520_v62  ;;  %v2216_v57 = vld [vmem:[%s2909_s1 + $0xb0] sm:$0xff]  }
  0x8a   : > { %948 = vmatmul.mubr.bf16.vlgmr.msra.gmra.mrb[0].mxu0 %v2199_v58  ;;  %v2217_v58 = vld [vmem:[%s2909_s1 + $0xf8] sm:$0xff]  }
  0x8b   : > { %1935 = vmatpush3.bf16.msra.mxu1 %v2200_v60  ;;  %2065 = vmatpush3.bf16.msra.mxu0 %v2198_v37  ;;  %v2526_v2 = vpop.permute.xlu0 %446  ;;  %v2543_v23 = vpop.permute.xlu1 %398 }
  0x8c   : > { %1936 = vmatprep.subr.bf16.mxu1 %v2201_v63  ;;  %955 = vmatprep.mubr.bf16.mxu0 %v524_v0  ;;  %v576_v5 = vsel %vm454_vm0, %v2458_v44, %v2526_v2  ;;  %v528_v28 = vsel %vm454_vm0, %v2210_v7, %v2543_v23 }
  0x8d   : > { %2066 = vmatprep.subr.bf16.mxu0 %v2218_v1 }
  0x8e   : > { %1052 = vmatmul.mubr.bf16.gmra.mrb[4].mxu1 %v2428_v38 }
  0x8f   : > { %1937 = vmatpush3.bf16.msra.mxu1 %v2202_v3  ;;  %1059 = vmatprep.mubr.bf16.mxu1 %v576_v5  ;;  %v2556_v32 = vpop.permute.xlu0 %450  ;;  %v403_v53 = vpop.permute.xlu1 %402 }
  0x90   : > { %1938 = vmatprep.subr.bf16.mxu1 %v2205_v4  ;;  %2067 = vmatpush3.bf16.msra.mxu0 %v2218_v1  ;;  %v580_v37 = vsel %vm454_vm0, %v2473_v47, %v2556_v32  ;;  %v532_v56 = vsel %vm454_vm0, %v2340_v16, %v403_v53  ;;  %v2219_v16 = vld [vmem:[%s2909_s1 + $0xb8] sm:$0xff]  }
  0x91   : > { %2068 = vmatprep.subr.bf16.mxu0 %v2220_v20 }
  0x92   : > { %956 = vmatmul.mubr.bf16.gmra.mrb[4].mxu0 %v2206_v22 }
  0x93   : > { %1939 = vmatpush3.bf16.msra.mxu1 %v2207_v24  ;;  %963 = vmatprep.mubr.bf16.mxu0 %v528_v28  ;;  %v407_v60 = vpop.permute.xlu1 %406  ;;  %v393_v63 = vpop.permute.xlu0 %392 }
  0x94   : > { %1940 = vmatprep.subr.bf16.mxu1 %v2208_v27  ;;  %2069 = vmatpush3.bf16.msra.mxu0 %v2220_v20  ;;  %v536_v62 = vsel %vm454_vm0, %v2350_v18, %v407_v60  ;;  %v455_v0 = vsel %vm454_vm0, %v2509_v59, %v393_v63 }
  0x95   : > { %2070 = vmatprep.subr.bf16.mxu0 %v2221_v31 }
  0x96   : > { %1060 = vmatmul.mubr.bf16.gmra.mrb[8].mxu1 %v2438_v40 }
  0x97   : > { %1941 = vmatpush3.bf16.msra.mxu1 %v2209_v35  ;;  %1067 = vmatprep.mubr.bf16.mxu1 %v580_v37  ;;  %v411_v1 = vpop.permute.xlu1 %410  ;;  %v397_v4 = vpop.permute.xlu0 %396 }
  0x98   : > { %1942 = vmatprep.subr.bf16.mxu1 %v2212_v36  ;;  %2071 = vmatpush3.bf16.msra.mxu0 %v2221_v31  ;;  %v540_v3 = vsel %vm454_vm0, %v2361_v21, %v411_v1  ;;  %v456_v18 = vsel %vm454_vm0, %v2514_v61, %v397_v4 }
  0x9a   : > { %964 = vmatmul.mubr.bf16.gmra.mrb[8].mxu0 %v2213_v52 }
  0x9b   : > { %1943 = vmatpush3.bf16.msra.mxu1 %v2214_v54  ;;  %971 = vmatprep.mubr.bf16.mxu0 %v532_v56  ;;  %v401_v5 = vpop.permute.xlu0 %400 }
  0x9c   : > { %1944 = vmatprep.subr.bf16.mxu1 %v2215_v55  ;;  %v457_v21 = vsel %vm454_vm0, %v2543_v23, %v401_v5 }
  0x9e   : > { %1068 = vmatmul.mubr.bf16.gmra.mrb[12].mxu1 %v2302_v8 }
  0x9f   : > { %1945 = vmatpush3.bf16.msra.mxu1 %v2216_v57  ;;  %1108 = vmatprep.mubr.bf16.mxu1 %v2325_v13  ;;  %v405_v7 = vpop.permute.xlu0 %404 }
  0xa0   : > { %1946 = vmatprep.subr.bf16.mxu1 %v2217_v58  ;;  %v458_v20 = vsel %vm454_vm0, %v403_v53, %v405_v7 }
  0xa2   : > { %972 = vmatmul.mubr.bf16.gmra.mrb[12].mxu0 %v2310_v10  ;;  %v415_v10 = vpop.permute.xlu1 %414 }
  0xa3   : > { %1947 = vmatpush3.bf16.msra.mxu1 %v2219_v16  ;;  %979 = vmatprep.mubr.bf16.mxu0 %v536_v62  ;;  %v544_v59 = vsel %vm454_vm0, %v2380_v26, %v415_v10  ;;  %v409_v23 = vpop.permute.xlu0 %408 }
  0xa4   : > { %v459_v24 = vsel %vm454_vm0, %v407_v60, %v409_v23 }
  0xa6   : > { %1109 = vmatmul.mubr.bf16.vlgmr.msra.gmra.mrb[16].mxu1 %v455_v0 }
  0xa7   : > { %1116 = vmatprep.mubr.bf16.mxu1 %v2335_v15  ;;  %v413_v28 = vpop.permute.xlu0 %412 }
  0xa8   : > { %v460_v31 = vsel %vm454_vm0, %v411_v1, %v413_v28 }
  0xaa   : > { %980 = vmatmul.mubr.bf16.gmra.mrb[16].mxu0 %v2305_v9  ;;  %v419_v9 = vpop.permute.xlu1 %418 }
  0xab   : > { %987 = vmatprep.mubr.bf16.mxu0 %v540_v3  ;;  %v548_v61 = vsel %vm454_vm0, %v2396_v30, %v419_v9  ;;  %v417_v36 = vpop.permute.xlu0 %416 }
  0xac   : > { %v461_v37 = vsel %vm454_vm0, %v415_v10, %v417_v36 }
  0xae   : > { %1117 = vmatmul.mubr.bf16.gmra.mrb[20].mxu1 %v456_v18  ;;  %v423_v22 = vpop.permute.xlu1 %422 }
  0xaf   : > { %1124 = vmatprep.mubr.bf16.mxu1 %v2345_v17 }
  0xb2   : > { %988 = vmatmul.mubr.bf16.gmra.mrb[20].mxu0 %v2315_v11  ;;  %v552_v11 = vsel %vm454_vm0, %v2412_v34, %v423_v22  ;;  %v427_v27 = vpop.permute.xlu1 %426 }
  0xb3   : > { %995 = vmatprep.mubr.bf16.mxu0 %v544_v59 }
  0xb6   : > { %1125 = vmatmul.mubr.bf16.gmra.mrb[24].mxu1 %v457_v21  ;;  %v431_v35 = vpop.permute.xlu1 %430 }
  0xb7   : > { %1132 = vmatprep.mubr.bf16.mxu1 %v2353_v19 }
  0xba   : > { %996 = vmatmul.mubr.bf16.gmra.mrb[24].mxu0 %v2325_v13  ;;  %v556_v13 = vsel %vm454_vm0, %v2433_v39, %v427_v27  ;;  %v435_v52 = vpop.permute.xlu1 %434 }
  0xbb   : > { %1003 = vmatprep.mubr.bf16.mxu0 %v548_v61 }
  0xbe   : > { %1133 = vmatmul.mubr.bf16.gmra.mrb[28].mxu1 %v458_v20 }
  0xbf   : > { %1140 = vmatprep.mubr.bf16.mxu1 %v2375_v25 }
  0xc2   : > { %1004 = vmatmul.mubr.bf16.gmra.mrb[28].mxu0 %v2335_v15  ;;  %v560_v15 = vsel %vm454_vm0, %v2443_v41, %v431_v35 }
  0xc3   : > { %1011 = vmatprep.mubr.bf16.mxu0 %v552_v11 }
  0xc6   : > { %1141 = vmatmul.mubr.bf16.gmra.mrb[32].mxu1 %v459_v24 }
  0xc7   : > { %1148 = vmatprep.mubr.bf16.mxu1 %v2391_v29 }
  0xca   : > { %1012 = vmatmul.mubr.bf16.gmra.mrb[32].mxu0 %v2345_v17  ;;  %v564_v17 = vsel %vm454_vm0, %v2453_v43, %v435_v52 }
  0xcb   : > { %1019 = vmatprep.mubr.bf16.mxu0 %v556_v13 }
  0xce   : > { %1149 = vmatmul.mubr.bf16.gmra.mrb[36].mxu1 %v460_v31 }
  0xcf   : > { %1156 = vmatprep.mubr.bf16.mxu1 %v2409_v33  ;;  %v421_v33 = vpop.permute.xlu0 %420 }
  0xd0   : > { %v462_v53 = vsel %vm454_vm0, %v419_v9, %v421_v33 }
  0xd2   : > { %1020 = vmatmul.mubr.bf16.gmra.mrb[36].mxu0 %v2353_v19 }
  0xd3   : > { %1027 = vmatprep.mubr.bf16.mxu0 %v560_v15  ;;  %v425_v19 = vpop.permute.xlu0 %424 }
  0xd6   : > { %1157 = vmatmul.mubr.bf16.gmra.mrb[40].mxu1 %v461_v37 }
  0xd7   : > { %1164 = vmatprep.mubr.bf16.mxu1 %v2428_v38  ;;  %v463_v38 = vsel %vm454_vm0, %v423_v22, %v425_v19 }
  0xda   : > { %1028 = vmatmul.mubr.bf16.gmra.mrb[40].mxu0 %v2375_v25  ;;  %v429_v25 = vpop.permute.xlu1 %428 }
  0xdb   : > { %1035 = vmatprep.mubr.bf16.mxu0 %v564_v17 }
  0xde   : > { %1165 = vmatmul.mubr.bf16.gmra.mrb[44].mxu1 %v462_v53 }
  0xdf   : > { %1172 = vmatprep.mubr.bf16.mxu1 %v2438_v40  ;;  %v464_v40 = vsel %vm454_vm0, %v427_v27, %v429_v25 }
  0xe2   : > { %1036 = vmatmul.mubr.bf16.gmra.mrb[44].mxu0 %v2391_v29 }
  0xe3   : > { %2072 = vmatprep.mubr.msk.bf16.mxu0 %vm454_vm0, %v2380_v26 }
  0xe6   : > { %1173 = vmatmul.mubr.bf16.gmra.mrb[48].mxu1 %v463_v38 }
  0xe7   : > { %1180 = vmatprep.mubr.bf16.mxu1 %v2302_v8  ;;  %v433_v8 = vpop.permute.xlu0 %432 }
  0xe8   : > { %v465_v26 = vsel %vm454_vm0, %v431_v35, %v433_v8 }
  0xea   : > { %2073 = vmatmul.mubr.msk.bf16.vlgmr.msra.gmra.mrb[48].mxu0 %vm454_vm0, %v2396_v30 }
  0xeb   : > { %2076 = vmatprep.mubr.msk.bf16.mxu0 %vm454_vm0, %v2412_v34  ;;  %v441_v30 = vpop.permute.xlu0 %440 }
  0xec   : > { %v467_v34 = vsel %vm454_vm0, %v2491_v51, %v441_v30 }
  0xee   : > { %1181 = vmatmul.mubr.bf16.gmra.mrb[52].mxu1 %v464_v40 }
  0xef   : > { %1188 = vmatprep.mubr.bf16.mxu1 %v2294_v6  ;;  %v437_v6 = vpop.permute.xlu1 %436 }
  0xf0   : > { %v466_v29 = vsel %vm454_vm0, %v435_v52, %v437_v6 }
  0xf2   : > { %2077 = vmatmul.mubr.msk.bf16.gmra.mrb[52].mxu0 %vm454_vm0, %v2433_v39 }
  0xf3   : > { %2080 = vmatprep.mubr.msk.bf16.mxu0 %vm454_vm0, %v2443_v41  ;;  %v445_v39 = vpop.permute.xlu1 %444 }
  0xf4   : > { %v468_v41 = vsel %vm454_vm0, %v2489_v50, %v445_v39 }
  0xf6   : > { %1189 = vmatmul.mubr.bf16.gmra.mrb[56].mxu1 %v465_v26 }
  0xf7   : > { %1196 = vmatprep.mubr.bf16.mxu1 %v2320_v12  ;;  %v2222_v12 = vld [vmem:[%s2288_s28 + $0x130] ss:$8 sps:$4 sm:$0xff]  }
  0xfa   : > { %2081 = vmatmul.mubr.msk.bf16.gmra.mrb[56].mxu0 %vm454_vm0, %v2453_v43  ;;  %v2228_v43 = vld [vmem:[%s2288_s28 + $0x150] ss:$8 sps:$4 sm:$0xff]  }
  0xfb   : > { %2084 = vmatprep.mubr.msk.bf16.mxu0 %vm454_vm0, %v2448_v42  ;;  %v449_v42 = vpop.permute.xlu0 %448 }
  0xfe   : > { %1197 = vmatmul.mubr.bf16.gmra.mrb[60].mxu1 %v466_v29  ;;  %v2702_v29 = vld [vmem:[%s2910_s2] ss:$0 sm:$0xff] }
  0xff   : > { %1204 = vmatprep.mubr.bf16.mxu1 %v2330_v14  ;;  %v2225_v14 = vld [vmem:[%s2288_s28 + $0x140] ss:$8 sps:$4 sm:$0xff]  }
 0x102   : > { %2085 = vmatmul.mubr.msk.bf16.gmra.mrb[60].mxu0 %vm454_vm0, %v2466_v46  ;;  %v2224_v46 = vld [vmem:[%s2288_s28 + $0x134] ss:$8 sps:$4 sm:$0xff]  }
 0x103   : > { %2088 = vmatprep.mubr.msk.bf16.mxu0 %vm454_vm0, %v2458_v44  ;;  %v469_v44 = vsel %vm454_vm0, %v2526_v2, %v449_v42 }
 0x106   : > { %1205 = vmatmul.mubr.bf16.gmra.mrb[64].mxu1 %v467_v34 }
 0x107   : > { %1212 = vmatprep.mubr.bf16.mxu1 %v2222_v12 }
 0x10a   : > { %2089 = vmatmul.mubr.msk.bf16.gmra.mrb[64].mxu0 %vm454_vm0, %v2473_v47  ;;  %v453_v47 = vpop.permute.xlu1 %452 }
 0x10b   : > { %2092 = vmatprep.mubr.msk.bf16.mxu0 %vm454_vm0, %v2461_v45  ;;  %v2227_v45 = vld [vmem:[%s2288_s28 + $0x144] ss:$8 sps:$4 sm:$0xff]   ;;  %v470_v50 = vsel %vm454_vm0, %v2556_v32, %v453_v47 }
 0x10e   : > { %1213 = vmatmul.mubr.bf16.gmra.mrb[68].mxu1 %v468_v41 }
 0x10f   : > { %1220 = vmatprep.mubr.bf16.mxu1 %v2225_v14 }
 0x112   : > { %2093 = vmatmul.mubr.msk.bf16.gmra.mrb[68].mxu0 %vm454_vm0, %v2483_v49  ;;  %v2230_v49 = vld [vmem:[%s2288_s28 + $0x154] ss:$8 sps:$4 sm:$0xff]  }
 0x113   : > { %2096 = vmatprep.mubr.msk.bf16.mxu0 %vm454_vm0, %v2478_v48 }
 0x116   : > { %1221 = vmatmul.mubr.bf16.gmra.mrb[72].mxu1 %v469_v44 }
 0x117   : > { %1228 = vmatprep.mubr.bf16.mxu1 %v2228_v43 }
 0x11a   : > { %2097 = vmatmul.mubr.msk.bf16.gmra.mrb[72].mxu0 %vm454_vm0, %v2224_v46 }
 0x11b   : > { %2100 = vmatprep.mubr.msk.bf16.mxu0 %vm454_vm0, %v2227_v45 }
 0x11e   : > { %1229 = vmatmul.mubr.bf16.gmra.mrb[76].mxu1 %v470_v50 }
 0x122   : > { %2101 = vmatmul.mubr.msk.bf16.gmra.mrb[76].mxu0 %vm454_vm0, %v2230_v49 }
 0x159   : > { %v1908_v48 = vpop.f32.mrb[0].mxu1 }
 0x15a   : > { %v1909_v51 = vpop.f32.mrb[1].mxu1 }
 0x15b   : > { %v2683_v54 = vadd.f32 %v1909_v51, %v1908_v48  ;;  %v1911_v2 = vpop.f32.mrb[2].mxu1 }
 0x15c   : > { %v1912_v55 = vpop.f32.mrb[3].mxu1 }
 0x15d   : > { %v2685_v56 = vadd.f32 %v1912_v55, %v1911_v2  ;;  %v1836_v57 = vpop.f32.mrb[0].mxu0 }
 0x15e   : > { %v1837_v58 = vpop.f32.mrb[1].mxu0 }
 0x15f   : > { %v1838_v60 = vadd.f32 %v1837_v58, %v1836_v57  ;;  %v1839_v16 = vpop.f32.mrb[2].mxu0 }
 0x160   : > { %v1840_v62 = vpop.f32.mrb[3].mxu0 }
 0x161   : > { %v1841_v63 = vadd.f32 %v1840_v62, %v1839_v16  ;;  %v1914_v0 = vpop.f32.mrb[4].mxu1  ;;  %v950_v12 = vadd.f32 %v1838_v60, %v2702_v29 }
 0x162   : > { %v1915_v32 = vpop.f32.mrb[5].mxu1 }
 0x163   : > { %v2687_v1 = vadd.f32 %v1915_v32, %v1914_v0  ;;  %v1917_v3 = vpop.f32.mrb[6].mxu1  ;;  %v953_v41 = vadd.f32 %v1841_v63, %v2702_v29 }
 0x164   : > { %v1918_v4 = vpop.f32.mrb[7].mxu1 }
 0x165   : > { %v2689_v18 = vadd.f32 %v1918_v4, %v1917_v3  ;;  %v1842_v10 = vpop.f32.mrb[4].mxu0 }
 0x166   : > { %v1843_v59 = vpop.f32.mrb[5].mxu0 }
 0x167   : > { %v1844_v5 = vadd.f32 %v1843_v59, %v1842_v10  ;;  %v1845_v21 = vpop.f32.mrb[6].mxu0 }
 0x168   : > { %v1846_v9 = vpop.f32.mrb[7].mxu0 }
 0x169   : > { %v1847_v61 = vadd.f32 %v1846_v9, %v1845_v21  ;;  %v1920_v7 = vpop.f32.mrb[8].mxu1  ;;  %v958_v55 = vadd.f32 %v1844_v5, %v2702_v29 }
 0x16a   : > { %v1921_v20 = vpop.f32.mrb[9].mxu1 }
 0x16b   : > { %v2691_v22 = vadd.f32 %v1921_v20, %v1920_v7  ;;  %v1923_v11 = vpop.f32.mrb[10].mxu1  ;;  %v961_v16 = vadd.f32 %v1847_v61, %v2702_v29 }
 0x16c   : > { %v1924_v23 = vpop.f32.mrb[11].mxu1 }
 0x16d   : > { %v2693_v24 = vadd.f32 %v1924_v23, %v1923_v11  ;;  %v1848_v27 = vpop.f32.mrb[8].mxu0 }
 0x16e   : > { %v1849_v13 = vpop.f32.mrb[9].mxu0 }
 0x16f   : > { %v1850_v28 = vadd.f32 %v1849_v13, %v1848_v27  ;;  %v1851_v31 = vpop.f32.mrb[10].mxu0 }
 0x170   : > { %v1852_v35 = vpop.f32.mrb[11].mxu0 }
 0x171   : > { %v1853_v15 = vadd.f32 %v1852_v35, %v1851_v31  ;;  %v1926_v36 = vpop.f32.mrb[12].mxu1  ;;  %v966_v5 = vadd.f32 %v1850_v28, %v2702_v29 }
 0x172   : > { %v1927_v37 = vpop.f32.mrb[13].mxu1 }
 0x173   : > { %v2695_v52 = vadd.f32 %v1927_v37, %v1926_v36  ;;  %v1929_v17 = vpop.f32.mrb[14].mxu1  ;;  %v969_v61 = vadd.f32 %v1853_v15, %v2702_v29 }
 0x174   : > { %v1930_v33 = vpop.f32.mrb[15].mxu1 }
 0x175   : > { %v2697_v53 = vadd.f32 %v1930_v33, %v1929_v17  ;;  %v1854_v19 = vpop.f32.mrb[12].mxu0 }
 0x176   : > { %v1855_v38 = vpop.f32.mrb[13].mxu0 }
 0x177   : > { %v1856_v25 = vadd.f32 %v1855_v38, %v1854_v19  ;;  %v1857_v40 = vpop.f32.mrb[14].mxu0 }
 0x178   : > { %v1858_v8 = vpop.f32.mrb[15].mxu0 }
 0x179   : > { %v1859_v26 = vadd.f32 %v1858_v8, %v1857_v40  ;;  %v1948_v6 = vpop.f32.mrb[16].mxu1  ;;  %v974_v28 = vadd.f32 %v1856_v25, %v2702_v29 }
 0x17a   : > { %v1949_v30 = vpop.f32.mrb[17].mxu1 }
 0x17b   : > { %v1950_v34 = vadd.f32 %v1949_v30, %v1948_v6  ;;  %v1951_v39 = vpop.f32.mrb[18].mxu1  ;;  %v977_v15 = vadd.f32 %v1859_v26, %v2702_v29 }
 0x17c   : > { %v1952_v14 = vpop.f32.mrb[19].mxu1 }
 0x17d   : > { %v1953_v42 = vadd.f32 %v1952_v14, %v1951_v39  ;;  %v1860_v43 = vpop.f32.mrb[16].mxu0  ;;  %v2706_v44 = vadd.f32 %v1950_v34, %v950_v12 }
 0x17e   : > { %v1861_v46 = vpop.f32.mrb[17].mxu0 }
 0x17f   : > { %v1862_v45 = vadd.f32 %v1861_v46, %v1860_v43  ;;  %v1863_v47 = vpop.f32.mrb[18].mxu0  ;;  %v2708_v50 = vadd.f32 %v1953_v42, %v953_v41 }
 0x180   : > { %v1864_v49 = vpop.f32.mrb[19].mxu0 }
 0x181   : > { %v1865_v48 = vadd.f32 %v1864_v49, %v1863_v47  ;;  %v1954_v51 = vpop.f32.mrb[20].mxu1  ;;  %v982_v25 = vadd.f32 %v1862_v45, %v2702_v29 }
 0x182   : > { %v1955_v2 = vpop.f32.mrb[21].mxu1 }
 0x183   : > { %v1956_v57 = vadd.f32 %v1955_v2, %v1954_v51  ;;  %v1957_v58 = vpop.f32.mrb[22].mxu1  ;;  %v985_v26 = vadd.f32 %v1865_v48, %v2702_v29 }
 0x184   : > { %v1958_v60 = vpop.f32.mrb[23].mxu1 }
 0x185   : > { %v1959_v62 = vadd.f32 %v1958_v60, %v1957_v58  ;;  %v1866_v63 = vpop.f32.mrb[20].mxu0  ;;  %v2712_v0 = vadd.f32 %v1956_v57, %v958_v55 }
 0x186   : > { %v1867_v32 = vpop.f32.mrb[21].mxu0 }
 0x187   : > { %v1868_v3 = vadd.f32 %v1867_v32, %v1866_v63  ;;  %v1869_v4 = vpop.f32.mrb[22].mxu0  ;;  %v2714_v10 = vadd.f32 %v1959_v62, %v961_v16 }
 0x188   : > { %v1870_v59 = vpop.f32.mrb[23].mxu0 }
 0x189   : > { %v1871_v21 = vadd.f32 %v1870_v59, %v1869_v4  ;;  %v1960_v9 = vpop.f32.mrb[24].mxu1  ;;  %v990_v45 = vadd.f32 %v1868_v3, %v2702_v29 }
 0x18a   : > { %v1961_v7 = vpop.f32.mrb[25].mxu1 }
 0x18b   : > { %v1962_v20 = vadd.f32 %v1961_v7, %v1960_v9  ;;  %v1963_v11 = vpop.f32.mrb[26].mxu1  ;;  %v993_v48 = vadd.f32 %v1871_v21, %v2702_v29 }
 0x18c   : > { %v1964_v23 = vpop.f32.mrb[27].mxu1 }
 0x18d   : > { %v1965_v27 = vadd.f32 %v1964_v23, %v1963_v11  ;;  %v1872_v13 = vpop.f32.mrb[24].mxu0  ;;  %v2718_v31 = vadd.f32 %v1962_v20, %v966_v5 }
 0x18e   : > { %v1873_v35 = vpop.f32.mrb[25].mxu0 }
 0x18f   : > { %v1874_v36 = vadd.f32 %v1873_v35, %v1872_v13  ;;  %v1875_v37 = vpop.f32.mrb[26].mxu0  ;;  %v2720_v17 = vadd.f32 %v1965_v27, %v969_v61 }
 0x190   : > { %v1876_v33 = vpop.f32.mrb[27].mxu0 }
 0x191   : > { %v1877_v19 = vadd.f32 %v1876_v33, %v1875_v37  ;;  %v1966_v38 = vpop.f32.mrb[28].mxu1 }
 0x192   : > { %v1967_v40 = vpop.f32.mrb[29].mxu1 }
 0x193   : > { %v1968_v8 = vadd.f32 %v1967_v40, %v1966_v38  ;;  %v1969_v6 = vpop.f32.mrb[30].mxu1 }
 0x194   : > { %v1970_v30 = vpop.f32.mrb[31].mxu1 }
 0x195   : > { %v1971_v12 = vadd.f32 %v1970_v30, %v1969_v6  ;;  %v1878_v34 = vpop.f32.mrb[28].mxu0  ;;  %v2724_v39 = vadd.f32 %v1968_v8, %v974_v28  ;;  %v998_v6 = vadd.f32 %v1874_v36, %v2702_v29 }
 0x196   : > { %v1879_v14 = vpop.f32.mrb[29].mxu0 }
 0x197   : > { %v1880_v41 = vadd.f32 %v1879_v14, %v1878_v34  ;;  %v1881_v42 = vpop.f32.mrb[30].mxu0  ;;  %v2726_v43 = vadd.f32 %v1971_v12, %v977_v15  ;;  %v1001_v12 = vadd.f32 %v1877_v19, %v2702_v29 }
 0x198   : > { %v1882_v46 = vpop.f32.mrb[31].mxu0 }
 0x199   : > { %v1883_v47 = vadd.f32 %v1882_v46, %v1881_v42  ;;  %v1972_v49 = vpop.f32.mrb[32].mxu1 }
 0x19a   : > { %v1973_v51 = vpop.f32.mrb[33].mxu1 }
 0x19b   : > { %v1974_v2 = vadd.f32 %v1973_v51, %v1972_v49  ;;  %v1975_v55 = vpop.f32.mrb[34].mxu1 }
 0x19c   : > { %v1976_v57 = vpop.f32.mrb[35].mxu1 }
 0x19d   : > { %v1977_v58 = vadd.f32 %v1976_v57, %v1975_v55  ;;  %v1884_v60 = vpop.f32.mrb[32].mxu0  ;;  %v2730_v16 = vadd.f32 %v1974_v2, %v982_v25 }
 0x19e   : > { %v1885_v62 = vpop.f32.mrb[33].mxu0 }
 0x19f   : > { %v1886_v63 = vadd.f32 %v1885_v62, %v1884_v60  ;;  %v1887_v32 = vpop.f32.mrb[34].mxu0  ;;  %v2732_v4 = vadd.f32 %v1977_v58, %v985_v26  ;;  %v1006_v26 = vadd.f32 %v1880_v41, %v2702_v29  ;;  %v1009_v62 = vadd.f32 %v1883_v47, %v2702_v29 }
 0x1a0   : > { %v1888_v59 = vpop.f32.mrb[35].mxu0 }
 0x1a1   : > { %v1889_v9 = vadd.f32 %v1888_v59, %v1887_v32  ;;  %v1978_v7 = vpop.f32.mrb[36].mxu1 }
 0x1a2   : > { %v1979_v5 = vpop.f32.mrb[37].mxu1 }
 0x1a3   : > { %v1980_v20 = vadd.f32 %v1979_v5, %v1978_v7  ;;  %v1981_v11 = vpop.f32.mrb[38].mxu1 }
 0x1a4   : > { %v1982_v23 = vpop.f32.mrb[39].mxu1 }
 0x1a5   : > { %v1983_v61 = vadd.f32 %v1982_v23, %v1981_v11  ;;  %v1890_v27 = vpop.f32.mrb[36].mxu0  ;;  %v2736_v13 = vadd.f32 %v1980_v20, %v990_v45 }
 0x1a6   : > { %v1891_v35 = vpop.f32.mrb[37].mxu0 }
 0x1a7   : > { %v2738_v37 = vadd.f32 %v1891_v35, %v1890_v27  ;;  %v1893_v33 = vpop.f32.mrb[38].mxu0  ;;  %v2740_v38 = vadd.f32 %v1983_v61, %v993_v48  ;;  %v1014_v27 = vadd.f32 %v1886_v63, %v2702_v29 }
 0x1a8   : > { %v1894_v40 = vpop.f32.mrb[39].mxu0 }
 0x1a9   : > { %v2742_v28 = vadd.f32 %v1894_v40, %v1893_v33  ;;  %v1984_v8 = vpop.f32.mrb[40].mxu1  ;;  %v1017_v40 = vadd.f32 %v1889_v9, %v2702_v29 }
 0x1aa   : > { %v1985_v3 = vpop.f32.mrb[41].mxu1 }
 0x1ab   : > { %v1986_v30 = vadd.f32 %v1985_v3, %v1984_v8  ;;  %v1987_v15 = vpop.f32.mrb[42].mxu1 }
 0x1ac   : > { %v1988_v21 = vpop.f32.mrb[43].mxu1 }
 0x1ad   : > { %v1989_v34 = vadd.f32 %v1988_v21, %v1987_v15  ;;  %v1896_v14 = vpop.f32.mrb[40].mxu0  ;;  %v2746_v42 = vadd.f32 %v1986_v30, %v998_v6 }
 0x1ae   : > { %v1897_v46 = vpop.f32.mrb[41].mxu0 }
 0x1af   : > { %v2748_v49 = vadd.f32 %v1897_v46, %v1896_v14  ;;  %v1899_v51 = vpop.f32.mrb[42].mxu0  ;;  %v2750_v25 = vadd.f32 %v1989_v34, %v1001_v12 }
 0x1b0   : > { %v1900_v2 = vpop.f32.mrb[43].mxu0 }
 0x1b1   : > { %v2752_v55 = vadd.f32 %v1900_v2, %v1899_v51  ;;  %v1990_v36 = vpop.f32.mrb[44].mxu1 }
 0x1b2   : > { %v1991_v57 = vpop.f32.mrb[45].mxu1 }
 0x1b3   : > { %v1992_v58 = vadd.f32 %v1991_v57, %v1990_v36  ;;  %v1993_v60 = vpop.f32.mrb[46].mxu1 }
 0x1b4   : > { %v1994_v19 = vpop.f32.mrb[47].mxu1 }
 0x1b5   : > { %v1995_v32 = vadd.f32 %v1994_v19, %v1993_v60  ;;  %v1902_v59 = vpop.f32.mrb[44].mxu0  ;;  %v2758_v7 = vadd.f32 %v1992_v58, %v1006_v26 }
 0x1b6   : > { %v1903_v5 = vpop.f32.mrb[45].mxu0 }
 0x1b7   : > { %v2760_v45 = vadd.f32 %v1903_v5, %v1902_v59  ;;  %v1905_v20 = vpop.f32.mrb[46].mxu0  ;;  %v2762_v11 = vadd.f32 %v1995_v32, %v1009_v62 }
 0x1b8   : > { %v1906_v23 = vpop.f32.mrb[47].mxu0 }
 0x1b9   : > { %v2764_v41 = vadd.f32 %v1906_v23, %v1905_v20  ;;  %v1996_v48 = vpop.f32.mrb[48].mxu1 }
 0x1ba   : > { %v1997_v61 = vpop.f32.mrb[49].mxu1 }
 0x1bb   : > { %v1998_v47 = vadd.f32 %v1997_v61, %v1996_v48  ;;  %v1999_v35 = vpop.f32.mrb[50].mxu1 }
 0x1bc   : > { %v2000_v33 = vpop.f32.mrb[51].mxu1 }
 0x1bd   : > { %v2001_v8 = vadd.f32 %v2000_v33, %v1999_v35  ;;  %v2074_v3 = vpop.f32.mrb[48].mxu0  ;;  %v2768_v6 = vadd.f32 %v1998_v47, %v1014_v27 }
 0x1be   : > { %v1280_v30 = vadd.f32 %v2074_v3, %v2712_v0  ;;  %v1271_v15 = vpop.f32.mrb[49].mxu0 }
 0x1bf   : > { %v1272_v21 = vadd.f32 %v1271_v15, %v2706_v44  ;;  %v2075_v12 = vpop.f32.mrb[50].mxu0  ;;  %v2772_v34 = vadd.f32 %v2001_v8, %v1017_v40 }
 0x1c0   : > { %v1400_v14 = vmax.f32 %v1280_v30, 0.0  ;;  %v1283_v63 = vadd.f32 %v2075_v12, %v2714_v10  ;;  %v1274_v46 = vpop.f32.mrb[51].mxu0  ;;  %v1022_v10 = vadd.f32 %v2738_v37, %v2702_v29 }
 0x1c1   : > { %v1398_v9 = vmax.f32 %v1272_v21, 0.0  ;;  %v1275_v0 = vadd.f32 %v1274_v46, %v2708_v50  ;;  %v2002_v51 = vpop.f32.mrb[52].mxu1  ;;  %v1025_v50 = vadd.f32 %v2742_v28, %v2702_v29 }
 0x1c2   : > { %v1790_v44 = vpack.c.bf16 %v1400_v14, %v1400_v14  ;;  %v1401_v2 = vmax.f32 %v1283_v63, 0.0  ;;  %v2003_v36 = vpop.f32.mrb[53].mxu1 }
 0x1c3   : > { %v1788_v57 = vpack.c.bf16 %v1398_v9, %v1398_v9  ;;  %v1399_v26 = vmax.f32 %v1275_v0, 0.0  ;;  %v2004_v58 = vadd.f32 %v2003_v36, %v2002_v51  ;;  %v2005_v60 = vpop.f32.mrb[54].mxu1 }
 0x1c4   : > { %1561 = vst.msk [vmem:[%s2778_s23 + $0x8] sm:$0xf] %vm1558_vm1, %v1790_v44  ;;  %v1791_v19 = vpack.c.bf16 %v1401_v2, %v1401_v2  ;;  %v2006_v62 = vpop.f32.mrb[55].mxu1 }
 0x1c5   : > { %1559 = vst.msk [vmem:[%s2778_s23] sm:$0xf] %vm1558_vm1, %v1788_v57  ;;  %v1789_v32 = vpack.c.bf16 %v1399_v26, %v1399_v26  ;;  %v2007_v59 = vadd.f32 %v2006_v62, %v2005_v60  ;;  %v2078_v5 = vpop.f32.mrb[52].mxu0  ;;  %v2789_v20 = vadd.f32 %v2004_v58, %v1022_v10 }
 0x1c6   : > { %1562 = vst.msk [vmem:[%s2778_s23 + $0xc] sm:$0xf] %vm1558_vm1, %v1791_v19  ;;  %v1296_v37 = vadd.f32 %v2078_v5, %v2724_v39  ;;  %v1287_v23 = vpop.f32.mrb[53].mxu0 }
 0x1c7   : > { %1560 = vst.msk [vmem:[%s2778_s23 + $0x4] sm:$0xf] %vm1558_vm1, %v1789_v32  ;;  %v1288_v48 = vadd.f32 %v1287_v23, %v2718_v31  ;;  %v2079_v61 = vpop.f32.mrb[54].mxu0  ;;  %v2797_v27 = vadd.f32 %v2007_v59, %v1025_v50  ;;  %v1030_v31 = vadd.f32 %v2748_v49, %v2702_v29 }
 0x1c8   : > { %v1404_v28 = vmax.f32 %v1296_v37, 0.0  ;;  %v1299_v47 = vadd.f32 %v2079_v61, %v2726_v43  ;;  %v1290_v35 = vpop.f32.mrb[55].mxu0 }
 0x1c9   : > { %v1402_v33 = vmax.f32 %v1288_v48, 0.0  ;;  %v1291_v40 = vadd.f32 %v1290_v35, %v2720_v17  ;;  %v2008_v8 = vpop.f32.mrb[56].mxu1  ;;  %v1033_v17 = vadd.f32 %v2752_v55, %v2702_v29 }
 0x1ca   : > { %v1794_v3 = vpack.c.bf16 %v1404_v28, %v1404_v28  ;;  %v1405_v39 = vmax.f32 %v1299_v47, 0.0  ;;  %v2009_v30 = vpop.f32.mrb[57].mxu1 }
 0x1cb   : > { %v1792_v15 = vpack.c.bf16 %v1402_v33, %v1402_v33  ;;  %v1403_v21 = vmax.f32 %v1291_v40, 0.0  ;;  %v2010_v12 = vadd.f32 %v2009_v30, %v2008_v8  ;;  %v2011_v14 = vpop.f32.mrb[58].mxu1 }
 0x1cc   : > { %1565 = vst.msk [vmem:[%s2778_s23 + $0x18] sm:$0xf] %vm1558_vm1, %v1794_v3  ;;  %v1795_v43 = vpack.c.bf16 %v1405_v39, %v1405_v39  ;;  %v2012_v63 = vpop.f32.mrb[59].mxu1 }
 0x1cd   : > { %1563 = vst.msk [vmem:[%s2778_s23 + $0x10] sm:$0xf] %vm1558_vm1, %v1792_v15  ;;  %v1793_v46 = vpack.c.bf16 %v1403_v21, %v1403_v21  ;;  %v2013_v9 = vadd.f32 %v2012_v63, %v2011_v14  ;;  %v2082_v0 = vpop.f32.mrb[56].mxu0  ;;  %v2809_v51 = vadd.f32 %v2010_v12, %v1030_v31  ;;  %v1046_v14 = vadd.f32 %v2683_v54, %v2702_v29 }
 0x1ce   : > { %1566 = vst.msk [vmem:[%s2778_s23 + $0x1c] sm:$0xf] %vm1558_vm1, %v1795_v43  ;;  %v1312_v49 = vadd.f32 %v2082_v0, %v2736_v13  ;;  %v1303_v44 = vpop.f32.mrb[57].mxu0 }
 0x1cf   : > { %1564 = vst.msk [vmem:[%s2778_s23 + $0x14] sm:$0xf] %vm1558_vm1, %v1793_v46  ;;  %v1304_v2 = vadd.f32 %v1303_v44, %v2730_v16  ;;  %v2083_v36 = vpop.f32.mrb[58].mxu0  ;;  %v2817_v10 = vadd.f32 %v2013_v9, %v1033_v17  ;;  %v1038_v16 = vadd.f32 %v2760_v45, %v2702_v29 }
 0x1d0   : > { %v1408_v55 = vmax.f32 %v1312_v49, 0.0  ;;  %v1315_v57 = vadd.f32 %v2083_v36, %v2740_v38  ;;  %v1306_v26 = vpop.f32.mrb[59].mxu0 }
 0x1d1   : > { %v1406_v58 = vmax.f32 %v1304_v2, 0.0  ;;  %v1307_v60 = vadd.f32 %v1306_v26, %v2732_v4  ;;  %v2014_v19 = vpop.f32.mrb[60].mxu1  ;;  %v1041_v4 = vadd.f32 %v2764_v41, %v2702_v29 }
 0x1d2   : > { %v1798_v62 = vpack.c.bf16 %v1408_v55, %v1408_v55  ;;  %v1409_v13 = vmax.f32 %v1315_v57, 0.0  ;;  %v2015_v50 = vpop.f32.mrb[61].mxu1 }
 0x1d3   : > { %v1796_v32 = vpack.c.bf16 %v1406_v58, %v1406_v58  ;;  %v1407_v59 = vmax.f32 %v1307_v60, 0.0  ;;  %v2016_v5 = vadd.f32 %v2015_v50, %v2014_v19  ;;  %v2017_v37 = vpop.f32.mrb[62].mxu1 }
 0x1d4   : > { %1569 = vst.msk [vmem:[%s2778_s23 + $0x28] sm:$0xf] %vm1558_vm1, %v1798_v62  ;;  %v1799_v38 = vpack.c.bf16 %v1409_v13, %v1409_v13  ;;  %v2018_v23 = vpop.f32.mrb[63].mxu1 }
 0x1d5   : > { %1567 = vst.msk [vmem:[%s2778_s23 + $0x20] sm:$0xf] %vm1558_vm1, %v1796_v32  ;;  %v1797_v48 = vpack.c.bf16 %v1407_v59, %v1407_v59  ;;  %v2019_v61 = vadd.f32 %v2018_v23, %v2017_v37  ;;  %v2086_v28 = vpop.f32.mrb[60].mxu0  ;;  %v1199_v47 = vadd.f32 %v2016_v5, %v1038_v16 }
 0x1d6   : > { %1570 = vst.msk [vmem:[%s2778_s23 + $0x2c] sm:$0xf] %vm1558_vm1, %v1799_v38  ;;  %v1328_v45 = vadd.f32 %v2086_v28, %v2758_v7  ;;  %v1319_v35 = vpop.f32.mrb[61].mxu0 }
 0x1d7   : > { %1568 = vst.msk [vmem:[%s2778_s23 + $0x24] sm:$0xf] %vm1558_vm1, %v1797_v48  ;;  %v1320_v33 = vadd.f32 %v1319_v35, %v2746_v42  ;;  %v2087_v40 = vpop.f32.mrb[62].mxu0  ;;  %v1202_v8 = vadd.f32 %v2019_v61, %v1041_v4 }
 0x1d8   : > { %v1412_v3 = vmax.f32 %v1328_v45, 0.0  ;;  %v1331_v41 = vadd.f32 %v2087_v40, %v2762_v11  ;;  %v1322_v39 = vpop.f32.mrb[63].mxu0 }
 0x1d9   : > { %v1410_v30 = vmax.f32 %v1320_v33, 0.0  ;;  %v1323_v31 = vadd.f32 %v1322_v39, %v2750_v25  ;;  %v2020_v15 = vpop.f32.mrb[64].mxu1  ;;  %v1049_v25 = vadd.f32 %v2685_v56, %v2702_v29 }
 0x1da   : > { %v1802_v21 = vpack.c.bf16 %v1412_v3, %v1412_v3  ;;  %v1413_v12 = vmax.f32 %v1331_v41, 0.0  ;;  %v2021_v7 = vpop.f32.mrb[65].mxu1 }
 0x1db   : > { %v1800_v42 = vpack.c.bf16 %v1410_v30, %v1410_v30  ;;  %v1411_v43 = vmax.f32 %v1323_v31, 0.0  ;;  %v2022_v63 = vadd.f32 %v2021_v7, %v2020_v15  ;;  %v2023_v17 = vpop.f32.mrb[66].mxu1  ;;  %v1062_v15 = vadd.f32 %v2691_v22, %v2702_v29 }
 0x1dc   : > { %1573 = vst.msk [vmem:[%s2778_s23 + $0x38] sm:$0xf] %vm1558_vm1, %v1802_v21  ;;  %v1803_v11 = vpack.c.bf16 %v1413_v12, %v1413_v12  ;;  %v2024_v46 = vpop.f32.mrb[67].mxu1 }
 0x1dd   : > { %1571 = vst.msk [vmem:[%s2778_s23 + $0x30] sm:$0xf] %vm1558_vm1, %v1800_v42  ;;  %v1801_v9 = vpack.c.bf16 %v1411_v43, %v1411_v43  ;;  %v2025_v0 = vadd.f32 %v2024_v46, %v2023_v17  ;;  %v2090_v49 = vpop.f32.mrb[64].mxu0  ;;  %v2845_v44 = vadd.f32 %v2022_v63, %v1046_v14 }
 0x1de   : > { %1574 = vst.msk [vmem:[%s2778_s23 + $0x3c] sm:$0xf] %vm1558_vm1, %v1803_v11  ;;  %v1344_v54 = vadd.f32 %v2090_v49, %v2789_v20  ;;  %v1335_v2 = vpop.f32.mrb[65].mxu0 }
 0x1df   : > { %1572 = vst.msk [vmem:[%s2778_s23 + $0x34] sm:$0xf] %vm1558_vm1, %v1801_v9  ;;  %v1336_v36 = vadd.f32 %v1335_v2, %v2768_v6  ;;  %v2091_v55 = vpop.f32.mrb[66].mxu0  ;;  %v2853_v57 = vadd.f32 %v2025_v0, %v1049_v25  ;;  %v1054_v6 = vadd.f32 %v2687_v1, %v2702_v29 }
 0x1e0   : > { %v1416_v56 = vmax.f32 %v1344_v54, 0.0  ;;  %v1347_v26 = vadd.f32 %v2091_v55, %v2797_v27  ;;  %v1338_v58 = vpop.f32.mrb[67].mxu0 }
 0x1e1   : > { %v1414_v60 = vmax.f32 %v1336_v36, 0.0  ;;  %v1339_v19 = vadd.f32 %v1338_v58, %v2772_v34  ;;  %v2026_v62 = vpop.f32.mrb[68].mxu1  ;;  %v1057_v34 = vadd.f32 %v2689_v18, %v2702_v29  ;;  %v1070_v58 = vadd.f32 %v2695_v52, %v2702_v29 }
 0x1e2   : > { %v1806_v13 = vpack.c.bf16 %v1416_v56, %v1416_v56  ;;  %v1417_v20 = vmax.f32 %v1347_v26, 0.0  ;;  %v2027_v50 = vpop.f32.mrb[69].mxu1 }
 0x1e3   : > { %v1804_v16 = vpack.c.bf16 %v1414_v60, %v1414_v60  ;;  %v1415_v32 = vmax.f32 %v1339_v19, 0.0  ;;  %v2028_v59 = vadd.f32 %v2027_v50, %v2026_v62  ;;  %v2029_v5 = vpop.f32.mrb[70].mxu1 }
 0x1e4   : > { %1577 = vst.msk [vmem:[%s2778_s23 + $0x48] sm:$0xf] %vm1558_vm1, %v1806_v13  ;;  %v1807_v27 = vpack.c.bf16 %v1417_v20, %v1417_v20  ;;  %v2030_v37 = vpop.f32.mrb[71].mxu1 }
 0x1e5   : > { %1575 = vst.msk [vmem:[%s2778_s23 + $0x40] sm:$0xf] %vm1558_vm1, %v1804_v16  ;;  %v1805_v38 = vpack.c.bf16 %v1415_v32, %v1415_v32  ;;  %v2031_v23 = vadd.f32 %v2030_v37, %v2029_v5  ;;  %v2094_v4 = vpop.f32.mrb[68].mxu0  ;;  %v1215_v48 = vadd.f32 %v2028_v59, %v1054_v6 }
 0x1e6   : > { %1578 = vst.msk [vmem:[%s2778_s23 + $0x4c] sm:$0xf] %vm1558_vm1, %v1807_v27  ;;  %v1360_v1 = vadd.f32 %v2094_v4, %v1199_v47  ;;  %v1351_v61 = vpop.f32.mrb[69].mxu0 }
 0x1e7   : > { %1576 = vst.msk [vmem:[%s2778_s23 + $0x44] sm:$0xf] %vm1558_vm1, %v1805_v38  ;;  %v1352_v28 = vadd.f32 %v1351_v61, %v2809_v51  ;;  %v2095_v45 = vpop.f32.mrb[70].mxu0  ;;  %v1218_v35 = vadd.f32 %v2031_v23, %v1057_v34 }
 0x1e8   : > { %v1420_v33 = vmax.f32 %v1360_v1, 0.0  ;;  %v1363_v40 = vadd.f32 %v2095_v45, %v1202_v8  ;;  %v1354_v18 = vpop.f32.mrb[71].mxu0 }
 0x1e9   : > { %v1418_v3 = vmax.f32 %v1352_v28, 0.0  ;;  %v1355_v41 = vadd.f32 %v1354_v18, %v2817_v10  ;;  %v2032_v39 = vpop.f32.mrb[72].mxu1  ;;  %v1065_v10 = vadd.f32 %v2693_v24, %v2702_v29 }
 0x1ea   : > { %v1810_v30 = vpack.c.bf16 %v1420_v33, %v1420_v33  ;;  %v1421_v31 = vmax.f32 %v1363_v40, 0.0  ;;  %v2033_v47 = vpop.f32.mrb[73].mxu1 }
 0x1eb   : > { %v1808_v21 = vpack.c.bf16 %v1418_v3, %v1418_v3  ;;  %v1419_v51 = vmax.f32 %v1355_v41, 0.0  ;;  %v2034_v12 = vadd.f32 %v2033_v47, %v2032_v39  ;;  %v2035_v7 = vpop.f32.mrb[74].mxu1 }
 0x1ec   : > { %1581 = vst.msk [vmem:[%s2778_s23 + $0x58] sm:$0xf] %vm1558_vm1, %v1810_v30  ;;  %v1811_v8 = vpack.c.bf16 %v1421_v31, %v1421_v31  ;;  %v2036_v14 = vpop.f32.mrb[75].mxu1 }
 0x1ed   : > { %1579 = vst.msk [vmem:[%s2778_s23 + $0x50] sm:$0xf] %vm1558_vm1, %v1808_v21  ;;  %v1809_v42 = vpack.c.bf16 %v1419_v51, %v1419_v51  ;;  %v2037_v43 = vadd.f32 %v2036_v14, %v2035_v7  ;;  %v2098_v63 = vpop.f32.mrb[72].mxu0  ;;  %v1223_v17 = vadd.f32 %v2034_v12, %v1062_v15 }
 0x1ee   : > { %1582 = vst.msk [vmem:[%s2778_s23 + $0x5c] sm:$0xf] %vm1558_vm1, %v1811_v8  ;;  %v1376_v22 = vadd.f32 %v2098_v63, %v1215_v48  ;;  %v1367_v11 = vpop.f32.mrb[73].mxu0 }
 0x1ef   : > { %1580 = vst.msk [vmem:[%s2778_s23 + $0x54] sm:$0xf] %vm1558_vm1, %v1809_v42  ;;  %v1368_v46 = vadd.f32 %v1367_v11, %v2845_v44  ;;  %v2099_v25 = vpop.f32.mrb[74].mxu0  ;;  %v1226_v9 = vadd.f32 %v2037_v43, %v1065_v10 }
 0x1f0   : > { %v1424_v0 = vmax.f32 %v1376_v22, 0.0  ;;  %v1379_v49 = vadd.f32 %v2099_v25, %v1218_v35  ;;  %v1370_v24 = vpop.f32.mrb[75].mxu0 }
 0x1f1   : > { %v1422_v54 = vmax.f32 %v1368_v46, 0.0  ;;  %v1371_v2 = vadd.f32 %v1370_v24, %v2853_v57  ;;  %v2038_v36 = vpop.f32.mrb[76].mxu1  ;;  %v1073_v57 = vadd.f32 %v2697_v53, %v2702_v29 }
 0x1f2   : > { %v1814_v55 = vpack.c.bf16 %v1424_v0, %v1424_v0  ;;  %v1425_v56 = vmax.f32 %v1379_v49, 0.0  ;;  %v2039_v26 = vpop.f32.mrb[77].mxu1 }
 0x1f3   : > { %v1812_v44 = vpack.c.bf16 %v1422_v54, %v1422_v54  ;;  %v1423_v60 = vmax.f32 %v1371_v2, 0.0  ;;  %v2040_v19 = vadd.f32 %v2039_v26, %v2038_v36  ;;  %v2041_v62 = vpop.f32.mrb[78].mxu1 }
 0x1f4   : > { %1585 = vst.msk [vmem:[%s2778_s23 + $0x68] sm:$0xf] %vm1558_vm1, %v1814_v55  ;;  %v1815_v13 = vpack.c.bf16 %v1425_v56, %v1425_v56  ;;  %v2042_v20 = vpop.f32.mrb[79].mxu1 }
 0x1f5   : > { %1583 = vst.msk [vmem:[%s2778_s23 + $0x60] sm:$0xf] %vm1558_vm1, %v1812_v44  ;;  %v1813_v50 = vpack.c.bf16 %v1423_v60, %v1423_v60  ;;  %v2043_v6 = vadd.f32 %v2042_v20, %v2041_v62  ;;  %v1231_v16 = vadd.f32 %v2040_v19, %v1070_v58  ;;  %v2102_v32 = vpop.f32.mrb[76].mxu0 }
 0x1f6   : > { %1586 = vst.msk [vmem:[%s2778_s23 + $0x6c] sm:$0xf] %vm1558_vm1, %v1815_v13  ;;  %v1383_v52 = vpop.f32.mrb[77].mxu0 }
 0x1f7   : > { %1584 = vst.msk [vmem:[%s2778_s23 + $0x64] sm:$0xf] %vm1558_vm1, %v1813_v50  ;;  %v1392_v59 = vadd.f32 %v2102_v32, %v1231_v16  ;;  %v1384_v5 = vadd.f32 %v1383_v52, %v1223_v17  ;;  %v1234_v27 = vadd.f32 %v2043_v6, %v1073_v57  ;;  %v2103_v37 = vpop.f32.mrb[78].mxu0 }
 0x1f8   : > { %v1386_v53 = vpop.f32.mrb[79].mxu0 }
 0x1f9   : > { %v1428_v29 = vmax.f32 %v1392_v59, 0.0  ;;  %v1426_v34 = vmax.f32 %v1384_v5, 0.0  ;;  %v1395_v38 = vadd.f32 %v2103_v37, %v1234_v27  ;;  %v1387_v23 = vadd.f32 %v1386_v53, %v1226_v9 }
 0x1fb   : > { %v1818_v4 = vpack.c.bf16 %v1428_v29, %v1428_v29  ;;  %v1816_v48 = vpack.c.bf16 %v1426_v34, %v1426_v34  ;;  %v1429_v1 = vmax.f32 %v1395_v38, 0.0  ;;  %v1427_v61 = vmax.f32 %v1387_v23, 0.0 }
 0x1fd   : > { %1589 = vst.msk [vmem:[%s2778_s23 + $0x78] sm:$0xf] %vm1558_vm1, %v1818_v4  ;;  %1587 = vst.msk [vmem:[%s2778_s23 + $0x70] sm:$0xf] %vm1558_vm1, %v1816_v48  ;;  %v1819_v28 = vpack.c.bf16 %v1429_v1, %v1429_v1  ;;  %v1817_v45 = vpack.c.bf16 %v1427_v61, %v1427_v61 }
 0x1ff   : > { %1590 = vst.msk [vmem:[%s2778_s23 + $0x7c] sm:$0xf] %vm1558_vm1, %v1819_v28  ;;  %1588 = vst.msk [vmem:[%s2778_s23 + $0x74] sm:$0xf] %vm1558_vm1, %v1817_v45 }
 0x200 PF: > { %s13_s12 = sadd.s32 1, %s2237_s12  }
 0x201   : > { %p10_p5 = scmp.ge.s32.totalorder %s13_s12, 4  }
 0x203   :  { %12 = sbr.rel (!%p10_p5) target bundleno = 1 (0x1), region = 62 }

// kernel: myfcn_forward.16
= control target key start
LH: loop header
LB: loop body
LE: loop exit
PB: predicated region body
PF: predicated region fallthrough
CT: control target
= control target key end

     0   :  { %s2294_s12 = smov 0   ;;  %s2942_s0 = inlined_call_operand.vmem [shape: bf16[768,192], index: 0, kind: input, shape index: {}]   ;;  %s2943_s1 = inlined_call_operand.vmem [shape: bf16[576,64], index: 1, kind: input, shape index: {}]   ;;  %s2944_s2 = inlined_call_operand.vmem [shape: f32[1,64], index: 2, kind: input, shape index: {}]   ;;  %s2945_s3 = inlined_call_operand.vmem [shape: bf16[512,64], index: 3, kind: output, shape index: {}]  }
   0x1 LB: > { %s1671_s13 = sadd.s32 4294967295, %s2271_s12   ;;  %p1675_p0 = scmp.ge.s32.totalorder %s2271_s12, 1  ;;  %s2271_s12 = sphi %s2294_s12, %s13_s12  }
   0x2   : > { %p139_p1 = scmp.lt.s32.totalorder %s2271_s12, 3 }
   0x4   : > { %p140_p2 = pnand %p1675_p0, %p139_p1 }
   0x5   : > { %s164_s14 = smul.u32 (!%p140_p2), 48, %s1671_s13  ;;  %v2205_v0 = vld [vmem:[%s2943_s1 + $0x40] sm:$0xff] (!%p140_p2)   ;;  %v2207_v2 = vld [vmem:[%s2943_s1 + $0x48] sm:$0xff] (!%p140_p2)   ;;  %v2209_v4 = vld [vmem:[%s2943_s1 + $0x50] sm:$0xff] (!%p140_p2)   ;;  %s2273_s6 = smov (!%p140_p2), 64   ;;  %vm466_vm0 = vcmask (!%p140_p2), 523264  }
   0x6   : > { %143 = sbr.rel (%p140_p2) target bundleno = 512 (0x200), region = 32  ;;  %v2206_v1 = vld [vmem:[%s2943_s1] sm:$0xff] (!%p140_p2)   ;;  %2132 = vmatprep.subr.bf16.mxu1 (!%p140_p2), %v2205_v0  ;;  %1848 = vmatprep.subr.bf16.mxu0 (!%p140_p2), %v2205_v0  ;;  %v2208_v3 = vld [vmem:[%s2943_s1 + $0x8] sm:$0xff] (!%p140_p2)   ;;  %v2210_v5 = vld [vmem:[%s2943_s1 + $0x10] sm:$0xff] (!%p140_p2)   ;;  %s1678_s20 = sshll.u32 (!%p140_p2), %s1671_s13, 5  ;;  %vm1582_vm1 = vcmask (!%p140_p2), 519168  }
   0x7   : > { %p165_p3 = scmp.lt.s32.totalorder (!%p140_p2), %s164_s14, 95  ;;  %2140 = vmatpush3.bf16.msra.mxu1 (!%p140_p2), %v2206_v1  ;;  %1849 = vmatpush3.bf16.msra.mxu0 (!%p140_p2), %v2206_v1  ;;  %v2211_v7 = vld [vmem:[%s2943_s1 + $0x58] sm:$0xff] (!%p140_p2)   ;;  %v2213_v22 = vld [vmem:[%s2943_s1 + $0x60] sm:$0xff] (!%p140_p2)   ;;  %v2215_v24 = vld [vmem:[%s2943_s1 + $0x68] sm:$0xff] (!%p140_p2)   ;;  %p172_p4 = scmp.lt.s32.totalorder (!%p140_p2), %s1678_s20, 63 }
   0x8   : > { %2133 = vmatprep.subr.bf16.mxu1 (!%p140_p2), %v2207_v2  ;;  %1850 = vmatprep.subr.bf16.mxu0 (!%p140_p2), %v2207_v2  ;;  %v2212_v20 = vld [vmem:[%s2943_s1 + $0x18] sm:$0xff] (!%p140_p2)   ;;  %v2214_v23 = vld [vmem:[%s2943_s1 + $0x20] sm:$0xff] (!%p140_p2)   ;;  %v2216_v27 = vld [vmem:[%s2943_s1 + $0x28] sm:$0xff] (!%p140_p2)  }
   0x9   : > { %v2217_v28 = vld [vmem:[%s2943_s1 + $0x70] sm:$0xff] (!%p140_p2)   ;;  %v2219_v32 = vld [vmem:[%s2943_s1 + $0x78] sm:$0xff] (!%p140_p2)   ;;  %v2221_v36 = vld [vmem:[%s2943_s1 + $0xc0] sm:$0xff] (!%p140_p2)  }
   0xa   : > { %v2218_v31 = vld [vmem:[%s2943_s1 + $0x30] sm:$0xff] (!%p140_p2)   ;;  %v2220_v35 = vld [vmem:[%s2943_s1 + $0x38] sm:$0xff] (!%p140_p2)   ;;  %v2226_v37 = vld [vmem:[%s2943_s1 + $0x100] sm:$0xff] (!%p140_p2)  }
   0xb   : > { %2141 = vmatpush3.bf16.msra.mxu1 (!%p140_p2), %v2208_v3  ;;  %1851 = vmatpush3.bf16.msra.mxu0 (!%p140_p2), %v2208_v3  ;;  %v2222_v52 = vld [vmem:[%s2943_s1 + $0x80] sm:$0xff] (!%p140_p2)   ;;  %v2225_v55 = vld [vmem:[%s2943_s1 + $0xc8] sm:$0xff] (!%p140_p2)   ;;  %v2229_v63 = vld [vmem:[%s2943_s1 + $0xd0] sm:$0xff] (!%p140_p2)  }
   0xc   : > { %2134 = vmatprep.subr.bf16.mxu1 (!%p140_p2), %v2209_v4  ;;  %1852 = vmatprep.subr.bf16.mxu0 (!%p140_p2), %v2209_v4  ;;  %v2228_v60 = vld [vmem:[%s2943_s1 + $0x88] sm:$0xff] (!%p140_p2)   ;;  %v2230_v3 = vld [vmem:[%s2943_s1 + $0x90] sm:$0xff] (!%p140_p2)   ;;  %v2233_v4 = vld [vmem:[%s2943_s1 + $0xd8] sm:$0xff] (!%p140_p2)  }
   0xd   : > { %s2947_s14 = smov (!%p165_p3, %s164_s14), 95  ;;  %v2248_v1 = vld [vmem:[%s2943_s1 + $0x108] sm:$0xff]   ;;  %s2949_s20 = smov (!%p172_p4, %s1678_s20), 63 }
   0xe   : > { %s1815_s25 = sshll.u32 %s2947_s14, 3  ;;  %s1679_s13 = sshll.u32 %s2949_s20, 2 }
   0xf   : > { %s2322_s28 = scalar_lea.vmem %s2942_s0, %s1815_s25  ;;  %2142 = vmatpush3.bf16.msra.mxu1 %v2210_v5  ;;  %1853 = vmatpush3.bf16.msra.mxu0 %v2210_v5  ;;  %s2812_s23 = scalar_lea.vmem %s2945_s3, %s1679_s13 }
  0x10   : > { %v2328_v6 = vld [vmem:[%s2322_s28 + $0x110] ss:$8 sps:$4 sm:$0xff]   ;;  %v2336_v8 = vld [vmem:[%s2322_s28 + $0x100] ss:$8 sps:$4 sm:$0xff]   ;;  %2135 = vmatprep.subr.bf16.mxu1 %v2211_v7  ;;  %1854 = vmatprep.subr.bf16.mxu0 %v2211_v7  ;;  %v2374_v16 = vld [vmem:[%s2322_s28 + $0x44] ss:$8 sps:$4 sm:$0xff]  }
  0x11   : > { %454 = vrot.lane.b32.xlu1 %v2328_v6, %s2273_s6  ;;  %v2339_v9 = vld [vmem:[%s2322_s28 + $0x50] ss:$8 sps:$4 sm:$0xff]   ;;  %450 = vrot.lane.b32.xlu0 %v2336_v8, %s2273_s6  ;;  %v2344_v10 = vld [vmem:[%s2322_s28 + $0x40] ss:$8 sps:$4 sm:$0xff]  }
  0x12   : > { %v2349_v11 = vld [vmem:[%s2322_s28 + $0x60] ss:$8 sps:$4 sm:$0xff]   ;;  %v2359_v13 = vld [vmem:[%s2322_s28 + $0x70] ss:$8 sps:$4 sm:$0xff]   ;;  %v2384_v18 = vld [vmem:[%s2322_s28 + $0x54] ss:$8 sps:$4 sm:$0xff]  }
  0x13   : > { %v2354_v12 = vld [vmem:[%s2322_s28 + $0x120] ss:$8 sps:$4 sm:$0xff]   ;;  %v2364_v14 = vld [vmem:[%s2322_s28 + $0x130] ss:$8 sps:$4 sm:$0xff]   ;;  %v2395_v21 = vld [vmem:[%s2322_s28 + $0x64] ss:$8 sps:$4 sm:$0xff]   ;;  %2143 = vmatpush3.bf16.msra.mxu1 %v2212_v20  ;;  %1855 = vmatpush3.bf16.msra.mxu0 %v2212_v20 }
  0x14   : > { %v2369_v15 = vld [vmem:[%s2322_s28 + $0x80] ss:$8 sps:$4 sm:$0xff]   ;;  %v2379_v17 = vld [vmem:[%s2322_s28 + $0x90] ss:$8 sps:$4 sm:$0xff]   ;;  %2136 = vmatprep.subr.bf16.mxu1 %v2213_v22  ;;  %1856 = vmatprep.subr.bf16.mxu0 %v2213_v22  ;;  %v2414_v26 = vld [vmem:[%s2322_s28 + $0x74] ss:$8 sps:$4 sm:$0xff]  }
  0x15   : > { %406 = vrot.lane.b32.xlu1 %v2339_v9, %s2273_s6  ;;  %402 = vrot.lane.b32.xlu0 %v2344_v10, %s2273_s6  ;;  %v2387_v19 = vld [vmem:[%s2322_s28 + $0xa0] ss:$8 sps:$4 sm:$0xff]   ;;  %v2409_v25 = vld [vmem:[%s2322_s28 + $0xb0] ss:$8 sps:$4 sm:$0xff]  }
  0x16   : > { %v2425_v29 = vld [vmem:[%s2322_s28 + $0xc0] ss:$8 sps:$4 sm:$0xff]   ;;  %v2430_v30 = vld [vmem:[%s2322_s28 + $0x84] ss:$8 sps:$4 sm:$0xff]   ;;  %v2443_v33 = vld [vmem:[%s2322_s28 + $0xd0] ss:$8 sps:$4 sm:$0xff]  }
  0x17   : > { %2144 = vmatpush3.bf16.msra.mxu1 %v2214_v23  ;;  %1857 = vmatpush3.bf16.msra.mxu0 %v2214_v23  ;;  %v2446_v34 = vld [vmem:[%s2322_s28 + $0x94] ss:$8 sps:$4 sm:$0xff]   ;;  %v2462_v38 = vld [vmem:[%s2322_s28 + $0xe0] ss:$8 sps:$4 sm:$0xff]   ;;  %v2467_v39 = vld [vmem:[%s2322_s28 + $0xa4] ss:$8 sps:$4 sm:$0xff]  }
  0x18   : > { %2137 = vmatprep.subr.bf16.mxu1 %v2215_v24  ;;  %1858 = vmatprep.subr.bf16.mxu0 %v2215_v24  ;;  %v2472_v40 = vld [vmem:[%s2322_s28 + $0xf0] ss:$8 sps:$4 sm:$0xff]   ;;  %v2477_v41 = vld [vmem:[%s2322_s28 + $0xb4] ss:$8 sps:$4 sm:$0xff]   ;;  %v2487_v43 = vld [vmem:[%s2322_s28 + $0xc4] ss:$8 sps:$4 sm:$0xff]  }
  0x19   : > { %410 = vrot.lane.b32.xlu1 %v2349_v11, %s2273_s6  ;;  %458 = vrot.lane.b32.xlu0 %v2354_v12, %s2273_s6  ;;  %v2482_v42 = vld [vmem:[%s2322_s28 + $0xd4] ss:$8 sps:$4 sm:$0xff]   ;;  %v2497_v45 = vld [vmem:[%s2322_s28 + $0xe4] ss:$8 sps:$4 sm:$0xff]  }
  0x1a   : > { %v2492_v44 = vld [vmem:[%s2322_s28 + $0xf4] ss:$8 sps:$4 sm:$0xff]   ;;  %v2503_v47 = vld [vmem:[%s2322_s28 + $0x104] ss:$8 sps:$4 sm:$0xff]   ;;  %v2227_v58 = vld [vmem:[%s2322_s28] ss:$8 sps:$4 sm:$0xff]  }
  0x1b   : > { %2145 = vmatpush3.bf16.msra.mxu1 %v2216_v27  ;;  %1859 = vmatpush3.bf16.msra.mxu0 %v2216_v27  ;;  %v2500_v46 = vld [vmem:[%s2322_s28 + $0x114] ss:$8 sps:$4 sm:$0xff]   ;;  %v2517_v49 = vld [vmem:[%s2322_s28 + $0x124] ss:$8 sps:$4 sm:$0xff]   ;;  %v2234_v22 = vld [vmem:[%s2322_s28 + $0x10] ss:$8 sps:$4 sm:$0xff]  }
  0x1c   : > { %2138 = vmatprep.subr.bf16.mxu1 %v2217_v28  ;;  %1860 = vmatprep.subr.bf16.mxu0 %v2217_v28  ;;  %v2512_v48 = vld [vmem:[%s2322_s28 + $0x134] ss:$8 sps:$4 sm:$0xff]   ;;  %v2223_v54 = vld [vmem:[%s2322_s28 + $0x4] ss:$8 sps:$4 sm:$0xff]  }
  0x1d   : > { %414 = vrot.lane.b32.xlu1 %v2359_v13, %s2273_s6  ;;  %462 = vrot.lane.b32.xlu0 %v2364_v14, %s2273_s6  ;;  %v2231_v57 = vld [vmem:[%s2322_s28 + $0x14] ss:$8 sps:$4 sm:$0xff]   ;;  %v2238_v7 = vld [vmem:[%s2322_s28 + $0x24] ss:$8 sps:$4 sm:$0xff]  }
  0x1e   : > { %v2251_v20 = vld [vmem:[%s2943_s1 + $0x110] sm:$0xff]   ;;  %v2235_v24 = vld [vmem:[%s2943_s1 + $0x98] sm:$0xff]   ;;  %v2236_v27 = vld [vmem:[%s2943_s1 + $0xe0] sm:$0xff]  }
  0x1f   : > { %2146 = vmatpush3.bf16.msra.mxu1 %v2218_v31  ;;  %1861 = vmatpush3.bf16.msra.mxu0 %v2218_v31  ;;  %v2252_v31 = vld [vmem:[%s2943_s1 + $0x118] sm:$0xff]  }
  0x20   : > { %2139 = vmatprep.subr.bf16.mxu1 %v2219_v32  ;;  %1862 = vmatprep.subr.bf16.mxu0 %v2219_v32 }
  0x21   : > { %418 = vrot.lane.b32.xlu1 %v2369_v15, %s2273_s6  ;;  %404 = vrot.lane.b32.xlu0 %v2374_v16, %s2273_s6 }
  0x23   : > { %2147 = vmatpush3.bf16.msra.mxu1 %v2220_v35  ;;  %1863 = vmatpush3.bf16.msra.mxu0 %v2220_v35  ;;  %v2237_v35 = vld [vmem:[%s2943_s1 + $0xa0] sm:$0xff]  }
  0x24   : > { %1960 = vmatprep.subr.bf16.mxu1 %v2221_v36  ;;  %2092 = vmatprep.subr.bf16.mxu0 %v2226_v37  ;;  %v2240_v36 = vld [vmem:[%s2943_s1 + $0xe8] sm:$0xff]  }
  0x25   : > { %422 = vrot.lane.b32.xlu1 %v2379_v17, %s2273_s6  ;;  %408 = vrot.lane.b32.xlu0 %v2384_v18, %s2273_s6 }
  0x29   : > { %426 = vrot.lane.b32.xlu1 %v2387_v19, %s2273_s6  ;;  %412 = vrot.lane.b32.xlu0 %v2395_v21, %s2273_s6 }
  0x2d   : > { %430 = vrot.lane.b32.xlu1 %v2409_v25, %s2273_s6  ;;  %416 = vrot.lane.b32.xlu0 %v2414_v26, %s2273_s6 }
  0x31   : > { %434 = vrot.lane.b32.xlu1 %v2425_v29, %s2273_s6  ;;  %420 = vrot.lane.b32.xlu0 %v2430_v30, %s2273_s6 }
  0x35   : > { %438 = vrot.lane.b32.xlu1 %v2443_v33, %s2273_s6  ;;  %424 = vrot.lane.b32.xlu0 %v2446_v34, %s2273_s6 }
  0x39   : > { %442 = vrot.lane.b32.xlu1 %v2462_v38, %s2273_s6  ;;  %428 = vrot.lane.b32.xlu0 %v2467_v39, %s2273_s6 }
  0x3d   : > { %446 = vrot.lane.b32.xlu1 %v2472_v40, %s2273_s6  ;;  %432 = vrot.lane.b32.xlu0 %v2477_v41, %s2273_s6 }
  0x41   : > { %440 = vrot.lane.b32.xlu1 %v2482_v42, %s2273_s6  ;;  %436 = vrot.lane.b32.xlu0 %v2487_v43, %s2273_s6 }
  0x45   : > { %448 = vrot.lane.b32.xlu1 %v2492_v44, %s2273_s6  ;;  %444 = vrot.lane.b32.xlu0 %v2497_v45, %s2273_s6 }
  0x49   : > { %456 = vrot.lane.b32.xlu1 %v2500_v46, %s2273_s6  ;;  %452 = vrot.lane.b32.xlu0 %v2503_v47, %s2273_s6 }
  0x4d   : > { %464 = vrot.lane.b32.xlu1 %v2512_v48, %s2273_s6  ;;  %460 = vrot.lane.b32.xlu0 %v2517_v49, %s2273_s6 }
  0x83   : > { %v2523_v50 = vpop.permute.xlu1 %454  ;;  %v2525_v51 = vpop.permute.xlu0 %450 }
  0x84   : > { %v590_v53 = vsel %vm466_vm0, %v2487_v43, %v2525_v51  ;;  %v594_v56 = vsel %vm466_vm0, %v2482_v42, %v2523_v50 }
  0x85   : > { %1067 = vmatprep.mubr.bf16.mxu1 %v590_v53  ;;  %v2241_v53 = vld [vmem:[%s2322_s28 + $0x20] ss:$8 sps:$4 sm:$0xff]  }
  0x86   : > { %1068 = vmatmul.mubr.bf16.vlgmr.msra.gmra.mrb[0].mxu1 %v2425_v29 }
  0x87   : > { %1961 = vmatpush3.bf16.msra.mxu1 %v2222_v52  ;;  %v2543_v59 = vpop.permute.xlu0 %402  ;;  %1075 = vmatprep.mubr.bf16.mxu1 %v594_v56  ;;  %v2548_v61 = vpop.permute.xlu1 %406  ;;  %v2245_v52 = vld [vmem:[%s2322_s28 + $0x34] ss:$8 sps:$4 sm:$0xff]  }
  0x88   : > { %v542_v62 = vsel %vm466_vm0, %v2223_v54, %v2543_v59  ;;  %1962 = vmatprep.subr.bf16.mxu1 %v2225_v55  ;;  %v546_v0 = vsel %vm466_vm0, %v2231_v57, %v2548_v61  ;;  %v2242_v55 = vld [vmem:[%s2943_s1 + $0xa8] sm:$0xff]   ;;  %v2243_v56 = vld [vmem:[%s2943_s1 + $0xf0] sm:$0xff]  }
  0x89   : > { %971 = vmatprep.mubr.bf16.mxu0 %v542_v62  ;;  %v2249_v62 = vld [vmem:[%s2322_s28 + $0x30] ss:$8 sps:$4 sm:$0xff]  }
  0x8a   : > { %972 = vmatmul.mubr.bf16.vlgmr.msra.gmra.mrb[0].mxu0 %v2227_v58  ;;  %v2244_v58 = vld [vmem:[%s2943_s1 + $0xb0] sm:$0xff]  }
  0x8b   : > { %1963 = vmatpush3.bf16.msra.mxu1 %v2228_v60  ;;  %2093 = vmatpush3.bf16.msra.mxu0 %v2226_v37  ;;  %v2560_v2 = vpop.permute.xlu0 %458  ;;  %v2577_v23 = vpop.permute.xlu1 %410  ;;  %v2247_v60 = vld [vmem:[%s2943_s1 + $0xf8] sm:$0xff]  }
  0x8c   : > { %1964 = vmatprep.subr.bf16.mxu1 %v2229_v63  ;;  %979 = vmatprep.mubr.bf16.mxu0 %v546_v0  ;;  %v598_v5 = vsel %vm466_vm0, %v2497_v45, %v2560_v2  ;;  %v550_v28 = vsel %vm466_vm0, %v2238_v7, %v2577_v23  ;;  %v2250_v0 = vld [vmem:[%s2943_s1 + $0xb8] sm:$0xff]  }
  0x8d   : > { %2094 = vmatprep.subr.bf16.mxu0 %v2248_v1 }
  0x8e   : > { %1076 = vmatmul.mubr.bf16.gmra.mrb[4].mxu1 %v2443_v33 }
  0x8f   : > { %1965 = vmatpush3.bf16.msra.mxu1 %v2230_v3  ;;  %1083 = vmatprep.mubr.bf16.mxu1 %v598_v5  ;;  %v2590_v32 = vpop.permute.xlu0 %462  ;;  %v415_v54 = vpop.permute.xlu1 %414 }
  0x90   : > { %1966 = vmatprep.subr.bf16.mxu1 %v2233_v4  ;;  %2095 = vmatpush3.bf16.msra.mxu0 %v2248_v1  ;;  %v602_v37 = vsel %vm466_vm0, %v2492_v44, %v2590_v32  ;;  %v554_v57 = vsel %vm466_vm0, %v2245_v52, %v415_v54 }
  0x91   : > { %2096 = vmatprep.subr.bf16.mxu0 %v2251_v20 }
  0x92   : > { %980 = vmatmul.mubr.bf16.gmra.mrb[4].mxu0 %v2234_v22 }
  0x93   : > { %1967 = vmatpush3.bf16.msra.mxu1 %v2235_v24  ;;  %987 = vmatprep.mubr.bf16.mxu0 %v550_v28  ;;  %v419_v63 = vpop.permute.xlu1 %418  ;;  %v405_v3 = vpop.permute.xlu0 %404 }
  0x94   : > { %1968 = vmatprep.subr.bf16.mxu1 %v2236_v27  ;;  %2097 = vmatpush3.bf16.msra.mxu0 %v2251_v20  ;;  %v558_v1 = vsel %vm466_vm0, %v2374_v16, %v419_v63  ;;  %v467_v4 = vsel %vm466_vm0, %v2543_v59, %v405_v3 }
  0x95   : > { %2098 = vmatprep.subr.bf16.mxu0 %v2252_v31 }
  0x96   : > { %1084 = vmatmul.mubr.bf16.gmra.mrb[8].mxu1 %v2462_v38 }
  0x97   : > { %1969 = vmatpush3.bf16.msra.mxu1 %v2237_v35  ;;  %1091 = vmatprep.mubr.bf16.mxu1 %v602_v37  ;;  %v423_v5 = vpop.permute.xlu1 %422  ;;  %v409_v20 = vpop.permute.xlu0 %408 }
  0x98   : > { %1970 = vmatprep.subr.bf16.mxu1 %v2240_v36  ;;  %2099 = vmatpush3.bf16.msra.mxu0 %v2252_v31  ;;  %v562_v7 = vsel %vm466_vm0, %v2384_v18, %v423_v5  ;;  %v468_v16 = vsel %vm466_vm0, %v2548_v61, %v409_v20 }
  0x9a   : > { %988 = vmatmul.mubr.bf16.gmra.mrb[8].mxu0 %v2241_v53 }
  0x9b   : > { %1971 = vmatpush3.bf16.msra.mxu1 %v2242_v55  ;;  %995 = vmatprep.mubr.bf16.mxu0 %v554_v57  ;;  %v427_v22 = vpop.permute.xlu1 %426  ;;  %v413_v24 = vpop.permute.xlu0 %412 }
  0x9c   : > { %1972 = vmatprep.subr.bf16.mxu1 %v2243_v56  ;;  %v566_v59 = vsel %vm466_vm0, %v2395_v21, %v427_v22  ;;  %v469_v18 = vsel %vm466_vm0, %v2577_v23, %v413_v24  ;;  %v2264_v56 = vld [vmem:[%s2322_s28 + $0x174] ss:$8 sps:$4 sm:$0xff]  }
  0x9e   : > { %1092 = vmatmul.mubr.bf16.gmra.mrb[12].mxu1 %v2472_v40 }
  0x9f   : > { %1973 = vmatpush3.bf16.msra.mxu1 %v2244_v58  ;;  %1132 = vmatprep.mubr.bf16.mxu1 %v2369_v15  ;;  %v417_v27 = vpop.permute.xlu0 %416 }
  0xa0   : > { %1974 = vmatprep.subr.bf16.mxu1 %v2247_v60  ;;  %v470_v21 = vsel %vm466_vm0, %v415_v54, %v417_v27  ;;  %v2258_v54 = vld [vmem:[%s2322_s28 + $0x154] ss:$8 sps:$4 sm:$0xff]  }
  0xa2   : > { %996 = vmatmul.mubr.bf16.gmra.mrb[12].mxu0 %v2249_v62 }
  0xa3   : > { %1975 = vmatpush3.bf16.msra.mxu1 %v2250_v0  ;;  %1003 = vmatprep.mubr.bf16.mxu0 %v558_v1  ;;  %v421_v23 = vpop.permute.xlu0 %420 }
  0xa4   : > { %v471_v31 = vsel %vm466_vm0, %v419_v63, %v421_v23 }
  0xa6   : > { %1133 = vmatmul.mubr.bf16.vlgmr.msra.gmra.mrb[16].mxu1 %v467_v4 }
  0xa7   : > { %1140 = vmatprep.mubr.bf16.mxu1 %v2379_v17 }
  0xaa   : > { %1004 = vmatmul.mubr.bf16.gmra.mrb[16].mxu0 %v2344_v10  ;;  %v431_v10 = vpop.permute.xlu1 %430 }
  0xab   : > { %1011 = vmatprep.mubr.bf16.mxu0 %v562_v7  ;;  %v570_v61 = vsel %vm466_vm0, %v2414_v26, %v431_v10 }
  0xae   : > { %1141 = vmatmul.mubr.bf16.gmra.mrb[20].mxu1 %v468_v16  ;;  %v435_v28 = vpop.permute.xlu1 %434 }
  0xaf   : > { %1148 = vmatprep.mubr.bf16.mxu1 %v2387_v19 }
  0xb2   : > { %1012 = vmatmul.mubr.bf16.gmra.mrb[20].mxu0 %v2339_v9  ;;  %v574_v9 = vsel %vm466_vm0, %v2430_v30, %v435_v28  ;;  %v439_v26 = vpop.permute.xlu1 %438 }
  0xb3   : > { %1019 = vmatprep.mubr.bf16.mxu0 %v566_v59 }
  0xb6   : > { %1149 = vmatmul.mubr.bf16.gmra.mrb[24].mxu1 %v469_v18  ;;  %v443_v36 = vpop.permute.xlu1 %442 }
  0xb7   : > { %1156 = vmatprep.mubr.bf16.mxu1 %v2409_v25 }
  0xba   : > { %1020 = vmatmul.mubr.bf16.gmra.mrb[24].mxu0 %v2349_v11  ;;  %v578_v11 = vsel %vm466_vm0, %v2446_v34, %v439_v26  ;;  %v447_v52 = vpop.permute.xlu1 %446 }
  0xbb   : > { %1027 = vmatprep.mubr.bf16.mxu0 %v570_v61 }
  0xbe   : > { %1157 = vmatmul.mubr.bf16.gmra.mrb[28].mxu1 %v470_v21 }
  0xbf   : > { %1164 = vmatprep.mubr.bf16.mxu1 %v2425_v29  ;;  %v425_v29 = vpop.permute.xlu0 %424 }
  0xc0   : > { %v472_v35 = vsel %vm466_vm0, %v423_v5, %v425_v29 }
  0xc2   : > { %1028 = vmatmul.mubr.bf16.gmra.mrb[28].mxu0 %v2359_v13  ;;  %v582_v13 = vsel %vm466_vm0, %v2467_v39, %v443_v36 }
  0xc3   : > { %1035 = vmatprep.mubr.bf16.mxu0 %v574_v9 }
  0xc6   : > { %1165 = vmatmul.mubr.bf16.gmra.mrb[32].mxu1 %v471_v31 }
  0xc7   : > { %1172 = vmatprep.mubr.bf16.mxu1 %v2443_v33  ;;  %v429_v33 = vpop.permute.xlu0 %428 }
  0xc8   : > { %v473_v37 = vsel %vm466_vm0, %v427_v22, %v429_v33 }
  0xca   : > { %1036 = vmatmul.mubr.bf16.gmra.mrb[32].mxu0 %v2369_v15  ;;  %v586_v15 = vsel %vm466_vm0, %v2477_v41, %v447_v52 }
  0xcb   : > { %1043 = vmatprep.mubr.bf16.mxu0 %v578_v11 }
  0xce   : > { %1173 = vmatmul.mubr.bf16.gmra.mrb[36].mxu1 %v472_v35 }
  0xcf   : > { %1180 = vmatprep.mubr.bf16.mxu1 %v2462_v38  ;;  %v433_v38 = vpop.permute.xlu0 %432 }
  0xd0   : > { %v474_v53 = vsel %vm466_vm0, %v431_v10, %v433_v38 }
  0xd2   : > { %1044 = vmatmul.mubr.bf16.gmra.mrb[36].mxu0 %v2379_v17 }
  0xd3   : > { %1051 = vmatprep.mubr.bf16.mxu0 %v582_v13  ;;  %v437_v17 = vpop.permute.xlu0 %436 }
  0xd6   : > { %1181 = vmatmul.mubr.bf16.gmra.mrb[40].mxu1 %v473_v37 }
  0xd7   : > { %1188 = vmatprep.mubr.bf16.mxu1 %v2472_v40  ;;  %v475_v40 = vsel %vm466_vm0, %v435_v28, %v437_v17 }
  0xda   : > { %1052 = vmatmul.mubr.bf16.gmra.mrb[40].mxu0 %v2387_v19  ;;  %v441_v19 = vpop.permute.xlu1 %440 }
  0xdb   : > { %1059 = vmatprep.mubr.bf16.mxu0 %v586_v15 }
  0xde   : > { %1189 = vmatmul.mubr.bf16.gmra.mrb[44].mxu1 %v474_v53 }
  0xdf   : > { %1196 = vmatprep.mubr.bf16.mxu1 %v2336_v8  ;;  %v476_v8 = vsel %vm466_vm0, %v439_v26, %v441_v19 }
  0xe2   : > { %1060 = vmatmul.mubr.bf16.gmra.mrb[44].mxu0 %v2409_v25 }
  0xe3   : > { %2100 = vmatprep.mubr.msk.bf16.mxu0 %vm466_vm0, %v2430_v30  ;;  %v449_v30 = vpop.permute.xlu1 %448 }
  0xe6   : > { %1197 = vmatmul.mubr.bf16.gmra.mrb[48].mxu1 %v475_v40 }
  0xe7   : > { %1204 = vmatprep.mubr.bf16.mxu1 %v2328_v6  ;;  %v445_v6 = vpop.permute.xlu0 %444 }
  0xe8   : > { %v477_v25 = vsel %vm466_vm0, %v443_v36, %v445_v6 }
  0xea   : > { %2101 = vmatmul.mubr.msk.bf16.vlgmr.msra.gmra.mrb[48].mxu0 %vm466_vm0, %v2446_v34  ;;  %v478_v34 = vsel %vm466_vm0, %v447_v52, %v449_v30 }
  0xeb   : > { %2104 = vmatprep.mubr.msk.bf16.mxu0 %vm466_vm0, %v2467_v39  ;;  %v453_v39 = vpop.permute.xlu0 %452 }
  0xee   : > { %1205 = vmatmul.mubr.bf16.gmra.mrb[52].mxu1 %v476_v8 }
  0xef   : > { %1212 = vmatprep.mubr.bf16.mxu1 %v2354_v12  ;;  %v2253_v12 = vld [vmem:[%s2322_s28 + $0x140] ss:$8 sps:$4 sm:$0xff]  }
  0xf2   : > { %2105 = vmatmul.mubr.msk.bf16.gmra.mrb[52].mxu0 %vm466_vm0, %v2477_v41  ;;  %v479_v41 = vsel %vm466_vm0, %v2525_v51, %v453_v39  ;;  %v2262_v51 = vld [vmem:[%s2322_s28 + $0x170] ss:$8 sps:$4 sm:$0xff]   ;;  %v2736_v39 = vld [vmem:[%s2944_s2] ss:$0 sm:$0xff] }
  0xf3   : > { %2108 = vmatprep.mubr.msk.bf16.mxu0 %vm466_vm0, %v2487_v43  ;;  %v2259_v43 = vld [vmem:[%s2322_s28 + $0x160] ss:$8 sps:$4 sm:$0xff]  }
  0xf6   : > { %1213 = vmatmul.mubr.bf16.gmra.mrb[56].mxu1 %v477_v25 }
  0xf7   : > { %1220 = vmatprep.mubr.bf16.mxu1 %v2364_v14  ;;  %v2256_v14 = vld [vmem:[%s2322_s28 + $0x150] ss:$8 sps:$4 sm:$0xff]  }
  0xfa   : > { %2109 = vmatmul.mubr.msk.bf16.gmra.mrb[56].mxu0 %vm466_vm0, %v2482_v42  ;;  %v457_v42 = vpop.permute.xlu1 %456 }
  0xfb   : > { %2112 = vmatprep.mubr.msk.bf16.mxu0 %vm466_vm0, %v2497_v45  ;;  %v2255_v45 = vld [vmem:[%s2322_s28 + $0x144] ss:$8 sps:$4 sm:$0xff]  }
  0xfe   : > { %1221 = vmatmul.mubr.bf16.gmra.mrb[60].mxu1 %v478_v34  ;;  %v465_v55 = vpop.permute.xlu1 %464 }
  0xff   : > { %1228 = vmatprep.mubr.bf16.mxu1 %v2253_v12 }
 0x102   : > { %2113 = vmatmul.mubr.msk.bf16.gmra.mrb[60].mxu0 %vm466_vm0, %v2492_v44  ;;  %v480_v44 = vsel %vm466_vm0, %v2523_v50, %v457_v42  ;;  %v482_v50 = vsel %vm466_vm0, %v2590_v32, %v465_v55 }
 0x103   : > { %2116 = vmatprep.mubr.msk.bf16.mxu0 %vm466_vm0, %v2503_v47  ;;  %v461_v47 = vpop.permute.xlu0 %460 }
 0x106   : > { %1229 = vmatmul.mubr.bf16.gmra.mrb[64].mxu1 %v479_v41 }
 0x107   : > { %1236 = vmatprep.mubr.bf16.mxu1 %v2256_v14 }
 0x10a   : > { %2117 = vmatmul.mubr.msk.bf16.gmra.mrb[64].mxu0 %vm466_vm0, %v2500_v46  ;;  %v481_v46 = vsel %vm466_vm0, %v2560_v2, %v461_v47 }
 0x10b   : > { %2120 = vmatprep.mubr.msk.bf16.mxu0 %vm466_vm0, %v2517_v49  ;;  %v2261_v49 = vld [vmem:[%s2322_s28 + $0x164] ss:$8 sps:$4 sm:$0xff]  }
 0x10e   : > { %1237 = vmatmul.mubr.bf16.gmra.mrb[68].mxu1 %v480_v44 }
 0x10f   : > { %1244 = vmatprep.mubr.bf16.mxu1 %v2259_v43 }
 0x112   : > { %2121 = vmatmul.mubr.msk.bf16.gmra.mrb[68].mxu0 %vm466_vm0, %v2512_v48 }
 0x113   : > { %2124 = vmatprep.mubr.msk.bf16.mxu0 %vm466_vm0, %v2255_v45 }
 0x116   : > { %1245 = vmatmul.mubr.bf16.gmra.mrb[72].mxu1 %v481_v46 }
 0x117   : > { %1252 = vmatprep.mubr.bf16.mxu1 %v2262_v51 }
 0x11a   : > { %2125 = vmatmul.mubr.msk.bf16.gmra.mrb[72].mxu0 %vm466_vm0, %v2258_v54 }
 0x11b   : > { %2128 = vmatprep.mubr.msk.bf16.mxu0 %vm466_vm0, %v2261_v49 }
 0x11e   : > { %1253 = vmatmul.mubr.bf16.gmra.mrb[76].mxu1 %v482_v50 }
 0x122   : > { %2129 = vmatmul.mubr.msk.bf16.gmra.mrb[76].mxu0 %vm466_vm0, %v2264_v56 }
 0x159   : > { %v1936_v48 = vpop.f32.mrb[0].mxu1 }
 0x15a   : > { %v1937_v57 = vpop.f32.mrb[1].mxu1 }
 0x15b   : > { %v2717_v58 = vadd.f32 %v1937_v57, %v1936_v48  ;;  %v1939_v2 = vpop.f32.mrb[2].mxu1 }
 0x15c   : > { %v1940_v60 = vpop.f32.mrb[3].mxu1 }
 0x15d   : > { %v2719_v62 = vadd.f32 %v1940_v60, %v1939_v2  ;;  %v1864_v63 = vpop.f32.mrb[0].mxu0 }
 0x15e   : > { %v1865_v0 = vpop.f32.mrb[1].mxu0 }
 0x15f   : > { %v1866_v1 = vadd.f32 %v1865_v0, %v1864_v63  ;;  %v1867_v3 = vpop.f32.mrb[2].mxu0 }
 0x160   : > { %v1868_v4 = vpop.f32.mrb[3].mxu0 }
 0x161   : > { %v1869_v5 = vadd.f32 %v1868_v4, %v1867_v3  ;;  %v1942_v7 = vpop.f32.mrb[4].mxu1  ;;  %v974_v41 = vadd.f32 %v1866_v1, %v2736_v39 }
 0x162   : > { %v1943_v32 = vpop.f32.mrb[5].mxu1 }
 0x163   : > { %v2721_v20 = vadd.f32 %v1943_v32, %v1942_v7  ;;  %v1945_v16 = vpop.f32.mrb[6].mxu1  ;;  %v977_v45 = vadd.f32 %v1869_v5, %v2736_v39 }
 0x164   : > { %v1946_v22 = vpop.f32.mrb[7].mxu1 }
 0x165   : > { %v2723_v59 = vadd.f32 %v1946_v22, %v1945_v16  ;;  %v1870_v24 = vpop.f32.mrb[4].mxu0 }
 0x166   : > { %v1871_v18 = vpop.f32.mrb[5].mxu0 }
 0x167   : > { %v1872_v10 = vadd.f32 %v1871_v18, %v1870_v24  ;;  %v1873_v61 = vpop.f32.mrb[6].mxu0 }
 0x168   : > { %v1874_v27 = vpop.f32.mrb[7].mxu0 }
 0x169   : > { %v1875_v21 = vadd.f32 %v1874_v27, %v1873_v61  ;;  %v1948_v28 = vpop.f32.mrb[8].mxu1  ;;  %v982_v60 = vadd.f32 %v1872_v10, %v2736_v39 }
 0x16a   : > { %v1949_v9 = vpop.f32.mrb[9].mxu1 }
 0x16b   : > { %v2725_v23 = vadd.f32 %v1949_v9, %v1948_v28  ;;  %v1951_v31 = vpop.f32.mrb[10].mxu1  ;;  %v985_v3 = vadd.f32 %v1875_v21, %v2736_v39 }
 0x16c   : > { %v1952_v26 = vpop.f32.mrb[11].mxu1 }
 0x16d   : > { %v2727_v11 = vadd.f32 %v1952_v26, %v1951_v31  ;;  %v1876_v29 = vpop.f32.mrb[8].mxu0 }
 0x16e   : > { %v1877_v35 = vpop.f32.mrb[9].mxu0 }
 0x16f   : > { %v1878_v36 = vadd.f32 %v1877_v35, %v1876_v29  ;;  %v1879_v13 = vpop.f32.mrb[10].mxu0 }
 0x170   : > { %v1880_v33 = vpop.f32.mrb[11].mxu0 }
 0x171   : > { %v1881_v37 = vadd.f32 %v1880_v33, %v1879_v13  ;;  %v1954_v52 = vpop.f32.mrb[12].mxu1  ;;  %v990_v10 = vadd.f32 %v1878_v36, %v2736_v39 }
 0x172   : > { %v1955_v15 = vpop.f32.mrb[13].mxu1 }
 0x173   : > { %v2729_v38 = vadd.f32 %v1955_v15, %v1954_v52  ;;  %v1957_v53 = vpop.f32.mrb[14].mxu1  ;;  %v993_v21 = vadd.f32 %v1881_v37, %v2736_v39 }
 0x174   : > { %v1958_v17 = vpop.f32.mrb[15].mxu1 }
 0x175   : > { %v2731_v40 = vadd.f32 %v1958_v17, %v1957_v53  ;;  %v1882_v19 = vpop.f32.mrb[12].mxu0 }
 0x176   : > { %v1883_v8 = vpop.f32.mrb[13].mxu0 }
 0x177   : > { %v1884_v6 = vadd.f32 %v1883_v8, %v1882_v19  ;;  %v1885_v25 = vpop.f32.mrb[14].mxu0 }
 0x178   : > { %v1886_v12 = vpop.f32.mrb[15].mxu0 }
 0x179   : > { %v1887_v30 = vadd.f32 %v1886_v12, %v1885_v25  ;;  %v1976_v34 = vpop.f32.mrb[16].mxu1  ;;  %v998_v36 = vadd.f32 %v1884_v6, %v2736_v39 }
 0x17a   : > { %v1977_v14 = vpop.f32.mrb[17].mxu1 }
 0x17b   : > { %v1978_v42 = vadd.f32 %v1977_v14, %v1976_v34  ;;  %v1979_v43 = vpop.f32.mrb[18].mxu1  ;;  %v1001_v37 = vadd.f32 %v1887_v30, %v2736_v39 }
 0x17c   : > { %v1980_v44 = vpop.f32.mrb[19].mxu1 }
 0x17d   : > { %v1981_v47 = vadd.f32 %v1980_v44, %v1979_v43  ;;  %v1888_v51 = vpop.f32.mrb[16].mxu0  ;;  %v2740_v46 = vadd.f32 %v1978_v42, %v974_v41 }
 0x17e   : > { %v1889_v54 = vpop.f32.mrb[17].mxu0 }
 0x17f   : > { %v1890_v49 = vadd.f32 %v1889_v54, %v1888_v51  ;;  %v1891_v55 = vpop.f32.mrb[18].mxu0  ;;  %v2742_v50 = vadd.f32 %v1981_v47, %v977_v45 }
 0x180   : > { %v1892_v56 = vpop.f32.mrb[19].mxu0 }
 0x181   : > { %v1893_v48 = vadd.f32 %v1892_v56, %v1891_v55  ;;  %v1982_v57 = vpop.f32.mrb[20].mxu1  ;;  %v1006_v6 = vadd.f32 %v1890_v49, %v2736_v39 }
 0x182   : > { %v1983_v2 = vpop.f32.mrb[21].mxu1 }
 0x183   : > { %v1984_v63 = vadd.f32 %v1983_v2, %v1982_v57  ;;  %v1985_v0 = vpop.f32.mrb[22].mxu1  ;;  %v1009_v30 = vadd.f32 %v1893_v48, %v2736_v39 }
 0x184   : > { %v1986_v1 = vpop.f32.mrb[23].mxu1 }
 0x185   : > { %v1987_v4 = vadd.f32 %v1986_v1, %v1985_v0  ;;  %v1894_v5 = vpop.f32.mrb[20].mxu0  ;;  %v2746_v7 = vadd.f32 %v1984_v63, %v982_v60 }
 0x186   : > { %v1895_v32 = vpop.f32.mrb[21].mxu0 }
 0x187   : > { %v1896_v16 = vadd.f32 %v1895_v32, %v1894_v5  ;;  %v1897_v22 = vpop.f32.mrb[22].mxu0  ;;  %v2748_v24 = vadd.f32 %v1987_v4, %v985_v3 }
 0x188   : > { %v1898_v18 = vpop.f32.mrb[23].mxu0 }
 0x189   : > { %v1899_v61 = vadd.f32 %v1898_v18, %v1897_v22  ;;  %v1988_v27 = vpop.f32.mrb[24].mxu1  ;;  %v1014_v49 = vadd.f32 %v1896_v16, %v2736_v39 }
 0x18a   : > { %v1989_v28 = vpop.f32.mrb[25].mxu1 }
 0x18b   : > { %v1990_v9 = vadd.f32 %v1989_v28, %v1988_v27  ;;  %v1991_v31 = vpop.f32.mrb[26].mxu1  ;;  %v1017_v48 = vadd.f32 %v1899_v61, %v2736_v39 }
 0x18c   : > { %v1992_v26 = vpop.f32.mrb[27].mxu1 }
 0x18d   : > { %v1993_v29 = vadd.f32 %v1992_v26, %v1991_v31  ;;  %v1900_v35 = vpop.f32.mrb[24].mxu0  ;;  %v2752_v13 = vadd.f32 %v1990_v9, %v990_v10 }
 0x18e   : > { %v1901_v33 = vpop.f32.mrb[25].mxu0 }
 0x18f   : > { %v1902_v52 = vadd.f32 %v1901_v33, %v1900_v35  ;;  %v1903_v15 = vpop.f32.mrb[26].mxu0  ;;  %v2754_v53 = vadd.f32 %v1993_v29, %v993_v21 }
 0x190   : > { %v1904_v17 = vpop.f32.mrb[27].mxu0 }
 0x191   : > { %v1905_v19 = vadd.f32 %v1904_v17, %v1903_v15  ;;  %v1994_v8 = vpop.f32.mrb[28].mxu1 }
 0x192   : > { %v1995_v25 = vpop.f32.mrb[29].mxu1 }
 0x193   : > { %v1996_v12 = vadd.f32 %v1995_v25, %v1994_v8  ;;  %v1997_v34 = vpop.f32.mrb[30].mxu1 }
 0x194   : > { %v1998_v14 = vpop.f32.mrb[31].mxu1 }
 0x195   : > { %v1999_v41 = vadd.f32 %v1998_v14, %v1997_v34  ;;  %v1906_v42 = vpop.f32.mrb[28].mxu0  ;;  %v2758_v43 = vadd.f32 %v1996_v12, %v998_v36  ;;  %v1022_v34 = vadd.f32 %v1902_v52, %v2736_v39 }
 0x196   : > { %v1907_v44 = vpop.f32.mrb[29].mxu0 }
 0x197   : > { %v1908_v45 = vadd.f32 %v1907_v44, %v1906_v42  ;;  %v1909_v47 = vpop.f32.mrb[30].mxu0  ;;  %v2760_v51 = vadd.f32 %v1999_v41, %v1001_v37  ;;  %v1025_v41 = vadd.f32 %v1905_v19, %v2736_v39 }
 0x198   : > { %v1910_v54 = vpop.f32.mrb[31].mxu0 }
 0x199   : > { %v1911_v55 = vadd.f32 %v1910_v54, %v1909_v47  ;;  %v2000_v56 = vpop.f32.mrb[32].mxu1 }
 0x19a   : > { %v2001_v57 = vpop.f32.mrb[33].mxu1 }
 0x19b   : > { %v2002_v2 = vadd.f32 %v2001_v57, %v2000_v56  ;;  %v2003_v60 = vpop.f32.mrb[34].mxu1 }
 0x19c   : > { %v2004_v63 = vpop.f32.mrb[35].mxu1 }
 0x19d   : > { %v2005_v0 = vadd.f32 %v2004_v63, %v2003_v60  ;;  %v1912_v1 = vpop.f32.mrb[32].mxu0  ;;  %v2764_v3 = vadd.f32 %v2002_v2, %v1006_v6 }
 0x19e   : > { %v1913_v4 = vpop.f32.mrb[33].mxu0 }
 0x19f   : > { %v1914_v5 = vadd.f32 %v1913_v4, %v1912_v1  ;;  %v1915_v32 = vpop.f32.mrb[34].mxu0  ;;  %v2766_v22 = vadd.f32 %v2005_v0, %v1009_v30  ;;  %v1030_v30 = vadd.f32 %v1908_v45, %v2736_v39  ;;  %v1033_v4 = vadd.f32 %v1911_v55, %v2736_v39 }
 0x1a0   : > { %v1916_v18 = vpop.f32.mrb[35].mxu0 }
 0x1a1   : > { %v1917_v27 = vadd.f32 %v1916_v18, %v1915_v32  ;;  %v2006_v28 = vpop.f32.mrb[36].mxu1 }
 0x1a2   : > { %v2007_v10 = vpop.f32.mrb[37].mxu1 }
 0x1a3   : > { %v2008_v9 = vadd.f32 %v2007_v10, %v2006_v28  ;;  %v2009_v31 = vpop.f32.mrb[38].mxu1 }
 0x1a4   : > { %v2010_v26 = vpop.f32.mrb[39].mxu1 }
 0x1a5   : > { %v2011_v21 = vadd.f32 %v2010_v26, %v2009_v31  ;;  %v1918_v29 = vpop.f32.mrb[36].mxu0  ;;  %v2770_v35 = vadd.f32 %v2008_v9, %v1014_v49 }
 0x1a6   : > { %v1919_v33 = vpop.f32.mrb[37].mxu0 }
 0x1a7   : > { %v2772_v15 = vadd.f32 %v1919_v33, %v1918_v29  ;;  %v1921_v17 = vpop.f32.mrb[38].mxu0  ;;  %v2774_v8 = vadd.f32 %v2011_v21, %v1017_v48  ;;  %v1038_v29 = vadd.f32 %v1914_v5, %v2736_v39 }
 0x1a8   : > { %v1922_v25 = vpop.f32.mrb[39].mxu0 }
 0x1a9   : > { %v2776_v36 = vadd.f32 %v1922_v25, %v1921_v17  ;;  %v2012_v12 = vpop.f32.mrb[40].mxu1  ;;  %v1041_v25 = vadd.f32 %v1917_v27, %v2736_v39 }
 0x1aa   : > { %v2013_v16 = vpop.f32.mrb[41].mxu1 }
 0x1ab   : > { %v2014_v14 = vadd.f32 %v2013_v16, %v2012_v12  ;;  %v2015_v37 = vpop.f32.mrb[42].mxu1 }
 0x1ac   : > { %v2016_v61 = vpop.f32.mrb[43].mxu1 }
 0x1ad   : > { %v2017_v42 = vadd.f32 %v2016_v61, %v2015_v37  ;;  %v1924_v44 = vpop.f32.mrb[40].mxu0  ;;  %v2780_v47 = vadd.f32 %v2014_v14, %v1022_v34 }
 0x1ae   : > { %v1925_v54 = vpop.f32.mrb[41].mxu0 }
 0x1af   : > { %v2782_v56 = vadd.f32 %v1925_v54, %v1924_v44  ;;  %v1927_v57 = vpop.f32.mrb[42].mxu0  ;;  %v2784_v6 = vadd.f32 %v2017_v42, %v1025_v41 }
 0x1b0   : > { %v1928_v2 = vpop.f32.mrb[43].mxu0 }
 0x1b1   : > { %v2786_v60 = vadd.f32 %v1928_v2, %v1927_v57  ;;  %v2018_v52 = vpop.f32.mrb[44].mxu1 }
 0x1b2   : > { %v2019_v63 = vpop.f32.mrb[45].mxu1 }
 0x1b3   : > { %v2020_v0 = vadd.f32 %v2019_v63, %v2018_v52  ;;  %v2021_v1 = vpop.f32.mrb[46].mxu1 }
 0x1b4   : > { %v2022_v19 = vpop.f32.mrb[47].mxu1 }
 0x1b5   : > { %v2023_v32 = vadd.f32 %v2022_v19, %v2021_v1  ;;  %v1930_v18 = vpop.f32.mrb[44].mxu0  ;;  %v2792_v28 = vadd.f32 %v2020_v0, %v1030_v30 }
 0x1b6   : > { %v1931_v10 = vpop.f32.mrb[45].mxu0 }
 0x1b7   : > { %v2794_v49 = vadd.f32 %v1931_v10, %v1930_v18  ;;  %v1933_v9 = vpop.f32.mrb[46].mxu0  ;;  %v2796_v31 = vadd.f32 %v2023_v32, %v1033_v4 }
 0x1b8   : > { %v1934_v26 = vpop.f32.mrb[47].mxu0 }
 0x1b9   : > { %v2798_v45 = vadd.f32 %v1934_v26, %v1933_v9  ;;  %v2024_v48 = vpop.f32.mrb[48].mxu1 }
 0x1ba   : > { %v2025_v21 = vpop.f32.mrb[49].mxu1 }
 0x1bb   : > { %v2026_v55 = vadd.f32 %v2025_v21, %v2024_v48  ;;  %v2027_v33 = vpop.f32.mrb[50].mxu1 }
 0x1bc   : > { %v2028_v17 = vpop.f32.mrb[51].mxu1 }
 0x1bd   : > { %v2029_v12 = vadd.f32 %v2028_v17, %v2027_v33  ;;  %v2102_v16 = vpop.f32.mrb[48].mxu0  ;;  %v2802_v34 = vadd.f32 %v2026_v55, %v1038_v29 }
 0x1be   : > { %v1304_v14 = vadd.f32 %v2102_v16, %v2746_v7  ;;  %v1295_v37 = vpop.f32.mrb[49].mxu0 }
 0x1bf   : > { %v1296_v61 = vadd.f32 %v1295_v37, %v2740_v46  ;;  %v2103_v41 = vpop.f32.mrb[50].mxu0  ;;  %v2806_v42 = vadd.f32 %v2029_v12, %v1041_v25 }
 0x1c0   : > { %v1424_v44 = vmax.f32 %v1304_v14, 0.0  ;;  %v1307_v5 = vadd.f32 %v2103_v41, %v2748_v24  ;;  %v1298_v54 = vpop.f32.mrb[51].mxu0  ;;  %v1046_v24 = vadd.f32 %v2772_v15, %v2736_v39 }
 0x1c1   : > { %v1422_v27 = vmax.f32 %v1296_v61, 0.0  ;;  %v1299_v7 = vadd.f32 %v1298_v54, %v2742_v50  ;;  %v2030_v57 = vpop.f32.mrb[52].mxu1  ;;  %v1049_v50 = vadd.f32 %v2776_v36, %v2736_v39 }
 0x1c2   : > { %v1818_v46 = vpack.c.bf16 %v1424_v44, %v1424_v44  ;;  %v1425_v2 = vmax.f32 %v1307_v5, 0.0  ;;  %v2031_v52 = vpop.f32.mrb[53].mxu1 }
 0x1c3   : > { %v1816_v63 = vpack.c.bf16 %v1422_v27, %v1422_v27  ;;  %v1423_v30 = vmax.f32 %v1299_v7, 0.0  ;;  %v2032_v0 = vadd.f32 %v2031_v52, %v2030_v57  ;;  %v2033_v1 = vpop.f32.mrb[54].mxu1 }
 0x1c4   : > { %1585 = vst.msk [vmem:[%s2812_s23 + $0x8] sm:$0xf] %vm1582_vm1, %v1818_v46  ;;  %v1819_v19 = vpack.c.bf16 %v1425_v2, %v1425_v2  ;;  %v2034_v4 = vpop.f32.mrb[55].mxu1 }
 0x1c5   : > { %1583 = vst.msk [vmem:[%s2812_s23] sm:$0xf] %vm1582_vm1, %v1816_v63  ;;  %v1817_v32 = vpack.c.bf16 %v1423_v30, %v1423_v30  ;;  %v2035_v18 = vadd.f32 %v2034_v4, %v2033_v1  ;;  %v2106_v10 = vpop.f32.mrb[52].mxu0  ;;  %v2823_v9 = vadd.f32 %v2032_v0, %v1046_v24 }
 0x1c6   : > { %1586 = vst.msk [vmem:[%s2812_s23 + $0xc] sm:$0xf] %vm1582_vm1, %v1819_v19  ;;  %v1320_v15 = vadd.f32 %v2106_v10, %v2758_v43  ;;  %v1311_v26 = vpop.f32.mrb[53].mxu0 }
 0x1c7   : > { %1584 = vst.msk [vmem:[%s2812_s23 + $0x4] sm:$0xf] %vm1582_vm1, %v1817_v32  ;;  %v1312_v48 = vadd.f32 %v1311_v26, %v2752_v13  ;;  %v2107_v21 = vpop.f32.mrb[54].mxu0  ;;  %v2831_v29 = vadd.f32 %v2035_v18, %v1049_v50  ;;  %v1054_v13 = vadd.f32 %v2782_v56, %v2736_v39 }
 0x1c8   : > { %v1428_v36 = vmax.f32 %v1320_v15, 0.0  ;;  %v1323_v55 = vadd.f32 %v2107_v21, %v2760_v51  ;;  %v1314_v33 = vpop.f32.mrb[55].mxu0 }
 0x1c9   : > { %v1426_v17 = vmax.f32 %v1312_v48, 0.0  ;;  %v1315_v25 = vadd.f32 %v1314_v33, %v2754_v53  ;;  %v2036_v12 = vpop.f32.mrb[56].mxu1  ;;  %v1057_v53 = vadd.f32 %v2786_v60, %v2736_v39 }
 0x1ca   : > { %v1822_v16 = vpack.c.bf16 %v1428_v36, %v1428_v36  ;;  %v1429_v43 = vmax.f32 %v1323_v55, 0.0  ;;  %v2037_v14 = vpop.f32.mrb[57].mxu1 }
 0x1cb   : > { %v1820_v37 = vpack.c.bf16 %v1426_v17, %v1426_v17  ;;  %v1427_v61 = vmax.f32 %v1315_v25, 0.0  ;;  %v2038_v41 = vadd.f32 %v2037_v14, %v2036_v12  ;;  %v2039_v44 = vpop.f32.mrb[58].mxu1 }
 0x1cc   : > { %1589 = vst.msk [vmem:[%s2812_s23 + $0x18] sm:$0xf] %vm1582_vm1, %v1822_v16  ;;  %v1823_v51 = vpack.c.bf16 %v1429_v43, %v1429_v43  ;;  %v2040_v5 = vpop.f32.mrb[59].mxu1 }
 0x1cd   : > { %1587 = vst.msk [vmem:[%s2812_s23 + $0x10] sm:$0xf] %vm1582_vm1, %v1820_v37  ;;  %v1821_v54 = vpack.c.bf16 %v1427_v61, %v1427_v61  ;;  %v2041_v27 = vadd.f32 %v2040_v5, %v2039_v44  ;;  %v2110_v7 = vpop.f32.mrb[56].mxu0  ;;  %v2843_v57 = vadd.f32 %v2038_v41, %v1054_v13  ;;  %v1070_v44 = vadd.f32 %v2717_v58, %v2736_v39 }
 0x1ce   : > { %1590 = vst.msk [vmem:[%s2812_s23 + $0x1c] sm:$0xf] %vm1582_vm1, %v1823_v51  ;;  %v1336_v56 = vadd.f32 %v2110_v7, %v2770_v35  ;;  %v1327_v46 = vpop.f32.mrb[57].mxu0 }
 0x1cf   : > { %1588 = vst.msk [vmem:[%s2812_s23 + $0x14] sm:$0xf] %vm1582_vm1, %v1821_v54  ;;  %v1328_v2 = vadd.f32 %v1327_v46, %v2764_v3  ;;  %v2111_v52 = vpop.f32.mrb[58].mxu0  ;;  %v2851_v24 = vadd.f32 %v2041_v27, %v1057_v53  ;;  %v1062_v3 = vadd.f32 %v2794_v49, %v2736_v39 }
 0x1d0   : > { %v1432_v60 = vmax.f32 %v1336_v56, 0.0  ;;  %v1339_v63 = vadd.f32 %v2111_v52, %v2774_v8  ;;  %v1330_v30 = vpop.f32.mrb[59].mxu0 }
 0x1d1   : > { %v1430_v0 = vmax.f32 %v1328_v2, 0.0  ;;  %v1331_v1 = vadd.f32 %v1330_v30, %v2766_v22  ;;  %v2042_v19 = vpop.f32.mrb[60].mxu1  ;;  %v1065_v22 = vadd.f32 %v2798_v45, %v2736_v39 }
 0x1d2   : > { %v1826_v4 = vpack.c.bf16 %v1432_v60, %v1432_v60  ;;  %v1433_v35 = vmax.f32 %v1339_v63, 0.0  ;;  %v2043_v50 = vpop.f32.mrb[61].mxu1 }
 0x1d3   : > { %v1824_v32 = vpack.c.bf16 %v1430_v0, %v1430_v0  ;;  %v1431_v18 = vmax.f32 %v1331_v1, 0.0  ;;  %v2044_v10 = vadd.f32 %v2043_v50, %v2042_v19  ;;  %v2045_v15 = vpop.f32.mrb[62].mxu1 }
 0x1d4   : > { %1593 = vst.msk [vmem:[%s2812_s23 + $0x28] sm:$0xf] %vm1582_vm1, %v1826_v4  ;;  %v1827_v8 = vpack.c.bf16 %v1433_v35, %v1433_v35  ;;  %v2046_v26 = vpop.f32.mrb[63].mxu1 }
 0x1d5   : > { %1591 = vst.msk [vmem:[%s2812_s23 + $0x20] sm:$0xf] %vm1582_vm1, %v1824_v32  ;;  %v1825_v48 = vpack.c.bf16 %v1431_v18, %v1431_v18  ;;  %v2047_v21 = vadd.f32 %v2046_v26, %v2045_v15  ;;  %v2114_v36 = vpop.f32.mrb[60].mxu0  ;;  %v1223_v55 = vadd.f32 %v2044_v10, %v1062_v3 }
 0x1d6   : > { %1594 = vst.msk [vmem:[%s2812_s23 + $0x2c] sm:$0xf] %vm1582_vm1, %v1827_v8  ;;  %v1352_v49 = vadd.f32 %v2114_v36, %v2792_v28  ;;  %v1343_v33 = vpop.f32.mrb[61].mxu0 }
 0x1d7   : > { %1592 = vst.msk [vmem:[%s2812_s23 + $0x24] sm:$0xf] %vm1582_vm1, %v1825_v48  ;;  %v1344_v17 = vadd.f32 %v1343_v33, %v2780_v47  ;;  %v2115_v25 = vpop.f32.mrb[62].mxu0  ;;  %v1226_v12 = vadd.f32 %v2047_v21, %v1065_v22 }
 0x1d8   : > { %v1436_v16 = vmax.f32 %v1352_v49, 0.0  ;;  %v1355_v45 = vadd.f32 %v2115_v25, %v2796_v31  ;;  %v1346_v43 = vpop.f32.mrb[63].mxu0 }
 0x1d9   : > { %v1434_v14 = vmax.f32 %v1344_v17, 0.0  ;;  %v1347_v13 = vadd.f32 %v1346_v43, %v2784_v6  ;;  %v2048_v37 = vpop.f32.mrb[64].mxu1  ;;  %v1073_v6 = vadd.f32 %v2719_v62, %v2736_v39 }
 0x1da   : > { %v1830_v61 = vpack.c.bf16 %v1436_v16, %v1436_v16  ;;  %v1437_v41 = vmax.f32 %v1355_v45, 0.0  ;;  %v2049_v28 = vpop.f32.mrb[65].mxu1 }
 0x1db   : > { %v1828_v47 = vpack.c.bf16 %v1434_v14, %v1434_v14  ;;  %v1435_v51 = vmax.f32 %v1347_v13, 0.0  ;;  %v2050_v5 = vadd.f32 %v2049_v28, %v2048_v37  ;;  %v2051_v53 = vpop.f32.mrb[66].mxu1  ;;  %v1086_v37 = vadd.f32 %v2725_v23, %v2736_v39 }
 0x1dc   : > { %1597 = vst.msk [vmem:[%s2812_s23 + $0x38] sm:$0xf] %vm1582_vm1, %v1830_v61  ;;  %v1831_v31 = vpack.c.bf16 %v1437_v41, %v1437_v41  ;;  %v2052_v54 = vpop.f32.mrb[67].mxu1 }
 0x1dd   : > { %1595 = vst.msk [vmem:[%s2812_s23 + $0x30] sm:$0xf] %vm1582_vm1, %v1828_v47  ;;  %v1829_v27 = vpack.c.bf16 %v1435_v51, %v1435_v51  ;;  %v2053_v7 = vadd.f32 %v2052_v54, %v2051_v53  ;;  %v2118_v56 = vpop.f32.mrb[64].mxu0  ;;  %v2879_v46 = vadd.f32 %v2050_v5, %v1070_v44 }
 0x1de   : > { %1598 = vst.msk [vmem:[%s2812_s23 + $0x3c] sm:$0xf] %vm1582_vm1, %v1831_v31  ;;  %v1368_v58 = vadd.f32 %v2118_v56, %v2823_v9  ;;  %v1359_v2 = vpop.f32.mrb[65].mxu0 }
 0x1df   : > { %1596 = vst.msk [vmem:[%s2812_s23 + $0x34] sm:$0xf] %vm1582_vm1, %v1829_v27  ;;  %v1360_v52 = vadd.f32 %v1359_v2, %v2802_v34  ;;  %v2119_v60 = vpop.f32.mrb[66].mxu0  ;;  %v2887_v63 = vadd.f32 %v2053_v7, %v1073_v6  ;;  %v1078_v34 = vadd.f32 %v2721_v20, %v2736_v39 }
 0x1e0   : > { %v1440_v62 = vmax.f32 %v1368_v58, 0.0  ;;  %v1371_v30 = vadd.f32 %v2119_v60, %v2831_v29  ;;  %v1362_v0 = vpop.f32.mrb[67].mxu0 }
 0x1e1   : > { %v1438_v1 = vmax.f32 %v1360_v52, 0.0  ;;  %v1363_v19 = vadd.f32 %v1362_v0, %v2806_v42  ;;  %v2054_v4 = vpop.f32.mrb[68].mxu1  ;;  %v1081_v42 = vadd.f32 %v2723_v59, %v2736_v39  ;;  %v1094_v0 = vadd.f32 %v2729_v38, %v2736_v39 }
 0x1e2   : > { %v1834_v35 = vpack.c.bf16 %v1440_v62, %v1440_v62  ;;  %v1441_v9 = vmax.f32 %v1371_v30, 0.0  ;;  %v2055_v50 = vpop.f32.mrb[69].mxu1 }
 0x1e3   : > { %v1832_v3 = vpack.c.bf16 %v1438_v1, %v1438_v1  ;;  %v1439_v32 = vmax.f32 %v1363_v19, 0.0  ;;  %v2056_v18 = vadd.f32 %v2055_v50, %v2054_v4  ;;  %v2057_v10 = vpop.f32.mrb[70].mxu1 }
 0x1e4   : > { %1601 = vst.msk [vmem:[%s2812_s23 + $0x48] sm:$0xf] %vm1582_vm1, %v1834_v35  ;;  %v1835_v29 = vpack.c.bf16 %v1441_v9, %v1441_v9  ;;  %v2058_v15 = vpop.f32.mrb[71].mxu1 }
 0x1e5   : > { %1599 = vst.msk [vmem:[%s2812_s23 + $0x40] sm:$0xf] %vm1582_vm1, %v1832_v3  ;;  %v1833_v8 = vpack.c.bf16 %v1439_v32, %v1439_v32  ;;  %v2059_v26 = vadd.f32 %v2058_v15, %v2057_v10  ;;  %v2122_v22 = vpop.f32.mrb[68].mxu0  ;;  %v1239_v48 = vadd.f32 %v2056_v18, %v1078_v34 }
 0x1e6   : > { %1602 = vst.msk [vmem:[%s2812_s23 + $0x4c] sm:$0xf] %vm1582_vm1, %v1835_v29  ;;  %v1384_v20 = vadd.f32 %v2122_v22, %v1223_v55  ;;  %v1375_v21 = vpop.f32.mrb[69].mxu0 }
 0x1e7   : > { %1600 = vst.msk [vmem:[%s2812_s23 + $0x44] sm:$0xf] %vm1582_vm1, %v1833_v8  ;;  %v1376_v36 = vadd.f32 %v1375_v21, %v2843_v57  ;;  %v2123_v49 = vpop.f32.mrb[70].mxu0  ;;  %v1242_v33 = vadd.f32 %v2059_v26, %v1081_v42 }
 0x1e8   : > { %v1444_v17 = vmax.f32 %v1384_v20, 0.0  ;;  %v1387_v25 = vadd.f32 %v2123_v49, %v1226_v12  ;;  %v1378_v59 = vpop.f32.mrb[71].mxu0 }
 0x1e9   : > { %v1442_v16 = vmax.f32 %v1376_v36, 0.0  ;;  %v1379_v45 = vadd.f32 %v1378_v59, %v2851_v24  ;;  %v2060_v43 = vpop.f32.mrb[72].mxu1  ;;  %v1089_v24 = vadd.f32 %v2727_v11, %v2736_v39 }
 0x1ea   : > { %v1838_v14 = vpack.c.bf16 %v1444_v17, %v1444_v17  ;;  %v1445_v13 = vmax.f32 %v1387_v25, 0.0  ;;  %v2061_v55 = vpop.f32.mrb[73].mxu1 }
 0x1eb   : > { %v1836_v61 = vpack.c.bf16 %v1442_v16, %v1442_v16  ;;  %v1443_v57 = vmax.f32 %v1379_v45, 0.0  ;;  %v2062_v41 = vadd.f32 %v2061_v55, %v2060_v43  ;;  %v2063_v28 = vpop.f32.mrb[74].mxu1 }
 0x1ec   : > { %1605 = vst.msk [vmem:[%s2812_s23 + $0x58] sm:$0xf] %vm1582_vm1, %v1838_v14  ;;  %v1839_v12 = vpack.c.bf16 %v1445_v13, %v1445_v13  ;;  %v2064_v44 = vpop.f32.mrb[75].mxu1 }
 0x1ed   : > { %1603 = vst.msk [vmem:[%s2812_s23 + $0x50] sm:$0xf] %vm1582_vm1, %v1836_v61  ;;  %v1837_v47 = vpack.c.bf16 %v1443_v57, %v1443_v57  ;;  %v2065_v51 = vadd.f32 %v2064_v44, %v2063_v28  ;;  %v2126_v5 = vpop.f32.mrb[72].mxu0  ;;  %v1247_v53 = vadd.f32 %v2062_v41, %v1086_v37 }
 0x1ee   : > { %1606 = vst.msk [vmem:[%s2812_s23 + $0x5c] sm:$0xf] %vm1582_vm1, %v1839_v12  ;;  %v1400_v23 = vadd.f32 %v2126_v5, %v1239_v48  ;;  %v1391_v31 = vpop.f32.mrb[73].mxu0 }
 0x1ef   : > { %1604 = vst.msk [vmem:[%s2812_s23 + $0x54] sm:$0xf] %vm1582_vm1, %v1837_v47  ;;  %v1392_v54 = vadd.f32 %v1391_v31, %v2879_v46  ;;  %v2127_v6 = vpop.f32.mrb[74].mxu0  ;;  %v1250_v27 = vadd.f32 %v2065_v51, %v1089_v24 }
 0x1f0   : > { %v1448_v7 = vmax.f32 %v1400_v23, 0.0  ;;  %v1403_v56 = vadd.f32 %v2127_v6, %v1242_v33  ;;  %v1394_v11 = vpop.f32.mrb[75].mxu0 }
 0x1f1   : > { %v1446_v58 = vmax.f32 %v1392_v54, 0.0  ;;  %v1395_v2 = vadd.f32 %v1394_v11, %v2887_v63  ;;  %v2066_v52 = vpop.f32.mrb[76].mxu1  ;;  %v1097_v63 = vadd.f32 %v2731_v40, %v2736_v39 }
 0x1f2   : > { %v1842_v60 = vpack.c.bf16 %v1448_v7, %v1448_v7  ;;  %v1449_v62 = vmax.f32 %v1403_v56, 0.0  ;;  %v2067_v30 = vpop.f32.mrb[77].mxu1 }
 0x1f3   : > { %v1840_v46 = vpack.c.bf16 %v1446_v58, %v1446_v58  ;;  %v1447_v1 = vmax.f32 %v1395_v2, 0.0  ;;  %v2068_v19 = vadd.f32 %v2067_v30, %v2066_v52  ;;  %v2069_v4 = vpop.f32.mrb[78].mxu1 }
 0x1f4   : > { %1609 = vst.msk [vmem:[%s2812_s23 + $0x68] sm:$0xf] %vm1582_vm1, %v1842_v60  ;;  %v1843_v35 = vpack.c.bf16 %v1449_v62, %v1449_v62  ;;  %v2070_v9 = vpop.f32.mrb[79].mxu1 }
 0x1f5   : > { %1607 = vst.msk [vmem:[%s2812_s23 + $0x60] sm:$0xf] %vm1582_vm1, %v1840_v46  ;;  %v1841_v50 = vpack.c.bf16 %v1447_v1, %v1447_v1  ;;  %v2071_v34 = vadd.f32 %v2070_v9, %v2069_v4  ;;  %v1255_v3 = vadd.f32 %v2068_v19, %v1094_v0  ;;  %v2130_v32 = vpop.f32.mrb[76].mxu0 }
 0x1f6   : > { %1610 = vst.msk [vmem:[%s2812_s23 + $0x6c] sm:$0xf] %vm1582_vm1, %v1843_v35  ;;  %v1407_v38 = vpop.f32.mrb[77].mxu0 }
 0x1f7   : > { %1608 = vst.msk [vmem:[%s2812_s23 + $0x64] sm:$0xf] %vm1582_vm1, %v1841_v50  ;;  %v1416_v18 = vadd.f32 %v2130_v32, %v1255_v3  ;;  %v1408_v10 = vadd.f32 %v1407_v38, %v1247_v53  ;;  %v1258_v29 = vadd.f32 %v2071_v34, %v1097_v63  ;;  %v2131_v15 = vpop.f32.mrb[78].mxu0 }
 0x1f8   : > { %v1410_v40 = vpop.f32.mrb[79].mxu0 }
 0x1f9   : > { %v1452_v39 = vmax.f32 %v1416_v18, 0.0  ;;  %v1450_v42 = vmax.f32 %v1408_v10, 0.0  ;;  %v1419_v8 = vadd.f32 %v2131_v15, %v1258_v29  ;;  %v1411_v26 = vadd.f32 %v1410_v40, %v1250_v27 }
 0x1fb   : > { %v1846_v22 = vpack.c.bf16 %v1452_v39, %v1452_v39  ;;  %v1844_v48 = vpack.c.bf16 %v1450_v42, %v1450_v42  ;;  %v1453_v20 = vmax.f32 %v1419_v8, 0.0  ;;  %v1451_v21 = vmax.f32 %v1411_v26, 0.0 }
 0x1fd   : > { %1613 = vst.msk [vmem:[%s2812_s23 + $0x78] sm:$0xf] %vm1582_vm1, %v1846_v22  ;;  %1611 = vst.msk [vmem:[%s2812_s23 + $0x70] sm:$0xf] %vm1582_vm1, %v1844_v48  ;;  %v1847_v36 = vpack.c.bf16 %v1453_v20, %v1453_v20  ;;  %v1845_v49 = vpack.c.bf16 %v1451_v21, %v1451_v21 }
 0x1ff   : > { %1614 = vst.msk [vmem:[%s2812_s23 + $0x7c] sm:$0xf] %vm1582_vm1, %v1847_v36  ;;  %1612 = vst.msk [vmem:[%s2812_s23 + $0x74] sm:$0xf] %vm1582_vm1, %v1845_v49 }
 0x200 PF: > { %s13_s12 = sadd.s32 1, %s2271_s12  }
 0x201   : > { %p10_p5 = scmp.ge.s32.totalorder %s13_s12, 4  }
 0x203   :  { %12 = sbr.rel (!%p10_p5) target bundleno = 1 (0x1), region = 62 }

// kernel: myfcn_forward.19
= control target key start
LH: loop header
LB: loop body
LE: loop exit
PB: predicated region body
PF: predicated region fallthrough
CT: control target
= control target key end

     0   :  { %s2283_s12 = smov 0   ;;  %s3179_s0 = inlined_call_operand.vmem [shape: bf16[576,192], index: 0, kind: input, shape index: {}]   ;;  %s3180_s1 = inlined_call_operand.vmem [shape: bf16[576,192], index: 1, kind: input, shape index: {}]   ;;  %s3181_s2 = inlined_call_operand.vmem [shape: f32[1,192], index: 2, kind: input, shape index: {}]   ;;  %s3182_s3 = inlined_call_operand.vmem [shape: f32[512,192], index: 3, kind: output, shape index: {}]  }
   0x1 LB: > { %s1719_s13 = sadd.s32 4294967295, %s2259_s12   ;;  %p1723_p0 = scmp.ge.s32.totalorder %s2259_s12, 1  ;;  %s2259_s12 = sphi %s2283_s12, %s13_s12  }
   0x2   : > { %p139_p1 = scmp.lt.s32.totalorder %s2259_s12, 3 }
   0x4   : > { %p140_p2 = pnand %p1723_p0, %p139_p1 }
   0x6   : > { %143 = sbr.rel (%p140_p2) target bundleno = 543 (0x21f), region = 32 }
   0xd   : > { %s165_s14 = smul.u32 36, %s1719_s13  ;;  %v2116_v0 = vld [vmem:[%s3180_s1 + $0x4] ss:$8 sps:$4 sm:$0xff]   ;;  %v2121_v1 = vld [vmem:[%s3180_s1] ss:$8 sps:$4 sm:$0xff]   ;;  %s2261_s18 = smov 64  }
   0xe   : > { %1018 = vmatprep.subr.bf16.mxu1 %v2116_v0  ;;  %v2302_v2 = vld [vmem:[%s3180_s1 + $0x104] ss:$8 sps:$4 sm:$0xff]   ;;  %v2307_v3 = vld [vmem:[%s3180_s1 + $0x100] ss:$8 sps:$4 sm:$0xff]   ;;  %v2125_v4 = vld [vmem:[%s3180_s1 + $0x14] ss:$8 sps:$4 sm:$0xff]  }
   0xf   : > { %p166_p3 = scmp.lt.s32.totalorder %s165_s14, 71  ;;  %1019 = vmatpush1.bf16.msra.mxu1 %v2121_v1  ;;  %v2131_v5 = vld [vmem:[%s3180_s1 + $0x10] ss:$8 sps:$4 sm:$0xff]   ;;  %1211 = vmatprep.subr.bf16.mxu0 %v2302_v2  ;;  %v2319_v6 = vld [vmem:[%s3180_s1 + $0x114] ss:$8 sps:$4 sm:$0xff]   ;;  %vm432_vm0 = vcmask 523264  }
  0x10   : > { %1212 = vmatpush1.bf16.msra.mxu0 %v2307_v3  ;;  %1020 = vmatprep.subr.bf16.mxu1 %v2125_v4  ;;  %v2325_v7 = vld [vmem:[%s3180_s1 + $0x110] ss:$8 sps:$4 sm:$0xff]   ;;  %v2135_v8 = vld [vmem:[%s3180_s1 + $0x24] ss:$8 sps:$4 sm:$0xff]   ;;  %v2141_v9 = vld [vmem:[%s3180_s1 + $0x20] ss:$8 sps:$4 sm:$0xff]  }
  0x11   : > { %s3214_s14 = smov (!%p166_p3, %s165_s14), 71  ;;  %1213 = vmatprep.subr.bf16.mxu0 %v2319_v6  ;;  %v2342_v10 = vld [vmem:[%s3180_s1 + $0x124] ss:$8 sps:$4 sm:$0xff]   ;;  %v2351_v12 = vld [vmem:[%s3180_s1 + $0x120] ss:$8 sps:$4 sm:$0xff]  }
  0x12   : > { %s1855_s4 = sshll.u32 %s3214_s14, 3  ;;  %v2145_v22 = vld [vmem:[%s3180_s1 + $0x34] ss:$8 sps:$4 sm:$0xff]   ;;  %v2150_v25 = vld [vmem:[%s3180_s1 + $0x30] ss:$8 sps:$4 sm:$0xff]  }
  0x13   : > { %s2334_s9 = scalar_lea.vmem %s3179_s0, %s1855_s4  ;;  %1021 = vmatpush1.bf16.msra.mxu1 %v2131_v5  ;;  %v2421_v27 = vld [vmem:[%s3180_s1 + $0x134] ss:$8 sps:$4 sm:$0xff]   ;;  %v2426_v28 = vld [vmem:[%s3180_s1 + $0x130] ss:$8 sps:$4 sm:$0xff]   ;;  %v2154_v29 = vld [vmem:[%s3180_s1 + $0x44] ss:$8 sps:$4 sm:$0xff]  }
  0x14   : > { %v2345_v11 = vld [vmem:[%s2334_s9 + $0x10] ss:$8 sps:$4 sm:$0xff]   ;;  %1022 = vmatprep.subr.bf16.mxu1 %v2135_v8  ;;  %1214 = vmatpush1.bf16.msra.mxu0 %v2325_v7  ;;  %v2354_v13 = vld [vmem:[%s2334_s9 + $0x14] ss:$8 sps:$4 sm:$0xff]   ;;  %v2359_v14 = vld [vmem:[%s2334_s9 + $0x20] ss:$8 sps:$4 sm:$0xff]  }
  0x15   : > { %368 = vrot.lane.b32.xlu0 %v2345_v11, %s2261_s18  ;;  %1215 = vmatprep.subr.bf16.mxu0 %v2342_v10  ;;  %v2365_v15 = vld [vmem:[%s2334_s9 + $0x24] ss:$8 sps:$4 sm:$0xff]   ;;  %v2372_v16 = vld [vmem:[%s2334_s9 + $0x30] ss:$8 sps:$4 sm:$0xff]   ;;  %v2377_v17 = vld [vmem:[%s2334_s9 + $0x34] ss:$8 sps:$4 sm:$0xff]  }
  0x16   : > { %372 = vrot.lane.b32.xlu1 %v2359_v14, %s2261_s18  ;;  %1243 = vmatprep.mubr.bf16.mxu0 %v2359_v14  ;;  %v2382_v18 = vld [vmem:[%s2334_s9 + $0x40] ss:$8 sps:$4 sm:$0xff]   ;;  %v2387_v19 = vld [vmem:[%s2334_s9 + $0x44] ss:$8 sps:$4 sm:$0xff]   ;;  %v2392_v20 = vld [vmem:[%s2334_s9 + $0x50] ss:$8 sps:$4 sm:$0xff]  }
  0x17   : > { %1023 = vmatpush1.bf16.msra.mxu1 %v2141_v9  ;;  %v2397_v21 = vld [vmem:[%s2334_s9 + $0x54] ss:$8 sps:$4 sm:$0xff]   ;;  %v2405_v23 = vld [vmem:[%s2334_s9 + $0x60] ss:$8 sps:$4 sm:$0xff]   ;;  %v2408_v24 = vld [vmem:[%s2334_s9 + $0x64] ss:$8 sps:$4 sm:$0xff]  }
  0x18   : > { %1216 = vmatpush1.bf16.msra.mxu0 %v2351_v12  ;;  %1024 = vmatprep.subr.bf16.mxu1 %v2145_v22  ;;  %v2416_v26 = vld [vmem:[%s2334_s9 + $0x70] ss:$8 sps:$4 sm:$0xff]   ;;  %v2434_v30 = vld [vmem:[%s2334_s9 + $0x74] ss:$8 sps:$4 sm:$0xff]   ;;  %v2158_v31 = vld [vmem:[%s3180_s1 + $0x40] ss:$8 sps:$4 sm:$0xff]  }
  0x19   : > { %370 = vrot.lane.b32.xlu0 %v2354_v13, %s2261_s18  ;;  %1217 = vmatprep.subr.bf16.mxu0 %v2421_v27  ;;  %v2444_v32 = vld [vmem:[%s3180_s1 + $0x144] ss:$8 sps:$4 sm:$0xff]   ;;  %v2451_v33 = vld [vmem:[%s3180_s1 + $0x140] ss:$8 sps:$4 sm:$0xff]   ;;  %v2162_v35 = vld [vmem:[%s3180_s1 + $0x54] ss:$8 sps:$4 sm:$0xff]  }
  0x1a   : > { %374 = vrot.lane.b32.xlu1 %v2365_v15, %s2261_s18  ;;  %v2454_v34 = vld [vmem:[%s2334_s9 + $0x80] ss:$8 sps:$4 sm:$0xff]   ;;  %v2165_v36 = vld [vmem:[%s3180_s1 + $0x50] ss:$8 sps:$4 sm:$0xff]   ;;  %v2468_v37 = vld [vmem:[%s3180_s1 + $0x154] ss:$8 sps:$4 sm:$0xff]  }
  0x1b   : > { %1025 = vmatpush1.bf16.msra.mxu1 %v2150_v25  ;;  %v2474_v38 = vld [vmem:[%s3180_s1 + $0x150] ss:$8 sps:$4 sm:$0xff]   ;;  %v2482_v40 = vld [vmem:[%s2334_s9 + $0x84] ss:$8 sps:$4 sm:$0xff]   ;;  %v2171_v42 = vld [vmem:[%s3180_s1 + $0x60] ss:$8 sps:$4 sm:$0xff]  }
  0x1c   : > { %1218 = vmatpush1.bf16.msra.mxu0 %v2426_v28  ;;  %1026 = vmatprep.subr.bf16.mxu1 %v2154_v29  ;;  %v2479_v39 = vld [vmem:[%s2334_s9 + $0x90] ss:$8 sps:$4 sm:$0xff]   ;;  %v2169_v41 = vld [vmem:[%s3180_s1 + $0x64] ss:$8 sps:$4 sm:$0xff]   ;;  %v2175_v44 = vld [vmem:[%s3180_s1 + $0x74] ss:$8 sps:$4 sm:$0xff]  }
  0x1d   : > { %376 = vrot.lane.b32.xlu0 %v2372_v16, %s2261_s18  ;;  %1219 = vmatprep.subr.bf16.mxu0 %v2444_v32  ;;  %v2494_v43 = vld [vmem:[%s3180_s1 + $0x164] ss:$8 sps:$4 sm:$0xff]   ;;  %v2505_v45 = vld [vmem:[%s3180_s1 + $0x160] ss:$8 sps:$4 sm:$0xff]   ;;  %v2510_v46 = vld [vmem:[%s2334_s9 + $0xb0] ss:$8 sps:$4 sm:$0xff]  }
  0x1e   : > { %378 = vrot.lane.b32.xlu1 %v2377_v17, %s2261_s18  ;;  %v2513_v47 = vld [vmem:[%s2334_s9 + $0xa0] ss:$8 sps:$4 sm:$0xff]   ;;  %v2519_v48 = vld [vmem:[%s3180_s1 + $0x174] ss:$8 sps:$4 sm:$0xff]   ;;  %v2178_v49 = vld [vmem:[%s3180_s1 + $0x70] ss:$8 sps:$4 sm:$0xff]  }
  0x1f   : > { %1027 = vmatpush1.bf16.msra.mxu1 %v2158_v31  ;;  %v2182_v50 = vld [vmem:[%s3180_s1 + $0x84] ss:$8 sps:$4 sm:$0xff]   ;;  %v2533_v51 = vld [vmem:[%s3180_s1 + $0x170] ss:$8 sps:$4 sm:$0xff]   ;;  %v2538_v52 = vld [vmem:[%s2334_s9 + $0xc0] ss:$8 sps:$4 sm:$0xff]  }
  0x20   : > { %1220 = vmatpush1.bf16.msra.mxu0 %v2451_v33  ;;  %1028 = vmatprep.subr.bf16.mxu1 %v2162_v35  ;;  %3197 = vst [vmem:[#allocation2_spill] sm:$0xff] %v2538_v52  ;;  %v2544_v53 = vld [vmem:[%s3180_s1 + $0x184] ss:$8 sps:$4 sm:$0xff]   ;;  %v2184_v54 = vld [vmem:[%s3180_s1 + $0x80] ss:$8 sps:$4 sm:$0xff]  }
  0x21   : > { %380 = vrot.lane.b32.xlu0 %v2382_v18, %s2261_s18  ;;  %1221 = vmatprep.subr.bf16.mxu0 %v2468_v37  ;;  %v2552_v55 = vld [vmem:[%s2334_s9 + $0xd0] ss:$8 sps:$4 sm:$0xff]   ;;  %v2188_v56 = vld [vmem:[%s3180_s1 + $0x94] ss:$8 sps:$4 sm:$0xff]   ;;  %v2558_v57 = vld [vmem:[%s2334_s9 + $0xe0] ss:$8 sps:$4 sm:$0xff]  }
  0x22   : > { %382 = vrot.lane.b32.xlu1 %v2387_v19, %s2261_s18  ;;  %3198 = vst [vmem:[#allocation3_spill] sm:$0xff] %v2552_v55  ;;  %3199 = vst [vmem:[#allocation4_spill] sm:$0xff] %v2558_v57  ;;  %v2564_v58 = vld [vmem:[%s3180_s1 + $0x180] ss:$8 sps:$4 sm:$0xff]   ;;  %v2572_v59 = vld [vmem:[%s3180_s1 + $0x194] ss:$8 sps:$4 sm:$0xff]  }
  0x23   : > { %1029 = vmatpush1.bf16.msra.mxu1 %v2165_v36  ;;  %v2191_v60 = vld [vmem:[%s3180_s1 + $0x90] ss:$8 sps:$4 sm:$0xff]   ;;  %v2583_v62 = vld [vmem:[%s2334_s9 + $0x100] ss:$8 sps:$4 sm:$0xff]   ;;  %v2195_v63 = vld [vmem:[%s3180_s1 + $0xa4] ss:$8 sps:$4 sm:$0xff]  }
  0x24   : > { %1030 = vmatprep.subr.bf16.mxu1 %v2169_v41  ;;  %1222 = vmatpush1.bf16.msra.mxu0 %v2474_v38  ;;  %v2580_v61 = vld [vmem:[%s2334_s9 + $0xf0] ss:$8 sps:$4 sm:$0xff]   ;;  %3201 = vst [vmem:[#allocation6_spill] sm:$0xff] %v2583_v62  ;;  %v2600_v1 = vld [vmem:[%s3180_s1 + $0x1a4] ss:$8 sps:$4 sm:$0xff]  }
  0x25   : > { %384 = vrot.lane.b32.xlu0 %v2392_v20, %s2261_s18  ;;  %1223 = vmatprep.subr.bf16.mxu0 %v2494_v43  ;;  %3200 = vst [vmem:[#allocation5_spill] sm:$0xff] %v2580_v61  ;;  %v2592_v0 = vld [vmem:[%s3180_s1 + $0x190] ss:$8 sps:$4 sm:$0xff]   ;;  %v2197_v4 = vld [vmem:[%s3180_s1 + $0xa0] ss:$8 sps:$4 sm:$0xff]  }
  0x26   : > { %386 = vrot.lane.b32.xlu1 %v2397_v21, %s2261_s18  ;;  %v2608_v5 = vld [vmem:[%s2334_s9 + $0x94] ss:$8 sps:$4 sm:$0xff]   ;;  %v2617_v9 = vld [vmem:[%s3180_s1 + $0x1a0] ss:$8 sps:$4 sm:$0xff]   ;;  %v2622_v22 = vld [vmem:[%s2334_s9 + $0xa4] ss:$8 sps:$4 sm:$0xff]  }
  0x27   : > { %1031 = vmatpush1.bf16.msra.mxu1 %v2171_v42  ;;  %v2201_v8 = vld [vmem:[%s3180_s1 + $0xb4] ss:$8 sps:$4 sm:$0xff]   ;;  %v2204_v31 = vld [vmem:[%s3180_s1 + $0xb0] ss:$8 sps:$4 sm:$0xff]   ;;  %v2208_v35 = vld [vmem:[%s3180_s1 + $0xc4] ss:$8 sps:$4 sm:$0xff]  }
  0x28   : > { %1032 = vmatprep.subr.bf16.mxu1 %v2175_v44  ;;  %1224 = vmatpush1.bf16.msra.mxu0 %v2505_v45  ;;  %v2628_v25 = vld [vmem:[%s3180_s1 + $0x1b4] ss:$8 sps:$4 sm:$0xff]   ;;  %v2645_v36 = vld [vmem:[%s3180_s1 + $0x1b0] ss:$8 sps:$4 sm:$0xff]   ;;  %v2650_v41 = vld [vmem:[%s2334_s9 + $0xc4] ss:$8 sps:$4 sm:$0xff]  }
  0x29   : > { %388 = vrot.lane.b32.xlu0 %v2405_v23, %s2261_s18  ;;  %1225 = vmatprep.subr.bf16.mxu0 %v2519_v48  ;;  %v2631_v29 = vld [vmem:[%s2334_s9 + $0xb4] ss:$8 sps:$4 sm:$0xff]   ;;  %v2656_v42 = vld [vmem:[%s3180_s1 + $0x1c4] ss:$8 sps:$4 sm:$0xff]  }
  0x2a   : > { %390 = vrot.lane.b32.xlu1 %v2408_v24, %s2261_s18  ;;  %v2659_v44 = vld [vmem:[%s2334_s9 + $0xd4] ss:$8 sps:$4 sm:$0xff]  }
  0x2b   : > { %1033 = vmatpush1.bf16.msra.mxu1 %v2178_v49  ;;  %v2210_v49 = vld [vmem:[%s3180_s1 + $0xc0] ss:$8 sps:$4 sm:$0xff]  }
  0x2c   : > { %1034 = vmatprep.subr.bf16.mxu1 %v2182_v50  ;;  %1226 = vmatpush1.bf16.msra.mxu0 %v2533_v51  ;;  %v2214_v50 = vld [vmem:[%s3180_s1 + $0xd4] ss:$8 sps:$4 sm:$0xff]  }
  0x2d   : > { %392 = vrot.lane.b32.xlu0 %v2416_v26, %s2261_s18  ;;  %1227 = vmatprep.subr.bf16.mxu0 %v2544_v53 }
  0x2e   : > { %394 = vrot.lane.b32.xlu1 %v2434_v30, %s2261_s18 }
  0x2f   : > { %1035 = vmatpush1.bf16.msra.mxu1 %v2184_v54  ;;  %v2673_v54 = vld [vmem:[%s3180_s1 + $0x1c0] ss:$8 sps:$4 sm:$0xff]  }
  0x30   : > { %1036 = vmatprep.subr.bf16.mxu1 %v2188_v56  ;;  %1228 = vmatpush1.bf16.msra.mxu0 %v2564_v58  ;;  %v2679_v56 = vld [vmem:[%s2334_s9 + $0xe4] ss:$8 sps:$4 sm:$0xff]  }
  0x31   : > { %396 = vrot.lane.b32.xlu0 %v2454_v34, %s2261_s18  ;;  %1229 = vmatprep.subr.bf16.mxu0 %v2572_v59  ;;  %3202 = vst [vmem:[#allocation7_spill] sm:$0xff] %v2679_v56 }
  0x32   : > { %398 = vrot.lane.b32.xlu1 %v2482_v40, %s2261_s18 }
  0x33   : > { %1037 = vmatpush1.bf16.msra.mxu1 %v2191_v60  ;;  %v2684_v60 = vld [vmem:[%s3180_s1 + $0x1d4] ss:$8 sps:$4 sm:$0xff]  }
  0x34   : > { %1038 = vmatprep.subr.bf16.mxu1 %v2195_v63  ;;  %1230 = vmatpush1.bf16.msra.mxu0 %v2592_v0  ;;  %v2217_v63 = vld [vmem:[%s3180_s1 + $0xd0] ss:$8 sps:$4 sm:$0xff]  }
  0x35   : > { %400 = vrot.lane.b32.xlu0 %v2479_v39, %s2261_s18  ;;  %1231 = vmatprep.subr.bf16.mxu0 %v2600_v1 }
  0x36   : > { %404 = vrot.lane.b32.xlu1 %v2513_v47, %s2261_s18 }
  0x37   : > { %1039 = vmatpush1.bf16.msra.mxu1 %v2197_v4  ;;  %v2221_v4 = vld [vmem:[%s3180_s1 + $0xe4] ss:$8 sps:$4 sm:$0xff]  }
  0x38   : > { %1040 = vmatprep.subr.bf16.mxu1 %v2201_v8  ;;  %1232 = vmatpush1.bf16.msra.mxu0 %v2617_v9  ;;  %v2695_v8 = vld [vmem:[%s2334_s9 + $0xf4] ss:$8 sps:$4 sm:$0xff]  }
  0x39   : > { %408 = vrot.lane.b32.xlu0 %v2510_v46, %s2261_s18  ;;  %1233 = vmatprep.subr.bf16.mxu0 %v2628_v25  ;;  %3203 = vst [vmem:[#allocation8_spill] sm:$0xff] %v2695_v8 }
  0x3a   : > { %412 = vrot.lane.b32.xlu1 %v2538_v52, %s2261_s18  ;;  %v2237_v52 = vld [vmem:[%s3180_s1 + $0x200] ss:$8 sps:$4 sm:$0xff]  }
  0x3b   : > { %1041 = vmatpush1.bf16.msra.mxu1 %v2204_v31  ;;  %v2701_v31 = vld [vmem:[%s3180_s1 + $0x1d0] ss:$8 sps:$4 sm:$0xff]  }
  0x3c   : > { %1042 = vmatprep.subr.bf16.mxu1 %v2208_v35  ;;  %1234 = vmatpush1.bf16.msra.mxu0 %v2645_v36  ;;  %v2706_v35 = vld [vmem:[%s3180_s1 + $0x1e4] ss:$8 sps:$4 sm:$0xff]  }
  0x3d   : > { %416 = vrot.lane.b32.xlu0 %v2552_v55, %s2261_s18  ;;  %1235 = vmatprep.subr.bf16.mxu0 %v2656_v42 }
  0x3e   : > { %420 = vrot.lane.b32.xlu1 %v2558_v57, %s2261_s18  ;;  %v2743_v57 = vld [vmem:[%s3180_s1 + $0x1f0] ss:$8 sps:$4 sm:$0xff]  }
  0x3f   : > { %1043 = vmatpush1.bf16.msra.mxu1 %v2210_v49  ;;  %v2712_v49 = vld [vmem:[%s2334_s9 + $0x104] ss:$8 sps:$4 sm:$0xff]  }
  0x40   : > { %1044 = vmatprep.subr.bf16.mxu1 %v2214_v50  ;;  %1236 = vmatpush1.bf16.msra.mxu0 %v2673_v54  ;;  %3204 = vst [vmem:[#allocation9_spill] sm:$0xff] %v2712_v49  ;;  %v2223_v50 = vld [vmem:[%s3180_s1 + $0xe0] ss:$8 sps:$4 sm:$0xff]  }
  0x41   : > { %424 = vrot.lane.b32.xlu0 %v2580_v61, %s2261_s18  ;;  %1237 = vmatprep.subr.bf16.mxu0 %v2684_v60  ;;  %v2726_v61 = vld [vmem:[%s3180_s1 + $0x1e0] ss:$8 sps:$4 sm:$0xff]  }
  0x42   : > { %428 = vrot.lane.b32.xlu1 %v2583_v62, %s2261_s18  ;;  %v2227_v62 = vld [vmem:[%s3180_s1 + $0xf4] ss:$8 sps:$4 sm:$0xff]  }
  0x43   : > { %1045 = vmatpush1.bf16.msra.mxu1 %v2217_v63  ;;  %v2732_v63 = vld [vmem:[%s3180_s1 + $0x1f4] ss:$8 sps:$4 sm:$0xff]  }
  0x44   : > { %1046 = vmatprep.subr.bf16.mxu1 %v2221_v4  ;;  %1238 = vmatpush1.bf16.msra.mxu0 %v2701_v31  ;;  %v2230_v4 = vld [vmem:[%s3180_s1 + $0xf0] ss:$8 sps:$4 sm:$0xff]  }
  0x45   : > { %402 = vrot.lane.b32.xlu0 %v2608_v5, %s2261_s18  ;;  %1239 = vmatprep.subr.bf16.mxu0 %v2706_v35 }
  0x46   : > { %406 = vrot.lane.b32.xlu1 %v2622_v22, %s2261_s18 }
  0x47   : > { %1047 = vmatpush1.bf16.msra.mxu1 %v2223_v50  ;;  %v2236_v50 = vld [vmem:[%s2334_s9] ss:$8 sps:$4 sm:$0xff]  }
  0x48   : > { %1048 = vmatprep.subr.bf16.mxu1 %v2227_v62  ;;  %1240 = vmatpush1.bf16.msra.mxu0 %v2726_v61  ;;  %v2233_v62 = vld [vmem:[%s2334_s9 + $0x4] ss:$8 sps:$4 sm:$0xff]  }
  0x49   : > { %410 = vrot.lane.b32.xlu0 %v2631_v29, %s2261_s18  ;;  %1241 = vmatprep.subr.bf16.mxu0 %v2732_v63 }
  0x4a   : > { %414 = vrot.lane.b32.xlu1 %v2650_v41, %s2261_s18 }
  0x4b   : > { %1049 = vmatpush1.bf16.msra.mxu1 %v2230_v4 }
  0x4c   : > { %1857 = vmatprep.subr.bf16.mxu1 %v2302_v2  ;;  %1242 = vmatpush1.bf16.msra.mxu0 %v2743_v57 }
  0x4d   : > { %418 = vrot.lane.b32.xlu0 %v2659_v44, %s2261_s18 }
  0x4e   : > { %422 = vrot.lane.b32.xlu1 %v2679_v56, %s2261_s18 }
  0x51   : > { %426 = vrot.lane.b32.xlu0 %v2695_v8, %s2261_s18  ;;  %v2239_v8 = vld [vmem:[%s3180_s1 + $0x204] ss:$8 sps:$4 sm:$0xff]  }
  0x52   : > { %430 = vrot.lane.b32.xlu1 %v2712_v49, %s2261_s18  ;;  %1404 = vmatprep.subr.bf16.mxu0 %v2239_v8  ;;  %v2243_v8 = vld [vmem:[%s3180_s1 + $0x214] ss:$8 sps:$4 sm:$0xff]  }
  0x87   : > { %v369_v49 = vpop.permute.xlu0 %368 }
  0x88   : > { %v478_v55 = vsel %vm432_vm0, %v2233_v62, %v369_v49  ;;  %v373_v56 = vpop.permute.xlu1 %372 }
  0x89   : > { %1050 = vmatprep.mubr.bf16.mxu1 %v478_v55  ;;  %v482_v4 = vsel %vm432_vm0, %v2354_v13, %v373_v56  ;;  %v2241_v13 = vld [vmem:[%s3180_s1 + $0x210] ss:$8 sps:$4 sm:$0xff]  }
  0x8a   : > { %1051 = vmatmul.mubr.bf16.vlgmr.msra.gmra.mrb[0].mxu1 %v2236_v50 }
  0x8b   : > { %v371_v2 = vpop.permute.xlu0 %370  ;;  %1873 = vmatpush1.bf16.msra.mxu1 %v2307_v3  ;;  %1060 = vmatprep.mubr.bf16.mxu1 %v482_v4 }
  0x8c   : > { %v433_v62 = vsel %vm432_vm0, %v369_v49, %v371_v2  ;;  %1858 = vmatprep.subr.bf16.mxu1 %v2319_v6  ;;  %v2246_v6 = vld [vmem:[%s3180_s1 + $0x224] ss:$8 sps:$4 sm:$0xff]   ;;  %v2244_v49 = vld [vmem:[%s3180_s1 + $0x220] ss:$8 sps:$4 sm:$0xff]  }
  0x8d   : > { %1244 = vmatmul.mubr.bf16.vlgmr.msra.gmra.mrb[0].mxu0 %v433_v62 }
  0x8e   : > { %1405 = vmatpush1.bf16.msra.mxu0 %v2237_v52  ;;  %1253 = vmatprep.mubr.bf16.mxu0 %v2372_v16  ;;  %v375_v52 = vpop.permute.xlu1 %374 }
  0x8f   : > { %1874 = vmatpush1.bf16.msra.mxu1 %v2325_v7  ;;  %v377_v3 = vpop.permute.xlu0 %376  ;;  %1406 = vmatprep.subr.bf16.mxu0 %v2243_v8  ;;  %v2249_v7 = vld [vmem:[%s3180_s1 + $0x234] ss:$8 sps:$4 sm:$0xff]  }
  0x90   : > { %v486_v55 = vsel %vm432_vm0, %v2365_v15, %v377_v3  ;;  %1859 = vmatprep.subr.bf16.mxu1 %v2342_v10  ;;  %v434_v10 = vsel %vm432_vm0, %v373_v56, %v375_v52  ;;  %v3209_v8 = vld [vmem:[#allocation4_spill] sm:$0xff] }
  0x91   : > { %v2250_v52 = vld [vmem:[%s2334_s9 + $0x110] ss:$8 sps:$4 sm:$0xff]  }
  0x92   : > { %1061 = vmatmul.mubr.bf16.gmra.mrb[4].mxu1 %v2345_v11  ;;  %1407 = vmatpush1.bf16.msra.mxu0 %v2241_v13  ;;  %v2247_v11 = vld [vmem:[%s3180_s1 + $0x230] ss:$8 sps:$4 sm:$0xff]   ;;  %v379_v56 = vpop.permute.xlu1 %378 }
  0x93   : > { %1070 = vmatprep.mubr.bf16.mxu1 %v486_v55  ;;  %1875 = vmatpush1.bf16.msra.mxu1 %v2351_v12  ;;  %v381_v50 = vpop.permute.xlu0 %380 }
  0x94   : > { %1860 = vmatprep.subr.bf16.mxu1 %v2421_v27  ;;  %1408 = vmatprep.subr.bf16.mxu0 %v2246_v6  ;;  %v490_v12 = vsel %vm432_vm0, %v2377_v17, %v381_v50  ;;  %v435_v27 = vsel %vm432_vm0, %v377_v3, %v379_v56  ;;  %v3211_v6 = vld [vmem:[#allocation6_spill] sm:$0xff] }
  0x95   : > { %1254 = vmatmul.mubr.bf16.gmra.mrb[4].mxu0 %v434_v10 }
  0x96   : > { %1263 = vmatprep.mubr.bf16.mxu0 %v2382_v18  ;;  %1409 = vmatpush1.bf16.msra.mxu0 %v2244_v49 }
  0x97   : > { %1876 = vmatpush1.bf16.msra.mxu1 %v2426_v28  ;;  %1410 = vmatprep.subr.bf16.mxu0 %v2249_v7  ;;  %v385_v4 = vpop.permute.xlu0 %384  ;;  %v3212_v7 = vld [vmem:[#allocation9_spill] sm:$0xff] }
  0x98   : > { %1861 = vmatprep.subr.bf16.mxu1 %v2444_v32  ;;  %v494_v28 = vsel %vm432_vm0, %v2387_v19, %v385_v4 }
  0x9a   : > { %1071 = vmatmul.mubr.bf16.gmra.mrb[8].mxu1 %v2359_v14  ;;  %1411 = vmatpush1.bf16.msra.mxu0 %v2247_v11  ;;  %v383_v14 = vpop.permute.xlu1 %382 }
  0x9b   : > { %1080 = vmatprep.mubr.bf16.mxu1 %v490_v12  ;;  %1877 = vmatpush1.bf16.msra.mxu1 %v2451_v33  ;;  %v436_v32 = vsel %vm432_vm0, %v381_v50, %v383_v14  ;;  %v389_v33 = vpop.permute.xlu0 %388  ;;  %v2252_v50 = vld [vmem:[%s2334_s9 + $0x114] ss:$8 sps:$4 sm:$0xff]   ;;  %s1726_s9 = sshll.u32 %s1719_s13, 5 }
  0x9c   : > { %1862 = vmatprep.subr.bf16.mxu1 %v2468_v37  ;;  %v498_v37 = vsel %vm432_vm0, %v2397_v21, %v389_v33  ;;  %p173_p4 = scmp.lt.s32.totalorder %s1726_s9, 63 }
  0x9d   : > { %1264 = vmatmul.mubr.bf16.gmra.mrb[8].mxu0 %v435_v27 }
  0x9e   : > { %1273 = vmatprep.mubr.bf16.mxu0 %v2392_v20  ;;  %s3216_s9 = smov (!%p173_p4, %s1726_s9), 63 }
  0x9f   : > { %1878 = vmatpush1.bf16.msra.mxu1 %v2474_v38  ;;  %v387_v38 = vpop.permute.xlu1 %386  ;;  %s1856_s13 = sshll.u32 %s3216_s9, 4 }
  0xa0   : > { %1863 = vmatprep.subr.bf16.mxu1 %v2494_v43  ;;  %v393_v43 = vpop.permute.xlu0 %392  ;;  %s2992_s27 = scalar_lea.vmem %s3182_s3, %s1856_s13 }
  0xa2   : > { %1081 = vmatmul.mubr.bf16.gmra.mrb[12].mxu1 %v2372_v16  ;;  %v437_v16 = vsel %vm432_vm0, %v385_v4, %v387_v38 }
  0xa3   : > { %1090 = vmatprep.mubr.bf16.mxu1 %v494_v28  ;;  %1879 = vmatpush1.bf16.msra.mxu1 %v2505_v45  ;;  %v502_v45 = vsel %vm432_vm0, %v2408_v24, %v393_v43 }
  0xa4   : > { %1864 = vmatprep.subr.bf16.mxu1 %v2519_v48  ;;  %v391_v48 = vpop.permute.xlu1 %390 }
  0xa5   : > { %1274 = vmatmul.mubr.bf16.gmra.mrb[12].mxu0 %v436_v32 }
  0xa6   : > { %1283 = vmatprep.mubr.bf16.mxu0 %v2405_v23 }
  0xa7   : > { %1880 = vmatpush1.bf16.msra.mxu1 %v2533_v51  ;;  %v397_v51 = vpop.permute.xlu0 %396 }
  0xa8   : > { %1865 = vmatprep.subr.bf16.mxu1 %v2544_v53  ;;  %v506_v53 = vsel %vm432_vm0, %v2434_v30, %v397_v51 }
  0xaa   : > { %1091 = vmatmul.mubr.bf16.gmra.mrb[16].mxu1 %v2382_v18  ;;  %v438_v18 = vsel %vm432_vm0, %v389_v33, %v391_v48 }
  0xab   : > { %1100 = vmatprep.mubr.bf16.mxu1 %v498_v37  ;;  %1881 = vmatpush1.bf16.msra.mxu1 %v2564_v58  ;;  %v395_v58 = vpop.permute.xlu1 %394 }
  0xac   : > { %1866 = vmatprep.subr.bf16.mxu1 %v2572_v59  ;;  %v401_v59 = vpop.permute.xlu0 %400 }
  0xad   : > { %1284 = vmatmul.mubr.bf16.gmra.mrb[16].mxu0 %v437_v16 }
  0xae   : > { %1293 = vmatprep.mubr.bf16.mxu0 %v2416_v26 }
  0xaf   : > { %1882 = vmatpush1.bf16.msra.mxu1 %v2592_v0  ;;  %v510_v0 = vsel %vm432_vm0, %v2482_v40, %v401_v59 }
  0xb0   : > { %1867 = vmatprep.subr.bf16.mxu1 %v2600_v1  ;;  %v399_v1 = vpop.permute.xlu1 %398 }
  0xb2   : > { %1101 = vmatmul.mubr.bf16.gmra.mrb[20].mxu1 %v2392_v20  ;;  %v439_v20 = vsel %vm432_vm0, %v393_v43, %v395_v58 }
  0xb3   : > { %1110 = vmatprep.mubr.bf16.mxu1 %v502_v45  ;;  %1883 = vmatpush1.bf16.msra.mxu1 %v2617_v9  ;;  %v2262_v9 = vmov 0  }
  0xb4   : > { %1868 = vmatprep.subr.bf16.mxu1 %v2628_v25  ;;  %v405_v25 = vpop.permute.xlu1 %404 }
  0xb5   : > { %1294 = vmatmul.mubr.bf16.gmra.mrb[20].mxu0 %v438_v18 }
  0xb6   : > { %1303 = vmatprep.mubr.bf16.mxu0 %v2454_v34 }
  0xb7   : > { %1884 = vmatpush1.bf16.msra.mxu1 %v2645_v36  ;;  %v514_v36 = vsel %vm432_vm0, %v2608_v5, %v405_v25 }
  0xb8   : > { %1869 = vmatprep.subr.bf16.mxu1 %v2656_v42 }
  0xba   : > { %1111 = vmatmul.mubr.bf16.gmra.mrb[24].mxu1 %v2405_v23  ;;  %v440_v23 = vsel %vm432_vm0, %v397_v51, %v399_v1 }
  0xbb   : > { %1120 = vmatprep.mubr.bf16.mxu1 %v506_v53  ;;  %1885 = vmatpush1.bf16.msra.mxu1 %v2673_v54  ;;  %v3205_v54 = vld [vmem:[#allocation2_spill] sm:$0xff] }
  0xbc   : > { %1870 = vmatprep.subr.bf16.mxu1 %v2684_v60  ;;  %v3206_v60 = vld [vmem:[#allocation7_spill] sm:$0xff] }
  0xbd   : > { %1304 = vmatmul.mubr.bf16.gmra.mrb[24].mxu0 %v439_v20 }
  0xbe   : > { %1313 = vmatprep.mubr.bf16.mxu0 %v2479_v39 }
  0xbf   : > { %1886 = vmatpush1.bf16.msra.mxu1 %v2701_v31 }
  0xc0   : > { %1871 = vmatprep.subr.bf16.mxu1 %v2706_v35  ;;  %v3207_v35 = vld [vmem:[#allocation3_spill] sm:$0xff] }
  0xc2   : > { %1121 = vmatmul.mubr.bf16.gmra.mrb[28].mxu1 %v2416_v26  ;;  %v409_v26 = vpop.permute.xlu0 %408 }
  0xc3   : > { %1130 = vmatprep.mubr.bf16.mxu1 %v510_v0  ;;  %1887 = vmatpush1.bf16.msra.mxu1 %v2726_v61  ;;  %v518_v61 = vsel %vm432_vm0, %v2622_v22, %v409_v26 }
  0xc4   : > { %1872 = vmatprep.subr.bf16.mxu1 %v2732_v63  ;;  %v3208_v63 = vld [vmem:[#allocation8_spill] sm:$0xff] }
  0xc5   : > { %1314 = vmatmul.mubr.bf16.gmra.mrb[28].mxu0 %v440_v23 }
  0xc6   : > { %1436 = vmatprep.mubr.bf16.mxu0 %v2262_v9 }
  0xc7   : > { %1888 = vmatpush1.bf16.msra.mxu1 %v2743_v57  ;;  %v413_v57 = vpop.permute.xlu1 %412 }
  0xca   : > { %1131 = vmatmul.mubr.bf16.gmra.mrb[32].mxu1 %v2454_v34  ;;  %v522_v34 = vsel %vm432_vm0, %v2631_v29, %v413_v57 }
  0xcb   : > { %1140 = vmatprep.mubr.bf16.mxu1 %v514_v36 }
  0xcd   : > { %1837 = vmatmul.mubr.msk.bf16.vlgmr.msra.gmra.mrb[0].mxu0 %vm432_vm0, %v2365_v15  ;;  %v417_v15 = vpop.permute.xlu0 %416 }
  0xce   : > { %1446 = vmatprep.mubr.bf16.mxu0 %v2262_v9 }
  0xd2   : > { %1141 = vmatmul.mubr.bf16.gmra.mrb[36].mxu1 %v2479_v39  ;;  %v526_v39 = vsel %vm432_vm0, %v2650_v41, %v417_v15 }
  0xd3   : > { %1150 = vmatprep.mubr.bf16.mxu1 %v518_v61 }
  0xd5   : > { %1838 = vmatmul.mubr.msk.bf16.gmra.mrb[4].mxu0 %vm432_vm0, %v2377_v17  ;;  %v421_v17 = vpop.permute.xlu1 %420 }
  0xd6   : > { %1456 = vmatprep.mubr.bf16.mxu0 %v2262_v9  ;;  %v530_v42 = vsel %vm432_vm0, %v2659_v44, %v421_v17 }
  0xda   : > { %1151 = vmatmul.mubr.bf16.gmra.mrb[40].mxu1 %v2513_v47 }
  0xdb   : > { %1160 = vmatprep.mubr.bf16.mxu1 %v522_v34 }
  0xdd   : > { %1839 = vmatmul.mubr.msk.bf16.gmra.mrb[8].mxu0 %vm432_vm0, %v2387_v19  ;;  %v425_v19 = vpop.permute.xlu0 %424 }
  0xde   : > { %1466 = vmatprep.mubr.bf16.mxu0 %v2262_v9  ;;  %v534_v31 = vsel %vm432_vm0, %v3206_v60, %v425_v19 }
  0xe2   : > { %1161 = vmatmul.mubr.bf16.gmra.mrb[44].mxu1 %v2510_v46 }
  0xe3   : > { %1170 = vmatprep.mubr.bf16.mxu1 %v526_v39 }
  0xe5   : > { %1840 = vmatmul.mubr.msk.bf16.gmra.mrb[12].mxu0 %vm432_vm0, %v2397_v21  ;;  %v429_v21 = vpop.permute.xlu1 %428 }
  0xe6   : > { %1476 = vmatprep.mubr.bf16.mxu0 %v2262_v9  ;;  %v538_v2 = vsel %vm432_vm0, %v3208_v63, %v429_v21 }
  0xea   : > { %1171 = vmatmul.mubr.bf16.gmra.mrb[48].mxu1 %v3205_v54 }
  0xeb   : > { %1180 = vmatprep.mubr.bf16.mxu1 %v530_v42 }
  0xed   : > { %1841 = vmatmul.mubr.msk.bf16.gmra.mrb[16].mxu0 %vm432_vm0, %v2408_v24  ;;  %v3210_v24 = vld [vmem:[#allocation5_spill] sm:$0xff] }
  0xee   : > { %1486 = vmatprep.mubr.bf16.mxu0 %v2262_v9 }
  0xf2   : > { %1181 = vmatmul.mubr.bf16.gmra.mrb[52].mxu1 %v3207_v35 }
  0xf3   : > { %1190 = vmatprep.mubr.bf16.mxu1 %v534_v31 }
  0xf5   : > { %1842 = vmatmul.mubr.msk.bf16.gmra.mrb[20].mxu0 %vm432_vm0, %v2434_v30  ;;  %v403_v30 = vpop.permute.xlu0 %402 }
  0xf6   : > { %1496 = vmatprep.mubr.bf16.mxu0 %v2262_v9  ;;  %v441_v62 = vsel %vm432_vm0, %v401_v59, %v403_v30 }
  0xfa   : > { %1191 = vmatmul.mubr.bf16.gmra.mrb[56].mxu1 %v3209_v8 }
  0xfb   : > { %1200 = vmatprep.mubr.bf16.mxu1 %v538_v2 }
  0xfd   : > { %1843 = vmatmul.mubr.msk.bf16.gmra.mrb[24].mxu0 %vm432_vm0, %v2482_v40  ;;  %v407_v40 = vpop.permute.xlu1 %406 }
  0xfe   : > { %1506 = vmatprep.mubr.bf16.mxu0 %v2262_v9  ;;  %v442_v13 = vsel %vm432_vm0, %v405_v25, %v407_v40 }
 0x102   : > { %1201 = vmatmul.mubr.bf16.gmra.mrb[60].mxu1 %v3210_v24 }
 0x103   : > { %1323 = vmatprep.mubr.bf16.mxu1 %v2513_v47  ;;  %v411_v47 = vpop.permute.xlu0 %410 }
 0x105   : > { %1844 = vmatmul.mubr.msk.bf16.gmra.mrb[28].mxu0 %vm432_vm0, %v2608_v5  ;;  %v443_v5 = vsel %vm432_vm0, %v409_v26, %v411_v47  ;;  %v614_v26 = vlaneseq }
 0x106   : > { %1516 = vmatprep.mubr.bf16.mxu0 %v2262_v9 }
 0x107   : > { %v615_v34 = vshrl.u32 %v614_v26, 7 }
 0x10a   : > { %1324 = vmatmul.mubr.bf16.vlgmr.msra.gmra.mrb[32].mxu1 %v441_v62 }
 0x10b   : > { %1333 = vmatprep.mubr.bf16.mxu1 %v2510_v46  ;;  %v415_v46 = vpop.permute.xlu1 %414 }
 0x10d   : > { %1845 = vmatmul.mubr.msk.bf16.gmra.mrb[32].mxu0 %vm432_vm0, %v2622_v22  ;;  %v444_v22 = vsel %vm432_vm0, %v413_v57, %v415_v46 }
 0x10e   : > { %1526 = vmatprep.mubr.bf16.mxu0 %v2262_v9 }
 0x112   : > { %1334 = vmatmul.mubr.bf16.gmra.mrb[36].mxu1 %v442_v13 }
 0x113   : > { %1343 = vmatprep.mubr.bf16.mxu1 %v3205_v54  ;;  %v612_v54 = vld [vmem:[%s3181_s2] sm:$0x3] }
 0x115   : > { %1846 = vmatmul.mubr.msk.bf16.gmra.mrb[36].mxu0 %vm432_vm0, %v2631_v29  ;;  %v419_v29 = vpop.permute.xlu0 %418 }
 0x116   : > { %1536 = vmatprep.mubr.bf16.mxu0 %v2262_v9  ;;  %v445_v3 = vsel %vm432_vm0, %v417_v15, %v419_v29 }
 0x11a   : > { %1344 = vmatmul.mubr.bf16.gmra.mrb[40].mxu1 %v443_v5 }
 0x11b   : > { %1353 = vmatprep.mubr.bf16.mxu1 %v3207_v35 }
 0x11d   : > { %1847 = vmatmul.mubr.msk.bf16.gmra.mrb[40].mxu0 %vm432_vm0, %v2650_v41  ;;  %v423_v41 = vpop.permute.xlu1 %422 }
 0x11e   : > { %1546 = vmatprep.mubr.bf16.mxu0 %v2262_v9  ;;  %v446_v55 = vsel %vm432_vm0, %v421_v17, %v423_v41  ;;  %v616_v17 = vsub.s32 0, %v615_v34 }
 0x120   : > { %v2983_v31 = vrot.slane %v612_v54, %v616_v17 }
 0x121   : > { %v431_v10 = vpop.permute.xlu1 %430 }
 0x122   : > { %1354 = vmatmul.mubr.bf16.gmra.mrb[44].mxu1 %v444_v22  ;;  %v448_v11 = vsel %vm432_vm0, %v429_v21, %v431_v10 }
 0x123   : > { %1363 = vmatprep.mubr.bf16.mxu1 %v3209_v8 }
 0x125   : > { %1848 = vmatmul.mubr.msk.bf16.gmra.mrb[44].mxu0 %vm432_vm0, %v2659_v44  ;;  %v427_v44 = vpop.permute.xlu0 %426 }
 0x126   : > { %1556 = vmatprep.mubr.bf16.mxu0 %v2262_v9  ;;  %v447_v49 = vsel %vm432_vm0, %v425_v19, %v427_v44  ;;  %v620_v19 = vsub.s32 1, %v615_v34 }
 0x128   : > { %v2985_v35 = vrot.slane %v612_v54, %v620_v19 }
 0x12a   : > { %1364 = vmatmul.mubr.bf16.gmra.mrb[48].mxu1 %v445_v3 }
 0x12b   : > { %1373 = vmatprep.mubr.bf16.mxu1 %v3210_v24 }
 0x12d   : > { %1849 = vmatmul.mubr.msk.bf16.gmra.mrb[48].mxu0 %vm432_vm0, %v3206_v60 }
 0x12e   : > { %1566 = vmatprep.mubr.bf16.mxu0 %v2262_v9 }
 0x132   : > { %1374 = vmatmul.mubr.bf16.gmra.mrb[52].mxu1 %v446_v55 }
 0x133   : > { %1383 = vmatprep.mubr.bf16.mxu1 %v3211_v6 }
 0x135   : > { %1850 = vmatmul.mubr.msk.bf16.gmra.mrb[52].mxu0 %vm432_vm0, %v3208_v63 }
 0x136   : > { %1576 = vmatprep.mubr.bf16.mxu0 %v2262_v9 }
 0x13a   : > { %1384 = vmatmul.mubr.bf16.gmra.mrb[56].mxu1 %v447_v49 }
 0x13b   : > { %1393 = vmatprep.mubr.bf16.mxu1 %v2250_v52 }
 0x13d   : > { %1851 = vmatmul.mubr.msk.bf16.gmra.mrb[56].mxu0 %vm432_vm0, %v3212_v7 }
 0x13e   : > { %1586 = vmatprep.mubr.bf16.mxu0 %v2262_v9 }
 0x142   : > { %1394 = vmatmul.mubr.bf16.gmra.mrb[60].mxu1 %v448_v11 }
 0x145   : > { %1852 = vmatmul.mubr.msk.bf16.gmra.mrb[60].mxu0 %vm432_vm0, %v2252_v50 }
 0x15d   : > { %v1052_v12 = vpop.f32.mrb[0].mxu1 }
 0x15e   : > { %v1054_v56 = vpop.f32.mrb[1].mxu1  ;;  %v1053_v21 = vadd.f32 %v1052_v12, %v2983_v31 }
 0x15f   : > { %v1056_v27 = vpop.f32.mrb[2].mxu1  ;;  %v1055_v63 = vadd.f32 %v1054_v56, %v2985_v35 }
 0x160   : > { %v1058_v4 = vpop.f32.mrb[3].mxu1  ;;  %v1057_v8 = vadd.f32 %v1056_v27, %v2983_v31 }
 0x161   : > { %v1059_v62 = vadd.f32 %v1058_v4, %v2985_v35 }
 0x165   : > { %v1062_v28 = vpop.f32.mrb[4].mxu1 }
 0x166   : > { %v1064_v14 = vpop.f32.mrb[5].mxu1  ;;  %v1063_v22 = vadd.f32 %v1062_v28, %v2983_v31 }
 0x167   : > { %v1066_v32 = vpop.f32.mrb[6].mxu1  ;;  %v1065_v29 = vadd.f32 %v1064_v14, %v2985_v35 }
 0x168   : > { %v1068_v33 = vpop.f32.mrb[7].mxu1  ;;  %v1067_v41 = vadd.f32 %v1066_v32, %v2983_v31 }
 0x169   : > { %v1069_v44 = vadd.f32 %v1068_v33, %v2985_v35 }
 0x16d   : > { %v2930_v37 = vpop.f32.mrb[8].mxu1 }
 0x16e   : > { %v2932_v38 = vpop.f32.mrb[9].mxu1  ;;  %v1073_v11 = vadd.f32 %v2930_v37, %v2983_v31 }
 0x16f   : > { %v2934_v16 = vpop.f32.mrb[10].mxu1  ;;  %v1075_v12 = vadd.f32 %v2932_v38, %v2985_v35 }
 0x170   : > { %v2936_v43 = vpop.f32.mrb[11].mxu1  ;;  %v1077_v27 = vadd.f32 %v2934_v16, %v2983_v31 }
 0x171   : > { %v1079_v14 = vadd.f32 %v2936_v43, %v2985_v35 }
 0x175   : > { %v2938_v45 = vpop.f32.mrb[12].mxu1 }
 0x176   : > { %v2940_v48 = vpop.f32.mrb[13].mxu1  ;;  %v1083_v38 = vadd.f32 %v2938_v45, %v2983_v31 }
 0x177   : > { %v2942_v18 = vpop.f32.mrb[14].mxu1  ;;  %v1085_v16 = vadd.f32 %v2940_v48, %v2985_v35 }
 0x178   : > { %v2944_v51 = vpop.f32.mrb[15].mxu1  ;;  %v1087_v17 = vadd.f32 %v2942_v18, %v2983_v31 }
 0x17d   : > { %v2946_v53 = vpop.f32.mrb[16].mxu1 }
 0x17e   : > { %v2948_v58 = vpop.f32.mrb[17].mxu1  ;;  %v1093_v48 = vadd.f32 %v2946_v53, %v2983_v31 }
 0x17f   : > { %v2950_v20 = vpop.f32.mrb[18].mxu1  ;;  %v1095_v18 = vadd.f32 %v2948_v58, %v2985_v35 }
 0x180   : > { %v2952_v59 = vpop.f32.mrb[19].mxu1 }
 0x185   : > { %v2954_v0 = vpop.f32.mrb[20].mxu1 }
 0x186   : > { %v2956_v1 = vpop.f32.mrb[21].mxu1  ;;  %v1103_v58 = vadd.f32 %v2954_v0, %v2983_v31 }
 0x187   : > { %v2958_v23 = vpop.f32.mrb[22].mxu1 }
 0x188   : > { %v2960_v9 = vpop.f32.mrb[23].mxu1 }
 0x18d   : > { %v2962_v25 = vpop.f32.mrb[24].mxu1 }
 0x18e   : > { %v2964_v36 = vpop.f32.mrb[25].mxu1 }
 0x18f   : > { %v2966_v61 = vpop.f32.mrb[26].mxu1 }
 0x190   : > { %v2968_v57 = vpop.f32.mrb[27].mxu1 }
 0x195   : > { %v2972_v15 = vpop.f32.mrb[28].mxu1 }
 0x196   : > { %v2974_v39 = vpop.f32.mrb[29].mxu1 }
 0x197   : > { %v2976_v42 = vpop.f32.mrb[30].mxu1 }
 0x198   : > { %v2981_v60 = vpop.f32.mrb[31].mxu1 }
 0x1a0   : > { %v1438_v2 = vpop.f32.mrb[0].mxu0 }
 0x1a1   : > { %v1890_v24 = vadd.f32 %v1438_v2, %v1053_v21  ;;  %v1440_v30 = vpop.f32.mrb[1].mxu0  ;;  %v1089_v21 = vadd.f32 %v2944_v51, %v2985_v35 }
 0x1a2   : > { %v1892_v40 = vadd.f32 %v1440_v30, %v1055_v63  ;;  %v1442_v13 = vpop.f32.mrb[2].mxu0  ;;  %v1097_v30 = vadd.f32 %v2950_v20, %v2983_v31  ;;  %v1105_v20 = vadd.f32 %v2956_v1, %v2985_v35  ;;  %v1113_v1 = vadd.f32 %v2962_v25, %v2983_v31 }
 0x1a3   : > { %1597 = vst [vmem:[%s2992_s27] sm:$0xff] %v1890_v24  ;;  %v1894_v47 = vadd.f32 %v1442_v13, %v1057_v8  ;;  %v1444_v5 = vpop.f32.mrb[3].mxu0  ;;  %v1099_v13 = vadd.f32 %v2952_v59, %v2985_v35 }
 0x1a4   : > { %1598 = vst.msk [vmem:[%s2992_s27 + $0x8] sm:$0xff] %vm432_vm0, %v1892_v40  ;;  %v1896_v46 = vadd.f32 %v1444_v5, %v1059_v62 }
 0x1a5   : > { %1599 = vst [vmem:[%s2992_s27 + $0x10] sm:$0xff] %v1894_v47 }
 0x1a6   : > { %1600 = vst.msk [vmem:[%s2992_s27 + $0x18] sm:$0xff] %vm432_vm0, %v1896_v46 }
 0x1a8   : > { %v1448_v3 = vpop.f32.mrb[4].mxu0 }
 0x1a9   : > { %v1898_v55 = vadd.f32 %v1448_v3, %v1063_v22  ;;  %v1450_v6 = vpop.f32.mrb[5].mxu0 }
 0x1aa   : > { %v1900_v52 = vadd.f32 %v1450_v6, %v1065_v29  ;;  %v1452_v49 = vpop.f32.mrb[6].mxu0  ;;  %v1107_v29 = vadd.f32 %v2958_v23, %v2983_v31  ;;  %v1115_v23 = vadd.f32 %v2964_v36, %v2985_v35  ;;  %v1123_v36 = vadd.f32 %v2972_v15, %v2983_v31 }
 0x1ab   : > { %1601 = vst [vmem:[%s2992_s27 + $0x20] sm:$0xff] %v1898_v55  ;;  %v1902_v7 = vadd.f32 %v1452_v49, %v1067_v41  ;;  %v1454_v10 = vpop.f32.mrb[7].mxu0  ;;  %v1109_v55 = vadd.f32 %v2960_v9, %v2985_v35 }
 0x1ac   : > { %1602 = vst.msk [vmem:[%s2992_s27 + $0x28] sm:$0xff] %vm432_vm0, %v1900_v52  ;;  %v1904_v50 = vadd.f32 %v1454_v10, %v1069_v44 }
 0x1ad   : > { %1603 = vst [vmem:[%s2992_s27 + $0x30] sm:$0xff] %v1902_v7  ;;  %v1117_v7 = vadd.f32 %v2966_v61, %v2983_v31  ;;  %v1125_v61 = vadd.f32 %v2974_v39, %v2985_v35 }
 0x1ae   : > { %1604 = vst.msk [vmem:[%s2992_s27 + $0x38] sm:$0xff] %vm432_vm0, %v1904_v50 }
 0x1b0   : > { %v1458_v56 = vpop.f32.mrb[8].mxu0 }
 0x1b1   : > { %v1906_v4 = vadd.f32 %v1458_v56, %v1073_v11  ;;  %v1460_v28 = vpop.f32.mrb[9].mxu0  ;;  %v1119_v11 = vadd.f32 %v2968_v57, %v2985_v35 }
 0x1b2   : > { %v1908_v32 = vadd.f32 %v1460_v28, %v1075_v12  ;;  %v1462_v33 = vpop.f32.mrb[10].mxu0  ;;  %v1127_v28 = vadd.f32 %v2976_v42, %v2983_v31 }
 0x1b3   : > { %1605 = vst [vmem:[%s2992_s27 + $0x40] sm:$0xff] %v1906_v4  ;;  %v1910_v26 = vadd.f32 %v1462_v33, %v1077_v27  ;;  %v1464_v34 = vpop.f32.mrb[11].mxu0  ;;  %v1129_v33 = vadd.f32 %v2981_v60, %v2985_v35 }
 0x1b4   : > { %1606 = vst.msk [vmem:[%s2992_s27 + $0x48] sm:$0xff] %vm432_vm0, %v1908_v32  ;;  %v1912_v37 = vadd.f32 %v1464_v34, %v1079_v14 }
 0x1b5   : > { %1607 = vst [vmem:[%s2992_s27 + $0x50] sm:$0xff] %v1910_v26 }
 0x1b6   : > { %1608 = vst.msk [vmem:[%s2992_s27 + $0x58] sm:$0xff] %vm432_vm0, %v1912_v37 }
 0x1b8   : > { %v1468_v43 = vpop.f32.mrb[12].mxu0 }
 0x1b9   : > { %v1914_v54 = vadd.f32 %v1468_v43, %v1083_v38  ;;  %v1470_v19 = vpop.f32.mrb[13].mxu0 }
 0x1ba   : > { %v1916_v63 = vadd.f32 %v1470_v19, %v1085_v16  ;;  %v1472_v2 = vpop.f32.mrb[14].mxu0 }
 0x1bb   : > { %1609 = vst [vmem:[%s2992_s27 + $0x60] sm:$0xff] %v1914_v54  ;;  %v1918_v8 = vadd.f32 %v1472_v2, %v1087_v17  ;;  %v1474_v24 = vpop.f32.mrb[15].mxu0 }
 0x1bc   : > { %1610 = vst.msk [vmem:[%s2992_s27 + $0x68] sm:$0xff] %vm432_vm0, %v1916_v63  ;;  %v1920_v45 = vadd.f32 %v1474_v24, %v1089_v21 }
 0x1bd   : > { %1611 = vst [vmem:[%s2992_s27 + $0x70] sm:$0xff] %v1918_v8 }
 0x1be   : > { %1612 = vst.msk [vmem:[%s2992_s27 + $0x78] sm:$0xff] %vm432_vm0, %v1920_v45 }
 0x1c0   : > { %v1478_v51 = vpop.f32.mrb[16].mxu0 }
 0x1c1   : > { %v1922_v62 = vadd.f32 %v1478_v51, %v1093_v48  ;;  %v1480_v40 = vpop.f32.mrb[17].mxu0 }
 0x1c2   : > { %v1924_v47 = vadd.f32 %v1480_v40, %v1095_v18  ;;  %v1482_v5 = vpop.f32.mrb[18].mxu0 }
 0x1c3   : > { %1613 = vst [vmem:[%s2992_s27 + $0x80] sm:$0xff] %v1922_v62  ;;  %v1926_v46 = vadd.f32 %v1482_v5, %v1097_v30  ;;  %v1484_v22 = vpop.f32.mrb[19].mxu0 }
 0x1c4   : > { %1614 = vst.msk [vmem:[%s2992_s27 + $0x88] sm:$0xff] %vm432_vm0, %v1924_v47  ;;  %v1928_v53 = vadd.f32 %v1484_v22, %v1099_v13 }
 0x1c5   : > { %1615 = vst [vmem:[%s2992_s27 + $0x90] sm:$0xff] %v1926_v46 }
 0x1c6   : > { %1616 = vst.msk [vmem:[%s2992_s27 + $0x98] sm:$0xff] %vm432_vm0, %v1928_v53 }
 0x1c8   : > { %v1488_v59 = vpop.f32.mrb[20].mxu0 }
 0x1c9   : > { %v1930_v3 = vadd.f32 %v1488_v59, %v1103_v58  ;;  %v1490_v41 = vpop.f32.mrb[21].mxu0 }
 0x1ca   : > { %v1932_v6 = vadd.f32 %v1490_v41, %v1105_v20  ;;  %v1492_v44 = vpop.f32.mrb[22].mxu0 }
 0x1cb   : > { %1617 = vst [vmem:[%s2992_s27 + $0xa0] sm:$0xff] %v1930_v3  ;;  %v1934_v52 = vadd.f32 %v1492_v44, %v1107_v29  ;;  %v1494_v49 = vpop.f32.mrb[23].mxu0 }
 0x1cc   : > { %1618 = vst.msk [vmem:[%s2992_s27 + $0xa8] sm:$0xff] %vm432_vm0, %v1932_v6  ;;  %v1936_v0 = vadd.f32 %v1494_v49, %v1109_v55 }
 0x1cd   : > { %1619 = vst [vmem:[%s2992_s27 + $0xb0] sm:$0xff] %v1934_v52 }
 0x1ce   : > { %1620 = vst.msk [vmem:[%s2992_s27 + $0xb8] sm:$0xff] %vm432_vm0, %v1936_v0 }
 0x1d0   : > { %v1498_v9 = vpop.f32.mrb[24].mxu0 }
 0x1d1   : > { %v1938_v10 = vadd.f32 %v1498_v9, %v1113_v1  ;;  %v1500_v50 = vpop.f32.mrb[25].mxu0 }
 0x1d2   : > { %v1940_v12 = vadd.f32 %v1500_v50, %v1115_v23  ;;  %v1502_v56 = vpop.f32.mrb[26].mxu0 }
 0x1d3   : > { %1621 = vst [vmem:[%s2992_s27 + $0xc0] sm:$0xff] %v1938_v10  ;;  %v1942_v27 = vadd.f32 %v1502_v56, %v1117_v7  ;;  %v1504_v4 = vpop.f32.mrb[27].mxu0 }
 0x1d4   : > { %1622 = vst.msk [vmem:[%s2992_s27 + $0xc8] sm:$0xff] %vm432_vm0, %v1940_v12  ;;  %v1944_v25 = vadd.f32 %v1504_v4, %v1119_v11 }
 0x1d5   : > { %1623 = vst [vmem:[%s2992_s27 + $0xd0] sm:$0xff] %v1942_v27 }
 0x1d6   : > { %1624 = vst.msk [vmem:[%s2992_s27 + $0xd8] sm:$0xff] %vm432_vm0, %v1944_v25 }
 0x1d8   : > { %v1508_v57 = vpop.f32.mrb[28].mxu0 }
 0x1d9   : > { %v1946_v14 = vadd.f32 %v1508_v57, %v1123_v36  ;;  %v1510_v32 = vpop.f32.mrb[29].mxu0 }
 0x1da   : > { %v1948_v26 = vadd.f32 %v1510_v32, %v1125_v61  ;;  %v1512_v34 = vpop.f32.mrb[30].mxu0 }
 0x1db   : > { %1625 = vst [vmem:[%s2992_s27 + $0xe0] sm:$0xff] %v1946_v14  ;;  %v1950_v37 = vadd.f32 %v1512_v34, %v1127_v28  ;;  %v1514_v38 = vpop.f32.mrb[31].mxu0 }
 0x1dc   : > { %1626 = vst.msk [vmem:[%s2992_s27 + $0xe8] sm:$0xff] %vm432_vm0, %v1948_v26  ;;  %v1952_v15 = vadd.f32 %v1514_v38, %v1129_v33 }
 0x1dd   : > { %1627 = vst [vmem:[%s2992_s27 + $0xf0] sm:$0xff] %v1950_v37  ;;  %v1325_v39 = vpop.f32.mrb[32].mxu1 }
 0x1de   : > { %1628 = vst.msk [vmem:[%s2992_s27 + $0xf8] sm:$0xff] %vm432_vm0, %v1952_v15  ;;  %v1953_v42 = vadd.f32 %v1325_v39, %v2983_v31  ;;  %v1327_v16 = vpop.f32.mrb[33].mxu1 }
 0x1df   : > { %v1955_v60 = vadd.f32 %v1327_v16, %v2985_v35  ;;  %v1329_v43 = vpop.f32.mrb[34].mxu1 }
 0x1e0   : > { %v1957_v17 = vadd.f32 %v1329_v43, %v2983_v31  ;;  %v1331_v54 = vpop.f32.mrb[35].mxu1  ;;  %v1518_v19 = vpop.f32.mrb[32].mxu0 }
 0x1e1   : > { %v1959_v21 = vadd.f32 %v1331_v54, %v2985_v35  ;;  %v1954_v63 = vadd.f32 %v1953_v42, %v1518_v19  ;;  %v1520_v2 = vpop.f32.mrb[33].mxu0 }
 0x1e2   : > { %v1956_v8 = vadd.f32 %v1955_v60, %v1520_v2  ;;  %v1522_v24 = vpop.f32.mrb[34].mxu0 }
 0x1e3   : > { %1629 = vst [vmem:[%s2992_s27 + $0x100] sm:$0xff] %v1954_v63  ;;  %v1958_v45 = vadd.f32 %v1957_v17, %v1522_v24  ;;  %v1524_v48 = vpop.f32.mrb[35].mxu0 }
 0x1e4   : > { %1630 = vst.msk [vmem:[%s2992_s27 + $0x108] sm:$0xff] %vm432_vm0, %v1956_v8  ;;  %v1960_v18 = vadd.f32 %v1959_v21, %v1524_v48 }
 0x1e5   : > { %1631 = vst [vmem:[%s2992_s27 + $0x110] sm:$0xff] %v1958_v45  ;;  %v1335_v51 = vpop.f32.mrb[36].mxu1 }
 0x1e6   : > { %1632 = vst.msk [vmem:[%s2992_s27 + $0x118] sm:$0xff] %vm432_vm0, %v1960_v18  ;;  %v1961_v30 = vadd.f32 %v1335_v51, %v2983_v31  ;;  %v1337_v62 = vpop.f32.mrb[37].mxu1 }
 0x1e7   : > { %v1963_v40 = vadd.f32 %v1337_v62, %v2985_v35  ;;  %v1339_v13 = vpop.f32.mrb[38].mxu1 }
 0x1e8   : > { %v1965_v47 = vadd.f32 %v1339_v13, %v2983_v31  ;;  %v1341_v5 = vpop.f32.mrb[39].mxu1  ;;  %v1528_v46 = vpop.f32.mrb[36].mxu0 }
 0x1e9   : > { %v1967_v22 = vadd.f32 %v1341_v5, %v2985_v35  ;;  %v1962_v53 = vadd.f32 %v1961_v30, %v1528_v46  ;;  %v1530_v58 = vpop.f32.mrb[37].mxu0 }
 0x1ea   : > { %v1964_v20 = vadd.f32 %v1963_v40, %v1530_v58  ;;  %v1532_v59 = vpop.f32.mrb[38].mxu0 }
 0x1eb   : > { %1633 = vst [vmem:[%s2992_s27 + $0x120] sm:$0xff] %v1962_v53  ;;  %v1966_v29 = vadd.f32 %v1965_v47, %v1532_v59  ;;  %v1534_v3 = vpop.f32.mrb[39].mxu0 }
 0x1ec   : > { %1634 = vst.msk [vmem:[%s2992_s27 + $0x128] sm:$0xff] %vm432_vm0, %v1964_v20  ;;  %v1968_v41 = vadd.f32 %v1967_v22, %v1534_v3 }
 0x1ed   : > { %1635 = vst [vmem:[%s2992_s27 + $0x130] sm:$0xff] %v1966_v29  ;;  %v1345_v55 = vpop.f32.mrb[40].mxu1 }
 0x1ee   : > { %1636 = vst.msk [vmem:[%s2992_s27 + $0x138] sm:$0xff] %vm432_vm0, %v1968_v41  ;;  %v1969_v6 = vadd.f32 %v1345_v55, %v2983_v31  ;;  %v1347_v44 = vpop.f32.mrb[41].mxu1 }
 0x1ef   : > { %v1971_v52 = vadd.f32 %v1347_v44, %v2985_v35  ;;  %v1349_v49 = vpop.f32.mrb[42].mxu1 }
 0x1f0   : > { %v1973_v0 = vadd.f32 %v1349_v49, %v2983_v31  ;;  %v1351_v1 = vpop.f32.mrb[43].mxu1  ;;  %v1538_v23 = vpop.f32.mrb[40].mxu0 }
 0x1f1   : > { %v1975_v9 = vadd.f32 %v1351_v1, %v2985_v35  ;;  %v1970_v7 = vadd.f32 %v1969_v6, %v1538_v23  ;;  %v1540_v10 = vpop.f32.mrb[41].mxu0 }
 0x1f2   : > { %v1972_v50 = vadd.f32 %v1971_v52, %v1540_v10  ;;  %v1542_v11 = vpop.f32.mrb[42].mxu0 }
 0x1f3   : > { %1637 = vst [vmem:[%s2992_s27 + $0x140] sm:$0xff] %v1970_v7  ;;  %v1974_v12 = vadd.f32 %v1973_v0, %v1542_v11  ;;  %v1544_v56 = vpop.f32.mrb[43].mxu0 }
 0x1f4   : > { %1638 = vst.msk [vmem:[%s2992_s27 + $0x148] sm:$0xff] %vm432_vm0, %v1972_v50  ;;  %v1976_v27 = vadd.f32 %v1975_v9, %v1544_v56 }
 0x1f5   : > { %1639 = vst [vmem:[%s2992_s27 + $0x150] sm:$0xff] %v1974_v12  ;;  %v1355_v4 = vpop.f32.mrb[44].mxu1 }
 0x1f6   : > { %1640 = vst.msk [vmem:[%s2992_s27 + $0x158] sm:$0xff] %vm432_vm0, %v1976_v27  ;;  %v1977_v25 = vadd.f32 %v1355_v4, %v2983_v31  ;;  %v1357_v36 = vpop.f32.mrb[45].mxu1 }
 0x1f7   : > { %v1979_v61 = vadd.f32 %v1357_v36, %v2985_v35  ;;  %v1359_v57 = vpop.f32.mrb[46].mxu1 }
 0x1f8   : > { %v1981_v28 = vadd.f32 %v1359_v57, %v2983_v31  ;;  %v1361_v14 = vpop.f32.mrb[47].mxu1  ;;  %v1548_v32 = vpop.f32.mrb[44].mxu0 }
 0x1f9   : > { %v1983_v33 = vadd.f32 %v1361_v14, %v2985_v35  ;;  %v1978_v26 = vadd.f32 %v1977_v25, %v1548_v32  ;;  %v1550_v34 = vpop.f32.mrb[45].mxu0 }
 0x1fa   : > { %v1980_v37 = vadd.f32 %v1979_v61, %v1550_v34  ;;  %v1552_v38 = vpop.f32.mrb[46].mxu0 }
 0x1fb   : > { %1641 = vst [vmem:[%s2992_s27 + $0x160] sm:$0xff] %v1978_v26  ;;  %v1982_v15 = vadd.f32 %v1981_v28, %v1552_v38  ;;  %v1554_v39 = vpop.f32.mrb[47].mxu0 }
 0x1fc   : > { %1642 = vst.msk [vmem:[%s2992_s27 + $0x168] sm:$0xff] %vm432_vm0, %v1980_v37  ;;  %v1984_v42 = vadd.f32 %v1983_v33, %v1554_v39 }
 0x1fd   : > { %1643 = vst [vmem:[%s2992_s27 + $0x170] sm:$0xff] %v1982_v15  ;;  %v1365_v16 = vpop.f32.mrb[48].mxu1 }
 0x1fe   : > { %1644 = vst.msk [vmem:[%s2992_s27 + $0x178] sm:$0xff] %vm432_vm0, %v1984_v42  ;;  %v1985_v60 = vadd.f32 %v1365_v16, %v2983_v31  ;;  %v1367_v43 = vpop.f32.mrb[49].mxu1 }
 0x1ff   : > { %v1987_v17 = vadd.f32 %v1367_v43, %v2985_v35  ;;  %v1369_v54 = vpop.f32.mrb[50].mxu1 }
 0x200   : > { %v1989_v19 = vadd.f32 %v1369_v54, %v2983_v31  ;;  %v1371_v21 = vpop.f32.mrb[51].mxu1  ;;  %v1558_v63 = vpop.f32.mrb[48].mxu0 }
 0x201   : > { %v1991_v2 = vadd.f32 %v1371_v21, %v2985_v35  ;;  %v1986_v8 = vadd.f32 %v1985_v60, %v1558_v63  ;;  %v1560_v24 = vpop.f32.mrb[49].mxu0 }
 0x202   : > { %v1988_v45 = vadd.f32 %v1987_v17, %v1560_v24  ;;  %v1562_v48 = vpop.f32.mrb[50].mxu0 }
 0x203   : > { %1645 = vst [vmem:[%s2992_s27 + $0x180] sm:$0xff] %v1986_v8  ;;  %v1990_v18 = vadd.f32 %v1989_v19, %v1562_v48  ;;  %v1564_v51 = vpop.f32.mrb[51].mxu0 }
 0x204   : > { %1646 = vst.msk [vmem:[%s2992_s27 + $0x188] sm:$0xff] %vm432_vm0, %v1988_v45  ;;  %v1992_v30 = vadd.f32 %v1991_v2, %v1564_v51 }
 0x205   : > { %1647 = vst [vmem:[%s2992_s27 + $0x190] sm:$0xff] %v1990_v18  ;;  %v1375_v62 = vpop.f32.mrb[52].mxu1 }
 0x206   : > { %1648 = vst.msk [vmem:[%s2992_s27 + $0x198] sm:$0xff] %vm432_vm0, %v1992_v30  ;;  %v1993_v40 = vadd.f32 %v1375_v62, %v2983_v31  ;;  %v1377_v13 = vpop.f32.mrb[53].mxu1 }
 0x207   : > { %v1995_v47 = vadd.f32 %v1377_v13, %v2985_v35  ;;  %v1379_v5 = vpop.f32.mrb[54].mxu1 }
 0x208   : > { %v1997_v46 = vadd.f32 %v1379_v5, %v2983_v31  ;;  %v1381_v22 = vpop.f32.mrb[55].mxu1  ;;  %v1568_v53 = vpop.f32.mrb[52].mxu0 }
 0x209   : > { %v1999_v58 = vadd.f32 %v1381_v22, %v2985_v35  ;;  %v1994_v20 = vadd.f32 %v1993_v40, %v1568_v53  ;;  %v1570_v59 = vpop.f32.mrb[53].mxu0 }
 0x20a   : > { %v1996_v29 = vadd.f32 %v1995_v47, %v1570_v59  ;;  %v1572_v3 = vpop.f32.mrb[54].mxu0 }
 0x20b   : > { %1649 = vst [vmem:[%s2992_s27 + $0x1a0] sm:$0xff] %v1994_v20  ;;  %v1998_v41 = vadd.f32 %v1997_v46, %v1572_v3  ;;  %v1574_v55 = vpop.f32.mrb[55].mxu0 }
 0x20c   : > { %1650 = vst.msk [vmem:[%s2992_s27 + $0x1a8] sm:$0xff] %vm432_vm0, %v1996_v29  ;;  %v2000_v6 = vadd.f32 %v1999_v58, %v1574_v55 }
 0x20d   : > { %1651 = vst [vmem:[%s2992_s27 + $0x1b0] sm:$0xff] %v1998_v41  ;;  %v1385_v44 = vpop.f32.mrb[56].mxu1 }
 0x20e   : > { %1652 = vst.msk [vmem:[%s2992_s27 + $0x1b8] sm:$0xff] %vm432_vm0, %v2000_v6  ;;  %v2001_v52 = vadd.f32 %v1385_v44, %v2983_v31  ;;  %v1387_v49 = vpop.f32.mrb[57].mxu1 }
 0x20f   : > { %v2003_v0 = vadd.f32 %v1387_v49, %v2985_v35  ;;  %v1389_v1 = vpop.f32.mrb[58].mxu1 }
 0x210   : > { %v2005_v23 = vadd.f32 %v1389_v1, %v2983_v31  ;;  %v1391_v9 = vpop.f32.mrb[59].mxu1  ;;  %v1578_v7 = vpop.f32.mrb[56].mxu0 }
 0x211   : > { %v2007_v10 = vadd.f32 %v1391_v9, %v2985_v35  ;;  %v2002_v50 = vadd.f32 %v2001_v52, %v1578_v7  ;;  %v1580_v11 = vpop.f32.mrb[57].mxu0 }
 0x212   : > { %v2004_v12 = vadd.f32 %v2003_v0, %v1580_v11  ;;  %v1582_v56 = vpop.f32.mrb[58].mxu0 }
 0x213   : > { %1653 = vst [vmem:[%s2992_s27 + $0x1c0] sm:$0xff] %v2002_v50  ;;  %v2006_v27 = vadd.f32 %v2005_v23, %v1582_v56  ;;  %v1584_v4 = vpop.f32.mrb[59].mxu0 }
 0x214   : > { %1654 = vst.msk [vmem:[%s2992_s27 + $0x1c8] sm:$0xff] %vm432_vm0, %v2004_v12  ;;  %v2008_v25 = vadd.f32 %v2007_v10, %v1584_v4 }
 0x215   : > { %1655 = vst [vmem:[%s2992_s27 + $0x1d0] sm:$0xff] %v2006_v27  ;;  %v1395_v36 = vpop.f32.mrb[60].mxu1 }
 0x216   : > { %1656 = vst.msk [vmem:[%s2992_s27 + $0x1d8] sm:$0xff] %vm432_vm0, %v2008_v25  ;;  %v2009_v61 = vadd.f32 %v1395_v36, %v2983_v31  ;;  %v1397_v57 = vpop.f32.mrb[61].mxu1 }
 0x217   : > { %v2011_v28 = vadd.f32 %v1397_v57, %v2985_v35  ;;  %v1399_v14 = vpop.f32.mrb[62].mxu1 }
 0x218   : > { %v2013_v32 = vadd.f32 %v1399_v14, %v2983_v31  ;;  %v1401_v33 = vpop.f32.mrb[63].mxu1  ;;  %v1588_v26 = vpop.f32.mrb[60].mxu0 }
 0x219   : > { %v2015_v34 = vadd.f32 %v1401_v33, %v2985_v35  ;;  %v2010_v37 = vadd.f32 %v2009_v61, %v1588_v26  ;;  %v1590_v38 = vpop.f32.mrb[61].mxu0 }
 0x21a   : > { %v2012_v15 = vadd.f32 %v2011_v28, %v1590_v38  ;;  %v1592_v39 = vpop.f32.mrb[62].mxu0 }
 0x21b   : > { %1657 = vst [vmem:[%s2992_s27 + $0x1e0] sm:$0xff] %v2010_v37  ;;  %v2014_v42 = vadd.f32 %v2013_v32, %v1592_v39  ;;  %v1594_v16 = vpop.f32.mrb[63].mxu0 }
 0x21c   : > { %1658 = vst.msk [vmem:[%s2992_s27 + $0x1e8] sm:$0xff] %vm432_vm0, %v2012_v15  ;;  %v2016_v60 = vadd.f32 %v2015_v34, %v1594_v16 }
 0x21d   : > { %1659 = vst [vmem:[%s2992_s27 + $0x1f0] sm:$0xff] %v2014_v42 }
 0x21e   : > { %1660 = vst.msk [vmem:[%s2992_s27 + $0x1f8] sm:$0xff] %vm432_vm0, %v2016_v60 }
 0x21f PF: > { %s13_s12 = sadd.s32 1, %s2259_s12  }
 0x220   : > { %p10_p5 = scmp.ge.s32.totalorder %s13_s12, 4  }
 0x222   :  { %12 = sbr.rel (!%p10_p5) target bundleno = 1 (0x1), region = 62 }

// kernel: myfcn_forward.20
= control target key start
LH: loop header
LB: loop body
LE: loop exit
PB: predicated region body
PF: predicated region fallthrough
CT: control target
= control target key end

     0   :  { %s3107_s15 = smov 0   ;;  %s4140_s0 = inlined_call_operand.vmem [shape: bf16[576,192], index: 0, kind: input, shape index: {}]   ;;  %s4141_s1 = inlined_call_operand.vmem [shape: bf16[576,128], index: 1, kind: input, shape index: {}]   ;;  %s4142_s2 = inlined_call_operand.vmem [shape: f32[512,192], index: 2, kind: input, shape index: {}]   ;;  %s4143_s3 = inlined_call_operand.vmem [shape: bf16[512,64], index: 3, kind: output, shape index: {0}]   ;;  %s4144_s4 = inlined_call_operand.vmem [shape: f32[512,64], index: 4, kind: output, shape index: {1}]  }
   0x1 LB: > { %s2280_s16 = sadd.s32 4294967295, %s3079_s15   ;;  %p2284_p0 = scmp.ge.s32.totalorder %s3079_s15, 1  ;;  %s3079_s15 = sphi %s3107_s15, %s15_s15  }
   0x2   : > { %p179_p1 = scmp.lt.s32.totalorder %s3079_s15, 3 }
   0x4   : > { %p180_p2 = pnand %p2284_p0, %p179_p1 }
   0x6   : > { %183 = sbr.rel (%p180_p2) target bundleno = 673 (0x2a1), region = 32 }
   0xd   : > { %s217_s17 = smul.u32 36, %s2280_s16  ;;  %v2903_v0 = vld [vmem:[%s4141_s1 + $0x40] sm:$0xff]   ;;  %v2905_v2 = vld [vmem:[%s4141_s1 + $0x48] sm:$0xff]   ;;  %v2907_v4 = vld [vmem:[%s4141_s1 + $0x50] sm:$0xff]   ;;  %s3081_s10 = smov 64   ;;  %vm496_vm0 = vcmask 523264  }
   0xe   : > { %v2904_v1 = vld [vmem:[%s4141_s1] sm:$0xff]   ;;  %2766 = vmatprep.subr.bf16.mxu1 %v2903_v0  ;;  %2482 = vmatprep.subr.bf16.mxu0 %v2903_v0  ;;  %v2906_v3 = vld [vmem:[%s4141_s1 + $0x8] sm:$0xff]   ;;  %v2908_v5 = vld [vmem:[%s4141_s1 + $0x10] sm:$0xff]   ;;  %vm1985_vm1 = vcmask 519168  }
   0xf   : > { %p218_p3 = scmp.lt.s32.totalorder %s217_s17, 71  ;;  %2774 = vmatpush3.bf16.msra.mxu1 %v2904_v1  ;;  %2483 = vmatpush3.bf16.msra.mxu0 %v2904_v1  ;;  %v2909_v16 = vld [vmem:[%s4141_s1 + $0x58] sm:$0xff]   ;;  %v2911_v33 = vld [vmem:[%s4141_s1 + $0x60] sm:$0xff]   ;;  %v2913_v36 = vld [vmem:[%s4141_s1 + $0x68] sm:$0xff]  }
  0x10   : > { %2767 = vmatprep.subr.bf16.mxu1 %v2905_v2  ;;  %2484 = vmatprep.subr.bf16.mxu0 %v2905_v2  ;;  %v2910_v31 = vld [vmem:[%s4141_s1 + $0x18] sm:$0xff]   ;;  %v2912_v35 = vld [vmem:[%s4141_s1 + $0x20] sm:$0xff]   ;;  %v2914_v41 = vld [vmem:[%s4141_s1 + $0x28] sm:$0xff]  }
  0x11   : > { %s4194_s17 = smov (!%p218_p3, %s217_s17), 71  ;;  %v2915_v42 = vld [vmem:[%s4141_s1 + $0x70] sm:$0xff]   ;;  %v2917_v48 = vld [vmem:[%s4141_s1 + $0x78] sm:$0xff]   ;;  %v2919_v54 = vld [vmem:[%s4141_s1 + $0xc0] sm:$0xff]  }
  0x12   : > { %s2448_s28 = sshll.u32 %s4194_s17, 3  ;;  %v2916_v47 = vld [vmem:[%s4141_s1 + $0x30] sm:$0xff]   ;;  %v2918_v53 = vld [vmem:[%s4141_s1 + $0x38] sm:$0xff]   ;;  %v3328_v55 = vld [vmem:[%s4141_s1 + $0x100] sm:$0xff]  }
  0x13   : > { %s3135_s5 = scalar_lea.vmem %s4140_s0, %s2448_s28  ;;  %2775 = vmatpush3.bf16.msra.mxu1 %v2906_v3  ;;  %2485 = vmatpush3.bf16.msra.mxu0 %v2906_v3 }
  0x14   : > { %v3141_v6 = vld [vmem:[%s3135_s5 + $0xe0] sm:$0xff]  ;;  %v3144_v7 = vld [vmem:[%s3135_s5 + $0xe8] sm:$0xff]  ;;  %v3147_v8 = vld [vmem:[%s3135_s5 + $0xd0] sm:$0xff]  ;;  %2768 = vmatprep.subr.bf16.mxu1 %v2907_v4  ;;  %2486 = vmatprep.subr.bf16.mxu0 %v2907_v4 }
  0x15   : > { %4159 = vst [vmem:[#allocation2_spill] sm:$0xff] %v3141_v6  ;;  %4160 = vst [vmem:[#allocation3_spill] sm:$0xff] %v3144_v7  ;;  %v3151_v9 = vcombine.low %v3141_v6, %v3144_v7  ;;  %v3154_v10 = vld [vmem:[%s3135_s5 + $0xd8] sm:$0xff]  ;;  %v3157_v11 = vld [vmem:[%s3135_s5 + $0x20] sm:$0xff] }
  0x16   : > { %4161 = vst [vmem:[#allocation4_spill] sm:$0xff] %v3147_v8  ;;  %4162 = vst [vmem:[#allocation5_spill] sm:$0xff] %v3154_v10  ;;  %v3160_v12 = vld [vmem:[%s3135_s5 + $0x28] sm:$0xff]  ;;  %v3164_v13 = vcombine.low %v3147_v8, %v3154_v10  ;;  %v3167_v14 = vld [vmem:[%s3135_s5 + $0x10] sm:$0xff] }
  0x17   : > { %v3170_v15 = vld [vmem:[%s3135_s5 + $0x18] sm:$0xff]  ;;  %484 = vrot.lane.b32.xlu1 %v3151_v9, %s3081_s10  ;;  %v3179_v17 = vcombine.low %v3157_v11, %v3160_v12  ;;  %v3188_v19 = vld [vmem:[%s3135_s5 + $0x30] sm:$0xff]  ;;  %2776 = vmatpush3.bf16.msra.mxu1 %v2908_v5  ;;  %v3212_v25 = vld [vmem:[%s3135_s5 + $0x40] sm:$0xff]  ;;  %v3293_v46 = vcombine.high %v3157_v11, %v3160_v12 }
  0x18   : > { %480 = vrot.lane.b32.xlu0 %v3164_v13, %s3081_s10  ;;  %v3185_v18 = vcombine.low %v3167_v14, %v3170_v15  ;;  %v3191_v20 = vld [vmem:[%s3135_s5 + $0x38] sm:$0xff]  ;;  %v3194_v21 = vld [vmem:[%s3135_s5 + $0xf0] sm:$0xff]  ;;  %2487 = vmatpush3.bf16.msra.mxu0 %v2908_v5  ;;  %v3215_v26 = vld [vmem:[%s3135_s5 + $0x48] sm:$0xff]  ;;  %v3269_v40 = vcombine.high %v3167_v14, %v3170_v15 }
  0x19   : > { %4163 = vst [vmem:[#allocation6_spill] sm:$0xff] %v3194_v21  ;;  %v3197_v22 = vld [vmem:[%s3135_s5 + $0xf8] sm:$0xff]  ;;  %2769 = vmatprep.subr.bf16.mxu1 %v2909_v16  ;;  %v3203_v23 = vcombine.low %v3188_v19, %v3191_v20  ;;  %2488 = vmatprep.subr.bf16.mxu0 %v2909_v16  ;;  %v3218_v27 = vld [vmem:[%s3135_s5 + $0x100] sm:$0xff]  ;;  %v3221_v28 = vld [vmem:[%s3135_s5 + $0x108] sm:$0xff]  ;;  %v3236_v32 = vcombine.low %v3212_v25, %v3215_v26 }
  0x1a   : > { %4164 = vst [vmem:[#allocation7_spill] sm:$0xff] %v3197_v22  ;;  %v3209_v24 = vcombine.low %v3194_v21, %v3197_v22  ;;  %4165 = vst [vmem:[#allocation8_spill] sm:$0xff] %v3218_v27  ;;  %v3224_v29 = vld [vmem:[%s3135_s5 + $0x50] sm:$0xff]  ;;  %v3227_v30 = vld [vmem:[%s3135_s5 + $0x58] sm:$0xff]  ;;  %v3245_v34 = vcombine.low %v3218_v27, %v3221_v28  ;;  %v3317_v52 = vcombine.high %v3188_v19, %v3191_v20 }
  0x1b   : > { %436 = vrot.lane.b32.xlu1 %v3179_v17, %s3081_s10  ;;  %4166 = vst [vmem:[#allocation9_spill] sm:$0xff] %v3221_v28  ;;  %2777 = vmatpush3.bf16.msra.mxu1 %v2910_v31  ;;  %v3254_v37 = vld [vmem:[%s3135_s5 + $0x60] sm:$0xff]  ;;  %v3260_v38 = vcombine.low %v3224_v29, %v3227_v30  ;;  %v3263_v39 = vld [vmem:[%s3135_s5 + $0x68] sm:$0xff]  ;;  %v3278_v43 = vld [vmem:[%s3135_s5 + $0x70] sm:$0xff]  ;;  %v3343_v58 = vcombine.high %v3212_v25, %v3215_v26 }
  0x1c   : > { %432 = vrot.lane.b32.xlu0 %v3185_v18, %s3081_s10  ;;  %4167 = vst [vmem:[#allocation10_spill] sm:$0xff] %v3245_v34  ;;  %2489 = vmatpush3.bf16.msra.mxu0 %v2910_v31  ;;  %v3284_v44 = vcombine.low %v3254_v37, %v3263_v39  ;;  %v3287_v45 = vld [vmem:[%s3135_s5 + $0x78] sm:$0xff]  ;;  %v3302_v49 = vld [vmem:[%s3135_s5 + $0x80] sm:$0xff]  ;;  %v3311_v51 = vld [vmem:[%s3135_s5 + $0x88] sm:$0xff]  ;;  %v3362_v62 = vcombine.high %v3224_v29, %v3227_v30 }
  0x1d   : > { %2770 = vmatprep.subr.bf16.mxu1 %v2911_v33  ;;  %2490 = vmatprep.subr.bf16.mxu0 %v2911_v33  ;;  %v3308_v50 = vcombine.low %v3278_v43, %v3287_v45  ;;  %v3334_v56 = vcombine.low %v3302_v49, %v3311_v51  ;;  %v3337_v57 = vld [vmem:[%s3135_s5 + $0x90] sm:$0xff]  ;;  %v3346_v59 = vld [vmem:[%s3135_s5 + $0x98] sm:$0xff]  ;;  %v3356_v61 = vld [vmem:[%s3135_s5 + $0xa0] sm:$0xff]  ;;  %v3380_v2 = vcombine.high %v3254_v37, %v3263_v39 }
  0x1e   : > { %v3353_v60 = vcombine.low %v3337_v57, %v3346_v59  ;;  %v3365_v63 = vld [vmem:[%s3135_s5 + $0xa8] sm:$0xff]  ;;  %v3374_v1 = vld [vmem:[%s3135_s5 + $0xb0] sm:$0xff]  ;;  %v3383_v3 = vld [vmem:[%s3135_s5 + $0xb8] sm:$0xff]  ;;  %v3395_v5 = vcombine.high %v3278_v43, %v3287_v45 }
  0x1f   : > { %440 = vrot.lane.b32.xlu1 %v3203_v23, %s3081_s10  ;;  %2778 = vmatpush3.bf16.msra.mxu1 %v2912_v35  ;;  %v3371_v0 = vcombine.low %v3356_v61, %v3365_v63  ;;  %4168 = vst [vmem:[#allocation11_spill] sm:$0xff] %v3374_v1  ;;  %4169 = vst [vmem:[#allocation12_spill] sm:$0xff] %v3383_v3  ;;  %v3389_v4 = vcombine.low %v3374_v1, %v3383_v3  ;;  %v3398_v16 = vld [vmem:[%s3135_s5 + $0xc0] sm:$0xff]  ;;  %v3401_v31 = vld [vmem:[%s3135_s5 + $0xc8] sm:$0xff] }
  0x20   : > { %488 = vrot.lane.b32.xlu0 %v3209_v24, %s3081_s10  ;;  %2491 = vmatpush3.bf16.msra.mxu0 %v2912_v35  ;;  %4170 = vst [vmem:[#allocation13_spill] sm:$0xff] %v3401_v31  ;;  %v3407_v33 = vcombine.low %v3398_v16, %v3401_v31  ;;  %v3413_v35 = vcombine.high %v3302_v49, %v3311_v51 }
  0x21   : > { %2771 = vmatprep.subr.bf16.mxu1 %v2913_v36  ;;  %2492 = vmatprep.subr.bf16.mxu0 %v2913_v36  ;;  %v3419_v36 = vcombine.high %v3356_v61, %v3365_v63 }
  0x23   : > { %444 = vrot.lane.b32.xlu1 %v3236_v32, %s3081_s10  ;;  %2779 = vmatpush3.bf16.msra.mxu1 %v2914_v41 }
  0x24   : > { %492 = vrot.lane.b32.xlu0 %v3245_v34, %s3081_s10  ;;  %2493 = vmatpush3.bf16.msra.mxu0 %v2914_v41  ;;  %v3425_v41 = vcombine.high %v3337_v57, %v3346_v59 }
  0x25   : > { %2772 = vmatprep.subr.bf16.mxu1 %v2915_v42  ;;  %2494 = vmatprep.subr.bf16.mxu0 %v2915_v42  ;;  %v3431_v42 = vcombine.high %v3398_v16, %v3401_v31 }
  0x27   : > { %448 = vrot.lane.b32.xlu1 %v3260_v38, %s3081_s10  ;;  %2780 = vmatpush3.bf16.msra.mxu1 %v2916_v47 }
  0x28   : > { %434 = vrot.lane.b32.xlu0 %v3269_v40, %s3081_s10  ;;  %2495 = vmatpush3.bf16.msra.mxu0 %v2916_v47  ;;  %v3437_v47 = vcombine.high %v3374_v1, %v3383_v3  ;;  %v2926_v3 = vld [vmem:[%s4141_s1 + $0x88] sm:$0xff]  }
  0x29   : > { %2773 = vmatprep.subr.bf16.mxu1 %v2917_v48  ;;  %2496 = vmatprep.subr.bf16.mxu0 %v2917_v48  ;;  %v3443_v48 = vcombine.high %v3141_v6, %v3144_v7  ;;  %v3461_v7 = vcombine.high %v3194_v21, %v3197_v22  ;;  %v2921_v21 = vld [vmem:[%s3135_s5 + $0x4] ss:$8 sps:$4 sm:$0xff]   ;;  %v2924_v6 = vld [vmem:[%s3135_s5] ss:$8 sps:$4 sm:$0xff]  }
  0x2b   : > { %452 = vrot.lane.b32.xlu1 %v3284_v44, %s3081_s10  ;;  %2781 = vmatpush3.bf16.msra.mxu1 %v2918_v53 }
  0x2c   : > { %438 = vrot.lane.b32.xlu0 %v3293_v46, %s3081_s10  ;;  %2497 = vmatpush3.bf16.msra.mxu0 %v2918_v53  ;;  %v3449_v53 = vcombine.high %v3147_v8, %v3154_v10 }
  0x2d   : > { %2594 = vmatprep.subr.bf16.mxu1 %v2919_v54  ;;  %2726 = vmatprep.subr.bf16.mxu0 %v3328_v55  ;;  %v3455_v54 = vcombine.high %v3218_v27, %v3221_v28  ;;  %v2920_v28 = vld [vmem:[%s4141_s1 + $0x80] sm:$0xff]   ;;  %v2925_v27 = vld [vmem:[%s4141_s1 + $0xc8] sm:$0xff]  }
  0x2e   : > { %4171 = vst [vmem:[#allocation14_spill] sm:$0xff] %v3449_v53 }
  0x2f   : > { %456 = vrot.lane.b32.xlu1 %v3308_v50, %s3081_s10  ;;  %4172 = vst [vmem:[#allocation15_spill] sm:$0xff] %v3455_v54 }
  0x30   : > { %442 = vrot.lane.b32.xlu0 %v3317_v52, %s3081_s10 }
  0x33   : > { %460 = vrot.lane.b32.xlu1 %v3334_v56, %s3081_s10 }
  0x34   : > { %446 = vrot.lane.b32.xlu0 %v3343_v58, %s3081_s10 }
  0x37   : > { %464 = vrot.lane.b32.xlu1 %v3353_v60, %s3081_s10 }
  0x38   : > { %450 = vrot.lane.b32.xlu0 %v3362_v62, %s3081_s10 }
  0x3b   : > { %468 = vrot.lane.b32.xlu1 %v3371_v0, %s3081_s10 }
  0x3c   : > { %454 = vrot.lane.b32.xlu0 %v3380_v2, %s3081_s10 }
  0x3f   : > { %472 = vrot.lane.b32.xlu1 %v3389_v4, %s3081_s10 }
  0x40   : > { %458 = vrot.lane.b32.xlu0 %v3395_v5, %s3081_s10 }
  0x43   : > { %476 = vrot.lane.b32.xlu1 %v3407_v33, %s3081_s10 }
  0x44   : > { %462 = vrot.lane.b32.xlu0 %v3413_v35, %s3081_s10 }
  0x47   : > { %470 = vrot.lane.b32.xlu1 %v3419_v36, %s3081_s10 }
  0x48   : > { %466 = vrot.lane.b32.xlu0 %v3425_v41, %s3081_s10 }
  0x4b   : > { %478 = vrot.lane.b32.xlu1 %v3431_v42, %s3081_s10 }
  0x4c   : > { %474 = vrot.lane.b32.xlu0 %v3437_v47, %s3081_s10 }
  0x4f   : > { %486 = vrot.lane.b32.xlu1 %v3443_v48, %s3081_s10 }
  0x50   : > { %482 = vrot.lane.b32.xlu0 %v3449_v53, %s3081_s10 }
  0x53   : > { %494 = vrot.lane.b32.xlu1 %v3455_v54, %s3081_s10 }
  0x54   : > { %490 = vrot.lane.b32.xlu0 %v3461_v7, %s3081_s10 }
  0x89   : > { %v3467_v10 = vpop.permute.xlu1 %484 }
  0x8a   : > { %v3469_v8 = vpop.permute.xlu0 %480  ;;  %v594_v54 = vsel %vm496_vm0, %v3449_v53, %v3467_v10  ;;  %v2937_v53 = vld [vmem:[%s4141_s1 + $0x108] sm:$0xff]  }
  0x8b   : > { %v590_v22 = vsel %vm496_vm0, %v3431_v42, %v3469_v8 }
  0x8c   : > { %1054 = vmatprep.mubr.bf16.mxu1 %v590_v22  ;;  %v2927_v22 = vld [vmem:[%s4141_s1 + $0xd0] sm:$0xff]  }
  0x8d   : > { %1055 = vmatmul.mubr.bf16.vlgmr.msra.gmra.mrb[0].mxu1 %v3407_v33  ;;  %v3491_v1 = vpop.permute.xlu1 %436 }
  0x8e   : > { %2595 = vmatpush3.bf16.msra.mxu1 %v2920_v28  ;;  %v3486_v34 = vpop.permute.xlu0 %432  ;;  %1062 = vmatprep.mubr.bf16.mxu1 %v594_v54  ;;  %v546_v28 = vsel %vm496_vm0, %v3269_v40, %v3491_v1 }
  0x8f   : > { %v542_v31 = vsel %vm496_vm0, %v2921_v21, %v3486_v34  ;;  %2596 = vmatprep.subr.bf16.mxu1 %v2925_v27  ;;  %v2928_v21 = vld [vmem:[%s4141_s1 + $0x90] sm:$0xff]   ;;  %v2929_v27 = vld [vmem:[%s4141_s1 + $0xd8] sm:$0xff]  }
  0x90   : > { %958 = vmatprep.mubr.bf16.mxu0 %v542_v31  ;;  %v2931_v31 = vld [vmem:[%s4141_s1 + $0xe0] sm:$0xff]  }
  0x91   : > { %959 = vmatmul.mubr.bf16.vlgmr.msra.gmra.mrb[0].mxu0 %v2924_v6  ;;  %v2940_v6 = vld [vmem:[%s4141_s1 + $0x110] sm:$0xff]  }
  0x92   : > { %2727 = vmatpush3.bf16.msra.mxu0 %v3328_v55  ;;  %2597 = vmatpush3.bf16.msra.mxu1 %v2926_v3  ;;  %v3505_v54 = vpop.permute.xlu0 %488  ;;  %v3520_v55 = vpop.permute.xlu1 %440  ;;  %v2930_v3 = vld [vmem:[%s4141_s1 + $0x98] sm:$0xff]  }
  0x93   : > { %2598 = vmatprep.subr.bf16.mxu1 %v2927_v22  ;;  %966 = vmatprep.mubr.bf16.mxu0 %v546_v28  ;;  %v598_v40 = vsel %vm496_vm0, %v3443_v48, %v3505_v54  ;;  %v550_v22 = vsel %vm496_vm0, %v3293_v46, %v3520_v55  ;;  %v2941_v28 = vld [vmem:[%s4141_s1 + $0x118] sm:$0xff]  }
  0x94   : > { %2728 = vmatprep.subr.bf16.mxu0 %v2937_v53 }
  0x95   : > { %1063 = vmatmul.mubr.bf16.gmra.mrb[4].mxu1 %v3164_v13 }
  0x96   : > { %2599 = vmatpush3.bf16.msra.mxu1 %v2928_v21  ;;  %1070 = vmatprep.mubr.bf16.mxu1 %v598_v40  ;;  %v3535_v21 = vpop.permute.xlu0 %492 }
  0x97   : > { %2600 = vmatprep.subr.bf16.mxu1 %v2929_v27  ;;  %2729 = vmatpush3.bf16.msra.mxu0 %v2937_v53  ;;  %v2932_v27 = vld [vmem:[%s4141_s1 + $0xa0] sm:$0xff]   ;;  %v2933_v53 = vld [vmem:[%s4141_s1 + $0xe8] sm:$0xff]   ;;  %v602_v40 = vsel %vm496_vm0, %v3461_v7, %v3535_v21 }
  0x98   : > { %2730 = vmatprep.subr.bf16.mxu0 %v2940_v6 }
  0x99   : > { %967 = vmatmul.mubr.bf16.gmra.mrb[4].mxu0 %v3185_v18  ;;  %v445_v18 = vpop.permute.xlu1 %444 }
  0x9a   : > { %2601 = vmatpush3.bf16.msra.mxu1 %v2930_v3  ;;  %974 = vmatprep.mubr.bf16.mxu0 %v550_v22  ;;  %v2934_v3 = vld [vmem:[%s4141_s1 + $0xa8] sm:$0xff]   ;;  %v554_v22 = vsel %vm496_vm0, %v3317_v52, %v445_v18 }
  0x9b   : > { %2602 = vmatprep.subr.bf16.mxu1 %v2931_v31  ;;  %2731 = vmatpush3.bf16.msra.mxu0 %v2940_v6  ;;  %v2935_v31 = vld [vmem:[%s4141_s1 + $0xf0] sm:$0xff]  }
  0x9c   : > { %2732 = vmatprep.subr.bf16.mxu0 %v2941_v28  ;;  %v2936_v6 = vld [vmem:[%s4141_s1 + $0xb0] sm:$0xff]  }
  0x9d   : > { %1071 = vmatmul.mubr.bf16.gmra.mrb[8].mxu1 %v3151_v9 }
  0x9e   : > { %2603 = vmatpush3.bf16.msra.mxu1 %v2932_v27  ;;  %1078 = vmatprep.mubr.bf16.mxu1 %v602_v40  ;;  %v2938_v27 = vld [vmem:[%s4141_s1 + $0xf8] sm:$0xff]  }
  0x9f   : > { %2604 = vmatprep.subr.bf16.mxu1 %v2933_v53  ;;  %2733 = vmatpush3.bf16.msra.mxu0 %v2941_v28  ;;  %v449_v53 = vpop.permute.xlu1 %448  ;;  %v2939_v28 = vld [vmem:[%s4141_s1 + $0xb8] sm:$0xff]  }
  0xa0   : > { %v558_v40 = vsel %vm496_vm0, %v3343_v58, %v449_v53 }
  0xa1   : > { %975 = vmatmul.mubr.bf16.gmra.mrb[8].mxu0 %v3179_v17 }
  0xa2   : > { %2605 = vmatpush3.bf16.msra.mxu1 %v2934_v3  ;;  %982 = vmatprep.mubr.bf16.mxu0 %v554_v22  ;;  %v435_v3 = vpop.permute.xlu0 %434 }
  0xa3   : > { %2606 = vmatprep.subr.bf16.mxu1 %v2935_v31  ;;  %v497_v31 = vsel %vm496_vm0, %v3486_v34, %v435_v3  ;;  %v453_v22 = vpop.permute.xlu1 %452 }
  0xa5   : > { %1079 = vmatmul.mubr.bf16.gmra.mrb[12].mxu1 %v3209_v24 }
  0xa6   : > { %2607 = vmatpush3.bf16.msra.mxu1 %v2936_v6  ;;  %1119 = vmatprep.mubr.bf16.mxu1 %v3179_v17  ;;  %v562_v6 = vsel %vm496_vm0, %v3362_v62, %v453_v22  ;;  %v439_v17 = vpop.permute.xlu0 %438 }
  0xa7   : > { %2608 = vmatprep.subr.bf16.mxu1 %v2938_v27  ;;  %v498_v27 = vsel %vm496_vm0, %v3491_v1, %v439_v17 }
  0xa9   : > { %983 = vmatmul.mubr.bf16.gmra.mrb[12].mxu0 %v3203_v23 }
  0xaa   : > { %2609 = vmatpush3.bf16.msra.mxu1 %v2939_v28  ;;  %990 = vmatprep.mubr.bf16.mxu0 %v558_v40  ;;  %v457_v28 = vpop.permute.xlu1 %456  ;;  %v443_v40 = vpop.permute.xlu0 %442 }
  0xab   : > { %v566_v34 = vsel %vm496_vm0, %v3380_v2, %v457_v28 }
  0xad   : > { %1120 = vmatmul.mubr.bf16.vlgmr.msra.gmra.mrb[16].mxu1 %v497_v31 }
  0xae   : > { %1127 = vmatprep.mubr.bf16.mxu1 %v3203_v23  ;;  %v499_v23 = vsel %vm496_vm0, %v3520_v55, %v443_v40  ;;  %v461_v3 = vpop.permute.xlu1 %460  ;;  %v447_v31 = vpop.permute.xlu0 %446 }
  0xaf   : > { %v570_v1 = vsel %vm496_vm0, %v3395_v5, %v461_v3 }
  0xb1   : > { %991 = vmatmul.mubr.bf16.gmra.mrb[16].mxu0 %v3236_v32 }
  0xb2   : > { %998 = vmatprep.mubr.bf16.mxu0 %v562_v6  ;;  %v465_v6 = vpop.permute.xlu1 %464 }
  0xb3   : > { %v574_v55 = vsel %vm496_vm0, %v3413_v35, %v465_v6 }
  0xb5   : > { %1128 = vmatmul.mubr.bf16.gmra.mrb[20].mxu1 %v498_v27 }
  0xb6   : > { %1135 = vmatprep.mubr.bf16.mxu1 %v3236_v32  ;;  %v500_v32 = vsel %vm496_vm0, %v445_v18, %v447_v31  ;;  %v469_v27 = vpop.permute.xlu1 %468 }
  0xb7   : > { %v578_v18 = vsel %vm496_vm0, %v3425_v41, %v469_v27 }
  0xb9   : > { %999 = vmatmul.mubr.bf16.gmra.mrb[20].mxu0 %v3260_v38 }
  0xba   : > { %1006 = vmatprep.mubr.bf16.mxu0 %v566_v34  ;;  %v473_v40 = vpop.permute.xlu1 %472 }
  0xbd   : > { %1136 = vmatmul.mubr.bf16.gmra.mrb[24].mxu1 %v499_v23 }
  0xbe   : > { %1143 = vmatprep.mubr.bf16.mxu1 %v3260_v38  ;;  %v451_v38 = vpop.permute.xlu0 %450 }
  0xbf   : > { %v501_v17 = vsel %vm496_vm0, %v449_v53, %v451_v38  ;;  %v582_v53 = vsel %vm496_vm0, %v3419_v36, %v473_v40  ;;  %v1666_v38 = vunpack.c.l.bf16 %v3170_v15  ;;  %v1669_v15 = vunpack.c.l.bf16 %v3188_v19 }
  0xc0   : > { %v1675_v19 = vunpack.c.l.bf16 %v3254_v37 }
  0xc1   : > { %1007 = vmatmul.mubr.bf16.gmra.mrb[24].mxu0 %v3284_v44 }
  0xc2   : > { %1014 = vmatprep.mubr.bf16.mxu0 %v570_v1  ;;  %v477_v1 = vpop.permute.xlu1 %476 }
  0xc5   : > { %1144 = vmatmul.mubr.bf16.gmra.mrb[28].mxu1 %v500_v32 }
  0xc6   : > { %1151 = vmatprep.mubr.bf16.mxu1 %v3284_v44  ;;  %v455_v44 = vpop.permute.xlu0 %454 }
  0xc7   : > { %v502_v34 = vsel %vm496_vm0, %v453_v22, %v455_v44  ;;  %v586_v22 = vsel %vm496_vm0, %v3437_v47, %v477_v1 }
  0xc9   : > { %1015 = vmatmul.mubr.bf16.gmra.mrb[28].mxu0 %v3308_v50 }
  0xca   : > { %1022 = vmatprep.mubr.bf16.mxu0 %v574_v55  ;;  %v1665_v55 = vunpack.c.l.bf16 %v3167_v14  ;;  %v471_v14 = vpop.permute.xlu1 %470 }
  0xcd   : > { %1152 = vmatmul.mubr.bf16.gmra.mrb[32].mxu1 %v501_v17 }
  0xce   : > { %1159 = vmatprep.mubr.bf16.mxu1 %v3308_v50  ;;  %v459_v50 = vpop.permute.xlu0 %458  ;;  %v479_v37 = vpop.permute.xlu1 %478 }
  0xcf   : > { %v503_v23 = vsel %vm496_vm0, %v457_v28, %v459_v50  ;;  %v1667_v28 = vunpack.c.l.bf16 %v3157_v11  ;;  %v1671_v11 = vunpack.c.l.bf16 %v3212_v25 }
  0xd1   : > { %1023 = vmatmul.mubr.bf16.gmra.mrb[32].mxu0 %v3334_v56 }
  0xd2   : > { %1030 = vmatprep.mubr.bf16.mxu0 %v578_v18  ;;  %v2791_v18 = vpack.i.bf16 %v1666_v38, %v1665_v55 }
  0xd4   : > { %2792 = vrot.lane.b32.xlu0 %v2791_v18, %s3081_s10  ;;  %v4183_v18 = vld [vmem:[#allocation8_spill] sm:$0xff] }
  0xd5   : > { %1160 = vmatmul.mubr.bf16.gmra.mrb[36].mxu1 %v502_v34 }
  0xd6   : > { %1167 = vmatprep.mubr.bf16.mxu1 %v3334_v56  ;;  %v463_v56 = vpop.permute.xlu0 %462 }
  0xd7   : > { %v504_v31 = vsel %vm496_vm0, %v461_v3, %v463_v56 }
  0xd9   : > { %1031 = vmatmul.mubr.bf16.gmra.mrb[36].mxu0 %v3353_v60 }
  0xda   : > { %1038 = vmatprep.mubr.bf16.mxu0 %v582_v53  ;;  %v467_v32 = vpop.permute.xlu0 %466 }
  0xdb   : > { %v505_v17 = vsel %vm496_vm0, %v465_v6, %v467_v32 }
  0xdd   : > { %1168 = vmatmul.mubr.bf16.gmra.mrb[40].mxu1 %v503_v23  ;;  %v4176_v23 = vld [vmem:[#allocation10_spill] sm:$0xff] }
  0xde   : > { %1175 = vmatprep.mubr.bf16.mxu1 %v3353_v60  ;;  %v1668_v60 = vunpack.c.l.bf16 %v3160_v12  ;;  %v1672_v12 = vunpack.c.l.bf16 %v3215_v26  ;;  %v475_v25 = vpop.permute.xlu0 %474  ;;  %v1673_v26 = vunpack.c.l.bf16 %v3224_v29  ;;  %v1679_v29 = vunpack.c.l.bf16 %v3302_v49 }
  0xdf   : > { %v1681_v49 = vunpack.c.l.bf16 %v3337_v57  ;;  %v1687_v57 = vunpack.c.l.bf16 %v3398_v16  ;;  %v4177_v16 = vld [vmem:[#allocation14_spill] sm:$0xff] }
  0xe0   : > { %v2796_v3 = vpack.i.bf16 %v1668_v60, %v1667_v28  ;;  %v4181_v60 = vld [vmem:[#allocation5_spill] sm:$0xff] }
  0xe1   : > { %1039 = vmatmul.mubr.bf16.gmra.mrb[40].mxu0 %v3371_v0  ;;  %v1690_v32 = vunpack.c.l.bf16 %v4181_v60 }
  0xe2   : > { %1046 = vmatprep.mubr.bf16.mxu0 %v586_v22  ;;  %2797 = vrot.lane.b32.xlu1 %v2796_v3, %s3081_s10  ;;  %v4182_v3 = vld [vmem:[#allocation15_spill] sm:$0xff] }
  0xe5   : > { %1176 = vmatmul.mubr.bf16.gmra.mrb[44].mxu1 %v504_v31  ;;  %v4180_v31 = vld [vmem:[#allocation4_spill] sm:$0xff] }
  0xe6   : > { %1183 = vmatprep.mubr.bf16.mxu1 %v3371_v0  ;;  %v506_v0 = vsel %vm496_vm0, %v469_v27, %v471_v14  ;;  %v1689_v28 = vunpack.c.l.bf16 %v4180_v31 }
  0xe9   : > { %1047 = vmatmul.mubr.bf16.gmra.mrb[44].mxu0 %v3389_v4 }
  0xea   : > { %2734 = vmatprep.mubr.msk.bf16.mxu0 %vm496_vm0, %v3293_v46  ;;  %v1670_v46 = vunpack.c.l.bf16 %v3191_v20  ;;  %v1676_v20 = vunpack.c.l.bf16 %v3263_v39  ;;  %v1677_v39 = vunpack.c.l.bf16 %v3278_v43  ;;  %v1683_v43 = vunpack.c.l.bf16 %v3356_v61  ;;  %v4174_v61 = vld [vmem:[#allocation11_spill] sm:$0xff] }
  0xec   : > { %v2801_v6 = vpack.i.bf16 %v1670_v46, %v1669_v15  ;;  %v4186_v46 = vld [vmem:[#allocation7_spill] sm:$0xff] }
  0xed   : > { %1184 = vmatmul.mubr.bf16.gmra.mrb[48].mxu1 %v505_v17  ;;  %v2851_v17 = vpack.i.bf16 %v1690_v32, %v1689_v28 }
  0xee   : > { %1191 = vmatprep.mubr.bf16.mxu1 %v3389_v4  ;;  %v2806_v4 = vpack.i.bf16 %v1672_v12, %v1671_v11  ;;  %2802 = vrot.lane.b32.xlu0 %v2801_v6, %s3081_s10  ;;  %v1695_v11 = vunpack.c.l.bf16 %v4183_v18  ;;  %v4184_v12 = vld [vmem:[#allocation9_spill] sm:$0xff] }
  0xef   : > { %v1696_v14 = vunpack.c.l.bf16 %v4184_v12  ;;  %v2944_v6 = vld [vmem:[%s3135_s5 + $0x114] ss:$8 sps:$4 sm:$0xff]  }
  0xf0   : > { %2807 = vrot.lane.b32.xlu1 %v2806_v4, %s3081_s10 }
  0xf1   : > { %2735 = vmatmul.mubr.msk.bf16.vlgmr.msra.gmra.mrb[48].mxu0 %vm496_vm0, %v3317_v52  ;;  %v1674_v52 = vunpack.c.l.bf16 %v3227_v30  ;;  %v1680_v30 = vunpack.c.l.bf16 %v3311_v51  ;;  %v1682_v51 = vunpack.c.l.bf16 %v3346_v59 }
  0xf2   : > { %2738 = vmatprep.mubr.msk.bf16.mxu0 %vm496_vm0, %v3343_v58  ;;  %v507_v58 = vsel %vm496_vm0, %v473_v40, %v475_v25 }
  0xf3   : > { %v2811_v27 = vpack.i.bf16 %v1674_v52, %v1673_v26  ;;  %v2831_v34 = vpack.i.bf16 %v1682_v51, %v1681_v49 }
  0xf5   : > { %1192 = vmatmul.mubr.bf16.gmra.mrb[52].mxu1 %v506_v0  ;;  %2812 = vrot.lane.b32.xlu0 %v2811_v27, %s3081_s10  ;;  %v1694_v0 = vunpack.c.l.bf16 %v4186_v46 }
  0xf6   : > { %1199 = vmatprep.mubr.bf16.mxu1 %v3407_v33  ;;  %v2816_v33 = vpack.i.bf16 %v1676_v20, %v1675_v19  ;;  %v2866_v19 = vpack.i.bf16 %v1696_v14, %v1695_v11 }
  0xf8   : > { %2817 = vrot.lane.b32.xlu1 %v2816_v33, %s3081_s10 }
  0xf9   : > { %2739 = vmatmul.mubr.msk.bf16.gmra.mrb[52].mxu0 %vm496_vm0, %v3362_v62  ;;  %v1678_v62 = vunpack.c.l.bf16 %v3287_v45  ;;  %v1684_v45 = vunpack.c.l.bf16 %v3365_v63  ;;  %v1685_v63 = vunpack.c.l.bf16 %v4174_v61 }
  0xfa   : > { %2742 = vmatprep.mubr.msk.bf16.mxu0 %vm496_vm0, %v3380_v2  ;;  %v2826_v2 = vpack.i.bf16 %v1680_v30, %v1679_v29 }
  0xfb   : > { %v2821_v44 = vpack.i.bf16 %v1678_v62, %v1677_v39 }
  0xfc   : > { %2827 = vrot.lane.b32.xlu1 %v2826_v2, %s3081_s10 }
  0xfd   : > { %1200 = vmatmul.mubr.bf16.gmra.mrb[56].mxu1 %v507_v58  ;;  %2822 = vrot.lane.b32.xlu0 %v2821_v44, %s3081_s10 }
  0xfe   : > { %1207 = vmatprep.mubr.bf16.mxu1 %v3164_v13  ;;  %v508_v13 = vsel %vm496_vm0, %v477_v1, %v479_v37  ;;  %v4178_v1 = vld [vmem:[#allocation2_spill] sm:$0xff] }
  0xff   : > { %v1691_v22 = vunpack.c.l.bf16 %v4178_v1 }
 0x101   : > { %2743 = vmatmul.mubr.msk.bf16.gmra.mrb[56].mxu0 %vm496_vm0, %v3395_v5  ;;  %v483_v5 = vpop.permute.xlu0 %482  ;;  %2832 = vrot.lane.b32.xlu0 %v2831_v34, %s3081_s10 }
 0x102   : > { %2746 = vmatprep.mubr.msk.bf16.mxu0 %vm496_vm0, %v3413_v35  ;;  %v2836_v35 = vpack.i.bf16 %v1684_v45, %v1683_v43 }
 0x104   : > { %2837 = vrot.lane.b32.xlu1 %v2836_v35, %s3081_s10 }
 0x105   : > { %1208 = vmatmul.mubr.bf16.gmra.mrb[60].mxu1 %v508_v13 }
 0x106   : > { %1215 = vmatprep.mubr.bf16.mxu1 %v3151_v9  ;;  %v509_v9 = vsel %vm496_vm0, %v3469_v8, %v483_v5  ;;  %v4173_v8 = vld [vmem:[#allocation13_spill] sm:$0xff] }
 0x107   : > { %v1688_v59 = vunpack.c.l.bf16 %v4173_v8 }
 0x109   : > { %2747 = vmatmul.mubr.msk.bf16.gmra.mrb[60].mxu0 %vm496_vm0, %v3425_v41  ;;  %v4175_v41 = vld [vmem:[#allocation12_spill] sm:$0xff]  ;;  %v2846_v53 = vpack.i.bf16 %v1688_v59, %v1687_v57 }
 0x10a   : > { %2750 = vmatprep.mubr.msk.bf16.mxu0 %vm496_vm0, %v3419_v36  ;;  %v487_v36 = vpop.permute.xlu1 %486 }
 0x10b   : > { %v510_v40 = vsel %vm496_vm0, %v3467_v10, %v487_v36  ;;  %2847 = vrot.lane.b32.xlu1 %v2846_v53, %s3081_s10  ;;  %v4179_v10 = vld [vmem:[#allocation3_spill] sm:$0xff] }
 0x10c   : > { %v1692_v56 = vunpack.c.l.bf16 %v4179_v10 }
 0x10d   : > { %1216 = vmatmul.mubr.bf16.gmra.mrb[64].mxu1 %v509_v9 }
 0x10e   : > { %1223 = vmatprep.mubr.bf16.mxu1 %v3209_v24  ;;  %v1686_v24 = vunpack.c.l.bf16 %v4175_v41  ;;  %v2856_v38 = vpack.i.bf16 %v1692_v56, %v1691_v22 }
 0x110   : > { %v2841_v50 = vpack.i.bf16 %v1686_v24, %v1685_v63  ;;  %2857 = vrot.lane.b32.xlu1 %v2856_v38, %s3081_s10 }
 0x111   : > { %2751 = vmatmul.mubr.msk.bf16.gmra.mrb[64].mxu0 %vm496_vm0, %v3437_v47  ;;  %v2942_v47 = vld [vmem:[%s3135_s5 + $0x110] ss:$8 sps:$4 sm:$0xff]   ;;  %s2287_s5 = sshll.u32 %s2280_s16, 5 }
 0x112   : > { %2754 = vmatprep.mubr.msk.bf16.mxu0 %vm496_vm0, %v3431_v42  ;;  %2842 = vrot.lane.b32.xlu0 %v2841_v50, %s3081_s10  ;;  %v491_v42 = vpop.permute.xlu0 %490  ;;  %p225_p4 = scmp.lt.s32.totalorder %s2287_s5, 63 }
 0x113   : > { %v511_v55 = vsel %vm496_vm0, %v3505_v54, %v491_v42  ;;  %v4185_v54 = vld [vmem:[#allocation6_spill] sm:$0xff] }
 0x114   : > { %v1693_v15 = vunpack.c.l.bf16 %v4185_v54  ;;  %2867 = vrot.lane.b32.xlu1 %v2866_v19, %s3081_s10  ;;  %s4196_s5 = smov (!%p225_p4, %s2287_s5), 63 }
 0x115   : > { %1224 = vmatmul.mubr.bf16.gmra.mrb[68].mxu1 %v510_v40  ;;  %s2449_s16 = sshll.u32 %s4196_s5, 4  ;;  %s2291_s30 = sshll.u32 %s4196_s5, 2 }
 0x116   : > { %1231 = vmatprep.mubr.bf16.mxu1 %v4176_v23  ;;  %2852 = vrot.lane.b32.xlu0 %v2851_v17, %s3081_s10  ;;  %v2861_v20 = vpack.i.bf16 %v1694_v0, %v1693_v15  ;;  %s3780_s29 = scalar_lea.vmem %s4142_s2, %s2449_s16  ;;  %s3885_s8 = scalar_lea.vmem %s4143_s3, %s2291_s30 }
 0x117   : > { %s2293_s9 = sshll.u32 %s4196_s5, 3 }
 0x118   : > { %s4071_s13 = scalar_lea.vmem %s4144_s4, %s2293_s9 }
 0x119   : > { %2755 = vmatmul.mubr.msk.bf16.gmra.mrb[68].mxu0 %vm496_vm0, %v4177_v16 }
 0x11a   : > { %2758 = vmatprep.mubr.msk.bf16.mxu0 %vm496_vm0, %v3443_v48  ;;  %v495_v48 = vpop.permute.xlu1 %494  ;;  %2862 = vrot.lane.b32.xlu0 %v2861_v20, %s3081_s10 }
 0x11b   : > { %v512_v4 = vsel %vm496_vm0, %v3535_v21, %v495_v48 }
 0x11d   : > { %1232 = vmatmul.mubr.bf16.gmra.mrb[72].mxu1 %v511_v55 }
 0x11e   : > { %1239 = vmatprep.mubr.bf16.mxu1 %v2942_v47 }
 0x121   : > { %2759 = vmatmul.mubr.msk.bf16.gmra.mrb[72].mxu0 %vm496_vm0, %v3461_v7 }
 0x122   : > { %2762 = vmatprep.mubr.msk.bf16.mxu0 %vm496_vm0, %v4182_v3 }
 0x125   : > { %1240 = vmatmul.mubr.bf16.gmra.mrb[76].mxu1 %v512_v4 }
 0x129   : > { %2763 = vmatmul.mubr.msk.bf16.gmra.mrb[76].mxu0 %vm496_vm0, %v2944_v6 }
 0x160   : > { %v2570_v7 = vpop.f32.mrb[0].mxu1 }
 0x161   : > { %v2571_v25 = vpop.f32.mrb[1].mxu1 }
 0x162   : > { %v3710_v26 = vadd.f32 %v2571_v25, %v2570_v7  ;;  %v2573_v52 = vpop.f32.mrb[2].mxu1 }
 0x163   : > { %v2574_v58 = vpop.f32.mrb[3].mxu1 }
 0x164   : > { %v2498_v33 = vpop.f32.mrb[0].mxu0  ;;  %v3712_v27 = vadd.f32 %v2574_v58, %v2573_v52 }
 0x165   : > { %v2499_v21 = vpop.f32.mrb[1].mxu0 }
 0x166   : > { %v2500_v29 = vadd.f32 %v2499_v21, %v2498_v33  ;;  %v2501_v30 = vpop.f32.mrb[2].mxu0 }
 0x167   : > { %v2502_v37 = vpop.f32.mrb[3].mxu0 }
 0x168   : > { %v2503_v39 = vadd.f32 %v2502_v37, %v2501_v30  ;;  %v2576_v62 = vpop.f32.mrb[4].mxu1 }
 0x169   : > { %v2577_v13 = vpop.f32.mrb[5].mxu1 }
 0x16a   : > { %v3714_v2 = vadd.f32 %v2577_v13, %v2576_v62  ;;  %v2579_v44 = vpop.f32.mrb[6].mxu1 }
 0x16b   : > { %v2580_v5 = vpop.f32.mrb[7].mxu1 }
 0x16c   : > { %v2504_v43 = vpop.f32.mrb[4].mxu0  ;;  %v3716_v45 = vadd.f32 %v2580_v5, %v2579_v44 }
 0x16d   : > { %v2505_v49 = vpop.f32.mrb[5].mxu0 }
 0x16e   : > { %v2506_v51 = vadd.f32 %v2505_v49, %v2504_v43  ;;  %v2507_v9 = vpop.f32.mrb[6].mxu0 }
 0x16f   : > { %v2508_v35 = vpop.f32.mrb[7].mxu0 }
 0x170   : > { %v2509_v34 = vadd.f32 %v2508_v35, %v2507_v9  ;;  %v2582_v36 = vpop.f32.mrb[8].mxu1 }
 0x171   : > { %v2583_v57 = vpop.f32.mrb[9].mxu1 }
 0x172   : > { %v3718_v8 = vadd.f32 %v2583_v57, %v2582_v36  ;;  %v2585_v59 = vpop.f32.mrb[10].mxu1 }
 0x173   : > { %v2586_v61 = vpop.f32.mrb[11].mxu1 }
 0x174   : > { %v2510_v63 = vpop.f32.mrb[8].mxu0  ;;  %v3720_v41 = vadd.f32 %v2586_v61, %v2585_v59 }
 0x175   : > { %v2511_v24 = vpop.f32.mrb[9].mxu0 }
 0x176   : > { %v2512_v40 = vadd.f32 %v2511_v24, %v2510_v63  ;;  %v2513_v53 = vpop.f32.mrb[10].mxu0 }
 0x177   : > { %v2514_v50 = vpop.f32.mrb[11].mxu0 }
 0x178   : > { %v2515_v23 = vadd.f32 %v2514_v50, %v2513_v53  ;;  %v2588_v42 = vpop.f32.mrb[12].mxu1 }
 0x179   : > { %v2589_v16 = vpop.f32.mrb[13].mxu1 }
 0x17a   : > { %v3722_v47 = vadd.f32 %v2589_v16, %v2588_v42  ;;  %v2591_v1 = vpop.f32.mrb[14].mxu1 }
 0x17b   : > { %v2592_v22 = vpop.f32.mrb[15].mxu1 }
 0x17c   : > { %v2516_v10 = vpop.f32.mrb[12].mxu0  ;;  %v3724_v56 = vadd.f32 %v2592_v22, %v2591_v1 }
 0x17d   : > { %v2517_v31 = vpop.f32.mrb[13].mxu0 }
 0x17e   : > { %v2518_v28 = vadd.f32 %v2517_v31, %v2516_v10  ;;  %v2519_v60 = vpop.f32.mrb[14].mxu0 }
 0x17f   : > { %v2520_v32 = vpop.f32.mrb[15].mxu0 }
 0x180   : > { %v2521_v55 = vadd.f32 %v2520_v32, %v2519_v60  ;;  %v2610_v38 = vpop.f32.mrb[16].mxu1 }
 0x181   : > { %v2611_v17 = vpop.f32.mrb[17].mxu1 }
 0x182   : > { %v2612_v48 = vadd.f32 %v2611_v17, %v2610_v38  ;;  %v2613_v3 = vpop.f32.mrb[18].mxu1 }
 0x183   : > { %v2614_v18 = vpop.f32.mrb[19].mxu1 }
 0x184   : > { %v2615_v11 = vadd.f32 %v2614_v18, %v2613_v3  ;;  %v2522_v12 = vpop.f32.mrb[16].mxu0  ;;  %v3726_v14 = vadd.f32 %v2612_v48, %v2500_v29 }
 0x185   : > { %v2523_v54 = vpop.f32.mrb[17].mxu0 }
 0x186   : > { %v2524_v15 = vadd.f32 %v2523_v54, %v2522_v12  ;;  %v2525_v46 = vpop.f32.mrb[18].mxu0  ;;  %v3728_v0 = vadd.f32 %v2615_v11, %v2503_v39 }
 0x187   : > { %v2526_v4 = vpop.f32.mrb[19].mxu0 }
 0x188   : > { %v2527_v6 = vadd.f32 %v2526_v4, %v2525_v46  ;;  %v2616_v19 = vpop.f32.mrb[20].mxu1 }
 0x189   : > { %v2617_v20 = vpop.f32.mrb[21].mxu1 }
 0x18a   : > { %v2618_v7 = vadd.f32 %v2617_v20, %v2616_v19  ;;  %v2619_v25 = vpop.f32.mrb[22].mxu1 }
 0x18b   : > { %v2620_v52 = vpop.f32.mrb[23].mxu1 }
 0x18c   : > { %v2621_v58 = vadd.f32 %v2620_v52, %v2619_v25  ;;  %v2528_v33 = vpop.f32.mrb[20].mxu0  ;;  %v3730_v21 = vadd.f32 %v2618_v7, %v2506_v51 }
 0x18d   : > { %v2529_v30 = vpop.f32.mrb[21].mxu0 }
 0x18e   : > { %v2530_v37 = vadd.f32 %v2529_v30, %v2528_v33  ;;  %v2531_v29 = vpop.f32.mrb[22].mxu0  ;;  %v3732_v62 = vadd.f32 %v2621_v58, %v2509_v34 }
 0x18f   : > { %v2532_v13 = vpop.f32.mrb[23].mxu0 }
 0x190   : > { %v2533_v44 = vadd.f32 %v2532_v13, %v2531_v29  ;;  %v2622_v39 = vpop.f32.mrb[24].mxu1 }
 0x191   : > { %v2623_v5 = vpop.f32.mrb[25].mxu1 }
 0x192   : > { %v2624_v43 = vadd.f32 %v2623_v5, %v2622_v39  ;;  %v2625_v49 = vpop.f32.mrb[26].mxu1 }
 0x193   : > { %v2626_v9 = vpop.f32.mrb[27].mxu1 }
 0x194   : > { %v2627_v35 = vadd.f32 %v2626_v9, %v2625_v49  ;;  %v2534_v36 = vpop.f32.mrb[24].mxu0  ;;  %v3734_v57 = vadd.f32 %v2624_v43, %v2512_v40 }
 0x195   : > { %v2535_v59 = vpop.f32.mrb[25].mxu0 }
 0x196   : > { %v2536_v61 = vadd.f32 %v2535_v59, %v2534_v36  ;;  %v2537_v51 = vpop.f32.mrb[26].mxu0  ;;  %v3736_v63 = vadd.f32 %v2627_v35, %v2515_v23 }
 0x197   : > { %v2538_v24 = vpop.f32.mrb[27].mxu0 }
 0x198   : > { %v2539_v53 = vadd.f32 %v2538_v24, %v2537_v51  ;;  %v2628_v34 = vpop.f32.mrb[28].mxu1 }
 0x199   : > { %v2629_v50 = vpop.f32.mrb[29].mxu1 }
 0x19a   : > { %v2630_v42 = vadd.f32 %v2629_v50, %v2628_v34  ;;  %v2631_v16 = vpop.f32.mrb[30].mxu1 }
 0x19b   : > { %v2632_v1 = vpop.f32.mrb[31].mxu1 }
 0x19c   : > { %v2633_v22 = vadd.f32 %v2632_v1, %v2631_v16  ;;  %v2540_v10 = vpop.f32.mrb[28].mxu0  ;;  %v3738_v31 = vadd.f32 %v2630_v42, %v2518_v28 }
 0x19d   : > { %v2541_v60 = vpop.f32.mrb[29].mxu0 }
 0x19e   : > { %v2542_v32 = vadd.f32 %v2541_v60, %v2540_v10  ;;  %v2543_v40 = vpop.f32.mrb[30].mxu0  ;;  %v3740_v38 = vadd.f32 %v2633_v22, %v2521_v55 }
 0x19f   : > { %v2544_v17 = vpop.f32.mrb[31].mxu0 }
 0x1a0   : > { %v2545_v48 = vadd.f32 %v2544_v17, %v2543_v40  ;;  %v2634_v23 = vpop.f32.mrb[32].mxu1 }
 0x1a1   : > { %v2635_v3 = vpop.f32.mrb[33].mxu1 }
 0x1a2   : > { %v2636_v18 = vadd.f32 %v2635_v3, %v2634_v23  ;;  %v2637_v11 = vpop.f32.mrb[34].mxu1 }
 0x1a3   : > { %v2638_v12 = vpop.f32.mrb[35].mxu1 }
 0x1a4   : > { %v2639_v54 = vadd.f32 %v2638_v12, %v2637_v11  ;;  %v2546_v46 = vpop.f32.mrb[32].mxu0  ;;  %v3742_v4 = vadd.f32 %v2636_v18, %v2524_v15 }
 0x1a5   : > { %v2547_v19 = vpop.f32.mrb[33].mxu0 }
 0x1a6   : > { %v2548_v20 = vadd.f32 %v2547_v19, %v2546_v46  ;;  %v2549_v28 = vpop.f32.mrb[34].mxu0  ;;  %v3744_v7 = vadd.f32 %v2639_v54, %v2527_v6 }
 0x1a7   : > { %v2550_v25 = vpop.f32.mrb[35].mxu0 }
 0x1a8   : > { %v3746_v52 = vadd.f32 %v2550_v25, %v2549_v28  ;;  %v2640_v55 = vpop.f32.mrb[36].mxu1 }
 0x1a9   : > { %v2641_v58 = vpop.f32.mrb[37].mxu1 }
 0x1aa   : > { %v2642_v33 = vadd.f32 %v2641_v58, %v2640_v55  ;;  %v2643_v30 = vpop.f32.mrb[38].mxu1 }
 0x1ab   : > { %v2644_v29 = vpop.f32.mrb[39].mxu1 }
 0x1ac   : > { %v2645_v13 = vadd.f32 %v2644_v29, %v2643_v30  ;;  %v2552_v39 = vpop.f32.mrb[36].mxu0  ;;  %v3748_v5 = vadd.f32 %v2642_v33, %v2530_v37 }
 0x1ad   : > { %v2553_v15 = vpop.f32.mrb[37].mxu0 }
 0x1ae   : > { %v3750_v43 = vadd.f32 %v2553_v15, %v2552_v39  ;;  %v2555_v49 = vpop.f32.mrb[38].mxu0  ;;  %v3752_v9 = vadd.f32 %v2645_v13, %v2533_v44  ;;  %v1411_v13 = vld [vmem:[%s3780_s29 + $0x20] sm:$0xff] }
 0x1af   : > { %v2556_v6 = vpop.f32.mrb[39].mxu0 }
 0x1b0   : > { %v3754_v35 = vadd.f32 %v2556_v6, %v2555_v49  ;;  %v2646_v36 = vpop.f32.mrb[40].mxu1  ;;  %v1409_v6 = vld [vmem:[%s3780_s29] sm:$0xff] }
 0x1b1   : > { %v2647_v59 = vpop.f32.mrb[41].mxu1 }
 0x1b2   : > { %v2648_v51 = vadd.f32 %v2647_v59, %v2646_v36  ;;  %v2649_v24 = vpop.f32.mrb[42].mxu1 }
 0x1b3   : > { %v2650_v34 = vpop.f32.mrb[43].mxu1 }
 0x1b4   : > { %v2651_v50 = vadd.f32 %v2650_v34, %v2649_v24  ;;  %v2558_v42 = vpop.f32.mrb[40].mxu0  ;;  %v3758_v37 = vadd.f32 %v2648_v51, %v2536_v61  ;;  %v1412_v51 = vld [vmem:[%s3780_s29 + $0x30] sm:$0xff]  ;;  %v3789_v24 = vpop.permute.xlu1 %2797 }
 0x1b5   : > { %v2559_v16 = vpop.f32.mrb[41].mxu0 }
 0x1b6   : > { %v3760_v1 = vadd.f32 %v2559_v16, %v2558_v42  ;;  %v2561_v22 = vpop.f32.mrb[42].mxu0  ;;  %v3762_v44 = vadd.f32 %v2651_v50, %v2539_v53 }
 0x1b7   : > { %v2562_v10 = vpop.f32.mrb[43].mxu0 }
 0x1b8   : > { %v3764_v60 = vadd.f32 %v2562_v10, %v2561_v22  ;;  %v2652_v40 = vpop.f32.mrb[44].mxu1  ;;  %v1410_v22 = vld [vmem:[%s3780_s29 + $0x10] sm:$0xff] }
 0x1b9   : > { %v2653_v17 = vpop.f32.mrb[45].mxu1 }
 0x1ba   : > { %v2654_v23 = vadd.f32 %v2653_v17, %v2652_v40  ;;  %v2655_v3 = vpop.f32.mrb[46].mxu1  ;;  %v3797_v40 = vpop.permute.xlu0 %2792 }
 0x1bb   : > { %v2656_v18 = vpop.f32.mrb[47].mxu1 }
 0x1bc   : > { %v2657_v61 = vadd.f32 %v2656_v18, %v2655_v3  ;;  %v2564_v11 = vpop.f32.mrb[44].mxu0  ;;  %v3768_v12 = vadd.f32 %v2654_v23, %v2542_v32 }
 0x1bd   : > { %v2565_v54 = vpop.f32.mrb[45].mxu0 }
 0x1be   : > { %v3770_v46 = vadd.f32 %v2565_v54, %v2564_v11  ;;  %v2567_v53 = vpop.f32.mrb[46].mxu0  ;;  %v3773_v19 = vadd.f32 %v2657_v61, %v2545_v48  ;;  %v3799_v11 = vpop.permute.xlu1 %2807 }
 0x1bf   : > { %v2568_v28 = vpop.f32.mrb[47].mxu0 }
 0x1c0   : > { %v3775_v25 = vadd.f32 %v2568_v28, %v2567_v53  ;;  %v2658_v55 = vpop.f32.mrb[48].mxu1 }
 0x1c1   : > { %v2659_v58 = vpop.f32.mrb[49].mxu1 }
 0x1c2   : > { %v2660_v32 = vadd.f32 %v2659_v58, %v2658_v55  ;;  %v2661_v33 = vpop.f32.mrb[50].mxu1  ;;  %v1415_v55 = vld [vmem:[%s3780_s29 + $0x60] sm:$0xff] }
 0x1c3   : > { %v2662_v30 = vpop.f32.mrb[51].mxu1 }
 0x1c4   : > { %v2663_v29 = vadd.f32 %v2662_v30, %v2661_v33  ;;  %v2736_v48 = vpop.f32.mrb[48].mxu0  ;;  %v3783_v39 = vadd.f32 %v2660_v32, %v2548_v20  ;;  %v3805_v32 = vpop.permute.xlu0 %2802 }
 0x1c5   : > { %v1291_v15 = vadd.f32 %v2736_v48, %v3730_v21  ;;  %v1282_v49 = vpop.f32.mrb[49].mxu0  ;;  %v2799_v48 = vunpack.i.l.bf16 %v3789_v24 }
 0x1c6   : > { %v1283_v36 = vadd.f32 %v1282_v49, %v3726_v14  ;;  %v2737_v59 = vpop.f32.mrb[50].mxu0  ;;  %v3792_v34 = vadd.f32 %v2663_v29, %v3746_v52  ;;  %v1413_v29 = vld [vmem:[%s3780_s29 + $0x40] sm:$0xff]  ;;  %v1416_v49 = vld [vmem:[%s3780_s29 + $0x70] sm:$0xff] }
 0x1c7   : > { %v1443_v50 = vadd.f32 %v1411_v13, %v1291_v15  ;;  %v1294_v42 = vadd.f32 %v2737_v59, %v3732_v62  ;;  %v1285_v16 = vpop.f32.mrb[51].mxu0 }
 0x1c8   : > { %v1441_v20 = vadd.f32 %v1409_v6, %v1283_v36  ;;  %v1286_v10 = vadd.f32 %v1285_v16, %v3728_v0  ;;  %v2664_v21 = vpop.f32.mrb[52].mxu1  ;;  %v2794_v6 = vunpack.i.l.bf16 %v3797_v40  ;;  %v3816_v36 = vpop.permute.xlu1 %2817  ;;  %v2795_v16 = vunpack.i.h.bf16 %v3797_v40 }
 0x1c9   : > { %v2384_v14 = vmul.f32 -1.442695, %v1443_v50  ;;  %v1444_v17 = vadd.f32 %v1412_v51, %v1294_v42  ;;  %v2665_v23 = vpop.f32.mrb[53].mxu1  ;;  %v1414_v50 = vld [vmem:[%s3780_s29 + $0x50] sm:$0xff]  ;;  %v2800_v42 = vunpack.i.h.bf16 %v3789_v24 }
 0x1ca   : > { %v2382_v3 = vmul.f32 -1.442695, %v1441_v20  ;;  %v1442_v18 = vadd.f32 %v1410_v22, %v1286_v10  ;;  %v2666_v61 = vadd.f32 %v2665_v23, %v2664_v21  ;;  %v2667_v52 = vpop.f32.mrb[54].mxu1  ;;  %v2809_v10 = vunpack.i.l.bf16 %v3799_v11  ;;  %v3825_v21 = vpop.permute.xlu0 %2812 }
 0x1cb   : > { %2945 = vpow2.f32 %v2384_v14  ;;  %v2385_v62 = vmul.f32 -1.442695, %v1444_v17  ;;  %v2668_v54 = vpop.f32.mrb[55].mxu1 }
 0x1cc   : > { %2947 = vpow2.f32 %v2382_v3  ;;  %v2383_v0 = vmul.f32 -1.442695, %v1442_v18  ;;  %v2669_v53 = vadd.f32 %v2668_v54, %v2667_v52  ;;  %v2740_v28 = vpop.f32.mrb[52].mxu0  ;;  %v3803_v58 = vadd.f32 %v2666_v61, %v3750_v43  ;;  %v3830_v54 = vpop.permute.xlu1 %2827 }
 0x1cd   : > { %2949 = vpow2.f32 %v2385_v62  ;;  %v1307_v33 = vadd.f32 %v2740_v28, %v3738_v31  ;;  %v1298_v30 = vpop.f32.mrb[53].mxu0  ;;  %v2805_v3 = vunpack.i.h.bf16 %v3805_v32 }
 0x1ce   : > { %2951 = vpow2.f32 %v2383_v0  ;;  %v1299_v13 = vadd.f32 %v1298_v30, %v3734_v57  ;;  %v2741_v15 = vpop.f32.mrb[54].mxu0  ;;  %v3814_v43 = vadd.f32 %v2669_v53, %v3754_v35  ;;  %v2804_v35 = vunpack.i.l.bf16 %v3805_v32 }
 0x1cf   : > { %v1447_v59 = vadd.f32 %v1415_v55, %v1307_v33  ;;  %v1310_v51 = vadd.f32 %v2741_v15, %v3740_v38  ;;  %v1301_v31 = vpop.f32.mrb[55].mxu0  ;;  %v2810_v38 = vunpack.i.h.bf16 %v3799_v11  ;;  %v2814_v55 = vunpack.i.l.bf16 %v3825_v21 }
 0x1d0   : > { %v1445_v22 = vadd.f32 %v1413_v29, %v1299_v13  ;;  %v1302_v57 = vadd.f32 %v1301_v31, %v3736_v63  ;;  %v2670_v20 = vpop.f32.mrb[56].mxu1  ;;  %v2819_v63 = vunpack.i.l.bf16 %v3816_v36  ;;  %v1419_v13 = vld [vmem:[%s3780_s29 + $0xa0] sm:$0xff] }
 0x1d1   : > { %v2388_v14 = vmul.f32 -1.442695, %v1447_v59  ;;  %v1448_v17 = vadd.f32 %v1416_v49, %v1310_v51  ;;  %v2671_v23 = vpop.f32.mrb[57].mxu1  ;;  %v3838_v49 = vpop.permute.xlu0 %2822 }
 0x1d2   : > { %v2386_v18 = vmul.f32 -1.442695, %v1445_v22  ;;  %v1446_v61 = vadd.f32 %v1414_v50, %v1302_v57  ;;  %v2672_v52 = vadd.f32 %v2671_v23, %v2670_v20  ;;  %v2673_v62 = vpop.f32.mrb[58].mxu1  ;;  %v1417_v50 = vld [vmem:[%s3780_s29 + $0x80] sm:$0xff]  ;;  %v1420_v23 = vld [vmem:[%s3780_s29 + $0xb0] sm:$0xff] }
 0x1d3   : > { %2953 = vpow2.f32 %v2388_v14  ;;  %v2389_v0 = vmul.f32 -1.442695, %v1448_v17  ;;  %v2674_v53 = vpop.f32.mrb[59].mxu1 }
 0x1d4   : > { %2955 = vpow2.f32 %v2386_v18  ;;  %v2387_v33 = vmul.f32 -1.442695, %v1446_v61  ;;  %v2675_v30 = vadd.f32 %v2674_v53, %v2673_v62  ;;  %v2744_v29 = vpop.f32.mrb[56].mxu0  ;;  %v3836_v15 = vadd.f32 %v2672_v52, %v3760_v1  ;;  %v1418_v53 = vld [vmem:[%s3780_s29 + $0x90] sm:$0xff] }
 0x1d5   : > { %v2946_v59 = vpop.eup %2945  ;;  %2957 = vpow2.f32 %v2389_v0  ;;  %v1323_v51 = vadd.f32 %v2744_v29, %v3748_v5  ;;  %v1314_v31 = vpop.f32.mrb[57].mxu0 }
 0x1d6   : > { %v2948_v20 = vpop.eup %2947  ;;  %v1571_v14 = vadd.f32 1.0, %v2946_v59  ;;  %2959 = vpow2.f32 %v2387_v33  ;;  %v1315_v17 = vadd.f32 %v1314_v31, %v3742_v4  ;;  %v2745_v1 = vpop.f32.mrb[58].mxu0  ;;  %v3847_v18 = vadd.f32 %v2675_v30, %v3764_v60 }
 0x1d7   : > { %v2950_v61 = vpop.eup %2949  ;;  %v1569_v52 = vadd.f32 1.0, %v2948_v20  ;;  %v1451_v5 = vadd.f32 %v1419_v13, %v1323_v51  ;;  %v1326_v62 = vadd.f32 %v2745_v1, %v3752_v9  ;;  %v1317_v0 = vpop.f32.mrb[59].mxu0 }
 0x1d8   : > { %v2952_v57 = vpop.eup %2951  ;;  %2961 = vrcp.f32 %v1571_v14  ;;  %v1572_v59 = vadd.f32 1.0, %v2950_v61  ;;  %v1449_v33 = vadd.f32 %v1417_v50, %v1315_v17  ;;  %v1318_v4 = vadd.f32 %v1317_v0, %v3744_v7  ;;  %v2676_v31 = vpop.f32.mrb[60].mxu1  ;;  %v1421_v0 = vld [vmem:[%s3780_s29 + $0xc0] sm:$0xff] }
 0x1d9   : > { %2963 = vrcp.f32 %v1569_v52  ;;  %v1570_v22 = vadd.f32 1.0, %v2952_v57  ;;  %v2392_v60 = vmul.f32 -1.442695, %v1451_v5  ;;  %v1452_v30 = vadd.f32 %v1420_v23, %v1326_v62  ;;  %v2677_v28 = vpop.f32.mrb[61].mxu1  ;;  %v3853_v20 = vpop.permute.xlu1 %2837  ;;  %v1423_v52 = vld [vmem:[%s3780_s29 + $0xe0] sm:$0xff] }
 0x1da   : > { %2965 = vrcp.f32 %v1572_v59  ;;  %v2390_v9 = vmul.f32 -1.442695, %v1449_v33  ;;  %v1450_v13 = vadd.f32 %v1418_v53, %v1318_v4  ;;  %v2678_v51 = vadd.f32 %v2677_v28, %v2676_v31  ;;  %v2679_v1 = vpop.f32.mrb[62].mxu1  ;;  %v3855_v29 = vpop.permute.xlu0 %2832 }
 0x1db   : > { %2967 = vrcp.f32 %v1570_v22  ;;  %v2393_v50 = vmul.f32 -1.442695, %v1452_v30  ;;  %v2680_v7 = vpop.f32.mrb[63].mxu1  ;;  %v2830_v14 = vunpack.i.h.bf16 %v3830_v54  ;;  %v2825_v57 = vunpack.i.h.bf16 %v3838_v49  ;;  %v1424_v30 = vld [vmem:[%s3780_s29 + $0xf0] sm:$0xff] }
 0x1dc   : > { %2969 = vpow2.f32 %v2392_v60  ;;  %v2391_v17 = vmul.f32 -1.442695, %v1450_v13  ;;  %v2681_v23 = vadd.f32 %v2680_v7, %v2679_v1  ;;  %v2748_v61 = vpop.f32.mrb[60].mxu0  ;;  %v3861_v28 = vadd.f32 %v2678_v51, %v3770_v46  ;;  %v1422_v7 = vld [vmem:[%s3780_s29 + $0xd0] sm:$0xff] }
 0x1dd   : > { %v2954_v5 = vpop.eup %2953  ;;  %2971 = vpow2.f32 %v2390_v9  ;;  %v1339_v22 = vadd.f32 %v2748_v61, %v3768_v12  ;;  %v1330_v62 = vpop.f32.mrb[61].mxu0 }
 0x1de   : > { %v2956_v33 = vpop.eup %2955  ;;  %v1575_v4 = vadd.f32 1.0, %v2954_v5  ;;  %2973 = vpow2.f32 %v2393_v50  ;;  %v1331_v31 = vadd.f32 %v1330_v62, %v3758_v37  ;;  %v2749_v60 = vpop.f32.mrb[62].mxu0  ;;  %v3870_v46 = vadd.f32 %v2681_v23, %v3775_v25 }
 0x1df   : > { %v2958_v9 = vpop.eup %2957  ;;  %v1573_v13 = vadd.f32 1.0, %v2956_v33  ;;  %2975 = vpow2.f32 %v2391_v17  ;;  %v1455_v12 = vadd.f32 %v1423_v52, %v1339_v22  ;;  %v1342_v51 = vadd.f32 %v2749_v60, %v3773_v19  ;;  %v1333_v1 = vpop.f32.mrb[63].mxu0 }
 0x1e0   : > { %v2960_v61 = vpop.eup %2959  ;;  %2977 = vrcp.f32 %v1575_v4  ;;  %v1576_v5 = vadd.f32 1.0, %v2958_v9  ;;  %v1453_v50 = vadd.f32 %v1421_v0, %v1331_v31  ;;  %v1334_v37 = vadd.f32 %v1333_v1, %v3762_v44  ;;  %v2682_v62 = vpop.f32.mrb[64].mxu1 }
 0x1e1   : > { %2979 = vrcp.f32 %v1573_v13  ;;  %v1574_v59 = vadd.f32 1.0, %v2960_v61  ;;  %v2396_v25 = vmul.f32 -1.442695, %v1455_v12  ;;  %v1456_v23 = vadd.f32 %v1424_v30, %v1342_v51  ;;  %v2683_v33 = vpop.f32.mrb[65].mxu1  ;;  %v1427_v12 = vld [vmem:[%s3780_s29 + $0x120] sm:$0xff] }
 0x1e2   : > { %v2962_v53 = vpop.eup %2961  ;;  %2981 = vrcp.f32 %v1576_v5  ;;  %v2394_v17 = vmul.f32 -1.442695, %v1453_v50  ;;  %v1454_v52 = vadd.f32 %v1422_v7, %v1334_v37  ;;  %v3876_v19 = vadd.f32 %v2683_v33, %v2682_v62  ;;  %v2685_v22 = vpop.f32.mrb[66].mxu1  ;;  %v1425_v5 = vld [vmem:[%s3780_s29 + $0x100] sm:$0xff]  ;;  %v1428_v33 = vld [vmem:[%s3780_s29 + $0x130] sm:$0xff] }
 0x1e3   : > { %v2964_v4 = vpop.eup %2963  ;;  %2983 = vrcp.f32 %v1574_v59  ;;  %v2397_v0 = vmul.f32 -1.442695, %v1456_v23  ;;  %v1827_v44 = vmul.f32 %v2962_v53, %v2799_v48  ;;  %v2686_v31 = vpop.f32.mrb[67].mxu1  ;;  %2054 = vrot.lane.b32.xlu0 %v2962_v53, %s3081_s10  ;;  %v2840_v60 = vunpack.i.h.bf16 %v3853_v20 }
 0x1e4   : > { %v2966_v30 = vpop.eup %2965  ;;  %2985 = vpow2.f32 %v2396_v25  ;;  %v2395_v9 = vmul.f32 -1.442695, %v1454_v52  ;;  %v1825_v59 = vmul.f32 %v2964_v4, %v2794_v6  ;;  %v3889_v13 = vadd.f32 %v2686_v31, %v2685_v22  ;;  %v2752_v48 = vpop.f32.mrb[64].mxu0 }
 0x1e5   : > { %v2968_v51 = vpop.eup %2967  ;;  %2987 = vpow2.f32 %v2394_v17  ;;  %v1828_v53 = vmul.f32 %v2966_v30, %v2800_v42  ;;  %v2452_v1 = vpack.c.bf16 %v1827_v44, %v1827_v44  ;;  %v1355_v7 = vadd.f32 %v2752_v48, %v3803_v58  ;;  %v1346_v61 = vpop.f32.mrb[65].mxu0  ;;  %2056 = vrot.lane.b32.xlu1 %v2966_v30, %s3081_s10 }
 0x1e6   : > { %v2970_v50 = vpop.eup %2969  ;;  %2989 = vpow2.f32 %v2397_v0  ;;  %v1826_v6 = vmul.f32 %v2968_v51, %v2795_v16  ;;  %v2450_v37 = vpack.c.bf16 %v1825_v59, %v1825_v59  ;;  %v1347_v62 = vadd.f32 %v1346_v61, %v3783_v39  ;;  %v2753_v24 = vpop.f32.mrb[66].mxu0  ;;  %v1426_v0 = vld [vmem:[%s3780_s29 + $0x110] sm:$0xff] }
 0x1e7   : > { %v2972_v42 = vpop.eup %2971  ;;  %v1579_v25 = vadd.f32 1.0, %v2970_v50  ;;  %2991 = vpow2.f32 %v2395_v9  ;;  %v2453_v58 = vpack.c.bf16 %v1828_v53, %v1828_v53  ;;  %1988 = vst.msk [vmem:[%s3885_s8 + $0x8] sm:$0xf] %vm1985_vm1, %v2452_v1  ;;  %v1459_v23 = vadd.f32 %v1427_v12, %v1355_v7  ;;  %v1349_v17 = vpop.f32.mrb[67].mxu0  ;;  %2050 = vrot.lane.b32.xlu0 %v2964_v4, %s3081_s10 }
 0x1e8   : > { %v2974_v40 = vpop.eup %2973  ;;  %v1577_v16 = vadd.f32 1.0, %v2972_v42  ;;  %v2451_v52 = vpack.c.bf16 %v1826_v6, %v1826_v6  ;;  %1986 = vst.msk [vmem:[%s3885_s8] sm:$0xf] %vm1985_vm1, %v2450_v37  ;;  %v1457_v39 = vadd.f32 %v1425_v5, %v1347_v62  ;;  %v1358_v22 = vadd.f32 %v2753_v24, %v3814_v43  ;;  %v2688_v44 = vpop.f32.mrb[68].mxu1 }
 0x1e9   : > { %v2976_v31 = vpop.eup %2975  ;;  %2993 = vrcp.f32 %v1579_v25  ;;  %v1580_v30 = vadd.f32 1.0, %v2974_v40  ;;  %1989 = vst.msk [vmem:[%s3885_s8 + $0xc] sm:$0xf] %vm1985_vm1, %v2453_v58  ;;  %v2400_v9 = vmul.f32 -1.442695, %v1459_v23  ;;  %v1350_v59 = vadd.f32 %v1349_v17, %v3792_v34  ;;  %v2689_v4 = vpop.f32.mrb[69].mxu1  ;;  %2052 = vrot.lane.b32.xlu1 %v2968_v51, %s3081_s10 }
 0x1ea   : > { %v2978_v48 = vpop.eup %2977  ;;  %2995 = vrcp.f32 %v1577_v16  ;;  %v1578_v12 = vadd.f32 1.0, %v2976_v31  ;;  %1987 = vst.msk [vmem:[%s3885_s8 + $0x4] sm:$0xf] %vm1985_vm1, %v2451_v52  ;;  %v2398_v53 = vmul.f32 -1.442695, %v1457_v39  ;;  %v1460_v43 = vadd.f32 %v1428_v33, %v1358_v22  ;;  %v2691_v1 = vpop.f32.mrb[70].mxu1 }
 0x1eb   : > { %v2980_v7 = vpop.eup %2979  ;;  %2997 = vrcp.f32 %v1580_v30  ;;  %v1458_v61 = vadd.f32 %v1426_v0, %v1350_v59  ;;  %v1831_v5 = vmul.f32 %v2978_v48, %v2809_v10  ;;  %v3916_v50 = vadd.f32 %v2689_v4, %v2688_v44  ;;  %v2692_v34 = vpop.f32.mrb[71].mxu1  ;;  %2062 = vrot.lane.b32.xlu0 %v2978_v48, %s3081_s10  ;;  %v1431_v23 = vld [vmem:[%s3780_s29 + $0x160] sm:$0xff]  ;;  %v1432_v30 = vld [vmem:[%s3780_s29 + $0x170] sm:$0xff] }
 0x1ec   : > { %v2982_v51 = vpop.eup %2981  ;;  %2999 = vrcp.f32 %v1578_v12  ;;  %v2401_v6 = vmul.f32 -1.442695, %v1460_v43  ;;  %v1829_v37 = vmul.f32 %v2980_v7, %v2804_v35  ;;  %v3921_v62 = vadd.f32 %v2692_v34, %v2691_v1  ;;  %v2756_v24 = vpop.f32.mrb[68].mxu0  ;;  %v1429_v52 = vld [vmem:[%s3780_s29 + $0x140] sm:$0xff]  ;;  %v1430_v12 = vld [vmem:[%s3780_s29 + $0x150] sm:$0xff] }
 0x1ed   : > { %v2984_v42 = vpop.eup %2983  ;;  %3001 = vpow2.f32 %v2400_v9  ;;  %v2399_v25 = vmul.f32 -1.442695, %v1458_v61  ;;  %v1832_v10 = vmul.f32 %v2982_v51, %v2810_v38  ;;  %v2456_v58 = vpack.c.bf16 %v1831_v5, %v1831_v5  ;;  %v1362_v33 = vpop.f32.mrb[69].mxu0  ;;  %2064 = vrot.lane.b32.xlu1 %v2982_v51, %s3081_s10 }
 0x1ee   : > { %v2986_v17 = vpop.eup %2985  ;;  %3003 = vpow2.f32 %v2398_v53  ;;  %v1830_v35 = vmul.f32 %v2984_v42, %v2805_v3  ;;  %v2454_v40 = vpack.c.bf16 %v1829_v37, %v1829_v37  ;;  %v1371_v16 = vadd.f32 %v2756_v24, %v3861_v28  ;;  %v2757_v39 = vpop.f32.mrb[70].mxu0 }
 0x1ef   : > { %v2988_v11 = vpop.eup %2987  ;;  %v1583_v38 = vadd.f32 1.0, %v2986_v17  ;;  %3005 = vpow2.f32 %v2401_v6  ;;  %v2457_v22 = vpack.c.bf16 %v1832_v10, %v1832_v10  ;;  %1992 = vst.msk [vmem:[%s3885_s8 + $0x18] sm:$0xf] %vm1985_vm1, %v2456_v58  ;;  %v1363_v0 = vadd.f32 %v1362_v33, %v3836_v15  ;;  %v1365_v44 = vpop.f32.mrb[71].mxu0  ;;  %2058 = vrot.lane.b32.xlu0 %v2980_v7, %s3081_s10 }
 0x1f0   : > { %v2990_v32 = vpop.eup %2989  ;;  %v1581_v3 = vadd.f32 1.0, %v2988_v11  ;;  %3007 = vpow2.f32 %v2399_v25  ;;  %v2455_v28 = vpack.c.bf16 %v1830_v35, %v1830_v35  ;;  %1990 = vst.msk [vmem:[%s3885_s8 + $0x10] sm:$0xf] %vm1985_vm1, %v2454_v40  ;;  %v1463_v31 = vadd.f32 %v1431_v23, %v1371_v16  ;;  %v2694_v9 = vpop.f32.mrb[72].mxu1 }
 0x1f1   : > { %v2992_v59 = vpop.eup %2991  ;;  %3009 = vrcp.f32 %v1583_v38  ;;  %v1584_v4 = vadd.f32 1.0, %v2990_v32  ;;  %1993 = vst.msk [vmem:[%s3885_s8 + $0x1c] sm:$0xf] %vm1985_vm1, %v2457_v22  ;;  %v1461_v15 = vadd.f32 %v1429_v52, %v1363_v0  ;;  %v1374_v48 = vadd.f32 %v2757_v39, %v3870_v46  ;;  %v2695_v53 = vpop.f32.mrb[73].mxu1  ;;  %2060 = vrot.lane.b32.xlu1 %v2984_v42, %s3081_s10  ;;  %v1435_v39 = vld [vmem:[%s3780_s29 + $0x1a0] sm:$0xff] }
 0x1f2   : > { %3011 = vrcp.f32 %v1581_v3  ;;  %v1582_v43 = vadd.f32 1.0, %v2992_v59  ;;  %1991 = vst.msk [vmem:[%s3885_s8 + $0x14] sm:$0xf] %vm1985_vm1, %v2455_v28  ;;  %v2404_v1 = vmul.f32 -1.442695, %v1463_v31  ;;  %v1366_v7 = vadd.f32 %v1365_v44, %v3847_v18  ;;  %v2697_v61 = vpop.f32.mrb[74].mxu1 }
 0x1f3   : > { %v2994_v5 = vpop.eup %2993  ;;  %3013 = vrcp.f32 %v1584_v4  ;;  %v2402_v34 = vmul.f32 -1.442695, %v1461_v15  ;;  %v1464_v51 = vadd.f32 %v1432_v30, %v1374_v48  ;;  %v3946_v6 = vadd.f32 %v2695_v53, %v2694_v9  ;;  %v2698_v37 = vpop.f32.mrb[75].mxu1  ;;  %v1433_v59 = vld [vmem:[%s3780_s29 + $0x180] sm:$0xff] }
 0x1f4   : > { %v2996_v46 = vpop.eup %2995  ;;  %3015 = vrcp.f32 %v1582_v43  ;;  %v1462_v24 = vadd.f32 %v1430_v12, %v1366_v7  ;;  %v1835_v42 = vmul.f32 %v2994_v5, %v2819_v63  ;;  %v3950_v25 = vadd.f32 %v2698_v37, %v2697_v61  ;;  %2070 = vrot.lane.b32.xlu0 %v2994_v5, %s3081_s10  ;;  %v2760_v18 = vpop.f32.mrb[72].mxu0  ;;  %v1436_v12 = vld [vmem:[%s3780_s29 + $0x1b0] sm:$0xff] }
 0x1f5   : > { %v2998_v10 = vpop.eup %2997  ;;  %3017 = vpow2.f32 %v2404_v1  ;;  %v2405_v58 = vmul.f32 -1.442695, %v1464_v51  ;;  %v1833_v23 = vmul.f32 %v2996_v46, %v2814_v55  ;;  %v1226_v33 = vadd.f32 %v3916_v50, %v3714_v2  ;;  %v1378_v17 = vpop.f32.mrb[73].mxu0  ;;  %v1434_v61 = vld [vmem:[%s3780_s29 + $0x190] sm:$0xff] }
 0x1f6   : > { %v3000_v35 = vpop.eup %2999  ;;  %3019 = vpow2.f32 %v2402_v34  ;;  %v2403_v40 = vmul.f32 -1.442695, %v1462_v24  ;;  %v4187_v63 = vunpack.i.h.bf16 %v3816_v36  ;;  %v2460_v52 = vpack.c.bf16 %v1835_v42, %v1835_v42  ;;  %2072 = vrot.lane.b32.xlu1 %v2998_v10, %s3081_s10  ;;  %v2761_v11 = vpop.f32.mrb[74].mxu0 }
 0x1f7   : > { %v3002_v38 = vpop.eup %3001  ;;  %3021 = vpow2.f32 %v2405_v58  ;;  %v4188_v55 = vunpack.i.h.bf16 %v3825_v21  ;;  %v2458_v2 = vpack.c.bf16 %v1833_v23, %v1833_v23  ;;  %v1387_v50 = vadd.f32 %v2760_v18, %v1226_v33  ;;  %v1381_v0 = vpop.f32.mrb[75].mxu0 }
 0x1f8   : > { %v1836_v16 = vmul.f32 %v2998_v10, %v4187_v63  ;;  %v3004_v44 = vpop.eup %3003  ;;  %v1587_v32 = vadd.f32 1.0, %v3002_v38  ;;  %3023 = vpow2.f32 %v2403_v40  ;;  %1996 = vst.msk [vmem:[%s3885_s8 + $0x28] sm:$0xf] %vm1985_vm1, %v2460_v52  ;;  %v1218_v3 = vadd.f32 %v3876_v19, %v3710_v26  ;;  %2066 = vrot.lane.b32.xlu0 %v2996_v46, %s3081_s10  ;;  %v2700_v21 = vpop.f32.mrb[76].mxu1 }
 0x1f9   : > { %v1834_v22 = vmul.f32 %v3000_v35, %v4188_v55  ;;  %v3006_v28 = vpop.eup %3005  ;;  %v1585_v31 = vadd.f32 1.0, %v3004_v44  ;;  %1994 = vst.msk [vmem:[%s3885_s8 + $0x20] sm:$0xf] %vm1985_vm1, %v2458_v2  ;;  %v1467_v9 = vadd.f32 %v1435_v39, %v1387_v50  ;;  %v1229_v4 = vadd.f32 %v3921_v62, %v3716_v45  ;;  %v2701_v15 = vpop.f32.mrb[77].mxu1 }
 0x1fa   : > { %v2461_v36 = vpack.c.bf16 %v1836_v16, %v1836_v16  ;;  %v3008_v48 = vpop.eup %3007  ;;  %3025 = vrcp.f32 %v1587_v32  ;;  %v1588_v26 = vadd.f32 1.0, %v3006_v28  ;;  %v1379_v19 = vadd.f32 %v1378_v17, %v1218_v3  ;;  %2068 = vrot.lane.b32.xlu1 %v3000_v35, %s3081_s10  ;;  %v2703_v43 = vpop.f32.mrb[78].mxu1  ;;  %v1439_v28 = vld [vmem:[%s3780_s29 + $0x1e0] sm:$0xff] }
 0x1fb   : > { %v2459_v30 = vpack.c.bf16 %v1834_v22, %v1834_v22  ;;  %v1221_v53 = vadd.f32 %v3889_v13, %v3712_v27  ;;  %v3010_v1 = vpop.eup %3009  ;;  %3027 = vrcp.f32 %v1585_v31  ;;  %v1586_v7 = vadd.f32 1.0, %v3008_v48  ;;  %v2704_v5 = vpop.f32.mrb[79].mxu1  ;;  %v1437_v31 = vld [vmem:[%s3780_s29 + $0x1c0] sm:$0xff]  ;;  %v1438_v48 = vld [vmem:[%s3780_s29 + $0x1d0] sm:$0xff] }
 0x1fc   : > { %1997 = vst.msk [vmem:[%s3885_s8 + $0x2c] sm:$0xf] %vm1985_vm1, %v2461_v36  ;;  %v2408_v45 = vmul.f32 -1.442695, %v1467_v9  ;;  %v1390_v62 = vadd.f32 %v2761_v11, %v1229_v4  ;;  %v3012_v34 = vpop.eup %3011  ;;  %3029 = vrcp.f32 %v1588_v26  ;;  %v1465_v51 = vadd.f32 %v1433_v59, %v1379_v19  ;;  %2078 = vrot.lane.b32.xlu0 %v3010_v1, %s3081_s10  ;;  %v2764_v27 = vpop.f32.mrb[76].mxu0 }
 0x1fd   : > { %1995 = vst.msk [vmem:[%s3885_s8 + $0x24] sm:$0xf] %vm1985_vm1, %v2459_v30  ;;  %v1382_v37 = vadd.f32 %v1381_v0, %v1221_v53  ;;  %v4189_v46 = vunpack.i.l.bf16 %v3830_v54  ;;  %v3014_v13 = vpop.eup %3013  ;;  %3031 = vrcp.f32 %v1586_v7  ;;  %v2702_v18 = vadd.f32 %v2701_v15, %v2700_v21  ;;  %v1394_v23 = vpop.f32.mrb[77].mxu0  ;;  %v1440_v15 = vld [vmem:[%s3780_s29 + $0x1f0] sm:$0xff] }
 0x1fe   : > { %v1468_v42 = vadd.f32 %v1436_v12, %v1390_v62  ;;  %v4190_v10 = vunpack.i.l.bf16 %v3838_v49  ;;  %v3016_v33 = vpop.eup %3015  ;;  %3033 = vpow2.f32 %v2408_v45  ;;  %v2406_v17 = vmul.f32 -1.442695, %v1465_v51  ;;  %2080 = vrot.lane.b32.xlu1 %v3014_v13, %s3081_s10  ;;  %v2765_v63 = vpop.f32.mrb[78].mxu0 }
 0x1ff   : > { %v1839_v24 = vmul.f32 %v3010_v1, %v4189_v46  ;;  %v1466_v35 = vadd.f32 %v1434_v61, %v1382_v37  ;;  %v1840_v40 = vmul.f32 %v3014_v13, %v2830_v14  ;;  %v3018_v16 = vpop.eup %3017  ;;  %v1838_v11 = vmul.f32 %v3016_v33, %v2825_v57  ;;  %v1397_v55 = vpop.f32.mrb[79].mxu0 }
 0x200   : > { %v1837_v58 = vmul.f32 %v3012_v34, %v4190_v10  ;;  %v2409_v52 = vmul.f32 -1.442695, %v1468_v42  ;;  %v3020_v22 = vpop.eup %3019  ;;  %v1591_v2 = vadd.f32 1.0, %v3018_v16  ;;  %3035 = vpow2.f32 %v2406_v17  ;;  %2074 = vrot.lane.b32.xlu0 %v3012_v34, %s3081_s10  ;;  %v2848_v7 = vpop.permute.xlu1 %2847 }
 0x201   : > { %v2464_v39 = vpack.c.bf16 %v1839_v24, %v1839_v24  ;;  %v2407_v50 = vmul.f32 -1.442695, %v1466_v35  ;;  %v2465_v54 = vpack.c.bf16 %v1840_v40, %v1840_v40  ;;  %v3022_v14 = vpop.eup %3021  ;;  %v1589_v0 = vadd.f32 1.0, %v3020_v22  ;;  %v2843_v51 = vpop.permute.xlu0 %2842 }
 0x202   : > { %v2462_v38 = vpack.c.bf16 %v1837_v58, %v1837_v58  ;;  %3037 = vpow2.f32 %v2409_v52  ;;  %v2463_v49 = vpack.c.bf16 %v1838_v11, %v1838_v11  ;;  %v2705_v57 = vadd.f32 %v2704_v5, %v2703_v43  ;;  %v3024_v44 = vpop.eup %3023  ;;  %2076 = vrot.lane.b32.xlu1 %v3016_v33, %s3081_s10 }
 0x203   : > { %2000 = vst.msk [vmem:[%s3885_s8 + $0x38] sm:$0xf] %vm1985_vm1, %v2464_v39  ;;  %3039 = vrcp.f32 %v1591_v2  ;;  %v1592_v32 = vadd.f32 1.0, %v3022_v14  ;;  %2001 = vst.msk [vmem:[%s3885_s8 + $0x3c] sm:$0xf] %vm1985_vm1, %v2465_v54  ;;  %v1242_v36 = vadd.f32 %v2702_v18, %v3722_v47  ;;  %v1234_v3 = vadd.f32 %v3946_v6, %v3718_v8 }
 0x204   : > { %1998 = vst.msk [vmem:[%s3885_s8 + $0x30] sm:$0xf] %vm1985_vm1, %v2462_v38  ;;  %3041 = vrcp.f32 %v1589_v0  ;;  %v1590_v21 = vadd.f32 1.0, %v3024_v44  ;;  %1999 = vst.msk [vmem:[%s3885_s8 + $0x34] sm:$0xf] %vm1985_vm1, %v2463_v49  ;;  %v1245_v30 = vadd.f32 %v2705_v57, %v3724_v56  ;;  %v1237_v9 = vadd.f32 %v3950_v25, %v3720_v41  ;;  %v3026_v59 = vpop.eup %3025 }
 0x205   : > { %3043 = vrcp.f32 %v1592_v32  ;;  %v1403_v4 = vadd.f32 %v2764_v27, %v1242_v36  ;;  %v1395_v47 = vadd.f32 %v1394_v23, %v1234_v3  ;;  %v2835_v8 = vunpack.i.h.bf16 %v3855_v29  ;;  %v3028_v6 = vpop.eup %3027  ;;  %2086 = vrot.lane.b32.xlu0 %v3026_v59, %s3081_s10  ;;  %v2853_v44 = vpop.permute.xlu0 %2852 }
 0x206   : > { %3045 = vrcp.f32 %v1590_v21  ;;  %v1406_v26 = vadd.f32 %v2765_v63, %v1245_v30  ;;  %v1398_v19 = vadd.f32 %v1397_v55, %v1237_v9  ;;  %v4191_v12 = vunpack.i.l.bf16 %v3853_v20  ;;  %v3030_v56 = vpop.eup %3029 }
 0x207   : > { %3047 = vpow2.f32 %v2407_v50  ;;  %v1471_v41 = vadd.f32 %v1439_v28, %v1403_v4  ;;  %v1469_v25 = vadd.f32 %v1437_v31, %v1395_v47  ;;  %v4192_v43 = vunpack.i.l.bf16 %v3855_v29  ;;  %v3032_v45 = vpop.eup %3031  ;;  %2088 = vrot.lane.b32.xlu1 %v3030_v56, %s3081_s10  ;;  %v2858_v50 = vpop.permute.xlu1 %2857 }
 0x208   : > { %v1843_v53 = vmul.f32 %v3026_v59, %v4191_v12  ;;  %v1472_v62 = vadd.f32 %v1440_v15, %v1406_v26  ;;  %v1470_v61 = vadd.f32 %v1438_v48, %v1398_v19  ;;  %v1844_v5 = vmul.f32 %v3030_v56, %v2840_v60  ;;  %v3034_v37 = vpop.eup %3033 }
 0x209   : > { %v1841_v1 = vmul.f32 %v3028_v6, %v4192_v43  ;;  %v2412_v46 = vmul.f32 -1.442695, %v1471_v41  ;;  %v2410_v24 = vmul.f32 -1.442695, %v1469_v25  ;;  %v1842_v27 = vmul.f32 %v3032_v45, %v2835_v8  ;;  %2082 = vrot.lane.b32.xlu0 %v3028_v6, %s3081_s10 }
 0x20a   : > { %v2468_v34 = vpack.c.bf16 %v1843_v53, %v1843_v53  ;;  %v1595_v13 = vadd.f32 1.0, %v3034_v37  ;;  %v2469_v42 = vpack.c.bf16 %v1844_v5, %v1844_v5  ;;  %v2849_v18 = vunpack.i.l.bf16 %v2848_v7  ;;  %v3036_v20 = vpop.eup %3035 }
 0x20b   : > { %v2466_v29 = vpack.c.bf16 %v1841_v1, %v1841_v1  ;;  %3049 = vpow2.f32 %v2412_v46  ;;  %v2467_v60 = vpack.c.bf16 %v1842_v27, %v1842_v27  ;;  %v2844_v10 = vunpack.i.l.bf16 %v2843_v51  ;;  %2084 = vrot.lane.b32.xlu1 %v3032_v45, %s3081_s10  ;;  %v2868_v43 = vpop.permute.xlu1 %2867 }
 0x20c   : > { %2004 = vst.msk [vmem:[%s3885_s8 + $0x48] sm:$0xf] %vm1985_vm1, %v2468_v34  ;;  %v3038_v58 = vpop.eup %3037  ;;  %3051 = vrcp.f32 %v1595_v13  ;;  %v1593_v23 = vadd.f32 1.0, %v3036_v20  ;;  %v2413_v33 = vmul.f32 -1.442695, %v1472_v62  ;;  %v2850_v17 = vunpack.i.h.bf16 %v2848_v7  ;;  %v2863_v7 = vpop.permute.xlu0 %2862 }
 0x20d   : > { %2002 = vst.msk [vmem:[%s3885_s8 + $0x40] sm:$0xf] %vm1985_vm1, %v2466_v29  ;;  %2005 = vst.msk [vmem:[%s3885_s8 + $0x4c] sm:$0xf] %vm1985_vm1, %v2469_v42  ;;  %v3040_v35 = vpop.eup %3039  ;;  %v1596_v40 = vadd.f32 1.0, %v3038_v58  ;;  %3053 = vpow2.f32 %v2410_v24  ;;  %v2845_v16 = vunpack.i.h.bf16 %v2843_v51  ;;  %v2859_v36 = vunpack.i.l.bf16 %v2858_v50 }
 0x20e   : > { %v2411_v63 = vmul.f32 -1.442695, %v1470_v61  ;;  %2003 = vst.msk [vmem:[%s3885_s8 + $0x44] sm:$0xf] %vm1985_vm1, %v2467_v60  ;;  %v3042_v52 = vpop.eup %3041  ;;  %3055 = vrcp.f32 %v1593_v23  ;;  %v1847_v39 = vmul.f32 %v3040_v35, %v2849_v18  ;;  %2094 = vrot.lane.b32.xlu0 %v3040_v35, %s3081_s10  ;;  %v2854_v21 = vunpack.i.l.bf16 %v2853_v44 }
 0x20f   : > { %v3044_v11 = vpop.eup %3043  ;;  %3057 = vrcp.f32 %v1596_v40  ;;  %v1845_v38 = vmul.f32 %v3042_v52, %v2844_v10  ;;  %v2860_v30 = vunpack.i.h.bf16 %v2858_v50  ;;  %v2855_v53 = vunpack.i.h.bf16 %v2853_v44 }
 0x210   : > { %v3046_v55 = vpop.eup %3045  ;;  %3059 = vpow2.f32 %v2413_v33  ;;  %v1848_v22 = vmul.f32 %v3044_v11, %v2850_v17  ;;  %v2472_v2 = vpack.c.bf16 %v1847_v39, %v1847_v39  ;;  %2096 = vrot.lane.b32.xlu1 %v3044_v11, %s3081_s10  ;;  %v2869_v62 = vunpack.i.l.bf16 %v2868_v43 }
 0x211   : > { %v3048_v54 = vpop.eup %3047  ;;  %3061 = vpow2.f32 %v2411_v63  ;;  %v1846_v14 = vmul.f32 %v3046_v55, %v2845_v16  ;;  %v2470_v0 = vpack.c.bf16 %v1845_v38, %v1845_v38  ;;  %v2864_v5 = vunpack.i.l.bf16 %v2863_v7 }
 0x212   : > { %v1594_v49 = vadd.f32 1.0, %v3048_v54  ;;  %v2473_v57 = vpack.c.bf16 %v1848_v22, %v1848_v22  ;;  %2008 = vst.msk [vmem:[%s3885_s8 + $0x58] sm:$0xf] %vm1985_vm1, %v2472_v2  ;;  %2090 = vrot.lane.b32.xlu0 %v3042_v52, %s3081_s10  ;;  %v2870_v46 = vunpack.i.h.bf16 %v2868_v43  ;;  %v2865_v27 = vunpack.i.h.bf16 %v2863_v7 }
 0x213   : > { %v2471_v32 = vpack.c.bf16 %v1846_v14, %v1846_v14  ;;  %2006 = vst.msk [vmem:[%s3885_s8 + $0x50] sm:$0xf] %vm1985_vm1, %v2470_v0 }
 0x214   : > { %3063 = vrcp.f32 %v1594_v49  ;;  %2009 = vst.msk [vmem:[%s3885_s8 + $0x5c] sm:$0xf] %vm1985_vm1, %v2473_v57  ;;  %2092 = vrot.lane.b32.xlu1 %v3046_v55, %s3081_s10 }
 0x215   : > { %v3050_v3 = vpop.eup %3049  ;;  %2007 = vst.msk [vmem:[%s3885_s8 + $0x54] sm:$0xf] %vm1985_vm1, %v2471_v32 }
 0x216   : > { %v3052_v28 = vpop.eup %3051  ;;  %v1599_v31 = vadd.f32 1.0, %v3050_v3 }
 0x217   : > { %v3054_v9 = vpop.eup %3053  ;;  %v1851_v59 = vmul.f32 %v3052_v28, %v2859_v36  ;;  %2102 = vrot.lane.b32.xlu0 %v3052_v28, %s3081_s10 }
 0x218   : > { %v3056_v4 = vpop.eup %3055  ;;  %3065 = vrcp.f32 %v1599_v31  ;;  %v1597_v47 = vadd.f32 1.0, %v3054_v9 }
 0x219   : > { %v3058_v15 = vpop.eup %3057  ;;  %v2476_v48 = vpack.c.bf16 %v1851_v59, %v1851_v59  ;;  %v1849_v8 = vmul.f32 %v3056_v4, %v2854_v21 }
 0x21a   : > { %v3060_v6 = vpop.eup %3059  ;;  %3067 = vrcp.f32 %v1597_v47  ;;  %v1852_v26 = vmul.f32 %v3058_v15, %v2860_v30  ;;  %2104 = vrot.lane.b32.xlu1 %v3058_v15, %s3081_s10 }
 0x21b   : > { %v3062_v19 = vpop.eup %3061  ;;  %v1600_v12 = vadd.f32 1.0, %v3060_v6  ;;  %2012 = vst.msk [vmem:[%s3885_s8 + $0x68] sm:$0xf] %vm1985_vm1, %v2476_v48  ;;  %v2474_v56 = vpack.c.bf16 %v1849_v8, %v1849_v8  ;;  %2098 = vrot.lane.b32.xlu0 %v3056_v4, %s3081_s10 }
 0x21c   : > { %v1598_v41 = vadd.f32 1.0, %v3062_v19  ;;  %v2477_v25 = vpack.c.bf16 %v1852_v26, %v1852_v26 }
 0x21d   : > { %3069 = vrcp.f32 %v1600_v12  ;;  %2010 = vst.msk [vmem:[%s3885_s8 + $0x60] sm:$0xf] %vm1985_vm1, %v2474_v56 }
 0x21e   : > { %v3064_v1 = vpop.eup %3063  ;;  %3071 = vrcp.f32 %v1598_v41  ;;  %2013 = vst.msk [vmem:[%s3885_s8 + $0x6c] sm:$0xf] %vm1985_vm1, %v2477_v25 }
 0x21f   : > { %v1850_v45 = vmul.f32 %v3064_v1, %v2855_v53  ;;  %2100 = vrot.lane.b32.xlu1 %v3064_v1, %s3081_s10 }
 0x221   : > { %v2475_v61 = vpack.c.bf16 %v1850_v45, %v1850_v45 }
 0x222   : > { %v3066_v34 = vpop.eup %3065 }
 0x223   : > { %2011 = vst.msk [vmem:[%s3885_s8 + $0x64] sm:$0xf] %vm1985_vm1, %v2475_v61  ;;  %v1855_v51 = vmul.f32 %v3066_v34, %v2869_v62 }
 0x224   : > { %v3068_v37 = vpop.eup %3067 }
 0x225   : > { %v2480_v24 = vpack.c.bf16 %v1855_v51, %v1855_v51  ;;  %v1853_v29 = vmul.f32 %v3068_v37, %v2864_v5  ;;  %2106 = vrot.lane.b32.xlu0 %v3068_v37, %s3081_s10 }
 0x227   : > { %v3070_v13 = vpop.eup %3069  ;;  %2016 = vst.msk [vmem:[%s3885_s8 + $0x78] sm:$0xf] %vm1985_vm1, %v2480_v24  ;;  %v2478_v42 = vpack.c.bf16 %v1853_v29, %v1853_v29 }
 0x228   : > { %v3072_v18 = vpop.eup %3071  ;;  %v1856_v20 = vmul.f32 %v3070_v13, %v2870_v46 }
 0x229   : > { %v1854_v60 = vmul.f32 %v3072_v18, %v2865_v27  ;;  %2014 = vst.msk [vmem:[%s3885_s8 + $0x70] sm:$0xf] %vm1985_vm1, %v2478_v42  ;;  %2108 = vrot.lane.b32.xlu1 %v3072_v18, %s3081_s10  ;;  %2110 = vrot.lane.b32.xlu0 %v3066_v34, %s3081_s10 }
 0x22a   : > { %v2481_v10 = vpack.c.bf16 %v1856_v20, %v1856_v20 }
 0x22b   : > { %v2479_v58 = vpack.c.bf16 %v1854_v60, %v1854_v60 }
 0x22c   : > { %2017 = vst.msk [vmem:[%s3885_s8 + $0x7c] sm:$0xf] %vm1985_vm1, %v2481_v10 }
 0x22d   : > { %2015 = vst.msk [vmem:[%s3885_s8 + $0x74] sm:$0xf] %vm1985_vm1, %v2479_v58  ;;  %2112 = vrot.lane.b32.xlu1 %v3070_v13, %s3081_s10 }
 0x255   : > { %v2055_v23 = vpop.permute.xlu0 %2054 }
 0x256   : > { %2148 = vst.msk [vmem:[%s4071_s13 + $0x10] sm:$0xff] %vm496_vm0, %v2055_v23 }
 0x257   : > { %v2057_v33 = vpop.permute.xlu1 %2056 }
 0x258   : > { %2149 = vst.msk [vmem:[%s4071_s13 + $0x18] sm:$0xff] %vm496_vm0, %v2057_v33 }
 0x259   : > { %v2051_v17 = vpop.permute.xlu0 %2050 }
 0x25a   : > { %2146 = vst.msk [vmem:[%s4071_s13] sm:$0xff] %vm496_vm0, %v2051_v17 }
 0x25b   : > { %v2053_v35 = vpop.permute.xlu1 %2052 }
 0x25c   : > { %2147 = vst.msk [vmem:[%s4071_s13 + $0x8] sm:$0xff] %vm496_vm0, %v2053_v35 }
 0x25d   : > { %v2063_v40 = vpop.permute.xlu0 %2062 }
 0x25e   : > { %2152 = vst.msk [vmem:[%s4071_s13 + $0x30] sm:$0xff] %vm496_vm0, %v2063_v40 }
 0x25f   : > { %v2065_v63 = vpop.permute.xlu1 %2064 }
 0x260   : > { %2153 = vst.msk [vmem:[%s4071_s13 + $0x38] sm:$0xff] %vm496_vm0, %v2065_v63 }
 0x261   : > { %v2059_v16 = vpop.permute.xlu0 %2058 }
 0x262   : > { %2150 = vst.msk [vmem:[%s4071_s13 + $0x20] sm:$0xff] %vm496_vm0, %v2059_v16 }
 0x263   : > { %v2061_v52 = vpop.permute.xlu1 %2060 }
 0x264   : > { %2151 = vst.msk [vmem:[%s4071_s13 + $0x28] sm:$0xff] %vm496_vm0, %v2061_v52 }
 0x266   : > { %v2071_v39 = vpop.permute.xlu0 %2070 }
 0x267   : > { %2156 = vst.msk [vmem:[%s4071_s13 + $0x50] sm:$0xff] %vm496_vm0, %v2071_v39 }
 0x268   : > { %v2073_v11 = vpop.permute.xlu1 %2072 }
 0x269   : > { %2157 = vst.msk [vmem:[%s4071_s13 + $0x58] sm:$0xff] %vm496_vm0, %v2073_v11 }
 0x26a   : > { %v2067_v38 = vpop.permute.xlu0 %2066 }
 0x26b   : > { %2154 = vst.msk [vmem:[%s4071_s13 + $0x40] sm:$0xff] %vm496_vm0, %v2067_v38 }
 0x26c   : > { %v2069_v55 = vpop.permute.xlu1 %2068 }
 0x26d   : > { %2155 = vst.msk [vmem:[%s4071_s13 + $0x48] sm:$0xff] %vm496_vm0, %v2069_v55 }
 0x26e   : > { %v2079_v22 = vpop.permute.xlu0 %2078 }
 0x26f   : > { %2160 = vst.msk [vmem:[%s4071_s13 + $0x70] sm:$0xff] %vm496_vm0, %v2079_v22 }
 0x270   : > { %v2081_v2 = vpop.permute.xlu1 %2080 }
 0x271   : > { %2161 = vst.msk [vmem:[%s4071_s13 + $0x78] sm:$0xff] %vm496_vm0, %v2081_v2 }
 0x272   : > { %v2075_v50 = vpop.permute.xlu0 %2074 }
 0x273   : > { %2158 = vst.msk [vmem:[%s4071_s13 + $0x60] sm:$0xff] %vm496_vm0, %v2075_v50 }
 0x274   : > { %v2077_v54 = vpop.permute.xlu1 %2076 }
 0x275   : > { %2159 = vst.msk [vmem:[%s4071_s13 + $0x68] sm:$0xff] %vm496_vm0, %v2077_v54 }
 0x277   : > { %v2087_v14 = vpop.permute.xlu0 %2086 }
 0x278   : > { %2164 = vst.msk [vmem:[%s4071_s13 + $0x90] sm:$0xff] %vm496_vm0, %v2087_v14 }
 0x279   : > { %v2089_v0 = vpop.permute.xlu1 %2088 }
 0x27a   : > { %2165 = vst.msk [vmem:[%s4071_s13 + $0x98] sm:$0xff] %vm496_vm0, %v2089_v0 }
 0x27b   : > { %v2083_v49 = vpop.permute.xlu0 %2082 }
 0x27c   : > { %2162 = vst.msk [vmem:[%s4071_s13 + $0x80] sm:$0xff] %vm496_vm0, %v2083_v49 }
 0x27d   : > { %v2085_v57 = vpop.permute.xlu1 %2084 }
 0x27e   : > { %2163 = vst.msk [vmem:[%s4071_s13 + $0x88] sm:$0xff] %vm496_vm0, %v2085_v57 }
 0x280   : > { %v2095_v44 = vpop.permute.xlu0 %2094 }
 0x281   : > { %2168 = vst.msk [vmem:[%s4071_s13 + $0xb0] sm:$0xff] %vm496_vm0, %v2095_v44 }
 0x282   : > { %v2097_v32 = vpop.permute.xlu1 %2096 }
 0x283   : > { %2169 = vst.msk [vmem:[%s4071_s13 + $0xb8] sm:$0xff] %vm496_vm0, %v2097_v32 }
 0x284   : > { %v2091_v36 = vpop.permute.xlu0 %2090 }
 0x285   : > { %2166 = vst.msk [vmem:[%s4071_s13 + $0xa0] sm:$0xff] %vm496_vm0, %v2091_v36 }
 0x286   : > { %v2093_v3 = vpop.permute.xlu1 %2092 }
 0x287   : > { %2167 = vst.msk [vmem:[%s4071_s13 + $0xa8] sm:$0xff] %vm496_vm0, %v2093_v3 }
 0x289   : > { %v2103_v21 = vpop.permute.xlu0 %2102 }
 0x28a   : > { %2172 = vst.msk [vmem:[%s4071_s13 + $0xd0] sm:$0xff] %vm496_vm0, %v2103_v21 }
 0x28c   : > { %v2105_v28 = vpop.permute.xlu1 %2104 }
 0x28d   : > { %2173 = vst.msk [vmem:[%s4071_s13 + $0xd8] sm:$0xff] %vm496_vm0, %v2105_v28  ;;  %v2099_v31 = vpop.permute.xlu0 %2098 }
 0x28e   : > { %2170 = vst.msk [vmem:[%s4071_s13 + $0xc0] sm:$0xff] %vm496_vm0, %v2099_v31 }
 0x291   : > { %v2101_v30 = vpop.permute.xlu1 %2100 }
 0x292   : > { %2171 = vst.msk [vmem:[%s4071_s13 + $0xc8] sm:$0xff] %vm496_vm0, %v2101_v30 }
 0x297   : > { %v2107_v9 = vpop.permute.xlu0 %2106 }
 0x298   : > { %2174 = vst.msk [vmem:[%s4071_s13 + $0xe0] sm:$0xff] %vm496_vm0, %v2107_v9 }
 0x29b   : > { %v2109_v59 = vpop.permute.xlu1 %2108  ;;  %v2111_v4 = vpop.permute.xlu0 %2110 }
 0x29c   : > { %2175 = vst.msk [vmem:[%s4071_s13 + $0xe8] sm:$0xff] %vm496_vm0, %v2109_v59  ;;  %2176 = vst.msk [vmem:[%s4071_s13 + $0xf0] sm:$0xff] %vm496_vm0, %v2111_v4 }
 0x29f   : > { %v2113_v47 = vpop.permute.xlu1 %2112 }
 0x2a0   : > { %2177 = vst.msk [vmem:[%s4071_s13 + $0xf8] sm:$0xff] %vm496_vm0, %v2113_v47 }
 0x2a1 PF: > { %s15_s15 = sadd.s32 1, %s3079_s15  }
 0x2a2   : > { %p12_p5 = scmp.ge.s32.totalorder %s15_s15, 4  }
 0x2a4   :  { %14 = sbr.rel (!%p12_p5) target bundleno = 1 (0x1), region = 77 }

// kernel: myfcn_forward.21
= control target key start
LH: loop header
LB: loop body
LE: loop exit
PB: predicated region body
PF: predicated region fallthrough
CT: control target
= control target key end

     0   :  { %s2599_s18 = smov 0   ;;  %s3566_s0 = inlined_call_operand.vmem [shape: bf16[576,192], index: 0, kind: input, shape index: {}]   ;;  %s3567_s1 = inlined_call_operand.vmem [shape: bf16[576,64], index: 1, kind: input, shape index: {}]   ;;  %s3568_s2 = inlined_call_operand.vmem [shape: f32[512,192], index: 2, kind: input, shape index: {}]   ;;  %s3569_s3 = inlined_call_operand.vmem [shape: f32[512,64], index: 3, kind: input, shape index: {}]   ;;  %s3570_s4 = inlined_call_operand.vmem [shape: bf16[512,64], index: 4, kind: input, shape index: {}]   ;;  %s3571_s5 = inlined_call_operand.vmem [shape: f32[512,64], index: 5, kind: output, shape index: {}]  }
   0x1 LB: > { %s1910_s19 = sadd.s32 4294967295, %s2566_s18   ;;  %p1914_p0 = scmp.ge.s32.totalorder %s2566_s18, 1  ;;  %s2566_s18 = sphi %s2599_s18, %s15_s18  }
   0x2   : > { %p223_p1 = scmp.lt.s32.totalorder %s2566_s18, 3 }
   0x4   : > { %p224_p2 = pnand %p1914_p0, %p223_p1 }
   0x6   : > { %227 = sbr.rel (%p224_p2) target bundleno = 532 (0x214), region = 40 }
   0xd   : > { %s268_s20 = smul.u32 36, %s1910_s19  ;;  %v2454_v0 = vld [vmem:[%s3567_s1 + $0x40] sm:$0xff]   ;;  %v2456_v2 = vld [vmem:[%s3567_s1 + $0x48] sm:$0xff]   ;;  %v2458_v4 = vld [vmem:[%s3567_s1 + $0x50] sm:$0xff]   ;;  %s2568_s14 = smov 64   ;;  %vm553_vm0 = vcmask 523264  }
   0xe   : > { %v2455_v1 = vld [vmem:[%s3567_s1] sm:$0xff]   ;;  %2381 = vmatprep.subr.bf16.mxu1 %v2454_v0  ;;  %2097 = vmatprep.subr.bf16.mxu0 %v2454_v0  ;;  %v2457_v3 = vld [vmem:[%s3567_s1 + $0x8] sm:$0xff]   ;;  %v2459_v5 = vld [vmem:[%s3567_s1 + $0x10] sm:$0xff]  }
   0xf   : > { %p269_p3 = scmp.lt.s32.totalorder %s268_s20, 71  ;;  %2389 = vmatpush3.bf16.msra.mxu1 %v2455_v1  ;;  %2098 = vmatpush3.bf16.msra.mxu0 %v2455_v1  ;;  %v2460_v6 = vld [vmem:[%s3567_s1 + $0x58] sm:$0xff]   ;;  %v2462_v22 = vld [vmem:[%s3567_s1 + $0x60] sm:$0xff]   ;;  %v2464_v24 = vld [vmem:[%s3567_s1 + $0x68] sm:$0xff]  }
  0x10   : > { %2382 = vmatprep.subr.bf16.mxu1 %v2456_v2  ;;  %2099 = vmatprep.subr.bf16.mxu0 %v2456_v2  ;;  %v2461_v21 = vld [vmem:[%s3567_s1 + $0x18] sm:$0xff]   ;;  %v2463_v23 = vld [vmem:[%s3567_s1 + $0x20] sm:$0xff]   ;;  %v2465_v27 = vld [vmem:[%s3567_s1 + $0x28] sm:$0xff]  }
  0x11   : > { %s3586_s20 = smov (!%p269_p3, %s268_s20), 71  ;;  %v2466_v28 = vld [vmem:[%s3567_s1 + $0x70] sm:$0xff]   ;;  %v2468_v32 = vld [vmem:[%s3567_s1 + $0x78] sm:$0xff]   ;;  %v2470_v36 = vld [vmem:[%s3567_s1 + $0xc0] sm:$0xff]  }
  0x12   : > { %s2016_s6 = sshll.u32 %s3586_s20, 3  ;;  %v2467_v31 = vld [vmem:[%s3567_s1 + $0x30] sm:$0xff]   ;;  %v2469_v35 = vld [vmem:[%s3567_s1 + $0x38] sm:$0xff]   ;;  %v2475_v37 = vld [vmem:[%s3567_s1 + $0x100] sm:$0xff]  }
  0x13   : > { %s2630_s11 = scalar_lea.vmem %s3566_s0, %s2016_s6  ;;  %2390 = vmatpush3.bf16.msra.mxu1 %v2457_v3  ;;  %2100 = vmatpush3.bf16.msra.mxu0 %v2457_v3  ;;  %v2471_v52 = vld [vmem:[%s3567_s1 + $0x80] sm:$0xff]   ;;  %v2474_v55 = vld [vmem:[%s3567_s1 + $0xc8] sm:$0xff]   ;;  %v2478_v62 = vld [vmem:[%s3567_s1 + $0xd0] sm:$0xff]  }
  0x14   : > { %v2636_v7 = vld [vmem:[%s2630_s11 + $0xe0] ss:$8 sps:$4 sm:$0xff]   ;;  %v2639_v8 = vld [vmem:[%s2630_s11 + $0xd0] ss:$8 sps:$4 sm:$0xff]   ;;  %2383 = vmatprep.subr.bf16.mxu1 %v2458_v4  ;;  %2101 = vmatprep.subr.bf16.mxu0 %v2458_v4  ;;  %v2679_v16 = vld [vmem:[%s2630_s11 + $0x14] ss:$8 sps:$4 sm:$0xff]  }
  0x15   : > { %541 = vrot.lane.b32.xlu1 %v2636_v7, %s2568_s14  ;;  %v2644_v9 = vld [vmem:[%s2630_s11 + $0x20] ss:$8 sps:$4 sm:$0xff]   ;;  %537 = vrot.lane.b32.xlu0 %v2639_v8, %s2568_s14  ;;  %v2649_v10 = vld [vmem:[%s2630_s11 + $0x10] ss:$8 sps:$4 sm:$0xff]  }
  0x16   : > { %v2654_v11 = vld [vmem:[%s2630_s11 + $0x30] ss:$8 sps:$4 sm:$0xff]   ;;  %v2664_v13 = vld [vmem:[%s2630_s11 + $0x40] ss:$8 sps:$4 sm:$0xff]   ;;  %v2689_v18 = vld [vmem:[%s2630_s11 + $0x24] ss:$8 sps:$4 sm:$0xff]  }
  0x17   : > { %2391 = vmatpush3.bf16.msra.mxu1 %v2459_v5  ;;  %2102 = vmatpush3.bf16.msra.mxu0 %v2459_v5  ;;  %v2659_v12 = vld [vmem:[%s2630_s11 + $0xf0] ss:$8 sps:$4 sm:$0xff]   ;;  %v2669_v14 = vld [vmem:[%s2630_s11 + $0x100] ss:$8 sps:$4 sm:$0xff]   ;;  %v2695_v20 = vld [vmem:[%s2630_s11 + $0x34] ss:$8 sps:$4 sm:$0xff]  }
  0x18   : > { %2384 = vmatprep.subr.bf16.mxu1 %v2460_v6  ;;  %2103 = vmatprep.subr.bf16.mxu0 %v2460_v6  ;;  %v2674_v15 = vld [vmem:[%s2630_s11 + $0x50] ss:$8 sps:$4 sm:$0xff]   ;;  %v2684_v17 = vld [vmem:[%s2630_s11 + $0x60] ss:$8 sps:$4 sm:$0xff]   ;;  %v2719_v26 = vld [vmem:[%s2630_s11 + $0x44] ss:$8 sps:$4 sm:$0xff]  }
  0x19   : > { %493 = vrot.lane.b32.xlu1 %v2644_v9, %s2568_s14  ;;  %489 = vrot.lane.b32.xlu0 %v2649_v10, %s2568_s14  ;;  %v2692_v19 = vld [vmem:[%s2630_s11 + $0x70] ss:$8 sps:$4 sm:$0xff]   ;;  %v2714_v25 = vld [vmem:[%s2630_s11 + $0x80] ss:$8 sps:$4 sm:$0xff]  }
  0x1a   : > { %v2730_v29 = vld [vmem:[%s2630_s11 + $0x90] ss:$8 sps:$4 sm:$0xff]   ;;  %v2735_v30 = vld [vmem:[%s2630_s11 + $0x54] ss:$8 sps:$4 sm:$0xff]   ;;  %v2748_v33 = vld [vmem:[%s2630_s11 + $0xa0] ss:$8 sps:$4 sm:$0xff]  }
  0x1b   : > { %2392 = vmatpush3.bf16.msra.mxu1 %v2461_v21  ;;  %2104 = vmatpush3.bf16.msra.mxu0 %v2461_v21  ;;  %v2751_v34 = vld [vmem:[%s2630_s11 + $0x64] ss:$8 sps:$4 sm:$0xff]   ;;  %v2767_v38 = vld [vmem:[%s2630_s11 + $0xb0] ss:$8 sps:$4 sm:$0xff]   ;;  %v2772_v39 = vld [vmem:[%s2630_s11 + $0x74] ss:$8 sps:$4 sm:$0xff]  }
  0x1c   : > { %2385 = vmatprep.subr.bf16.mxu1 %v2462_v22  ;;  %2105 = vmatprep.subr.bf16.mxu0 %v2462_v22  ;;  %v2777_v40 = vld [vmem:[%s2630_s11 + $0xc0] ss:$8 sps:$4 sm:$0xff]   ;;  %v2782_v41 = vld [vmem:[%s2630_s11 + $0x84] ss:$8 sps:$4 sm:$0xff]   ;;  %v2792_v43 = vld [vmem:[%s2630_s11 + $0x94] ss:$8 sps:$4 sm:$0xff]  }
  0x1d   : > { %497 = vrot.lane.b32.xlu1 %v2654_v11, %s2568_s14  ;;  %545 = vrot.lane.b32.xlu0 %v2659_v12, %s2568_s14  ;;  %v2787_v42 = vld [vmem:[%s2630_s11 + $0xa4] ss:$8 sps:$4 sm:$0xff]   ;;  %v2802_v45 = vld [vmem:[%s2630_s11 + $0xb4] ss:$8 sps:$4 sm:$0xff]  }
  0x1e   : > { %v2795_v44 = vld [vmem:[%s2630_s11 + $0xc4] ss:$8 sps:$4 sm:$0xff]   ;;  %v2812_v47 = vld [vmem:[%s2630_s11 + $0xd4] ss:$8 sps:$4 sm:$0xff]   ;;  %v2476_v57 = vld [vmem:[%s2630_s11] ss:$8 sps:$4 sm:$0xff]  }
  0x1f   : > { %2393 = vmatpush3.bf16.msra.mxu1 %v2463_v23  ;;  %2106 = vmatpush3.bf16.msra.mxu0 %v2463_v23  ;;  %v2807_v46 = vld [vmem:[%s2630_s11 + $0xe4] ss:$8 sps:$4 sm:$0xff]   ;;  %v2822_v49 = vld [vmem:[%s2630_s11 + $0xf4] ss:$8 sps:$4 sm:$0xff]  }
  0x20   : > { %2386 = vmatprep.subr.bf16.mxu1 %v2464_v24  ;;  %2107 = vmatprep.subr.bf16.mxu0 %v2464_v24  ;;  %v2817_v48 = vld [vmem:[%s2630_s11 + $0x104] ss:$8 sps:$4 sm:$0xff]   ;;  %v2479_v2 = vld [vmem:[%s3567_s1 + $0x90] sm:$0xff]   ;;  %v2480_v3 = vld [vmem:[%s3567_s1 + $0xd8] sm:$0xff]  }
  0x21   : > { %501 = vrot.lane.b32.xlu1 %v2664_v13, %s2568_s14  ;;  %549 = vrot.lane.b32.xlu0 %v2669_v14, %s2568_s14  ;;  %v2472_v54 = vld [vmem:[%s2630_s11 + $0x4] ss:$8 sps:$4 sm:$0xff]   ;;  %v2491_v5 = vld [vmem:[%s3567_s1 + $0x110] sm:$0xff]  }
  0x22   : > { %v2477_v59 = vld [vmem:[%s3567_s1 + $0x88] sm:$0xff]   ;;  %v2482_v21 = vld [vmem:[%s3567_s1 + $0xe0] sm:$0xff]   ;;  %v2492_v23 = vld [vmem:[%s3567_s1 + $0x118] sm:$0xff]  }
  0x23   : > { %2394 = vmatpush3.bf16.msra.mxu1 %v2465_v27  ;;  %2108 = vmatpush3.bf16.msra.mxu0 %v2465_v27  ;;  %v2489_v0 = vld [vmem:[%s3567_s1 + $0x108] sm:$0xff]   ;;  %v2483_v27 = vld [vmem:[%s3567_s1 + $0xa0] sm:$0xff]  }
  0x24   : > { %2387 = vmatprep.subr.bf16.mxu1 %v2466_v28  ;;  %2109 = vmatprep.subr.bf16.mxu0 %v2466_v28  ;;  %v2484_v28 = vld [vmem:[%s3567_s1 + $0xe8] sm:$0xff]  }
  0x25   : > { %505 = vrot.lane.b32.xlu1 %v2674_v15, %s2568_s14  ;;  %491 = vrot.lane.b32.xlu0 %v2679_v16, %s2568_s14 }
  0x27   : > { %2395 = vmatpush3.bf16.msra.mxu1 %v2467_v31  ;;  %2110 = vmatpush3.bf16.msra.mxu0 %v2467_v31 }
  0x28   : > { %2388 = vmatprep.subr.bf16.mxu1 %v2468_v32  ;;  %2111 = vmatprep.subr.bf16.mxu0 %v2468_v32  ;;  %v2485_v32 = vld [vmem:[%s3567_s1 + $0xa8] sm:$0xff]  }
  0x29   : > { %509 = vrot.lane.b32.xlu1 %v2684_v17, %s2568_s14  ;;  %495 = vrot.lane.b32.xlu0 %v2689_v18, %s2568_s14 }
  0x2b   : > { %2396 = vmatpush3.bf16.msra.mxu1 %v2469_v35  ;;  %2112 = vmatpush3.bf16.msra.mxu0 %v2469_v35  ;;  %v2486_v35 = vld [vmem:[%s3567_s1 + $0xf0] sm:$0xff]  }
  0x2c   : > { %2209 = vmatprep.subr.bf16.mxu1 %v2470_v36  ;;  %2341 = vmatprep.subr.bf16.mxu0 %v2475_v37 }
  0x2d   : > { %513 = vrot.lane.b32.xlu1 %v2692_v19, %s2568_s14  ;;  %499 = vrot.lane.b32.xlu0 %v2695_v20, %s2568_s14 }
  0x31   : > { %517 = vrot.lane.b32.xlu1 %v2714_v25, %s2568_s14  ;;  %503 = vrot.lane.b32.xlu0 %v2719_v26, %s2568_s14 }
  0x35   : > { %521 = vrot.lane.b32.xlu1 %v2730_v29, %s2568_s14  ;;  %507 = vrot.lane.b32.xlu0 %v2735_v30, %s2568_s14 }
  0x39   : > { %525 = vrot.lane.b32.xlu1 %v2748_v33, %s2568_s14  ;;  %511 = vrot.lane.b32.xlu0 %v2751_v34, %s2568_s14 }
  0x3d   : > { %529 = vrot.lane.b32.xlu1 %v2767_v38, %s2568_s14  ;;  %515 = vrot.lane.b32.xlu0 %v2772_v39, %s2568_s14 }
  0x41   : > { %533 = vrot.lane.b32.xlu1 %v2777_v40, %s2568_s14  ;;  %519 = vrot.lane.b32.xlu0 %v2782_v41, %s2568_s14 }
  0x45   : > { %527 = vrot.lane.b32.xlu1 %v2787_v42, %s2568_s14  ;;  %523 = vrot.lane.b32.xlu0 %v2792_v43, %s2568_s14 }
  0x49   : > { %535 = vrot.lane.b32.xlu1 %v2795_v44, %s2568_s14  ;;  %531 = vrot.lane.b32.xlu0 %v2802_v45, %s2568_s14 }
  0x4d   : > { %543 = vrot.lane.b32.xlu1 %v2807_v46, %s2568_s14  ;;  %539 = vrot.lane.b32.xlu0 %v2812_v47, %s2568_s14 }
  0x51   : > { %551 = vrot.lane.b32.xlu1 %v2817_v48, %s2568_s14  ;;  %547 = vrot.lane.b32.xlu0 %v2822_v49, %s2568_s14 }
  0x87   : > { %v2828_v50 = vpop.permute.xlu1 %541  ;;  %v2830_v51 = vpop.permute.xlu0 %537 }
  0x88   : > { %v647_v53 = vsel %vm553_vm0, %v2795_v44, %v2830_v51  ;;  %v651_v56 = vsel %vm553_vm0, %v2812_v47, %v2828_v50 }
  0x89   : > { %1111 = vmatprep.mubr.bf16.mxu1 %v647_v53 }
  0x8a   : > { %1112 = vmatmul.mubr.bf16.vlgmr.msra.gmra.mrb[0].mxu1 %v2777_v40 }
  0x8b   : > { %2210 = vmatpush3.bf16.msra.mxu1 %v2471_v52  ;;  %v2847_v58 = vpop.permute.xlu0 %489  ;;  %1119 = vmatprep.mubr.bf16.mxu1 %v651_v56  ;;  %v2852_v60 = vpop.permute.xlu1 %493  ;;  %v2488_v52 = vld [vmem:[%s3567_s1 + $0xf8] sm:$0xff]  }
  0x8c   : > { %v599_v61 = vsel %vm553_vm0, %v2472_v54, %v2847_v58  ;;  %2211 = vmatprep.subr.bf16.mxu1 %v2474_v55  ;;  %v603_v63 = vsel %vm553_vm0, %v2679_v16, %v2852_v60  ;;  %v2481_v16 = vld [vmem:[%s3567_s1 + $0x98] sm:$0xff]  }
  0x8d   : > { %1015 = vmatprep.mubr.bf16.mxu0 %v599_v61  ;;  %v2490_v54 = vld [vmem:[%s3567_s1 + $0xb8] sm:$0xff]  }
  0x8e   : > { %1016 = vmatmul.mubr.bf16.vlgmr.msra.gmra.mrb[0].mxu0 %v2476_v57 }
  0x8f   : > { %2212 = vmatpush3.bf16.msra.mxu1 %v2477_v59  ;;  %2342 = vmatpush3.bf16.msra.mxu0 %v2475_v37  ;;  %v2865_v1 = vpop.permute.xlu0 %545  ;;  %v2880_v6 = vpop.permute.xlu1 %497  ;;  %v2487_v37 = vld [vmem:[%s3567_s1 + $0xb0] sm:$0xff]  }
  0x90   : > { %2213 = vmatprep.subr.bf16.mxu1 %v2478_v62  ;;  %1023 = vmatprep.mubr.bf16.mxu0 %v603_v63  ;;  %v655_v4 = vsel %vm553_vm0, %v2807_v46, %v2865_v1  ;;  %v607_v22 = vsel %vm553_vm0, %v2689_v18, %v2880_v6 }
  0x91   : > { %2343 = vmatprep.subr.bf16.mxu0 %v2489_v0 }
  0x92   : > { %1120 = vmatmul.mubr.bf16.gmra.mrb[4].mxu1 %v2639_v8 }
  0x93   : > { %2214 = vmatpush3.bf16.msra.mxu1 %v2479_v2  ;;  %1127 = vmatprep.mubr.bf16.mxu1 %v655_v4  ;;  %v2895_v24 = vpop.permute.xlu0 %549 }
  0x94   : > { %2215 = vmatprep.subr.bf16.mxu1 %v2480_v3  ;;  %2344 = vmatpush3.bf16.msra.mxu0 %v2489_v0  ;;  %v659_v31 = vsel %vm553_vm0, %v2822_v49, %v2895_v24 }
  0x95   : > { %2345 = vmatprep.subr.bf16.mxu0 %v2491_v5 }
  0x96   : > { %1024 = vmatmul.mubr.bf16.gmra.mrb[4].mxu0 %v2649_v10  ;;  %v502_v10 = vpop.permute.xlu1 %501 }
  0x97   : > { %2216 = vmatpush3.bf16.msra.mxu1 %v2481_v16  ;;  %1031 = vmatprep.mubr.bf16.mxu0 %v607_v22  ;;  %v611_v36 = vsel %vm553_vm0, %v2695_v20, %v502_v10  ;;  %v492_v56 = vpop.permute.xlu0 %491 }
  0x98   : > { %2217 = vmatprep.subr.bf16.mxu1 %v2482_v21  ;;  %2346 = vmatpush3.bf16.msra.mxu0 %v2491_v5  ;;  %v554_v57 = vsel %vm553_vm0, %v2847_v58, %v492_v56 }
  0x99   : > { %2347 = vmatprep.subr.bf16.mxu0 %v2492_v23 }
  0x9a   : > { %1128 = vmatmul.mubr.bf16.gmra.mrb[8].mxu1 %v2636_v7  ;;  %v506_v53 = vpop.permute.xlu1 %505 }
  0x9b   : > { %2218 = vmatpush3.bf16.msra.mxu1 %v2483_v27  ;;  %1135 = vmatprep.mubr.bf16.mxu1 %v659_v31  ;;  %v615_v55 = vsel %vm553_vm0, %v2719_v26, %v506_v53 }
  0x9c   : > { %2219 = vmatprep.subr.bf16.mxu1 %v2484_v28  ;;  %2348 = vmatpush3.bf16.msra.mxu0 %v2492_v23 }
  0x9e   : > { %1032 = vmatmul.mubr.bf16.gmra.mrb[8].mxu0 %v2644_v9  ;;  %v510_v59 = vpop.permute.xlu1 %509 }
  0x9f   : > { %2220 = vmatpush3.bf16.msra.mxu1 %v2485_v32  ;;  %1039 = vmatprep.mubr.bf16.mxu0 %v611_v36  ;;  %v619_v61 = vsel %vm553_vm0, %v2735_v30, %v510_v59 }
  0xa0   : > { %2221 = vmatprep.subr.bf16.mxu1 %v2486_v35 }
  0xa2   : > { %1136 = vmatmul.mubr.bf16.gmra.mrb[12].mxu1 %v2659_v12  ;;  %v514_v63 = vpop.permute.xlu1 %513 }
  0xa3   : > { %2222 = vmatpush3.bf16.msra.mxu1 %v2487_v37  ;;  %1176 = vmatprep.mubr.bf16.mxu1 %v2644_v9  ;;  %v496_v9 = vpop.permute.xlu0 %495  ;;  %v623_v58 = vsel %vm553_vm0, %v2751_v34, %v514_v63 }
  0xa4   : > { %2223 = vmatprep.subr.bf16.mxu1 %v2488_v52  ;;  %v555_v62 = vsel %vm553_vm0, %v2852_v60, %v496_v9 }
  0xa6   : > { %1040 = vmatmul.mubr.bf16.gmra.mrb[12].mxu0 %v2654_v11  ;;  %v518_v2 = vpop.permute.xlu1 %517 }
  0xa7   : > { %2224 = vmatpush3.bf16.msra.mxu1 %v2490_v54  ;;  %1047 = vmatprep.mubr.bf16.mxu0 %v615_v55  ;;  %v500_v0 = vpop.permute.xlu0 %499  ;;  %v627_v60 = vsel %vm553_vm0, %v2772_v39, %v518_v2 }
  0xaa   : > { %1177 = vmatmul.mubr.bf16.vlgmr.msra.gmra.mrb[16].mxu1 %v554_v57  ;;  %v522_v4 = vpop.permute.xlu1 %521 }
  0xab   : > { %1184 = vmatprep.mubr.bf16.mxu1 %v2654_v11  ;;  %v556_v11 = vsel %vm553_vm0, %v2880_v6, %v500_v0  ;;  %v504_v3 = vpop.permute.xlu0 %503  ;;  %v631_v5 = vsel %vm553_vm0, %v2782_v41, %v522_v4 }
  0xae   : > { %1048 = vmatmul.mubr.bf16.gmra.mrb[16].mxu0 %v2664_v13  ;;  %v526_v16 = vpop.permute.xlu1 %525 }
  0xaf   : > { %1055 = vmatprep.mubr.bf16.mxu0 %v619_v61  ;;  %v635_v21 = vsel %vm553_vm0, %v2792_v43, %v526_v16 }
  0xb2   : > { %1185 = vmatmul.mubr.bf16.gmra.mrb[20].mxu1 %v555_v62  ;;  %v530_v23 = vpop.permute.xlu1 %529 }
  0xb3   : > { %1192 = vmatprep.mubr.bf16.mxu1 %v2664_v13  ;;  %v557_v13 = vsel %vm553_vm0, %v502_v10, %v504_v3  ;;  %v639_v27 = vsel %vm553_vm0, %v2787_v42, %v530_v23 }
  0xb6   : > { %1056 = vmatmul.mubr.bf16.gmra.mrb[20].mxu0 %v2674_v15  ;;  %v534_v31 = vpop.permute.xlu1 %533 }
  0xb7   : > { %1063 = vmatprep.mubr.bf16.mxu0 %v623_v58  ;;  %v643_v10 = vsel %vm553_vm0, %v2802_v45, %v534_v31 }
  0xba   : > { %1193 = vmatmul.mubr.bf16.gmra.mrb[24].mxu1 %v556_v11  ;;  %v528_v36 = vpop.permute.xlu1 %527 }
  0xbb   : > { %1200 = vmatprep.mubr.bf16.mxu1 %v2674_v15  ;;  %v508_v15 = vpop.permute.xlu0 %507 }
  0xbc   : > { %v558_v6 = vsel %vm553_vm0, %v506_v53, %v508_v15 }
  0xbe   : > { %1064 = vmatmul.mubr.bf16.gmra.mrb[24].mxu0 %v2684_v17 }
  0xbf   : > { %1071 = vmatprep.mubr.bf16.mxu0 %v627_v60 }
  0xc2   : > { %1201 = vmatmul.mubr.bf16.gmra.mrb[28].mxu1 %v557_v13 }
  0xc3   : > { %1208 = vmatprep.mubr.bf16.mxu1 %v2684_v17  ;;  %v512_v17 = vpop.permute.xlu0 %511 }
  0xc4   : > { %v559_v22 = vsel %vm553_vm0, %v510_v59, %v512_v17 }
  0xc6   : > { %1072 = vmatmul.mubr.bf16.gmra.mrb[28].mxu0 %v2692_v19 }
  0xc7   : > { %1079 = vmatprep.mubr.bf16.mxu0 %v631_v5 }
  0xca   : > { %1209 = vmatmul.mubr.bf16.gmra.mrb[32].mxu1 %v558_v6 }
  0xcb   : > { %1216 = vmatprep.mubr.bf16.mxu1 %v2692_v19  ;;  %v516_v19 = vpop.permute.xlu0 %515 }
  0xcc   : > { %v560_v28 = vsel %vm553_vm0, %v514_v63, %v516_v19 }
  0xce   : > { %1080 = vmatmul.mubr.bf16.gmra.mrb[32].mxu0 %v2714_v25 }
  0xcf   : > { %1087 = vmatprep.mubr.bf16.mxu0 %v635_v21 }
  0xd2   : > { %1217 = vmatmul.mubr.bf16.gmra.mrb[36].mxu1 %v559_v22 }
  0xd3   : > { %1224 = vmatprep.mubr.bf16.mxu1 %v2714_v25  ;;  %v520_v25 = vpop.permute.xlu0 %519 }
  0xd4   : > { %v561_v32 = vsel %vm553_vm0, %v518_v2, %v520_v25 }
  0xd6   : > { %1088 = vmatmul.mubr.bf16.gmra.mrb[36].mxu0 %v2730_v29 }
  0xd7   : > { %1095 = vmatprep.mubr.bf16.mxu0 %v639_v27  ;;  %v524_v35 = vpop.permute.xlu0 %523 }
  0xda   : > { %1225 = vmatmul.mubr.bf16.gmra.mrb[40].mxu1 %v560_v28 }
  0xdb   : > { %1232 = vmatprep.mubr.bf16.mxu1 %v2730_v29  ;;  %v562_v29 = vsel %vm553_vm0, %v522_v4, %v524_v35 }
  0xde   : > { %1096 = vmatmul.mubr.bf16.gmra.mrb[40].mxu0 %v2748_v33 }
  0xdf   : > { %1103 = vmatprep.mubr.bf16.mxu0 %v643_v10 }
  0xe2   : > { %1233 = vmatmul.mubr.bf16.gmra.mrb[44].mxu1 %v561_v32 }
  0xe3   : > { %1240 = vmatprep.mubr.bf16.mxu1 %v2748_v33  ;;  %v563_v33 = vsel %vm553_vm0, %v526_v16, %v528_v36 }
  0xe6   : > { %1104 = vmatmul.mubr.bf16.gmra.mrb[44].mxu0 %v2767_v38 }
  0xe7   : > { %2349 = vmatprep.mubr.msk.bf16.mxu0 %vm553_vm0, %v2689_v18  ;;  %v532_v18 = vpop.permute.xlu0 %531 }
  0xea   : > { %1241 = vmatmul.mubr.bf16.gmra.mrb[48].mxu1 %v562_v29 }
  0xeb   : > { %1248 = vmatprep.mubr.bf16.mxu1 %v2767_v38  ;;  %v564_v38 = vsel %vm553_vm0, %v530_v23, %v532_v18 }
  0xee   : > { %2350 = vmatmul.mubr.msk.bf16.vlgmr.msra.gmra.mrb[48].mxu0 %vm553_vm0, %v2695_v20  ;;  %v536_v20 = vpop.permute.xlu1 %535 }
  0xef   : > { %2353 = vmatprep.mubr.msk.bf16.mxu0 %vm553_vm0, %v2719_v26  ;;  %v565_v26 = vsel %vm553_vm0, %v534_v31, %v536_v20 }
  0xf2   : > { %1249 = vmatmul.mubr.bf16.gmra.mrb[52].mxu1 %v563_v33 }
  0xf3   : > { %1256 = vmatprep.mubr.bf16.mxu1 %v2777_v40 }
  0xf6   : > { %2354 = vmatmul.mubr.msk.bf16.gmra.mrb[52].mxu0 %vm553_vm0, %v2735_v30  ;;  %v540_v30 = vpop.permute.xlu0 %539 }
  0xf7   : > { %2357 = vmatprep.mubr.msk.bf16.mxu0 %vm553_vm0, %v2751_v34  ;;  %v544_v34 = vpop.permute.xlu1 %543 }
  0xfa   : > { %1257 = vmatmul.mubr.bf16.gmra.mrb[56].mxu1 %v564_v38 }
  0xfb   : > { %1264 = vmatprep.mubr.bf16.mxu1 %v2639_v8  ;;  %v566_v8 = vsel %vm553_vm0, %v2830_v51, %v540_v30 }
  0xfe   : > { %2358 = vmatmul.mubr.msk.bf16.gmra.mrb[56].mxu0 %vm553_vm0, %v2772_v39  ;;  %v548_v39 = vpop.permute.xlu0 %547 }
  0xff   : > { %2361 = vmatprep.mubr.msk.bf16.mxu0 %vm553_vm0, %v2782_v41  ;;  %v568_v40 = vsel %vm553_vm0, %v2865_v1, %v548_v39  ;;  %v552_v41 = vpop.permute.xlu1 %551 }
 0x102   : > { %1265 = vmatmul.mubr.bf16.gmra.mrb[60].mxu1 %v565_v26 }
 0x103   : > { %1272 = vmatprep.mubr.bf16.mxu1 %v2636_v7  ;;  %v567_v7 = vsel %vm553_vm0, %v2828_v50, %v544_v34 }
 0x106   : > { %2362 = vmatmul.mubr.msk.bf16.gmra.mrb[60].mxu0 %vm553_vm0, %v2792_v43 }
 0x107   : > { %2365 = vmatprep.mubr.msk.bf16.mxu0 %vm553_vm0, %v2787_v42  ;;  %v2495_v42 = vld [vmem:[%s2630_s11 + $0x114] ss:$8 sps:$4 sm:$0xff]  }
 0x10a   : > { %1273 = vmatmul.mubr.bf16.gmra.mrb[64].mxu1 %v566_v8 }
 0x10b   : > { %1280 = vmatprep.mubr.bf16.mxu1 %v2659_v12  ;;  %v2493_v12 = vld [vmem:[%s2630_s11 + $0x110] ss:$8 sps:$4 sm:$0xff]   ;;  %s1917_s11 = sshll.u32 %s1910_s19, 5 }
 0x10c   : > { %p276_p4 = scmp.lt.s32.totalorder %s1917_s11, 63 }
 0x10e   : > { %2366 = vmatmul.mubr.msk.bf16.gmra.mrb[64].mxu0 %vm553_vm0, %v2802_v45  ;;  %s3588_s11 = smov (!%p276_p4, %s1917_s11), 63 }
 0x10f   : > { %2369 = vmatprep.mubr.msk.bf16.mxu0 %vm553_vm0, %v2795_v44  ;;  %s1923_s19 = sshll.u32 %s3588_s11, 2  ;;  %s1921_s6 = sshll.u32 %s3588_s11, 3 }
 0x110   : > { %s3087_s9 = scalar_lea.vmem %s3570_s4, %s1923_s19  ;;  %s2017_s10 = sshll.u32 %s3588_s11, 4 }
 0x111   : > { %s3101_s15 = scalar_lea.vmem %s3569_s3, %s1921_s6  ;;  %s3109_s20 = scalar_lea.vmem %s3568_s2, %s2017_s10 }
 0x112   : > { %1281 = vmatmul.mubr.bf16.gmra.mrb[68].mxu1 %v567_v7  ;;  %s3243_s22 = scalar_lea.vmem %s3571_s5, %s1921_s6 }
 0x113   : > { %1288 = vmatprep.mubr.bf16.mxu1 %v2669_v14  ;;  %v569_v14 = vsel %vm553_vm0, %v2895_v24, %v552_v41 }
 0x116   : > { %2370 = vmatmul.mubr.msk.bf16.gmra.mrb[68].mxu0 %vm553_vm0, %v2812_v47 }
 0x117   : > { %2373 = vmatprep.mubr.msk.bf16.mxu0 %vm553_vm0, %v2807_v46 }
 0x11a   : > { %1289 = vmatmul.mubr.bf16.gmra.mrb[72].mxu1 %v568_v40 }
 0x11b   : > { %1296 = vmatprep.mubr.bf16.mxu1 %v2493_v12 }
 0x11e   : > { %2374 = vmatmul.mubr.msk.bf16.gmra.mrb[72].mxu0 %vm553_vm0, %v2822_v49 }
 0x11f   : > { %2377 = vmatprep.mubr.msk.bf16.mxu0 %vm553_vm0, %v2817_v48 }
 0x122   : > { %1297 = vmatmul.mubr.bf16.gmra.mrb[76].mxu1 %v569_v14 }
 0x126   : > { %2378 = vmatmul.mubr.msk.bf16.gmra.mrb[76].mxu0 %vm553_vm0, %v2495_v42 }
 0x15d   : > { %v2185_v43 = vpop.f32.mrb[0].mxu1 }
 0x15e   : > { %v2186_v44 = vpop.f32.mrb[1].mxu1 }
 0x15f   : > { %v3022_v45 = vadd.f32 %v2186_v44, %v2185_v43  ;;  %v2188_v46 = vpop.f32.mrb[2].mxu1 }
 0x160   : > { %v2189_v47 = vpop.f32.mrb[3].mxu1 }
 0x161   : > { %v3024_v50 = vadd.f32 %v2189_v47, %v2188_v46  ;;  %v2113_v51 = vpop.f32.mrb[0].mxu0 }
 0x162   : > { %v2114_v49 = vpop.f32.mrb[1].mxu0 }
 0x163   : > { %v2115_v1 = vadd.f32 %v2114_v49, %v2113_v51  ;;  %v2116_v37 = vpop.f32.mrb[2].mxu0 }
 0x164   : > { %v2117_v48 = vpop.f32.mrb[3].mxu0 }
 0x165   : > { %v2118_v52 = vadd.f32 %v2117_v48, %v2116_v37  ;;  %v2191_v53 = vpop.f32.mrb[4].mxu1 }
 0x166   : > { %v2192_v24 = vpop.f32.mrb[5].mxu1 }
 0x167   : > { %v3026_v54 = vadd.f32 %v2192_v24, %v2191_v53  ;;  %v2194_v55 = vpop.f32.mrb[6].mxu1 }
 0x168   : > { %v2195_v56 = vpop.f32.mrb[7].mxu1 }
 0x169   : > { %v3028_v57 = vadd.f32 %v2195_v56, %v2194_v55  ;;  %v2119_v59 = vpop.f32.mrb[4].mxu0 }
 0x16a   : > { %v2120_v61 = vpop.f32.mrb[5].mxu0 }
 0x16b   : > { %v2121_v9 = vadd.f32 %v2120_v61, %v2119_v59  ;;  %v2122_v62 = vpop.f32.mrb[6].mxu0 }
 0x16c   : > { %v2123_v63 = vpop.f32.mrb[7].mxu0 }
 0x16d   : > { %v2124_v58 = vadd.f32 %v2123_v63, %v2122_v62  ;;  %v2197_v0 = vpop.f32.mrb[8].mxu1 }
 0x16e   : > { %v2198_v11 = vpop.f32.mrb[9].mxu1 }
 0x16f   : > { %v3030_v2 = vadd.f32 %v2198_v11, %v2197_v0  ;;  %v2200_v60 = vpop.f32.mrb[10].mxu1 }
 0x170   : > { %v2201_v3 = vpop.f32.mrb[11].mxu1 }
 0x171   : > { %v3032_v13 = vadd.f32 %v2201_v3, %v2200_v60  ;;  %v2125_v4 = vpop.f32.mrb[8].mxu0 }
 0x172   : > { %v2126_v5 = vpop.f32.mrb[9].mxu0 }
 0x173   : > { %v2127_v15 = vadd.f32 %v2126_v5, %v2125_v4  ;;  %v2128_v6 = vpop.f32.mrb[10].mxu0 }
 0x174   : > { %v2129_v16 = vpop.f32.mrb[11].mxu0 }
 0x175   : > { %v2130_v21 = vadd.f32 %v2129_v16, %v2128_v6  ;;  %v2203_v17 = vpop.f32.mrb[12].mxu1 }
 0x176   : > { %v2204_v22 = vpop.f32.mrb[13].mxu1 }
 0x177   : > { %v3034_v23 = vadd.f32 %v2204_v22, %v2203_v17  ;;  %v2206_v27 = vpop.f32.mrb[14].mxu1 }
 0x178   : > { %v2207_v19 = vpop.f32.mrb[15].mxu1 }
 0x179   : > { %v3036_v28 = vadd.f32 %v2207_v19, %v2206_v27  ;;  %v2131_v31 = vpop.f32.mrb[12].mxu0 }
 0x17a   : > { %v2132_v10 = vpop.f32.mrb[13].mxu0 }
 0x17b   : > { %3572 = vst [vmem:[#allocation2_spill] sm:$0xff] %v3036_v28  ;;  %v2133_v25 = vadd.f32 %v2132_v10, %v2131_v31  ;;  %v2134_v32 = vpop.f32.mrb[14].mxu0 }
 0x17c   : > { %v2135_v35 = vpop.f32.mrb[15].mxu0 }
 0x17d   : > { %v2136_v29 = vadd.f32 %v2135_v35, %v2134_v32  ;;  %v2225_v36 = vpop.f32.mrb[16].mxu1 }
 0x17e   : > { %v2226_v33 = vpop.f32.mrb[17].mxu1 }
 0x17f   : > { %v2227_v18 = vadd.f32 %v2226_v33, %v2225_v36  ;;  %v2228_v38 = vpop.f32.mrb[18].mxu1 }
 0x180   : > { %v2229_v20 = vpop.f32.mrb[19].mxu1 }
 0x181   : > { %v2230_v26 = vadd.f32 %v2229_v20, %v2228_v38  ;;  %v2137_v30 = vpop.f32.mrb[16].mxu0  ;;  %v3038_v8 = vadd.f32 %v2227_v18, %v2115_v1 }
 0x182   : > { %v2138_v34 = vpop.f32.mrb[17].mxu0 }
 0x183   : > { %v2139_v7 = vadd.f32 %v2138_v34, %v2137_v30  ;;  %v2140_v39 = vpop.f32.mrb[18].mxu0  ;;  %v3040_v12 = vadd.f32 %v2230_v26, %v2118_v52 }
 0x184   : > { %v2141_v40 = vpop.f32.mrb[19].mxu0 }
 0x185   : > { %v2142_v41 = vadd.f32 %v2141_v40, %v2140_v39  ;;  %v2231_v14 = vpop.f32.mrb[20].mxu1 }
 0x186   : > { %v2232_v42 = vpop.f32.mrb[21].mxu1 }
 0x187   : > { %v2233_v43 = vadd.f32 %v2232_v42, %v2231_v14  ;;  %v2234_v44 = vpop.f32.mrb[22].mxu1 }
 0x188   : > { %v2235_v46 = vpop.f32.mrb[23].mxu1 }
 0x189   : > { %v2236_v47 = vadd.f32 %v2235_v46, %v2234_v44  ;;  %v2143_v51 = vpop.f32.mrb[20].mxu0  ;;  %v3042_v49 = vadd.f32 %v2233_v43, %v2121_v9 }
 0x18a   : > { %v2144_v37 = vpop.f32.mrb[21].mxu0 }
 0x18b   : > { %v2145_v48 = vadd.f32 %v2144_v37, %v2143_v51  ;;  %v2146_v1 = vpop.f32.mrb[22].mxu0  ;;  %v3044_v53 = vadd.f32 %v2236_v47, %v2124_v58 }
 0x18c   : > { %v2147_v24 = vpop.f32.mrb[23].mxu0 }
 0x18d   : > { %v2148_v55 = vadd.f32 %v2147_v24, %v2146_v1  ;;  %v2237_v52 = vpop.f32.mrb[24].mxu1 }
 0x18e   : > { %v2238_v56 = vpop.f32.mrb[25].mxu1 }
 0x18f   : > { %v2239_v59 = vadd.f32 %v2238_v56, %v2237_v52  ;;  %v2240_v61 = vpop.f32.mrb[26].mxu1 }
 0x190   : > { %v2241_v62 = vpop.f32.mrb[27].mxu1 }
 0x191   : > { %v2242_v63 = vadd.f32 %v2241_v62, %v2240_v61  ;;  %v2149_v0 = vpop.f32.mrb[24].mxu0  ;;  %v3046_v11 = vadd.f32 %v2239_v59, %v2127_v15 }
 0x192   : > { %v2150_v60 = vpop.f32.mrb[25].mxu0 }
 0x193   : > { %v2151_v3 = vadd.f32 %v2150_v60, %v2149_v0  ;;  %v2152_v9 = vpop.f32.mrb[26].mxu0  ;;  %v3048_v4 = vadd.f32 %v2242_v63, %v2130_v21 }
 0x194   : > { %v2153_v5 = vpop.f32.mrb[27].mxu0 }
 0x195   : > { %v2154_v6 = vadd.f32 %v2153_v5, %v2152_v9  ;;  %v2243_v58 = vpop.f32.mrb[28].mxu1 }
 0x196   : > { %v2244_v16 = vpop.f32.mrb[29].mxu1 }
 0x197   : > { %v2245_v17 = vadd.f32 %v2244_v16, %v2243_v58  ;;  %v2246_v22 = vpop.f32.mrb[30].mxu1 }
 0x198   : > { %v2247_v27 = vpop.f32.mrb[31].mxu1 }
 0x199   : > { %v2248_v19 = vadd.f32 %v2247_v27, %v2246_v22  ;;  %v2155_v31 = vpop.f32.mrb[28].mxu0  ;;  %v3050_v10 = vadd.f32 %v2245_v17, %v2133_v25 }
 0x19a   : > { %v2156_v32 = vpop.f32.mrb[29].mxu0 }
 0x19b   : > { %v2157_v35 = vadd.f32 %v2156_v32, %v2155_v31  ;;  %v2158_v15 = vpop.f32.mrb[30].mxu0  ;;  %v3052_v36 = vadd.f32 %v2248_v19, %v2136_v29 }
 0x19c   : > { %v2159_v33 = vpop.f32.mrb[31].mxu0 }
 0x19d   : > { %v2160_v18 = vadd.f32 %v2159_v33, %v2158_v15  ;;  %v2249_v21 = vpop.f32.mrb[32].mxu1 }
 0x19e   : > { %v2250_v38 = vpop.f32.mrb[33].mxu1 }
 0x19f   : > { %v2251_v20 = vadd.f32 %v2250_v38, %v2249_v21  ;;  %v2252_v26 = vpop.f32.mrb[34].mxu1 }
 0x1a0   : > { %v2253_v30 = vpop.f32.mrb[35].mxu1 }
 0x1a1   : > { %v2254_v34 = vadd.f32 %v2253_v30, %v2252_v26  ;;  %v2161_v39 = vpop.f32.mrb[32].mxu0  ;;  %v3054_v40 = vadd.f32 %v2251_v20, %v2139_v7 }
 0x1a2   : > { %v2162_v14 = vpop.f32.mrb[33].mxu0 }
 0x1a3   : > { %v3056_v42 = vadd.f32 %v2162_v14, %v2161_v39  ;;  %v2164_v25 = vpop.f32.mrb[34].mxu0  ;;  %v3058_v43 = vadd.f32 %v2254_v34, %v2142_v41 }
 0x1a4   : > { %v2165_v44 = vpop.f32.mrb[35].mxu0 }
 0x1a5   : > { %v3060_v29 = vadd.f32 %v2165_v44, %v2164_v25  ;;  %v2255_v46 = vpop.f32.mrb[36].mxu1  ;;  %v2082_v44 = vld [vmem:[%s3087_s9 + $0x8] sm:$0xff]  }
 0x1a6   : > { %v2256_v47 = vpop.f32.mrb[37].mxu1 }
 0x1a7   : > { %v2257_v51 = vadd.f32 %v2256_v47, %v2255_v46  ;;  %v2258_v37 = vpop.f32.mrb[38].mxu1 }
 0x1a8   : > { %v2259_v1 = vpop.f32.mrb[39].mxu1 }
 0x1a9   : > { %v2260_v24 = vadd.f32 %v2259_v1, %v2258_v37  ;;  %v2167_v52 = vpop.f32.mrb[36].mxu0  ;;  %v3062_v56 = vadd.f32 %v2257_v51, %v2145_v48  ;;  %v3113_v1 = vld [vmem:[%s3101_s15 + $0x10] sm:$0xff] }
 0x1aa   : > { %v2168_v7 = vpop.f32.mrb[37].mxu0 }
 0x1ab   : > { %v3064_v59 = vadd.f32 %v2168_v7, %v2167_v52  ;;  %v2170_v61 = vpop.f32.mrb[38].mxu0  ;;  %v3066_v62 = vadd.f32 %v2260_v24, %v2148_v55  ;;  %v2024_v24 = vunpack.c.l.bf16 %v2082_v44  ;;  %v3116_v7 = vld [vmem:[%s3101_s15] sm:$0xff] }
 0x1ac   : > { %v2171_v41 = vpop.f32.mrb[39].mxu0 }
 0x1ad   : > { %v3068_v63 = vadd.f32 %v2171_v41, %v2170_v61  ;;  %v2261_v0 = vpop.f32.mrb[40].mxu1 }
 0x1ae   : > { %v2262_v60 = vpop.f32.mrb[41].mxu1 }
 0x1af   : > { %v2263_v9 = vadd.f32 %v2262_v60, %v2261_v0  ;;  %v2264_v5 = vpop.f32.mrb[42].mxu1  ;;  %v1468_v0 = vld [vmem:[%s3109_s20 + $0x28] sm:$0xff] }
 0x1b0   : > { %v2265_v58 = vpop.f32.mrb[43].mxu1 }
 0x1b1   : > { %v2266_v16 = vadd.f32 %v2265_v58, %v2264_v5  ;;  %v2173_v48 = vpop.f32.mrb[40].mxu0  ;;  %v3072_v17 = vadd.f32 %v2263_v9, %v2151_v3  ;;  %v3120_v9 = vld [vmem:[%s3101_s15 + $0x18] sm:$0xff] }
 0x1b2   : > { %v2174_v22 = vpop.f32.mrb[41].mxu0 }
 0x1b3   : > { %v3074_v27 = vadd.f32 %v2174_v22, %v2173_v48  ;;  %v2176_v55 = vpop.f32.mrb[42].mxu0  ;;  %v3076_v19 = vadd.f32 %v2266_v16, %v2154_v6  ;;  %v1466_v22 = vld [vmem:[%s3109_s20 + $0x8] sm:$0xff] }
 0x1b4   : > { %v2177_v31 = vpop.f32.mrb[43].mxu0 }
 0x1b5   : > { %v3080_v32 = vadd.f32 %v2177_v31, %v2176_v55  ;;  %v2267_v15 = vpop.f32.mrb[44].mxu1  ;;  %v2025_v55 = vunpack.c.h.bf16 %v2082_v44  ;;  %v3129_v31 = vld [vmem:[%s3101_s15 + $0x8] sm:$0xff] }
 0x1b6   : > { %v2268_v33 = vpop.f32.mrb[45].mxu1 }
 0x1b7   : > { %v2269_v3 = vadd.f32 %v2268_v33, %v2267_v15  ;;  %v2270_v21 = vpop.f32.mrb[46].mxu1  ;;  %v3132_v15 = vmul.f32 %v2024_v24, %v3113_v1  ;;  %v3153_v24 = vld [vmem:[%s3101_s15 + $0x30] sm:$0xff] }
 0x1b8   : > { %v2271_v38 = vpop.f32.mrb[47].mxu1 }
 0x1b9   : > { %v2272_v20 = vadd.f32 %v2271_v38, %v2270_v21  ;;  %v2179_v26 = vpop.f32.mrb[44].mxu0  ;;  %v3089_v6 = vadd.f32 %v2269_v3, %v2157_v35  ;;  %v1469_v21 = vld [vmem:[%s3109_s20 + $0x38] sm:$0xff] }
 0x1ba   : > { %v2180_v30 = vpop.f32.mrb[45].mxu0 }
 0x1bb   : > { %v3091_v34 = vadd.f32 %v2180_v30, %v2179_v26  ;;  %v2182_v39 = vpop.f32.mrb[46].mxu0  ;;  %v3094_v14 = vadd.f32 %v2272_v20, %v2160_v18  ;;  %v2019_v18 = vld [vmem:[%s3087_s9] sm:$0xff]  }
 0x1bc   : > { %v2183_v25 = vpop.f32.mrb[47].mxu0  ;;  %v2020_v60 = vunpack.c.l.bf16 %v2019_v18  ;;  %v2021_v44 = vunpack.c.h.bf16 %v2019_v18 }
 0x1bd   : > { %v3104_v35 = vadd.f32 %v2183_v25, %v2182_v39  ;;  %v2273_v46 = vpop.f32.mrb[48].mxu1  ;;  %v1467_v25 = vld [vmem:[%s3109_s20 + $0x18] sm:$0xff] }
 0x1be   : > { %v2274_v47 = vpop.f32.mrb[49].mxu1 }
 0x1bf   : > { %v2275_v51 = vadd.f32 %v2274_v47, %v2273_v46  ;;  %v2276_v37 = vpop.f32.mrb[50].mxu1  ;;  %v2083_v46 = vld [vmem:[%s3087_s9 + $0x10] sm:$0xff]   ;;  %v3148_v47 = vmul.f32 %v2020_v60, %v3116_v7  ;;  %v3160_v60 = vld [vmem:[%s3101_s15 + $0x20] sm:$0xff] }
 0x1c0   : > { %v2277_v52 = vpop.f32.mrb[51].mxu1 }
 0x1c1   : > { %v2278_v61 = vadd.f32 %v2277_v52, %v2276_v37  ;;  %v2351_v41 = vpop.f32.mrb[48].mxu0  ;;  %v3123_v5 = vadd.f32 %v2275_v51, %v3056_v42  ;;  %v3156_v52 = vmul.f32 %v2025_v55, %v3120_v9 }
 0x1c2   : > { %v1348_v58 = vadd.f32 %v2351_v41, %v3042_v49  ;;  %v1339_v48 = vpop.f32.mrb[49].mxu0  ;;  %v3138_v49 = vld [vmem:[%s3087_s9 + $0x18] sm:$0xff]  }
 0x1c3   : > { %v1340_v33 = vadd.f32 %v1339_v48, %v3038_v8  ;;  %v2352_v42 = vpop.f32.mrb[50].mxu0  ;;  %v3141_v38 = vadd.f32 %v2278_v61, %v3060_v29  ;;  %v2032_v61 = vunpack.c.l.bf16 %v3138_v49  ;;  %v3163_v48 = vld [vmem:[%s3101_s15 + $0x38] sm:$0xff] }
 0x1c4   : > { %v1500_v20 = vadd.f32 %v1468_v0, %v1348_v58  ;;  %v1351_v26 = vadd.f32 %v2352_v42, %v3044_v53  ;;  %v1342_v39 = vpop.f32.mrb[51].mxu0  ;;  %v2028_v58 = vunpack.c.l.bf16 %v2083_v46  ;;  %v2033_v42 = vunpack.c.h.bf16 %v3138_v49 }
 0x1c5   : > { %v1498_v8 = vadd.f32 %v1466_v22, %v1340_v33  ;;  %v1343_v51 = vadd.f32 %v1342_v39, %v3040_v12  ;;  %v2279_v37 = vpop.f32.mrb[52].mxu1  ;;  %v3166_v22 = vmul.f32 %v2021_v44, %v3129_v31  ;;  %v1472_v39 = vld [vmem:[%s3109_s20 + $0x68] sm:$0xff]  ;;  %v3178_v44 = vld [vmem:[%s3087_s9 + $0x20] sm:$0xff]   ;;  %v3185_v49 = vmul.f32 %v2032_v61, %v3153_v24 }
 0x1c6   : > { %2496 = vtanh.f32 %v1500_v20  ;;  %v1501_v53 = vadd.f32 %v1469_v21, %v1351_v26  ;;  %v2280_v18 = vpop.f32.mrb[53].mxu1  ;;  %v3171_v21 = vld [vmem:[%s3087_s9 + $0x28] sm:$0xff]   ;;  %v3200_v61 = vld [vmem:[%s3101_s15 + $0x40] sm:$0xff]  ;;  %v3210_v3 = vmul.f32 %v2033_v42, %v3163_v48 }
 0x1c7   : > { %2498 = vtanh.f32 %v1498_v8  ;;  %v1499_v41 = vadd.f32 %v1467_v25, %v1343_v51  ;;  %v2281_v0 = vadd.f32 %v2280_v18, %v2279_v37  ;;  %v2282_v12 = vpop.f32.mrb[54].mxu1  ;;  %v3175_v25 = vld [vmem:[%s3101_s15 + $0x28] sm:$0xff]  ;;  %v2029_v8 = vunpack.c.h.bf16 %v2083_v46 }
 0x1c8   : > { %2500 = vtanh.f32 %v1501_v53  ;;  %v2283_v55 = vpop.f32.mrb[55].mxu1  ;;  %v1470_v18 = vld [vmem:[%s3109_s20 + $0x48] sm:$0xff]  ;;  %v3192_v46 = vmul.f32 %v2028_v58, %v3160_v60  ;;  %v1695_v58 = vsub.f32 1.0, %v3175_v25 }
 0x1c9   : > { %2502 = vtanh.f32 %v1499_v41  ;;  %v2284_v20 = vadd.f32 %v2283_v55, %v2282_v12  ;;  %v2355_v26 = vpop.f32.mrb[52].mxu0  ;;  %v3181_v51 = vadd.f32 %v2281_v0, %v3064_v59  ;;  %v1473_v59 = vld [vmem:[%s3109_s20 + $0x78] sm:$0xff]  ;;  %v3196_v0 = vld [vmem:[%s3101_s15 + $0x50] sm:$0xff]  ;;  %v3214_v28 = vmul.f32 %v2029_v8, %v3175_v25  ;;  %v3333_v25 = vld [vmem:[%s3101_s15 + $0x68] sm:$0xff] }
 0x1ca   : > { %v1364_v37 = vadd.f32 %v2355_v26, %v3050_v10  ;;  %v1355_v53 = vpop.f32.mrb[53].mxu0  ;;  %v2040_v10 = vunpack.c.l.bf16 %v3171_v21 }
 0x1cb   : > { %v1356_v55 = vadd.f32 %v1355_v53, %v3046_v11  ;;  %v2356_v33 = vpop.f32.mrb[54].mxu0  ;;  %v3203_v26 = vadd.f32 %v2284_v20, %v3068_v63  ;;  %v1471_v11 = vld [vmem:[%s3109_s20 + $0x58] sm:$0xff]  ;;  %v2036_v53 = vunpack.c.l.bf16 %v3178_v44 }
 0x1cc   : > { %v1504_v41 = vadd.f32 %v1472_v39, %v1364_v37  ;;  %v1367_v12 = vadd.f32 %v2356_v33, %v3052_v36  ;;  %v1358_v29 = vpop.f32.mrb[55].mxu0  ;;  %v3217_v20 = vld [vmem:[%s3101_s15 + $0x58] sm:$0xff]  ;;  %v1476_v37 = vld [vmem:[%s3109_s20 + $0xa8] sm:$0xff] }
 0x1cd   : > { %v1502_v30 = vadd.f32 %v1470_v18, %v1356_v55  ;;  %v1359_v16 = vadd.f32 %v1358_v29, %v3048_v4  ;;  %v2285_v63 = vpop.f32.mrb[56].mxu1  ;;  %v3222_v4 = vmul.f32 %v2040_v10, %v3196_v0  ;;  %v3225_v29 = vld [vmem:[%s3101_s15 + $0x48] sm:$0xff] }
 0x1ce   : > { %2504 = vtanh.f32 %v1504_v41  ;;  %v1505_v36 = vadd.f32 %v1473_v59, %v1367_v12  ;;  %v2286_v33 = vpop.f32.mrb[57].mxu1  ;;  %v3228_v12 = vmul.f32 %v2036_v53, %v3200_v61  ;;  %v2041_v59 = vunpack.c.h.bf16 %v3171_v21 }
 0x1cf   : > { %2506 = vtanh.f32 %v1502_v30  ;;  %v1503_v18 = vadd.f32 %v1471_v11, %v1359_v16  ;;  %v2287_v42 = vadd.f32 %v2286_v33, %v2285_v63  ;;  %v2288_v55 = vpop.f32.mrb[58].mxu1  ;;  %v3573_v11 = vsub.f32 1.0, %v3113_v1 }
 0x1d0   : > { %v2497_v8 = vpop.eup %2496  ;;  %2508 = vtanh.f32 %v1505_v36  ;;  %v2289_v41 = vpop.f32.mrb[59].mxu1  ;;  %v3574_v21 = vsub.f32 1.0, %v3116_v7 }
 0x1d1   : > { %v2499_v30 = vpop.eup %2498  ;;  %v1724_v63 = vmul.f32 %v2497_v8, %v3573_v11  ;;  %2510 = vtanh.f32 %v1503_v18  ;;  %v2290_v10 = vadd.f32 %v2289_v41, %v2288_v55  ;;  %v2359_v33 = vpop.f32.mrb[56].mxu0  ;;  %v3236_v36 = vadd.f32 %v2287_v42, %v3074_v27  ;;  %v1474_v55 = vld [vmem:[%s3109_s20 + $0x88] sm:$0xff] }
 0x1d2   : > { %v2501_v39 = vpop.eup %2500  ;;  %v1722_v53 = vmul.f32 %v2499_v30, %v3574_v21  ;;  %v1380_v1 = vadd.f32 %v2359_v33, %v3062_v56  ;;  %v1371_v18 = vpop.f32.mrb[57].mxu0  ;;  %v2037_v8 = vunpack.c.h.bf16 %v3178_v44  ;;  %v3575_v11 = vsub.f32 1.0, %v3120_v9  ;;  %v1477_v56 = vld [vmem:[%s3109_s20 + $0xb8] sm:$0xff] }
 0x1d3   : > { %v2503_v42 = vpop.eup %2502  ;;  %v1756_v41 = vadd.f32 %v1724_v63, %v3132_v15  ;;  %v1372_v7 = vadd.f32 %v1371_v18, %v3054_v40  ;;  %v2360_v30 = vpop.f32.mrb[58].mxu0  ;;  %v3257_v33 = vadd.f32 %v2290_v10, %v3080_v32  ;;  %v3576_v21 = vsub.f32 1.0, %v3129_v31  ;;  %v1475_v63 = vld [vmem:[%s3109_s20 + $0x98] sm:$0xff] }
 0x1d4   : > { %v1725_v16 = vmul.f32 %v2501_v39, %v3575_v11  ;;  %v1754_v44 = vadd.f32 %v1722_v53, %v3148_v47  ;;  %v1508_v15 = vadd.f32 %v1476_v37, %v1380_v1  ;;  %v1383_v9 = vadd.f32 %v2360_v30, %v3066_v62  ;;  %v1374_v39 = vpop.f32.mrb[59].mxu0  ;;  %v3265_v40 = vld [vmem:[%s3087_s9 + $0x38] sm:$0xff]   ;;  %v3275_v53 = vld [vmem:[%s3101_s15 + $0x70] sm:$0xff]  ;;  %v3278_v62 = vld [vmem:[%s3101_s15 + $0x60] sm:$0xff] }
 0x1d5   : > { %v1723_v27 = vmul.f32 %v2503_v42, %v3576_v21  ;;  %1788 = vst.msk [vmem:[%s3243_s22 + $0x10] sm:$0xff] %vm553_vm0, %v1756_v41  ;;  %v1506_v10 = vadd.f32 %v1474_v55, %v1372_v7  ;;  %v3271_v18 = vmul.f32 %v2041_v59, %v3217_v20  ;;  %v1375_v31 = vadd.f32 %v1374_v39, %v3058_v43  ;;  %v2291_v47 = vpop.f32.mrb[60].mxu1  ;;  %v3281_v37 = vld [vmem:[%s3087_s9 + $0x30] sm:$0xff]  }
 0x1d6   : > { %v1757_v32 = vadd.f32 %v1725_v16, %v3156_v52  ;;  %1786 = vst.msk [vmem:[%s3243_s22] sm:$0xff] %vm553_vm0, %v1754_v44  ;;  %2512 = vtanh.f32 %v1508_v15  ;;  %v1509_v52 = vadd.f32 %v1477_v56, %v1383_v9  ;;  %v3287_v16 = vmul.f32 %v2037_v8, %v3225_v29  ;;  %v2292_v59 = vpop.f32.mrb[61].mxu1  ;;  %v1480_v9 = vld [vmem:[%s3109_s20 + $0xe8] sm:$0xff] }
 0x1d7   : > { %v1755_v1 = vadd.f32 %v1723_v27, %v3166_v22  ;;  %2514 = vtanh.f32 %v1506_v10  ;;  %v1507_v43 = vadd.f32 %v1475_v63, %v1375_v31  ;;  %v2293_v55 = vadd.f32 %v2292_v59, %v2291_v47  ;;  %v2294_v42 = vpop.f32.mrb[62].mxu1 }
 0x1d8   : > { %1789 = vst.msk [vmem:[%s3243_s22 + $0x18] sm:$0xff] %vm553_vm0, %v1757_v32  ;;  %v2048_v41 = vunpack.c.l.bf16 %v3265_v40  ;;  %v2505_v11 = vpop.eup %2504  ;;  %2516 = vtanh.f32 %v1509_v52  ;;  %v2295_v22 = vpop.f32.mrb[63].mxu1  ;;  %v1704_v27 = vsub.f32 1.0, %v3275_v53  ;;  %v2044_v8 = vunpack.c.l.bf16 %v3281_v37 }
 0x1d9   : > { %1787 = vst.msk [vmem:[%s3243_s22 + $0x8] sm:$0xff] %vm553_vm0, %v1755_v1  ;;  %v1702_v7 = vsub.f32 1.0, %v3278_v62  ;;  %v2507_v30 = vpop.eup %2506  ;;  %v3577_v56 = vsub.f32 1.0, %v3153_v24  ;;  %2518 = vtanh.f32 %v1507_v43  ;;  %v2296_v21 = vadd.f32 %v2295_v22, %v2294_v42  ;;  %v2363_v15 = vpop.f32.mrb[60].mxu0  ;;  %v1478_v1 = vld [vmem:[%s3109_s20 + $0xc8] sm:$0xff] }
 0x1da   : > { %v3301_v39 = vadd.f32 %v2293_v55, %v3091_v34  ;;  %v2509_v63 = vpop.eup %2508  ;;  %v3578_v32 = vsub.f32 1.0, %v3160_v60  ;;  %v1396_v31 = vadd.f32 %v2363_v15, %v3089_v6  ;;  %v1387_v47 = vpop.f32.mrb[61].mxu0  ;;  %v2049_v24 = vunpack.c.h.bf16 %v3265_v40  ;;  %v3315_v6 = vld [vmem:[%s3101_s15 + $0x78] sm:$0xff] }
 0x1db   : > { %v1728_v44 = vmul.f32 %v2505_v11, %v3577_v56  ;;  %v2045_v52 = vunpack.c.h.bf16 %v3281_v37  ;;  %v2511_v59 = vpop.eup %2510  ;;  %v3579_v34 = vsub.f32 1.0, %v3163_v48  ;;  %v1388_v42 = vadd.f32 %v1387_v47, %v3072_v17  ;;  %v2364_v60 = vpop.f32.mrb[62].mxu0  ;;  %v1481_v11 = vld [vmem:[%s3109_s20 + $0xf8] sm:$0xff] }
 0x1dc   : > { %v1726_v10 = vmul.f32 %v2507_v30, %v3578_v32  ;;  %v3318_v22 = vadd.f32 %v2296_v21, %v3104_v35  ;;  %v1727_v37 = vmul.f32 %v2511_v59, %v1695_v58  ;;  %v1399_v48 = vadd.f32 %v2364_v60, %v3094_v14  ;;  %v1390_v30 = vpop.f32.mrb[63].mxu0  ;;  %v1479_v17 = vld [vmem:[%s3109_s20 + $0xd8] sm:$0xff]  ;;  %v3345_v32 = vld [vmem:[%s3087_s9 + $0x48] sm:$0xff]  }
 0x1dd   : > { %v1760_v43 = vadd.f32 %v1728_v44, %v3185_v49  ;;  %v1729_v55 = vmul.f32 %v2509_v63, %v3579_v34  ;;  %v1512_v49 = vadd.f32 %v1480_v9, %v1396_v31  ;;  %v3329_v44 = vmul.f32 %v2048_v41, %v3275_v53  ;;  %v2297_v58 = vpop.f32.mrb[64].mxu1  ;;  %v1484_v60 = vld [vmem:[%s3109_s20 + $0x128] sm:$0xff] }
 0x1de   : > { %v1758_v40 = vadd.f32 %v1726_v10, %v3192_v46  ;;  %v1510_v35 = vadd.f32 %v1478_v1, %v1388_v42  ;;  %v1391_v46 = vadd.f32 %v1390_v30, %v3076_v19  ;;  %v1759_v14 = vadd.f32 %v1727_v37, %v3214_v28  ;;  %v2298_v15 = vpop.f32.mrb[65].mxu1  ;;  %v3348_v10 = vld [vmem:[%s3087_s9 + $0x40] sm:$0xff]   ;;  %v1482_v30 = vld [vmem:[%s3109_s20 + $0x108] sm:$0xff] }
 0x1df   : > { %1792 = vst.msk [vmem:[%s3243_s22 + $0x30] sm:$0xff] %vm553_vm0, %v1760_v43  ;;  %v1761_v56 = vadd.f32 %v1729_v55, %v3210_v3  ;;  %2520 = vtanh.f32 %v1512_v49  ;;  %v1513_v21 = vadd.f32 %v1481_v11, %v1399_v48  ;;  %v1705_v3 = vsub.f32 1.0, %v3315_v6  ;;  %v2300_v63 = vpop.f32.mrb[66].mxu1  ;;  %v3369_v49 = vld [vmem:[%s3101_s15 + $0x90] sm:$0xff] }
 0x1e0   : > { %1790 = vst.msk [vmem:[%s3243_s22 + $0x20] sm:$0xff] %vm553_vm0, %v1758_v40  ;;  %2522 = vtanh.f32 %v1510_v35  ;;  %v3342_v41 = vmul.f32 %v2044_v8, %v3278_v62  ;;  %v1511_v19 = vadd.f32 %v1479_v17, %v1391_v46  ;;  %v2299_v9 = vadd.f32 %v2298_v15, %v2297_v58  ;;  %v2513_v28 = vpop.eup %2512  ;;  %1791 = vst.msk [vmem:[%s3243_s22 + $0x28] sm:$0xff] %vm553_vm0, %v1759_v14  ;;  %v2301_v1 = vpop.f32.mrb[67].mxu1  ;;  %v1485_v14 = vld [vmem:[%s3109_s20 + $0x138] sm:$0xff] }
 0x1e1   : > { %1793 = vst.msk [vmem:[%s3243_s22 + $0x38] sm:$0xff] %vm553_vm0, %v1761_v56  ;;  %2524 = vtanh.f32 %v1513_v21  ;;  %v3353_v31 = vmul.f32 %v2049_v24, %v3315_v6  ;;  %v3356_v47 = vmul.f32 %v2045_v52, %v3333_v25  ;;  %v1703_v8 = vsub.f32 1.0, %v3333_v25  ;;  %v2515_v59 = vpop.eup %2514  ;;  %v2367_v42 = vpop.f32.mrb[64].mxu0  ;;  %v3449_v25 = vld [vmem:[%s3101_s15 + $0xa0] sm:$0xff] }
 0x1e2   : > { %v3580_v43 = vsub.f32 1.0, %v3196_v0  ;;  %2526 = vtanh.f32 %v1511_v19  ;;  %v2302_v55 = vadd.f32 %v2301_v1, %v2300_v63  ;;  %v3363_v24 = vadd.f32 %v2299_v9, %v3022_v45  ;;  %v2517_v11 = vpop.eup %2516  ;;  %v1403_v48 = vpop.f32.mrb[65].mxu0 }
 0x1e3   : > { %v3581_v52 = vsub.f32 1.0, %v3200_v61  ;;  %v1412_v37 = vadd.f32 %v2367_v42, %v3181_v51  ;;  %v2056_v0 = vunpack.c.l.bf16 %v3345_v32  ;;  %v2052_v17 = vunpack.c.l.bf16 %v3348_v10  ;;  %v2519_v56 = vpop.eup %2518  ;;  %v3379_v51 = vld [vmem:[%s3101_s15 + $0x80] sm:$0xff]  ;;  %v2368_v58 = vpop.f32.mrb[66].mxu0 }
 0x1e4   : > { %v1732_v34 = vmul.f32 %v2513_v28, %v3580_v43  ;;  %v3582_v35 = vsub.f32 1.0, %v3217_v20  ;;  %v1404_v61 = vadd.f32 %v1403_v48, %v3123_v5  ;;  %v3383_v21 = vadd.f32 %v2302_v55, %v3024_v50  ;;  %v1406_v63 = vpop.f32.mrb[67].mxu0  ;;  %v1483_v28 = vld [vmem:[%s3109_s20 + $0x118] sm:$0xff] }
 0x1e5   : > { %v1730_v40 = vmul.f32 %v2515_v59, %v3581_v52  ;;  %v3583_v19 = vsub.f32 1.0, %v3225_v29  ;;  %v1415_v20 = vadd.f32 %v2368_v58, %v3203_v26  ;;  %v1708_v1 = vsub.f32 1.0, %v3369_v49  ;;  %v3395_v59 = vld [vmem:[%s3101_s15 + $0x98] sm:$0xff]  ;;  %v2303_v29 = vpop.f32.mrb[68].mxu1 }
 0x1e6   : > { %v1764_v45 = vadd.f32 %v1732_v34, %v3222_v4  ;;  %v1733_v46 = vmul.f32 %v2517_v11, %v3582_v35  ;;  %v1516_v4 = vadd.f32 %v1484_v60, %v1412_v37  ;;  %v1514_v50 = vadd.f32 %v1482_v30, %v1404_v61  ;;  %v2304_v55 = vpop.f32.mrb[69].mxu1  ;;  %v1488_v35 = vld [vmem:[%s3109_s20 + $0x168] sm:$0xff] }
 0x1e7   : > { %v1762_v15 = vadd.f32 %v1730_v40, %v3228_v12  ;;  %v1731_v9 = vmul.f32 %v2519_v56, %v3583_v19  ;;  %v1407_v12 = vadd.f32 %v1406_v63, %v3141_v38  ;;  %v1706_v43 = vsub.f32 1.0, %v3379_v51  ;;  %v3408_v38 = vld [vmem:[%s3101_s15 + $0x88] sm:$0xff]  ;;  %v2306_v11 = vpop.f32.mrb[70].mxu1  ;;  %v1487_v63 = vld [vmem:[%s3109_s20 + $0x158] sm:$0xff] }
 0x1e8   : > { %1796 = vst.msk [vmem:[%s3243_s22 + $0x50] sm:$0xff] %vm553_vm0, %v1764_v45  ;;  %v1765_v5 = vadd.f32 %v1733_v46, %v3271_v18  ;;  %2528 = vtanh.f32 %v1516_v4  ;;  %v1517_v34 = vadd.f32 %v1485_v14, %v1415_v20  ;;  %v3405_v18 = vmul.f32 %v2056_v0, %v3369_v49  ;;  %v2307_v0 = vpop.f32.mrb[71].mxu1 }
 0x1e9   : > { %1794 = vst.msk [vmem:[%s3243_s22 + $0x40] sm:$0xff] %vm553_vm0, %v1762_v15  ;;  %v1763_v26 = vadd.f32 %v1731_v9, %v3287_v16  ;;  %2530 = vtanh.f32 %v1514_v50  ;;  %v1515_v42 = vadd.f32 %v1483_v28, %v1407_v12  ;;  %v2305_v60 = vadd.f32 %v2304_v55, %v2303_v29  ;;  %v2521_v52 = vpop.eup %2520  ;;  %v2371_v45 = vpop.f32.mrb[68].mxu0  ;;  %v3446_v28 = vld [vmem:[%s3101_s15 + $0xb0] sm:$0xff] }
 0x1ea   : > { %1797 = vst.msk [vmem:[%s3243_s22 + $0x58] sm:$0xff] %vm553_vm0, %v1765_v5  ;;  %v3413_v16 = vmul.f32 %v2052_v17, %v3379_v51  ;;  %2532 = vtanh.f32 %v1517_v34  ;;  %v2057_v40 = vunpack.c.h.bf16 %v3345_v32  ;;  %v1709_v37 = vsub.f32 1.0, %v3395_v59  ;;  %v2523_v48 = vpop.eup %2522  ;;  %v1419_v53 = vpop.f32.mrb[69].mxu0 }
 0x1eb   : > { %1795 = vst.msk [vmem:[%s3243_s22 + $0x48] sm:$0xff] %vm553_vm0, %v1763_v26  ;;  %v1736_v30 = vmul.f32 %v2521_v52, %v1704_v27  ;;  %2534 = vtanh.f32 %v1515_v42  ;;  %v2308_v56 = vadd.f32 %v2307_v0, %v2306_v11  ;;  %v1283_v46 = vadd.f32 %v2305_v60, %v3026_v54  ;;  %v2525_v17 = vpop.eup %2524  ;;  %v1486_v27 = vld [vmem:[%s3109_s20 + $0x148] sm:$0xff] }
 0x1ec   : > { %v1734_v61 = vmul.f32 %v2523_v48, %v1702_v7  ;;  %v2053_v32 = vunpack.c.h.bf16 %v3348_v10  ;;  %v1707_v58 = vsub.f32 1.0, %v3408_v38  ;;  %v1428_v14 = vadd.f32 %v2371_v45, %v3301_v39  ;;  %v2527_v15 = vpop.eup %2526  ;;  %v2372_v7 = vpop.f32.mrb[70].mxu0  ;;  %v1489_v10 = vld [vmem:[%s3109_s20 + $0x178] sm:$0xff] }
 0x1ed   : > { %v1768_v19 = vadd.f32 %v1736_v30, %v3329_v44  ;;  %v1737_v54 = vmul.f32 %v2525_v17, %v1705_v3  ;;  %v1420_v62 = vadd.f32 %v1419_v53, %v3236_v36  ;;  %v1286_v9 = vadd.f32 %v2308_v56, %v3028_v57  ;;  %v3437_v44 = vld [vmem:[%s3087_s9 + $0x58] sm:$0xff]   ;;  %v1422_v3 = vpop.f32.mrb[71].mxu0  ;;  %v1492_v56 = vld [vmem:[%s3109_s20 + $0x1a8] sm:$0xff] }
 0x1ee   : > { %v1766_v39 = vadd.f32 %v1734_v61, %v3342_v41  ;;  %v1735_v4 = vmul.f32 %v2527_v15, %v1703_v8  ;;  %v1520_v20 = vadd.f32 %v1488_v35, %v1428_v14  ;;  %v1431_v6 = vadd.f32 %v2372_v7, %v3318_v22  ;;  %v3452_v8 = vld [vmem:[%s3087_s9 + $0x50] sm:$0xff]   ;;  %v2309_v22 = vpop.f32.mrb[72].mxu1  ;;  %v1585_v15 = vld [vmem:[%s3101_s15 + $0xb8] sm:$0xff] }
 0x1ef   : > { %1800 = vst.msk [vmem:[%s3243_s22 + $0x70] sm:$0xff] %vm553_vm0, %v1768_v19  ;;  %v1769_v36 = vadd.f32 %v1737_v54, %v3353_v31  ;;  %v1677_v57 = vmul.f32 %v2057_v40, %v3395_v59  ;;  %v1518_v41 = vadd.f32 %v1486_v27, %v1420_v62  ;;  %v1423_v5 = vadd.f32 %v1422_v3, %v3257_v33  ;;  %v2310_v29 = vpop.f32.mrb[73].mxu1  ;;  %v1493_v19 = vld [vmem:[%s3109_s20 + $0x1b8] sm:$0xff]  ;;  %v3505_v3 = vld [vmem:[%s3087_s9 + $0x68] sm:$0xff]  }
 0x1f0   : > { %1798 = vst.msk [vmem:[%s3243_s22 + $0x60] sm:$0xff] %vm553_vm0, %v1766_v39  ;;  %v1767_v50 = vadd.f32 %v1735_v4, %v3356_v47  ;;  %v1675_v12 = vmul.f32 %v2053_v32, %v3408_v38  ;;  %2536 = vtanh.f32 %v1520_v20  ;;  %v1521_v31 = vadd.f32 %v1489_v10, %v1431_v6  ;;  %v2312_v42 = vpop.f32.mrb[74].mxu1  ;;  %v1491_v10 = vld [vmem:[%s3109_s20 + $0x198] sm:$0xff]  ;;  %v3502_v6 = vld [vmem:[%s3101_s15 + $0xd0] sm:$0xff] }
 0x1f1   : > { %1801 = vst.msk [vmem:[%s3243_s22 + $0x78] sm:$0xff] %vm553_vm0, %v1769_v36  ;;  %v2064_v26 = vunpack.c.l.bf16 %v3437_v44  ;;  %2538 = vtanh.f32 %v1518_v41  ;;  %v1519_v34 = vadd.f32 %v1487_v63, %v1423_v5  ;;  %v2311_v55 = vadd.f32 %v2310_v29, %v2309_v22  ;;  %v2313_v52 = vpop.f32.mrb[75].mxu1  ;;  %v2375_v30 = vpop.f32.mrb[72].mxu0  ;;  %v3508_v63 = vld [vmem:[%s3087_s9 + $0x60] sm:$0xff]  }
 0x1f2   : > { %v2529_v33 = vpop.eup %2528  ;;  %1799 = vst.msk [vmem:[%s3243_s22 + $0x68] sm:$0xff] %vm553_vm0, %v1767_v50  ;;  %v1712_v60 = vsub.f32 1.0, %v3446_v28  ;;  %v2060_v47 = vunpack.c.l.bf16 %v3452_v8  ;;  %v1710_v11 = vsub.f32 1.0, %v3449_v25  ;;  %2540 = vtanh.f32 %v1521_v31  ;;  %v1435_v49 = vpop.f32.mrb[73].mxu0 }
 0x1f3   : > { %v2531_v40 = vpop.eup %2530  ;;  %v1740_v0 = vmul.f32 %v2529_v33, %v1708_v1  ;;  %2542 = vtanh.f32 %v1519_v34  ;;  %v2314_v48 = vadd.f32 %v2313_v52, %v2312_v42  ;;  %v3471_v45 = vadd.f32 %v2311_v55, %v3030_v2  ;;  %v1490_v1 = vld [vmem:[%s3109_s20 + $0x188] sm:$0xff] }
 0x1f4   : > { %v2533_v35 = vpop.eup %2532  ;;  %v1738_v17 = vmul.f32 %v2531_v40, %v1706_v43  ;;  %v2065_v61 = vunpack.c.h.bf16 %v3437_v44  ;;  %v2061_v32 = vunpack.c.h.bf16 %v3452_v8  ;;  %v1444_v14 = vadd.f32 %v2375_v30, %v1283_v46  ;;  %v2376_v43 = vpop.f32.mrb[74].mxu0  ;;  %v1496_v40 = vld [vmem:[%s3109_s20 + $0x1e8] sm:$0xff]  ;;  %v1586_v30 = vld [vmem:[%s3101_s15 + $0xc0] sm:$0xff] }
 0x1f5   : > { %v2535_v53 = vpop.eup %2534  ;;  %v1772_v27 = vadd.f32 %v1740_v0, %v3405_v18  ;;  %v1741_v2 = vmul.f32 %v2533_v35, %v1709_v37  ;;  %v1436_v51 = vadd.f32 %v1435_v49, %v3363_v24  ;;  %v3485_v54 = vadd.f32 %v2314_v48, %v3032_v13  ;;  %v1438_v59 = vpop.f32.mrb[75].mxu0  ;;  %v1583_v13 = vld [vmem:[%s3101_s15 + $0xa8] sm:$0xff] }
 0x1f6   : > { %v1770_v46 = vadd.f32 %v1738_v17, %v3413_v16  ;;  %v1739_v62 = vmul.f32 %v2535_v53, %v1707_v58  ;;  %v1524_v7 = vadd.f32 %v1492_v56, %v1444_v14  ;;  %v1447_v18 = vadd.f32 %v2376_v43, %v1286_v9  ;;  %v2315_v4 = vpop.f32.mrb[76].mxu1  ;;  %v3584_v14 = vld [vmem:[#allocation2_spill] sm:$0xff]  ;;  %v1495_v53 = vld [vmem:[%s3109_s20 + $0x1d8] sm:$0xff] }
 0x1f7   : > { %1804 = vst.msk [vmem:[%s3243_s22 + $0x90] sm:$0xff] %vm553_vm0, %v1772_v27  ;;  %v1773_v24 = vadd.f32 %v1741_v2, %v1677_v57  ;;  %v1680_v37 = vmul.f32 %v2064_v26, %v3446_v28  ;;  %v1522_v39 = vadd.f32 %v1490_v1, %v1436_v51  ;;  %v1439_v16 = vadd.f32 %v1438_v59, %v3383_v21  ;;  %v2316_v20 = vpop.f32.mrb[77].mxu1  ;;  %v1587_v2 = vld [vmem:[%s3101_s15 + $0xc8] sm:$0xff] }
 0x1f8   : > { %1802 = vst.msk [vmem:[%s3243_s22 + $0x80] sm:$0xff] %vm553_vm0, %v1770_v46  ;;  %v1771_v38 = vadd.f32 %v1739_v62, %v1675_v12  ;;  %v1713_v58 = vsub.f32 1.0, %v1585_v15  ;;  %2544 = vtanh.f32 %v1524_v7  ;;  %v1525_v9 = vadd.f32 %v1493_v19, %v1447_v18  ;;  %v2318_v57 = vpop.f32.mrb[78].mxu1 }
 0x1f9   : > { %1805 = vst.msk [vmem:[%s3243_s22 + $0x98] sm:$0xff] %vm553_vm0, %v1773_v24  ;;  %v1678_v44 = vmul.f32 %v2060_v47, %v3449_v25  ;;  %2546 = vtanh.f32 %v1522_v39  ;;  %v1523_v21 = vadd.f32 %v1491_v10, %v1439_v16  ;;  %v2317_v36 = vadd.f32 %v2316_v20, %v2315_v4  ;;  %v2319_v50 = vpop.f32.mrb[79].mxu1  ;;  %v2379_v34 = vpop.f32.mrb[76].mxu0 }
 0x1fa   : > { %v2537_v41 = vpop.eup %2536  ;;  %1803 = vst.msk [vmem:[%s3243_s22 + $0x88] sm:$0xff] %vm553_vm0, %v1771_v38  ;;  %v1681_v8 = vmul.f32 %v2065_v61, %v1585_v15  ;;  %v1679_v5 = vmul.f32 %v2061_v32, %v1583_v13  ;;  %v1711_v22 = vsub.f32 1.0, %v1583_v13  ;;  %2548 = vtanh.f32 %v1525_v9  ;;  %v1451_v28 = vpop.f32.mrb[77].mxu0  ;;  %v1589_v61 = vld [vmem:[%s3101_s15 + $0xd8] sm:$0xff] }
 0x1fb   : > { %v2539_v12 = vpop.eup %2538  ;;  %v1744_v31 = vmul.f32 %v2537_v41, %v1712_v60  ;;  %2550 = vtanh.f32 %v1523_v21  ;;  %v2320_v29 = vadd.f32 %v2319_v50, %v2318_v57  ;;  %v1299_v26 = vadd.f32 %v2317_v36, %v3034_v23  ;;  %v1494_v60 = vld [vmem:[%s3109_s20 + $0x1c8] sm:$0xff]  ;;  %v2380_v56 = vpop.f32.mrb[78].mxu0  ;;  %v2096_v38 = vld [vmem:[%s3087_s9 + $0x78] sm:$0xff]   ;;  %v1592_v21 = vld [vmem:[%s3101_s15 + $0xf0] sm:$0xff] }
 0x1fc   : > { %v2541_v55 = vpop.eup %2540  ;;  %v1742_v42 = vmul.f32 %v2539_v12, %v1710_v11  ;;  %v2072_v33 = vunpack.c.l.bf16 %v3505_v3  ;;  %v1716_v47 = vsub.f32 1.0, %v3502_v6  ;;  %v2068_v52 = vunpack.c.l.bf16 %v3508_v63  ;;  %v1454_v1 = vpop.f32.mrb[79].mxu0  ;;  %v1591_v50 = vld [vmem:[%s3101_s15 + $0xe8] sm:$0xff] }
 0x1fd   : > { %v2543_v0 = vpop.eup %2542  ;;  %v1776_v23 = vadd.f32 %v1744_v31, %v1680_v37  ;;  %v1745_v48 = vmul.f32 %v2541_v55, %v1713_v58  ;;  %v1460_v25 = vadd.f32 %v2379_v34, %v1299_v26  ;;  %v1452_v11 = vadd.f32 %v1451_v28, %v3471_v45  ;;  %v1497_v45 = vld [vmem:[%s3109_s20 + $0x1f8] sm:$0xff] }
 0x1fe   : > { %v1774_v35 = vadd.f32 %v1742_v42, %v1678_v44  ;;  %v1743_v17 = vmul.f32 %v2543_v0, %v1711_v22  ;;  %v2073_v32 = vunpack.c.h.bf16 %v3505_v3  ;;  %v1302_v49 = vadd.f32 %v2320_v29, %v3584_v14  ;;  %v2095_v44 = vld [vmem:[%s3087_s9 + $0x70] sm:$0xff]   ;;  %v1593_v29 = vld [vmem:[%s3101_s15 + $0xf8] sm:$0xff] }
 0x1ff   : > { %1808 = vst.msk [vmem:[%s3243_s22 + $0xb0] sm:$0xff] %vm553_vm0, %v1776_v23  ;;  %v1777_v27 = vadd.f32 %v1745_v48, %v1681_v8  ;;  %v1528_v15 = vadd.f32 %v1496_v40, %v1460_v25  ;;  %v1526_v51 = vadd.f32 %v1494_v60, %v1452_v11  ;;  %v1455_v43 = vadd.f32 %v1454_v1, %v3485_v54  ;;  %v1590_v8 = vld [vmem:[%s3101_s15 + $0xe0] sm:$0xff] }
 0x200   : > { %1806 = vst.msk [vmem:[%s3243_s22 + $0xa0] sm:$0xff] %vm553_vm0, %v1774_v35  ;;  %v1775_v19 = vadd.f32 %v1743_v17, %v1679_v5  ;;  %v1714_v46 = vsub.f32 1.0, %v1586_v30  ;;  %v2069_v62 = vunpack.c.h.bf16 %v3508_v63  ;;  %v1463_v7 = vadd.f32 %v2380_v56, %v1302_v49 }
 0x201   : > { %1809 = vst.msk [vmem:[%s3243_s22 + $0xb8] sm:$0xff] %vm553_vm0, %v1777_v27  ;;  %v1684_v18 = vmul.f32 %v2072_v33, %v3502_v6  ;;  %v1717_v59 = vsub.f32 1.0, %v1589_v61  ;;  %2552 = vtanh.f32 %v1528_v15  ;;  %v1527_v10 = vadd.f32 %v1495_v53, %v1455_v43 }
 0x202   : > { %v2545_v24 = vpop.eup %2544  ;;  %1807 = vst.msk [vmem:[%s3243_s22 + $0xa8] sm:$0xff] %vm553_vm0, %v1775_v19  ;;  %v1682_v54 = vmul.f32 %v2068_v52, %v1586_v30  ;;  %v1715_v37 = vsub.f32 1.0, %v1587_v2  ;;  %2554 = vtanh.f32 %v1526_v51  ;;  %v1529_v13 = vadd.f32 %v1497_v45, %v1463_v7 }
 0x203   : > { %v2547_v39 = vpop.eup %2546  ;;  %v1748_v16 = vmul.f32 %v2545_v24, %v1716_v47  ;;  %v1685_v4 = vmul.f32 %v2073_v32, %v1589_v61  ;;  %2556 = vtanh.f32 %v1527_v10  ;;  %v1683_v20 = vmul.f32 %v2069_v62, %v1587_v2 }
 0x204   : > { %v2549_v58 = vpop.eup %2548  ;;  %v1746_v9 = vmul.f32 %v2547_v39, %v1714_v46  ;;  %2558 = vtanh.f32 %v1529_v13  ;;  %v2080_v41 = vunpack.c.l.bf16 %v2096_v38  ;;  %v2076_v22 = vunpack.c.l.bf16 %v2095_v44 }
 0x205   : > { %v2551_v6 = vpop.eup %2550  ;;  %v1780_v3 = vadd.f32 %v1748_v16, %v1684_v18  ;;  %v1749_v63 = vmul.f32 %v2549_v58, %v1717_v59  ;;  %v1720_v31 = vsub.f32 1.0, %v1592_v21  ;;  %v2077_v26 = vunpack.c.h.bf16 %v2095_v44 }
 0x206   : > { %v1778_v36 = vadd.f32 %v1746_v9, %v1682_v54  ;;  %v1747_v57 = vmul.f32 %v2551_v6, %v1715_v37  ;;  %v1718_v34 = vsub.f32 1.0, %v1590_v8  ;;  %v2081_v55 = vunpack.c.h.bf16 %v2096_v38 }
 0x207   : > { %1812 = vst.msk [vmem:[%s3243_s22 + $0xd0] sm:$0xff] %vm553_vm0, %v1780_v3  ;;  %v1781_v5 = vadd.f32 %v1749_v63, %v1685_v4  ;;  %v1688_v42 = vmul.f32 %v2080_v41, %v1592_v21  ;;  %v1719_v33 = vsub.f32 1.0, %v1591_v50  ;;  %v1686_v52 = vmul.f32 %v2076_v22, %v1590_v8 }
 0x208   : > { %1810 = vst.msk [vmem:[%s3243_s22 + $0xc0] sm:$0xff] %vm553_vm0, %v1778_v36  ;;  %v1779_v12 = vadd.f32 %v1747_v57, %v1683_v20  ;;  %v1721_v40 = vsub.f32 1.0, %v1593_v29  ;;  %v1687_v0 = vmul.f32 %v2077_v26, %v1591_v50  ;;  %v1689_v30 = vmul.f32 %v2081_v55, %v1593_v29 }
 0x209   : > { %1813 = vst.msk [vmem:[%s3243_s22 + $0xd8] sm:$0xff] %vm553_vm0, %v1781_v5 }
 0x20a   : > { %1811 = vst.msk [vmem:[%s3243_s22 + $0xc8] sm:$0xff] %vm553_vm0, %v1779_v12 }
 0x20b   : > { %v2553_v47 = vpop.eup %2552 }
 0x20c   : > { %v2555_v28 = vpop.eup %2554  ;;  %v1752_v60 = vmul.f32 %v2553_v47, %v1720_v31 }
 0x20d   : > { %v2557_v23 = vpop.eup %2556  ;;  %v1750_v48 = vmul.f32 %v2555_v28, %v1718_v34 }
 0x20e   : > { %v2559_v25 = vpop.eup %2558  ;;  %v1784_v11 = vadd.f32 %v1752_v60, %v1688_v42  ;;  %v1751_v56 = vmul.f32 %v2557_v23, %v1719_v33 }
 0x20f   : > { %v1782_v35 = vadd.f32 %v1750_v48, %v1686_v52  ;;  %v1753_v17 = vmul.f32 %v2559_v25, %v1721_v40 }
 0x210   : > { %1816 = vst.msk [vmem:[%s3243_s22 + $0xf0] sm:$0xff] %vm553_vm0, %v1784_v11  ;;  %v1783_v61 = vadd.f32 %v1751_v56, %v1687_v0 }
 0x211   : > { %1814 = vst.msk [vmem:[%s3243_s22 + $0xe0] sm:$0xff] %vm553_vm0, %v1782_v35  ;;  %v1785_v32 = vadd.f32 %v1753_v17, %v1689_v30 }
 0x212   : > { %1815 = vst.msk [vmem:[%s3243_s22 + $0xe8] sm:$0xff] %vm553_vm0, %v1783_v61 }
 0x213   : > { %1817 = vst.msk [vmem:[%s3243_s22 + $0xf8] sm:$0xff] %vm553_vm0, %v1785_v32 }
 0x214 PF: > { %s15_s18 = sadd.s32 1, %s2566_s18  }
 0x215   : > { %p12_p5 = scmp.ge.s32.totalorder %s15_s18, 4  }
 0x217   :  { %14 = sbr.rel (!%p12_p5) target bundleno = 1 (0x1), region = 79 }

// kernel: myfcn_forward.22
= control target key start
LH: loop header
LB: loop body
LE: loop exit
PB: predicated region body
PF: predicated region fallthrough
CT: control target
= control target key end

     0   :  { %s1968_s12 = smov 0   ;;  %s2610_s0 = inlined_call_operand.vmem [shape: bf16[576,192], index: 0, kind: input, shape index: {}]   ;;  %s2611_s1 = inlined_call_operand.vmem [shape: bf16[576,9], index: 1, kind: input, shape index: {}]   ;;  %s2612_s2 = inlined_call_operand.vmem [shape: f32[1,9], index: 2, kind: input, shape index: {}]   ;;  %s2613_s3 = inlined_call_operand.vmem [shape: f32[512,9], index: 3, kind: output, shape index: {}]  }
   0x1 LB: > { %s1439_s13 = sadd.s32 4294967295, %s1945_s12   ;;  %p1443_p0 = scmp.ge.s32.totalorder %s1945_s12, 1  ;;  %s1945_s12 = sphi %s1968_s12, %s13_s12  }
   0x2   : > { %p139_p1 = scmp.lt.s32.totalorder %s1945_s12, 3 }
   0x4   : > { %p140_p2 = pnand %p1443_p0, %p139_p1 }
   0x5   : > { %s164_s14 = smul.u32 (!%p140_p2), 36, %s1439_s13  ;;  %v1897_v0 = vld [vmem:[%s2611_s1 + $0x40] sm:$0xff] (!%p140_p2)   ;;  %v1899_v2 = vld [vmem:[%s2611_s1 + $0x48] sm:$0xff] (!%p140_p2)   ;;  %v1901_v4 = vld [vmem:[%s2611_s1 + $0x50] sm:$0xff] (!%p140_p2)   ;;  %s1947_s6 = smov (!%p140_p2), 64   ;;  %vm430_vm0 = vcmask (!%p140_p2), 523264  }
   0x6   : > { %143 = sbr.rel (%p140_p2) target bundleno = 508 (0x1fc), region = 32  ;;  %v1898_v1 = vld [vmem:[%s2611_s1] sm:$0xff] (!%p140_p2)   ;;  %1824 = vmatprep.subr.bf16.mxu1 (!%p140_p2), %v1897_v0  ;;  %1540 = vmatprep.subr.bf16.mxu0 (!%p140_p2), %v1897_v0  ;;  %v1900_v3 = vld [vmem:[%s2611_s1 + $0x8] sm:$0xff] (!%p140_p2)   ;;  %v1902_v5 = vld [vmem:[%s2611_s1 + $0x10] sm:$0xff] (!%p140_p2)   ;;  %s1446_s20 = sshll.u32 (!%p140_p2), %s1439_s13, 5  ;;  %vm1350_vm1 = vcmask (!%p140_p2), 72704  }
   0x7   : > { %p165_p3 = scmp.lt.s32.totalorder (!%p140_p2), %s164_s14, 71  ;;  %1832 = vmatpush3.bf16.msra.mxu1 (!%p140_p2), %v1898_v1  ;;  %1541 = vmatpush3.bf16.msra.mxu0 (!%p140_p2), %v1898_v1  ;;  %v1903_v6 = vld [vmem:[%s2611_s1 + $0x58] sm:$0xff] (!%p140_p2)   ;;  %v1905_v22 = vld [vmem:[%s2611_s1 + $0x60] sm:$0xff] (!%p140_p2)   ;;  %v1907_v24 = vld [vmem:[%s2611_s1 + $0x68] sm:$0xff] (!%p140_p2)   ;;  %p172_p4 = scmp.lt.s32.totalorder (!%p140_p2), %s1446_s20, 63 }
   0x8   : > { %1825 = vmatprep.subr.bf16.mxu1 (!%p140_p2), %v1899_v2  ;;  %1542 = vmatprep.subr.bf16.mxu0 (!%p140_p2), %v1899_v2  ;;  %v1904_v21 = vld [vmem:[%s2611_s1 + $0x18] sm:$0xff] (!%p140_p2)   ;;  %v1906_v23 = vld [vmem:[%s2611_s1 + $0x20] sm:$0xff] (!%p140_p2)   ;;  %v1908_v27 = vld [vmem:[%s2611_s1 + $0x28] sm:$0xff] (!%p140_p2)  }
   0x9   : > { %v1909_v28 = vld [vmem:[%s2611_s1 + $0x70] sm:$0xff] (!%p140_p2)   ;;  %v1911_v32 = vld [vmem:[%s2611_s1 + $0x78] sm:$0xff] (!%p140_p2)   ;;  %v1913_v36 = vld [vmem:[%s2611_s1 + $0xc0] sm:$0xff] (!%p140_p2)  }
   0xa   : > { %v1910_v31 = vld [vmem:[%s2611_s1 + $0x30] sm:$0xff] (!%p140_p2)   ;;  %v1912_v35 = vld [vmem:[%s2611_s1 + $0x38] sm:$0xff] (!%p140_p2)   ;;  %v1918_v37 = vld [vmem:[%s2611_s1 + $0x100] sm:$0xff] (!%p140_p2)  }
   0xb   : > { %1833 = vmatpush3.bf16.msra.mxu1 (!%p140_p2), %v1900_v3  ;;  %1543 = vmatpush3.bf16.msra.mxu0 (!%p140_p2), %v1900_v3  ;;  %v1914_v52 = vld [vmem:[%s2611_s1 + $0x80] sm:$0xff] (!%p140_p2)   ;;  %v1917_v55 = vld [vmem:[%s2611_s1 + $0xc8] sm:$0xff] (!%p140_p2)   ;;  %v1921_v62 = vld [vmem:[%s2611_s1 + $0xd0] sm:$0xff] (!%p140_p2)  }
   0xc   : > { %1826 = vmatprep.subr.bf16.mxu1 (!%p140_p2), %v1901_v4  ;;  %1544 = vmatprep.subr.bf16.mxu0 (!%p140_p2), %v1901_v4  ;;  %v1920_v59 = vld [vmem:[%s2611_s1 + $0x88] sm:$0xff] (!%p140_p2)   ;;  %v1922_v2 = vld [vmem:[%s2611_s1 + $0x90] sm:$0xff] (!%p140_p2)   ;;  %v1923_v3 = vld [vmem:[%s2611_s1 + $0xd8] sm:$0xff] (!%p140_p2)  }
   0xd   : > { %s2615_s14 = smov (!%p165_p3, %s164_s14), 71  ;;  %v1932_v0 = vld [vmem:[%s2611_s1 + $0x108] sm:$0xff]   ;;  %s2617_s20 = smov (!%p172_p4, %s1446_s20), 63 }
   0xe   : > { %s1539_s25 = sshll.u32 %s2615_s14, 3  ;;  %s1447_s13 = sshll.u32 %s2617_s20, 3 }
   0xf   : > { %s1999_s30 = scalar_lea.vmem %s2610_s0, %s1539_s25  ;;  %1834 = vmatpush3.bf16.msra.mxu1 %v1902_v5  ;;  %1545 = vmatpush3.bf16.msra.mxu0 %v1902_v5  ;;  %v1934_v5 = vld [vmem:[%s2611_s1 + $0x110] sm:$0xff]   ;;  %s2479_s23 = scalar_lea.vmem %s2613_s3, %s1447_s13 }
  0x10   : > { %v2005_v7 = vld [vmem:[%s1999_s30 + $0xe0] ss:$8 sps:$4 sm:$0xff]   ;;  %v2008_v8 = vld [vmem:[%s1999_s30 + $0xd0] ss:$8 sps:$4 sm:$0xff]   ;;  %1827 = vmatprep.subr.bf16.mxu1 %v1903_v6  ;;  %1546 = vmatprep.subr.bf16.mxu0 %v1903_v6  ;;  %v2048_v16 = vld [vmem:[%s1999_s30 + $0x14] ss:$8 sps:$4 sm:$0xff]  }
  0x11   : > { %418 = vrot.lane.b32.xlu1 %v2005_v7, %s1947_s6  ;;  %v2013_v9 = vld [vmem:[%s1999_s30 + $0x20] ss:$8 sps:$4 sm:$0xff]   ;;  %414 = vrot.lane.b32.xlu0 %v2008_v8, %s1947_s6  ;;  %v2018_v10 = vld [vmem:[%s1999_s30 + $0x10] ss:$8 sps:$4 sm:$0xff]  }
  0x12   : > { %v2023_v11 = vld [vmem:[%s1999_s30 + $0x30] ss:$8 sps:$4 sm:$0xff]   ;;  %v2033_v13 = vld [vmem:[%s1999_s30 + $0x40] ss:$8 sps:$4 sm:$0xff]   ;;  %v2058_v18 = vld [vmem:[%s1999_s30 + $0x24] ss:$8 sps:$4 sm:$0xff]  }
  0x13   : > { %v2028_v12 = vld [vmem:[%s1999_s30 + $0xf0] ss:$8 sps:$4 sm:$0xff]   ;;  %v2038_v14 = vld [vmem:[%s1999_s30 + $0x100] ss:$8 sps:$4 sm:$0xff]   ;;  %v2064_v20 = vld [vmem:[%s1999_s30 + $0x34] ss:$8 sps:$4 sm:$0xff]   ;;  %1835 = vmatpush3.bf16.msra.mxu1 %v1904_v21  ;;  %1547 = vmatpush3.bf16.msra.mxu0 %v1904_v21 }
  0x14   : > { %v2043_v15 = vld [vmem:[%s1999_s30 + $0x50] ss:$8 sps:$4 sm:$0xff]   ;;  %v2053_v17 = vld [vmem:[%s1999_s30 + $0x60] ss:$8 sps:$4 sm:$0xff]   ;;  %1828 = vmatprep.subr.bf16.mxu1 %v1905_v22  ;;  %1548 = vmatprep.subr.bf16.mxu0 %v1905_v22  ;;  %v2088_v26 = vld [vmem:[%s1999_s30 + $0x44] ss:$8 sps:$4 sm:$0xff]  }
  0x15   : > { %370 = vrot.lane.b32.xlu1 %v2013_v9, %s1947_s6  ;;  %366 = vrot.lane.b32.xlu0 %v2018_v10, %s1947_s6  ;;  %v2061_v19 = vld [vmem:[%s1999_s30 + $0x70] ss:$8 sps:$4 sm:$0xff]   ;;  %v2083_v25 = vld [vmem:[%s1999_s30 + $0x80] ss:$8 sps:$4 sm:$0xff]  }
  0x16   : > { %v2099_v29 = vld [vmem:[%s1999_s30 + $0x90] ss:$8 sps:$4 sm:$0xff]   ;;  %v2104_v30 = vld [vmem:[%s1999_s30 + $0x54] ss:$8 sps:$4 sm:$0xff]   ;;  %v2117_v33 = vld [vmem:[%s1999_s30 + $0xa0] ss:$8 sps:$4 sm:$0xff]  }
  0x17   : > { %1836 = vmatpush3.bf16.msra.mxu1 %v1906_v23  ;;  %1549 = vmatpush3.bf16.msra.mxu0 %v1906_v23  ;;  %v2120_v34 = vld [vmem:[%s1999_s30 + $0x64] ss:$8 sps:$4 sm:$0xff]   ;;  %v2136_v38 = vld [vmem:[%s1999_s30 + $0xb0] ss:$8 sps:$4 sm:$0xff]   ;;  %v2141_v39 = vld [vmem:[%s1999_s30 + $0x74] ss:$8 sps:$4 sm:$0xff]  }
  0x18   : > { %1829 = vmatprep.subr.bf16.mxu1 %v1907_v24  ;;  %1550 = vmatprep.subr.bf16.mxu0 %v1907_v24  ;;  %v2146_v40 = vld [vmem:[%s1999_s30 + $0xc0] ss:$8 sps:$4 sm:$0xff]   ;;  %v2151_v41 = vld [vmem:[%s1999_s30 + $0x84] ss:$8 sps:$4 sm:$0xff]   ;;  %v2161_v43 = vld [vmem:[%s1999_s30 + $0x94] ss:$8 sps:$4 sm:$0xff]  }
  0x19   : > { %374 = vrot.lane.b32.xlu1 %v2023_v11, %s1947_s6  ;;  %422 = vrot.lane.b32.xlu0 %v2028_v12, %s1947_s6  ;;  %v2156_v42 = vld [vmem:[%s1999_s30 + $0xa4] ss:$8 sps:$4 sm:$0xff]   ;;  %v2171_v45 = vld [vmem:[%s1999_s30 + $0xb4] ss:$8 sps:$4 sm:$0xff]  }
  0x1a   : > { %v2164_v44 = vld [vmem:[%s1999_s30 + $0xc4] ss:$8 sps:$4 sm:$0xff]   ;;  %v2181_v47 = vld [vmem:[%s1999_s30 + $0xd4] ss:$8 sps:$4 sm:$0xff]   ;;  %v1919_v57 = vld [vmem:[%s1999_s30] ss:$8 sps:$4 sm:$0xff]  }
  0x1b   : > { %1837 = vmatpush3.bf16.msra.mxu1 %v1908_v27  ;;  %1551 = vmatpush3.bf16.msra.mxu0 %v1908_v27  ;;  %v2176_v46 = vld [vmem:[%s1999_s30 + $0xe4] ss:$8 sps:$4 sm:$0xff]   ;;  %v2191_v49 = vld [vmem:[%s1999_s30 + $0xf4] ss:$8 sps:$4 sm:$0xff]  }
  0x1c   : > { %1830 = vmatprep.subr.bf16.mxu1 %v1909_v28  ;;  %1552 = vmatprep.subr.bf16.mxu0 %v1909_v28  ;;  %v2186_v48 = vld [vmem:[%s1999_s30 + $0x104] ss:$8 sps:$4 sm:$0xff]   ;;  %v1935_v23 = vld [vmem:[%s2611_s1 + $0x118] sm:$0xff]  }
  0x1d   : > { %378 = vrot.lane.b32.xlu1 %v2033_v13, %s1947_s6  ;;  %426 = vrot.lane.b32.xlu0 %v2038_v14, %s1947_s6  ;;  %v1915_v54 = vld [vmem:[%s1999_s30 + $0x4] ss:$8 sps:$4 sm:$0xff]  }
  0x1e   : > { %v1925_v21 = vld [vmem:[%s2611_s1 + $0xe0] sm:$0xff]   ;;  %v1927_v28 = vld [vmem:[%s2611_s1 + $0xe8] sm:$0xff]  }
  0x1f   : > { %1838 = vmatpush3.bf16.msra.mxu1 %v1910_v31  ;;  %1553 = vmatpush3.bf16.msra.mxu0 %v1910_v31  ;;  %v1926_v27 = vld [vmem:[%s2611_s1 + $0xa0] sm:$0xff]  }
  0x20   : > { %1831 = vmatprep.subr.bf16.mxu1 %v1911_v32  ;;  %1554 = vmatprep.subr.bf16.mxu0 %v1911_v32  ;;  %v1928_v32 = vld [vmem:[%s2611_s1 + $0xa8] sm:$0xff]  }
  0x21   : > { %382 = vrot.lane.b32.xlu1 %v2043_v15, %s1947_s6  ;;  %368 = vrot.lane.b32.xlu0 %v2048_v16, %s1947_s6 }
  0x23   : > { %1839 = vmatpush3.bf16.msra.mxu1 %v1912_v35  ;;  %1555 = vmatpush3.bf16.msra.mxu0 %v1912_v35  ;;  %v1929_v35 = vld [vmem:[%s2611_s1 + $0xf0] sm:$0xff]  }
  0x24   : > { %1652 = vmatprep.subr.bf16.mxu1 %v1913_v36  ;;  %1784 = vmatprep.subr.bf16.mxu0 %v1918_v37 }
  0x25   : > { %386 = vrot.lane.b32.xlu1 %v2053_v17, %s1947_s6  ;;  %372 = vrot.lane.b32.xlu0 %v2058_v18, %s1947_s6 }
  0x29   : > { %390 = vrot.lane.b32.xlu1 %v2061_v19, %s1947_s6  ;;  %376 = vrot.lane.b32.xlu0 %v2064_v20, %s1947_s6 }
  0x2d   : > { %394 = vrot.lane.b32.xlu1 %v2083_v25, %s1947_s6  ;;  %380 = vrot.lane.b32.xlu0 %v2088_v26, %s1947_s6 }
  0x31   : > { %398 = vrot.lane.b32.xlu1 %v2099_v29, %s1947_s6  ;;  %384 = vrot.lane.b32.xlu0 %v2104_v30, %s1947_s6 }
  0x35   : > { %402 = vrot.lane.b32.xlu1 %v2117_v33, %s1947_s6  ;;  %388 = vrot.lane.b32.xlu0 %v2120_v34, %s1947_s6 }
  0x39   : > { %406 = vrot.lane.b32.xlu1 %v2136_v38, %s1947_s6  ;;  %392 = vrot.lane.b32.xlu0 %v2141_v39, %s1947_s6 }
  0x3d   : > { %410 = vrot.lane.b32.xlu1 %v2146_v40, %s1947_s6  ;;  %396 = vrot.lane.b32.xlu0 %v2151_v41, %s1947_s6 }
  0x41   : > { %404 = vrot.lane.b32.xlu1 %v2156_v42, %s1947_s6  ;;  %400 = vrot.lane.b32.xlu0 %v2161_v43, %s1947_s6 }
  0x45   : > { %412 = vrot.lane.b32.xlu1 %v2164_v44, %s1947_s6  ;;  %408 = vrot.lane.b32.xlu0 %v2171_v45, %s1947_s6 }
  0x49   : > { %420 = vrot.lane.b32.xlu1 %v2176_v46, %s1947_s6  ;;  %416 = vrot.lane.b32.xlu0 %v2181_v47, %s1947_s6 }
  0x4d   : > { %428 = vrot.lane.b32.xlu1 %v2186_v48, %s1947_s6  ;;  %424 = vrot.lane.b32.xlu0 %v2191_v49, %s1947_s6 }
  0x83   : > { %v2197_v50 = vpop.permute.xlu1 %418  ;;  %v2199_v51 = vpop.permute.xlu0 %414 }
  0x84   : > { %v524_v53 = vsel %vm430_vm0, %v2164_v44, %v2199_v51  ;;  %v528_v56 = vsel %vm430_vm0, %v2181_v47, %v2197_v50 }
  0x85   : > { %995 = vmatprep.mubr.bf16.mxu1 %v524_v53 }
  0x86   : > { %996 = vmatmul.mubr.bf16.vlgmr.msra.gmra.mrb[0].mxu1 %v2146_v40 }
  0x87   : > { %1653 = vmatpush3.bf16.msra.mxu1 %v1914_v52  ;;  %v2216_v58 = vpop.permute.xlu0 %366  ;;  %1003 = vmatprep.mubr.bf16.mxu1 %v528_v56  ;;  %v2221_v60 = vpop.permute.xlu1 %370  ;;  %v1931_v52 = vld [vmem:[%s2611_s1 + $0xf8] sm:$0xff]  }
  0x88   : > { %v476_v61 = vsel %vm430_vm0, %v1915_v54, %v2216_v58  ;;  %1654 = vmatprep.subr.bf16.mxu1 %v1917_v55  ;;  %v480_v63 = vsel %vm430_vm0, %v2048_v16, %v2221_v60  ;;  %v1924_v16 = vld [vmem:[%s2611_s1 + $0x98] sm:$0xff]  }
  0x89   : > { %899 = vmatprep.mubr.bf16.mxu0 %v476_v61  ;;  %v1933_v54 = vld [vmem:[%s2611_s1 + $0xb8] sm:$0xff]  }
  0x8a   : > { %900 = vmatmul.mubr.bf16.vlgmr.msra.gmra.mrb[0].mxu0 %v1919_v57 }
  0x8b   : > { %1655 = vmatpush3.bf16.msra.mxu1 %v1920_v59  ;;  %1785 = vmatpush3.bf16.msra.mxu0 %v1918_v37  ;;  %v2234_v1 = vpop.permute.xlu0 %422  ;;  %v2249_v6 = vpop.permute.xlu1 %374  ;;  %v1930_v37 = vld [vmem:[%s2611_s1 + $0xb0] sm:$0xff]  }
  0x8c   : > { %1656 = vmatprep.subr.bf16.mxu1 %v1921_v62  ;;  %907 = vmatprep.mubr.bf16.mxu0 %v480_v63  ;;  %v532_v4 = vsel %vm430_vm0, %v2176_v46, %v2234_v1  ;;  %v484_v22 = vsel %vm430_vm0, %v2058_v18, %v2249_v6 }
  0x8d   : > { %1786 = vmatprep.subr.bf16.mxu0 %v1932_v0 }
  0x8e   : > { %1004 = vmatmul.mubr.bf16.gmra.mrb[4].mxu1 %v2008_v8 }
  0x8f   : > { %1657 = vmatpush3.bf16.msra.mxu1 %v1922_v2  ;;  %1011 = vmatprep.mubr.bf16.mxu1 %v532_v4  ;;  %v2264_v24 = vpop.permute.xlu0 %426 }
  0x90   : > { %1658 = vmatprep.subr.bf16.mxu1 %v1923_v3  ;;  %1787 = vmatpush3.bf16.msra.mxu0 %v1932_v0  ;;  %v536_v31 = vsel %vm430_vm0, %v2191_v49, %v2264_v24 }
  0x91   : > { %1788 = vmatprep.subr.bf16.mxu0 %v1934_v5 }
  0x92   : > { %908 = vmatmul.mubr.bf16.gmra.mrb[4].mxu0 %v2018_v10  ;;  %v379_v10 = vpop.permute.xlu1 %378 }
  0x93   : > { %1659 = vmatpush3.bf16.msra.mxu1 %v1924_v16  ;;  %915 = vmatprep.mubr.bf16.mxu0 %v484_v22  ;;  %v488_v36 = vsel %vm430_vm0, %v2064_v20, %v379_v10  ;;  %v369_v56 = vpop.permute.xlu0 %368 }
  0x94   : > { %1660 = vmatprep.subr.bf16.mxu1 %v1925_v21  ;;  %1789 = vmatpush3.bf16.msra.mxu0 %v1934_v5  ;;  %v431_v57 = vsel %vm430_vm0, %v2216_v58, %v369_v56 }
  0x95   : > { %1790 = vmatprep.subr.bf16.mxu0 %v1935_v23 }
  0x96   : > { %1012 = vmatmul.mubr.bf16.gmra.mrb[8].mxu1 %v2005_v7  ;;  %v383_v53 = vpop.permute.xlu1 %382 }
  0x97   : > { %1661 = vmatpush3.bf16.msra.mxu1 %v1926_v27  ;;  %1019 = vmatprep.mubr.bf16.mxu1 %v536_v31  ;;  %v492_v55 = vsel %vm430_vm0, %v2088_v26, %v383_v53 }
  0x98   : > { %1662 = vmatprep.subr.bf16.mxu1 %v1927_v28  ;;  %1791 = vmatpush3.bf16.msra.mxu0 %v1935_v23 }
  0x9a   : > { %916 = vmatmul.mubr.bf16.gmra.mrb[8].mxu0 %v2013_v9  ;;  %v387_v59 = vpop.permute.xlu1 %386 }
  0x9b   : > { %1663 = vmatpush3.bf16.msra.mxu1 %v1928_v32  ;;  %923 = vmatprep.mubr.bf16.mxu0 %v488_v36  ;;  %v496_v61 = vsel %vm430_vm0, %v2104_v30, %v387_v59 }
  0x9c   : > { %1664 = vmatprep.subr.bf16.mxu1 %v1929_v35 }
  0x9e   : > { %1020 = vmatmul.mubr.bf16.gmra.mrb[12].mxu1 %v2028_v12  ;;  %v391_v63 = vpop.permute.xlu1 %390 }
  0x9f   : > { %1665 = vmatpush3.bf16.msra.mxu1 %v1930_v37  ;;  %1060 = vmatprep.mubr.bf16.mxu1 %v2013_v9  ;;  %v373_v9 = vpop.permute.xlu0 %372  ;;  %v500_v58 = vsel %vm430_vm0, %v2120_v34, %v391_v63 }
  0xa0   : > { %1666 = vmatprep.subr.bf16.mxu1 %v1931_v52  ;;  %v432_v62 = vsel %vm430_vm0, %v2221_v60, %v373_v9 }
  0xa2   : > { %924 = vmatmul.mubr.bf16.gmra.mrb[12].mxu0 %v2023_v11  ;;  %v395_v2 = vpop.permute.xlu1 %394 }
  0xa3   : > { %1667 = vmatpush3.bf16.msra.mxu1 %v1933_v54  ;;  %931 = vmatprep.mubr.bf16.mxu0 %v492_v55  ;;  %v377_v0 = vpop.permute.xlu0 %376  ;;  %v504_v60 = vsel %vm430_vm0, %v2141_v39, %v395_v2 }
  0xa6   : > { %1061 = vmatmul.mubr.bf16.vlgmr.msra.gmra.mrb[16].mxu1 %v431_v57  ;;  %v399_v4 = vpop.permute.xlu1 %398 }
  0xa7   : > { %1068 = vmatprep.mubr.bf16.mxu1 %v2023_v11  ;;  %v433_v11 = vsel %vm430_vm0, %v2249_v6, %v377_v0  ;;  %v381_v3 = vpop.permute.xlu0 %380  ;;  %v508_v5 = vsel %vm430_vm0, %v2151_v41, %v399_v4 }
  0xaa   : > { %932 = vmatmul.mubr.bf16.gmra.mrb[16].mxu0 %v2033_v13  ;;  %v403_v16 = vpop.permute.xlu1 %402 }
  0xab   : > { %939 = vmatprep.mubr.bf16.mxu0 %v496_v61  ;;  %v512_v21 = vsel %vm430_vm0, %v2161_v43, %v403_v16 }
  0xae   : > { %1069 = vmatmul.mubr.bf16.gmra.mrb[20].mxu1 %v432_v62  ;;  %v407_v23 = vpop.permute.xlu1 %406 }
  0xaf   : > { %1076 = vmatprep.mubr.bf16.mxu1 %v2033_v13  ;;  %v434_v13 = vsel %vm430_vm0, %v379_v10, %v381_v3  ;;  %v516_v27 = vsel %vm430_vm0, %v2156_v42, %v407_v23 }
  0xb2   : > { %940 = vmatmul.mubr.bf16.gmra.mrb[20].mxu0 %v2043_v15  ;;  %v411_v31 = vpop.permute.xlu1 %410 }
  0xb3   : > { %947 = vmatprep.mubr.bf16.mxu0 %v500_v58  ;;  %v520_v10 = vsel %vm430_vm0, %v2171_v45, %v411_v31 }
  0xb6   : > { %1077 = vmatmul.mubr.bf16.gmra.mrb[24].mxu1 %v433_v11  ;;  %v405_v36 = vpop.permute.xlu1 %404 }
  0xb7   : > { %1084 = vmatprep.mubr.bf16.mxu1 %v2043_v15  ;;  %v385_v15 = vpop.permute.xlu0 %384 }
  0xb8   : > { %v435_v6 = vsel %vm430_vm0, %v383_v53, %v385_v15 }
  0xba   : > { %948 = vmatmul.mubr.bf16.gmra.mrb[24].mxu0 %v2053_v17 }
  0xbb   : > { %955 = vmatprep.mubr.bf16.mxu0 %v504_v60 }
  0xbe   : > { %1085 = vmatmul.mubr.bf16.gmra.mrb[28].mxu1 %v434_v13 }
  0xbf   : > { %1092 = vmatprep.mubr.bf16.mxu1 %v2053_v17  ;;  %v389_v17 = vpop.permute.xlu0 %388 }
  0xc0   : > { %v436_v22 = vsel %vm430_vm0, %v387_v59, %v389_v17 }
  0xc2   : > { %956 = vmatmul.mubr.bf16.gmra.mrb[28].mxu0 %v2061_v19 }
  0xc3   : > { %963 = vmatprep.mubr.bf16.mxu0 %v508_v5 }
  0xc6   : > { %1093 = vmatmul.mubr.bf16.gmra.mrb[32].mxu1 %v435_v6 }
  0xc7   : > { %1100 = vmatprep.mubr.bf16.mxu1 %v2061_v19  ;;  %v393_v19 = vpop.permute.xlu0 %392 }
  0xc8   : > { %v437_v28 = vsel %vm430_vm0, %v391_v63, %v393_v19 }
  0xca   : > { %964 = vmatmul.mubr.bf16.gmra.mrb[32].mxu0 %v2083_v25 }
  0xcb   : > { %971 = vmatprep.mubr.bf16.mxu0 %v512_v21 }
  0xce   : > { %1101 = vmatmul.mubr.bf16.gmra.mrb[36].mxu1 %v436_v22 }
  0xcf   : > { %1108 = vmatprep.mubr.bf16.mxu1 %v2083_v25  ;;  %v397_v25 = vpop.permute.xlu0 %396 }
  0xd0   : > { %v438_v32 = vsel %vm430_vm0, %v395_v2, %v397_v25 }
  0xd2   : > { %972 = vmatmul.mubr.bf16.gmra.mrb[36].mxu0 %v2099_v29 }
  0xd3   : > { %979 = vmatprep.mubr.bf16.mxu0 %v516_v27  ;;  %v401_v35 = vpop.permute.xlu0 %400 }
  0xd6   : > { %1109 = vmatmul.mubr.bf16.gmra.mrb[40].mxu1 %v437_v28 }
  0xd7   : > { %1116 = vmatprep.mubr.bf16.mxu1 %v2099_v29  ;;  %v439_v29 = vsel %vm430_vm0, %v399_v4, %v401_v35 }
  0xda   : > { %980 = vmatmul.mubr.bf16.gmra.mrb[40].mxu0 %v2117_v33 }
  0xdb   : > { %987 = vmatprep.mubr.bf16.mxu0 %v520_v10 }
  0xde   : > { %1117 = vmatmul.mubr.bf16.gmra.mrb[44].mxu1 %v438_v32 }
  0xdf   : > { %1124 = vmatprep.mubr.bf16.mxu1 %v2117_v33  ;;  %v440_v33 = vsel %vm430_vm0, %v403_v16, %v405_v36 }
  0xe2   : > { %988 = vmatmul.mubr.bf16.gmra.mrb[44].mxu0 %v2136_v38 }
  0xe3   : > { %1792 = vmatprep.mubr.msk.bf16.mxu0 %vm430_vm0, %v2058_v18  ;;  %v409_v18 = vpop.permute.xlu0 %408 }
  0xe6   : > { %1125 = vmatmul.mubr.bf16.gmra.mrb[48].mxu1 %v439_v29 }
  0xe7   : > { %1132 = vmatprep.mubr.bf16.mxu1 %v2136_v38  ;;  %v441_v38 = vsel %vm430_vm0, %v407_v23, %v409_v18 }
  0xea   : > { %1793 = vmatmul.mubr.msk.bf16.vlgmr.msra.gmra.mrb[48].mxu0 %vm430_vm0, %v2064_v20  ;;  %v413_v20 = vpop.permute.xlu1 %412 }
  0xeb   : > { %1796 = vmatprep.mubr.msk.bf16.mxu0 %vm430_vm0, %v2088_v26  ;;  %v442_v26 = vsel %vm430_vm0, %v411_v31, %v413_v20 }
  0xee   : > { %1133 = vmatmul.mubr.bf16.gmra.mrb[52].mxu1 %v440_v33  ;;  %v2410_v33 = vld [vmem:[%s2612_s2] ss:$0 sm:$0xff] }
  0xef   : > { %1140 = vmatprep.mubr.bf16.mxu1 %v2146_v40 }
  0xf2   : > { %1797 = vmatmul.mubr.msk.bf16.gmra.mrb[52].mxu0 %vm430_vm0, %v2104_v30  ;;  %v417_v30 = vpop.permute.xlu0 %416 }
  0xf3   : > { %1800 = vmatprep.mubr.msk.bf16.mxu0 %vm430_vm0, %v2120_v34  ;;  %v421_v34 = vpop.permute.xlu1 %420 }
  0xf6   : > { %1141 = vmatmul.mubr.bf16.gmra.mrb[56].mxu1 %v441_v38 }
  0xf7   : > { %1148 = vmatprep.mubr.bf16.mxu1 %v2008_v8  ;;  %v443_v8 = vsel %vm430_vm0, %v2199_v51, %v417_v30 }
  0xfa   : > { %1801 = vmatmul.mubr.msk.bf16.gmra.mrb[56].mxu0 %vm430_vm0, %v2141_v39  ;;  %v425_v39 = vpop.permute.xlu0 %424 }
  0xfb   : > { %1804 = vmatprep.mubr.msk.bf16.mxu0 %vm430_vm0, %v2151_v41  ;;  %v445_v40 = vsel %vm430_vm0, %v2234_v1, %v425_v39  ;;  %v429_v41 = vpop.permute.xlu1 %428 }
  0xfe   : > { %1149 = vmatmul.mubr.bf16.gmra.mrb[60].mxu1 %v442_v26 }
  0xff   : > { %1156 = vmatprep.mubr.bf16.mxu1 %v2005_v7  ;;  %v444_v7 = vsel %vm430_vm0, %v2197_v50, %v421_v34 }
 0x102   : > { %1805 = vmatmul.mubr.msk.bf16.gmra.mrb[60].mxu0 %vm430_vm0, %v2161_v43 }
 0x103   : > { %1808 = vmatprep.mubr.msk.bf16.mxu0 %vm430_vm0, %v2156_v42  ;;  %v1938_v42 = vld [vmem:[%s1999_s30 + $0x114] ss:$8 sps:$4 sm:$0xff]  }
 0x106   : > { %1157 = vmatmul.mubr.bf16.gmra.mrb[64].mxu1 %v443_v8 }
 0x107   : > { %1164 = vmatprep.mubr.bf16.mxu1 %v2028_v12  ;;  %v1936_v12 = vld [vmem:[%s1999_s30 + $0x110] ss:$8 sps:$4 sm:$0xff]  }
 0x10a   : > { %1809 = vmatmul.mubr.msk.bf16.gmra.mrb[64].mxu0 %vm430_vm0, %v2171_v45 }
 0x10b   : > { %1812 = vmatprep.mubr.msk.bf16.mxu0 %vm430_vm0, %v2164_v44 }
 0x10e   : > { %1165 = vmatmul.mubr.bf16.gmra.mrb[68].mxu1 %v444_v7 }
 0x10f   : > { %1172 = vmatprep.mubr.bf16.mxu1 %v2038_v14  ;;  %v446_v14 = vsel %vm430_vm0, %v2264_v24, %v429_v41 }
 0x112   : > { %1813 = vmatmul.mubr.msk.bf16.gmra.mrb[68].mxu0 %vm430_vm0, %v2181_v47 }
 0x113   : > { %1816 = vmatprep.mubr.msk.bf16.mxu0 %vm430_vm0, %v2176_v46 }
 0x116   : > { %1173 = vmatmul.mubr.bf16.gmra.mrb[72].mxu1 %v445_v40 }
 0x117   : > { %1180 = vmatprep.mubr.bf16.mxu1 %v1936_v12 }
 0x11a   : > { %1817 = vmatmul.mubr.msk.bf16.gmra.mrb[72].mxu0 %vm430_vm0, %v2191_v49 }
 0x11b   : > { %1820 = vmatprep.mubr.msk.bf16.mxu0 %vm430_vm0, %v2186_v48 }
 0x11e   : > { %1181 = vmatmul.mubr.bf16.gmra.mrb[76].mxu1 %v446_v14 }
 0x122   : > { %1821 = vmatmul.mubr.msk.bf16.gmra.mrb[76].mxu0 %vm430_vm0, %v1938_v42 }
 0x159   : > { %v1628_v43 = vpop.f32.mrb[0].mxu1 }
 0x15a   : > { %v1629_v44 = vpop.f32.mrb[1].mxu1 }
 0x15b   : > { %v2391_v45 = vadd.f32 %v1629_v44, %v1628_v43  ;;  %v1631_v46 = vpop.f32.mrb[2].mxu1 }
 0x15c   : > { %v1632_v47 = vpop.f32.mrb[3].mxu1 }
 0x15d   : > { %v2393_v50 = vadd.f32 %v1632_v47, %v1631_v46  ;;  %v1556_v51 = vpop.f32.mrb[0].mxu0 }
 0x15e   : > { %v1557_v49 = vpop.f32.mrb[1].mxu0 }
 0x15f   : > { %v1558_v1 = vadd.f32 %v1557_v49, %v1556_v51  ;;  %v1559_v37 = vpop.f32.mrb[2].mxu0 }
 0x160   : > { %v1560_v48 = vpop.f32.mrb[3].mxu0 }
 0x161   : > { %v1561_v52 = vadd.f32 %v1560_v48, %v1559_v37  ;;  %v1634_v53 = vpop.f32.mrb[4].mxu1  ;;  %v902_v38 = vadd.f32 %v1558_v1, %v2410_v33 }
 0x162   : > { %v1635_v24 = vpop.f32.mrb[5].mxu1 }
 0x163   : > { %v2395_v54 = vadd.f32 %v1635_v24, %v1634_v53  ;;  %v1637_v55 = vpop.f32.mrb[6].mxu1  ;;  %v905_v8 = vadd.f32 %v1561_v52, %v2410_v33 }
 0x164   : > { %v1638_v56 = vpop.f32.mrb[7].mxu1 }
 0x165   : > { %v2397_v57 = vadd.f32 %v1638_v56, %v1637_v55  ;;  %v1562_v59 = vpop.f32.mrb[4].mxu0 }
 0x166   : > { %v1563_v61 = vpop.f32.mrb[5].mxu0 }
 0x167   : > { %v1564_v9 = vadd.f32 %v1563_v61, %v1562_v59  ;;  %v1565_v62 = vpop.f32.mrb[6].mxu0 }
 0x168   : > { %v1566_v63 = vpop.f32.mrb[7].mxu0 }
 0x169   : > { %v1567_v58 = vadd.f32 %v1566_v63, %v1565_v62  ;;  %v1640_v0 = vpop.f32.mrb[8].mxu1  ;;  %v910_v47 = vadd.f32 %v1564_v9, %v2410_v33 }
 0x16a   : > { %v1641_v11 = vpop.f32.mrb[9].mxu1 }
 0x16b   : > { %v2399_v2 = vadd.f32 %v1641_v11, %v1640_v0  ;;  %v1643_v60 = vpop.f32.mrb[10].mxu1  ;;  %v913_v37 = vadd.f32 %v1567_v58, %v2410_v33 }
 0x16c   : > { %v1644_v3 = vpop.f32.mrb[11].mxu1 }
 0x16d   : > { %v2401_v13 = vadd.f32 %v1644_v3, %v1643_v60  ;;  %v1568_v4 = vpop.f32.mrb[8].mxu0 }
 0x16e   : > { %v1569_v5 = vpop.f32.mrb[9].mxu0 }
 0x16f   : > { %v1570_v15 = vadd.f32 %v1569_v5, %v1568_v4  ;;  %v1571_v6 = vpop.f32.mrb[10].mxu0 }
 0x170   : > { %v1572_v16 = vpop.f32.mrb[11].mxu0 }
 0x171   : > { %v1573_v21 = vadd.f32 %v1572_v16, %v1571_v6  ;;  %v1646_v17 = vpop.f32.mrb[12].mxu1  ;;  %v918_v9 = vadd.f32 %v1570_v15, %v2410_v33 }
 0x172   : > { %v1647_v22 = vpop.f32.mrb[13].mxu1 }
 0x173   : > { %v2403_v23 = vadd.f32 %v1647_v22, %v1646_v17  ;;  %v1649_v27 = vpop.f32.mrb[14].mxu1  ;;  %v921_v58 = vadd.f32 %v1573_v21, %v2410_v33 }
 0x174   : > { %v1650_v19 = vpop.f32.mrb[15].mxu1 }
 0x175   : > { %v2405_v28 = vadd.f32 %v1650_v19, %v1649_v27  ;;  %v1574_v31 = vpop.f32.mrb[12].mxu0 }
 0x176   : > { %v1575_v10 = vpop.f32.mrb[13].mxu0 }
 0x177   : > { %v1576_v25 = vadd.f32 %v1575_v10, %v1574_v31  ;;  %v1577_v32 = vpop.f32.mrb[14].mxu0 }
 0x178   : > { %v1578_v35 = vpop.f32.mrb[15].mxu0 }
 0x179   : > { %v1579_v29 = vadd.f32 %v1578_v35, %v1577_v32  ;;  %v1668_v36 = vpop.f32.mrb[16].mxu1  ;;  %v926_v15 = vadd.f32 %v1576_v25, %v2410_v33 }
 0x17a   : > { %v1669_v18 = vpop.f32.mrb[17].mxu1 }
 0x17b   : > { %v1670_v20 = vadd.f32 %v1669_v18, %v1668_v36  ;;  %v1671_v26 = vpop.f32.mrb[18].mxu1  ;;  %v929_v21 = vadd.f32 %v1579_v29, %v2410_v33 }
 0x17c   : > { %v1672_v30 = vpop.f32.mrb[19].mxu1 }
 0x17d   : > { %v1673_v34 = vadd.f32 %v1672_v30, %v1671_v26  ;;  %v1580_v7 = vpop.f32.mrb[16].mxu0  ;;  %v2414_v39 = vadd.f32 %v1670_v20, %v902_v38 }
 0x17e   : > { %v1581_v12 = vpop.f32.mrb[17].mxu0 }
 0x17f   : > { %v1582_v40 = vadd.f32 %v1581_v12, %v1580_v7  ;;  %v1583_v41 = vpop.f32.mrb[18].mxu0  ;;  %v2416_v14 = vadd.f32 %v1673_v34, %v905_v8 }
 0x180   : > { %v1584_v42 = vpop.f32.mrb[19].mxu0 }
 0x181   : > { %v1585_v43 = vadd.f32 %v1584_v42, %v1583_v41  ;;  %v1674_v44 = vpop.f32.mrb[20].mxu1  ;;  %v934_v25 = vadd.f32 %v1582_v40, %v2410_v33 }
 0x182   : > { %v1675_v46 = vpop.f32.mrb[21].mxu1 }
 0x183   : > { %v1676_v51 = vadd.f32 %v1675_v46, %v1674_v44  ;;  %v1677_v49 = vpop.f32.mrb[22].mxu1  ;;  %v937_v29 = vadd.f32 %v1585_v43, %v2410_v33 }
 0x184   : > { %v1678_v1 = vpop.f32.mrb[23].mxu1 }
 0x185   : > { %v1679_v48 = vadd.f32 %v1678_v1, %v1677_v49  ;;  %v1586_v52 = vpop.f32.mrb[20].mxu0  ;;  %v2420_v53 = vadd.f32 %v1676_v51, %v910_v47 }
 0x186   : > { %v1587_v24 = vpop.f32.mrb[21].mxu0 }
 0x187   : > { %v1588_v55 = vadd.f32 %v1587_v24, %v1586_v52  ;;  %v1589_v56 = vpop.f32.mrb[22].mxu0  ;;  %v2422_v59 = vadd.f32 %v1679_v48, %v913_v37 }
 0x188   : > { %v1590_v61 = vpop.f32.mrb[23].mxu0 }
 0x189   : > { %v1591_v62 = vadd.f32 %v1590_v61, %v1589_v56  ;;  %v1680_v63 = vpop.f32.mrb[24].mxu1  ;;  %v942_v40 = vadd.f32 %v1588_v55, %v2410_v33 }
 0x18a   : > { %v1681_v0 = vpop.f32.mrb[25].mxu1 }
 0x18b   : > { %v1682_v11 = vadd.f32 %v1681_v0, %v1680_v63  ;;  %v1683_v60 = vpop.f32.mrb[26].mxu1  ;;  %v945_v43 = vadd.f32 %v1591_v62, %v2410_v33 }
 0x18c   : > { %v1684_v3 = vpop.f32.mrb[27].mxu1 }
 0x18d   : > { %v1685_v4 = vadd.f32 %v1684_v3, %v1683_v60  ;;  %v1592_v5 = vpop.f32.mrb[24].mxu0  ;;  %v2426_v6 = vadd.f32 %v1682_v11, %v918_v9 }
 0x18e   : > { %v1593_v16 = vpop.f32.mrb[25].mxu0 }
 0x18f   : > { %v1594_v17 = vadd.f32 %v1593_v16, %v1592_v5  ;;  %v1595_v22 = vpop.f32.mrb[26].mxu0  ;;  %v2428_v27 = vadd.f32 %v1685_v4, %v921_v58 }
 0x190   : > { %v1596_v19 = vpop.f32.mrb[27].mxu0 }
 0x191   : > { %v1597_v31 = vadd.f32 %v1596_v19, %v1595_v22  ;;  %v1686_v10 = vpop.f32.mrb[28].mxu1 }
 0x192   : > { %v1687_v32 = vpop.f32.mrb[29].mxu1 }
 0x193   : > { %v1688_v35 = vadd.f32 %v1687_v32, %v1686_v10  ;;  %v1689_v36 = vpop.f32.mrb[30].mxu1 }
 0x194   : > { %v1690_v18 = vpop.f32.mrb[31].mxu1 }
 0x195   : > { %v1691_v38 = vadd.f32 %v1690_v18, %v1689_v36  ;;  %v1598_v20 = vpop.f32.mrb[28].mxu0  ;;  %v2432_v26 = vadd.f32 %v1688_v35, %v926_v15  ;;  %v950_v36 = vadd.f32 %v1594_v17, %v2410_v33 }
 0x196   : > { %v1599_v30 = vpop.f32.mrb[29].mxu0 }
 0x197   : > { %v1600_v8 = vadd.f32 %v1599_v30, %v1598_v20  ;;  %v1601_v34 = vpop.f32.mrb[30].mxu0  ;;  %v2434_v7 = vadd.f32 %v1691_v38, %v929_v21  ;;  %v953_v38 = vadd.f32 %v1597_v31, %v2410_v33 }
 0x198   : > { %v1602_v12 = vpop.f32.mrb[31].mxu0 }
 0x199   : > { %v1603_v41 = vadd.f32 %v1602_v12, %v1601_v34  ;;  %v1692_v42 = vpop.f32.mrb[32].mxu1  ;;  %v958_v31 = vadd.f32 %v1600_v8, %v2410_v33 }
 0x19a   : > { %v1693_v44 = vpop.f32.mrb[33].mxu1 }
 0x19b   : > { %v1694_v46 = vadd.f32 %v1693_v44, %v1692_v42  ;;  %v1695_v47 = vpop.f32.mrb[34].mxu1 }
 0x19c   : > { %v1696_v51 = vpop.f32.mrb[35].mxu1 }
 0x19d   : > { %v1697_v49 = vadd.f32 %v1696_v51, %v1695_v47  ;;  %v1604_v1 = vpop.f32.mrb[32].mxu0  ;;  %v2438_v37 = vadd.f32 %v1694_v46, %v934_v25 }
 0x19e   : > { %v1605_v48 = vpop.f32.mrb[33].mxu0 }
 0x19f   : > { %v1606_v52 = vadd.f32 %v1605_v48, %v1604_v1  ;;  %v1607_v24 = vpop.f32.mrb[34].mxu0  ;;  %v2440_v56 = vadd.f32 %v1697_v49, %v937_v29  ;;  %v961_v48 = vadd.f32 %v1603_v41, %v2410_v33 }
 0x1a0   : > { %v1608_v61 = vpop.f32.mrb[35].mxu0 }
 0x1a1   : > { %v1609_v63 = vadd.f32 %v1608_v61, %v1607_v24  ;;  %v1698_v0 = vpop.f32.mrb[36].mxu1 }
 0x1a2   : > { %v1699_v9 = vpop.f32.mrb[37].mxu1 }
 0x1a3   : > { %v1700_v11 = vadd.f32 %v1699_v9, %v1698_v0  ;;  %v1701_v60 = vpop.f32.mrb[38].mxu1 }
 0x1a4   : > { %v1702_v3 = vpop.f32.mrb[39].mxu1 }
 0x1a5   : > { %v1703_v58 = vadd.f32 %v1702_v3, %v1701_v60  ;;  %v1610_v4 = vpop.f32.mrb[36].mxu0  ;;  %v2444_v5 = vadd.f32 %v1700_v11, %v942_v40 }
 0x1a6   : > { %v1611_v16 = vpop.f32.mrb[37].mxu0 }
 0x1a7   : > { %v2446_v22 = vadd.f32 %v1611_v16, %v1610_v4  ;;  %v1613_v19 = vpop.f32.mrb[38].mxu0  ;;  %v2448_v10 = vadd.f32 %v1703_v58, %v945_v43  ;;  %v966_v4 = vadd.f32 %v1606_v52, %v2410_v33 }
 0x1a8   : > { %v1614_v32 = vpop.f32.mrb[39].mxu0 }
 0x1a9   : > { %v2450_v15 = vadd.f32 %v1614_v32, %v1613_v19  ;;  %v1704_v55 = vpop.f32.mrb[40].mxu1  ;;  %v969_v32 = vadd.f32 %v1609_v63, %v2410_v33 }
 0x1aa   : > { %v1705_v35 = vpop.f32.mrb[41].mxu1 }
 0x1ab   : > { %v1706_v18 = vadd.f32 %v1705_v35, %v1704_v55  ;;  %v1707_v62 = vpop.f32.mrb[42].mxu1 }
 0x1ac   : > { %v1708_v21 = vpop.f32.mrb[43].mxu1 }
 0x1ad   : > { %v1709_v20 = vadd.f32 %v1708_v21, %v1707_v62  ;;  %v1616_v30 = vpop.f32.mrb[40].mxu0  ;;  %v2454_v34 = vadd.f32 %v1706_v18, %v950_v36 }
 0x1ae   : > { %v1617_v12 = vpop.f32.mrb[41].mxu0 }
 0x1af   : > { %v2456_v42 = vadd.f32 %v1617_v12, %v1616_v30  ;;  %v1619_v44 = vpop.f32.mrb[42].mxu0  ;;  %v2460_v25 = vadd.f32 %v1709_v20, %v953_v38 }
 0x1b0   : > { %v1620_v46 = vpop.f32.mrb[43].mxu0 }
 0x1b1   : > { %v2462_v47 = vadd.f32 %v1620_v46, %v1619_v44  ;;  %v1710_v17 = vpop.f32.mrb[44].mxu1 }
 0x1b2   : > { %v1711_v51 = vpop.f32.mrb[45].mxu1 }
 0x1b3   : > { %v1712_v29 = vadd.f32 %v1711_v51, %v1710_v17  ;;  %v1713_v49 = vpop.f32.mrb[46].mxu1 }
 0x1b4   : > { %v1714_v1 = vpop.f32.mrb[47].mxu1 }
 0x1b5   : > { %v1715_v24 = vadd.f32 %v1714_v1, %v1713_v49  ;;  %v1622_v61 = vpop.f32.mrb[44].mxu0  ;;  %v2466_v0 = vadd.f32 %v1712_v29, %v958_v31 }
 0x1b6   : > { %v1623_v9 = vpop.f32.mrb[45].mxu0 }
 0x1b7   : > { %v2468_v40 = vadd.f32 %v1623_v9, %v1622_v61  ;;  %v1625_v11 = vpop.f32.mrb[46].mxu0  ;;  %v2470_v60 = vadd.f32 %v1715_v24, %v961_v48 }
 0x1b8   : > { %v1626_v3 = vpop.f32.mrb[47].mxu0 }
 0x1b9   : > { %v2472_v43 = vadd.f32 %v1626_v3, %v1625_v11  ;;  %v1716_v8 = vpop.f32.mrb[48].mxu1 }
 0x1ba   : > { %v1717_v58 = vpop.f32.mrb[49].mxu1 }
 0x1bb   : > { %v1718_v41 = vadd.f32 %v1717_v58, %v1716_v8  ;;  %v1719_v16 = vpop.f32.mrb[50].mxu1 }
 0x1bc   : > { %v1720_v19 = vpop.f32.mrb[51].mxu1 }
 0x1bd   : > { %v1721_v55 = vadd.f32 %v1720_v19, %v1719_v16  ;;  %v1794_v35 = vpop.f32.mrb[48].mxu0  ;;  %v2481_v36 = vadd.f32 %v1718_v41, %v966_v4 }
 0x1be   : > { %v1232_v52 = vadd.f32 %v1794_v35, %v2420_v53  ;;  %v1223_v18 = vpop.f32.mrb[49].mxu0 }
 0x1bf   : > { %v1224_v62 = vadd.f32 %v1223_v18, %v2414_v39  ;;  %v1795_v63 = vpop.f32.mrb[50].mxu0  ;;  %v2485_v21 = vadd.f32 %v1721_v55, %v969_v32  ;;  %v974_v39 = vadd.f32 %v2446_v22, %v2410_v33 }
 0x1c0   : > { %1353 = vst.msk [vmem:[%s2479_s23 + $0x10] sm:$0xff] %vm1350_vm1, %v1232_v52  ;;  %v1235_v38 = vadd.f32 %v1795_v63, %v2422_v59  ;;  %v1226_v20 = vpop.f32.mrb[51].mxu0  ;;  %v977_v59 = vadd.f32 %v2450_v15, %v2410_v33 }
 0x1c1   : > { %1351 = vst.msk [vmem:[%s2479_s23] sm:$0xff] %vm1350_vm1, %v1224_v62  ;;  %v1227_v30 = vadd.f32 %v1226_v20, %v2416_v14  ;;  %v1722_v12 = vpop.f32.mrb[52].mxu1 }
 0x1c2   : > { %1354 = vst.msk [vmem:[%s2479_s23 + $0x18] sm:$0xff] %vm1350_vm1, %v1235_v38  ;;  %v1723_v53 = vpop.f32.mrb[53].mxu1 }
 0x1c3   : > { %1352 = vst.msk [vmem:[%s2479_s23 + $0x8] sm:$0xff] %vm1350_vm1, %v1227_v30  ;;  %v1724_v44 = vadd.f32 %v1723_v53, %v1722_v12  ;;  %v1725_v46 = vpop.f32.mrb[54].mxu1 }
 0x1c4   : > { %v1726_v17 = vpop.f32.mrb[55].mxu1 }
 0x1c5   : > { %v1727_v51 = vadd.f32 %v1726_v17, %v1725_v46  ;;  %v1798_v14 = vpop.f32.mrb[52].mxu0  ;;  %v2501_v31 = vadd.f32 %v1724_v44, %v974_v39 }
 0x1c6   : > { %v1248_v29 = vadd.f32 %v1798_v14, %v2432_v26  ;;  %v1239_v49 = vpop.f32.mrb[53].mxu0 }
 0x1c7   : > { %v1240_v22 = vadd.f32 %v1239_v49, %v2426_v6  ;;  %v1799_v1 = vpop.f32.mrb[54].mxu0  ;;  %v2505_v48 = vadd.f32 %v1727_v51, %v977_v59  ;;  %v982_v6 = vadd.f32 %v2456_v42, %v2410_v33 }
 0x1c8   : > { %1357 = vst.msk [vmem:[%s2479_s23 + $0x30] sm:$0xff] %vm1350_vm1, %v1248_v29  ;;  %v1251_v24 = vadd.f32 %v1799_v1, %v2434_v7  ;;  %v1242_v61 = vpop.f32.mrb[55].mxu0  ;;  %v985_v7 = vadd.f32 %v2462_v47, %v2410_v33 }
 0x1c9   : > { %1355 = vst.msk [vmem:[%s2479_s23 + $0x20] sm:$0xff] %vm1350_vm1, %v1240_v22  ;;  %v1243_v15 = vadd.f32 %v1242_v61, %v2428_v27  ;;  %v1728_v9 = vpop.f32.mrb[56].mxu1 }
 0x1ca   : > { %1358 = vst.msk [vmem:[%s2479_s23 + $0x38] sm:$0xff] %vm1350_vm1, %v1251_v24  ;;  %v1729_v26 = vpop.f32.mrb[57].mxu1 }
 0x1cb   : > { %1356 = vst.msk [vmem:[%s2479_s23 + $0x28] sm:$0xff] %vm1350_vm1, %v1243_v15  ;;  %v1730_v11 = vadd.f32 %v1729_v26, %v1728_v9  ;;  %v1731_v3 = vpop.f32.mrb[58].mxu1 }
 0x1cc   : > { %v1732_v8 = vpop.f32.mrb[59].mxu1 }
 0x1cd   : > { %v1733_v58 = vadd.f32 %v1732_v8, %v1731_v3  ;;  %v1802_v27 = vpop.f32.mrb[56].mxu0  ;;  %v2521_v4 = vadd.f32 %v1730_v11, %v982_v6 }
 0x1ce   : > { %v1264_v41 = vadd.f32 %v1802_v27, %v2444_v5  ;;  %v1255_v16 = vpop.f32.mrb[57].mxu0 }
 0x1cf   : > { %v1256_v42 = vadd.f32 %v1255_v16, %v2438_v37  ;;  %v1803_v19 = vpop.f32.mrb[58].mxu0  ;;  %v2525_v32 = vadd.f32 %v1733_v58, %v985_v7  ;;  %v990_v37 = vadd.f32 %v2468_v40, %v2410_v33 }
 0x1d0   : > { %1361 = vst.msk [vmem:[%s2479_s23 + $0x50] sm:$0xff] %vm1350_vm1, %v1264_v41  ;;  %v1267_v55 = vadd.f32 %v1803_v19, %v2448_v10  ;;  %v1258_v35 = vpop.f32.mrb[59].mxu0  ;;  %v993_v10 = vadd.f32 %v2472_v43, %v2410_v33 }
 0x1d1   : > { %1359 = vst.msk [vmem:[%s2479_s23 + $0x40] sm:$0xff] %vm1350_vm1, %v1256_v42  ;;  %v1259_v47 = vadd.f32 %v1258_v35, %v2440_v56  ;;  %v1734_v52 = vpop.f32.mrb[60].mxu1 }
 0x1d2   : > { %1362 = vst.msk [vmem:[%s2479_s23 + $0x58] sm:$0xff] %vm1350_vm1, %v1267_v55  ;;  %v1735_v5 = vpop.f32.mrb[61].mxu1 }
 0x1d3   : > { %1360 = vst.msk [vmem:[%s2479_s23 + $0x48] sm:$0xff] %vm1350_vm1, %v1259_v47  ;;  %v1736_v18 = vadd.f32 %v1735_v5, %v1734_v52  ;;  %v1737_v62 = vpop.f32.mrb[62].mxu1  ;;  %v1014_v47 = vadd.f32 %v2399_v2, %v2410_v33 }
 0x1d4   : > { %v1738_v63 = vpop.f32.mrb[63].mxu1 }
 0x1d5   : > { %v1739_v38 = vadd.f32 %v1738_v63, %v1737_v62  ;;  %v1806_v56 = vpop.f32.mrb[60].mxu0  ;;  %v1151_v20 = vadd.f32 %v1736_v18, %v990_v37  ;;  %v1017_v37 = vadd.f32 %v2401_v13, %v2410_v33 }
 0x1d6   : > { %v1280_v30 = vadd.f32 %v1806_v56, %v2466_v0  ;;  %v1271_v12 = vpop.f32.mrb[61].mxu0  ;;  %v998_v0 = vadd.f32 %v2391_v45, %v2410_v33 }
 0x1d7   : > { %v1272_v53 = vadd.f32 %v1271_v12, %v2454_v34  ;;  %v1807_v40 = vpop.f32.mrb[62].mxu0  ;;  %v1154_v39 = vadd.f32 %v1739_v38, %v993_v10 }
 0x1d8   : > { %1365 = vst.msk [vmem:[%s2479_s23 + $0x70] sm:$0xff] %vm1350_vm1, %v1280_v30  ;;  %v1283_v44 = vadd.f32 %v1807_v40, %v2470_v60  ;;  %v1274_v46 = vpop.f32.mrb[63].mxu0  ;;  %v1001_v60 = vadd.f32 %v2393_v50, %v2410_v33  ;;  %v1022_v40 = vadd.f32 %v2403_v23, %v2410_v33 }
 0x1d9   : > { %1363 = vst.msk [vmem:[%s2479_s23 + $0x60] sm:$0xff] %vm1350_vm1, %v1272_v53  ;;  %v1275_v43 = vadd.f32 %v1274_v46, %v2460_v25  ;;  %v1740_v17 = vpop.f32.mrb[64].mxu1 }
 0x1da   : > { %1366 = vst.msk [vmem:[%s2479_s23 + $0x78] sm:$0xff] %vm1350_vm1, %v1283_v44  ;;  %v1741_v59 = vpop.f32.mrb[65].mxu1 }
 0x1db   : > { %1364 = vst.msk [vmem:[%s2479_s23 + $0x68] sm:$0xff] %vm1350_vm1, %v1275_v43  ;;  %v1742_v34 = vadd.f32 %v1741_v59, %v1740_v17  ;;  %v1743_v51 = vpop.f32.mrb[66].mxu1  ;;  %v1025_v43 = vadd.f32 %v2405_v28, %v2410_v33 }
 0x1dc   : > { %v1744_v14 = vpop.f32.mrb[67].mxu1 }
 0x1dd   : > { %v1745_v29 = vadd.f32 %v1744_v14, %v1743_v51  ;;  %v1810_v25 = vpop.f32.mrb[64].mxu0  ;;  %v1159_v49 = vadd.f32 %v1742_v34, %v998_v0 }
 0x1de   : > { %v1296_v22 = vadd.f32 %v1810_v25, %v2501_v31  ;;  %v1287_v1 = vpop.f32.mrb[65].mxu0  ;;  %v1006_v31 = vadd.f32 %v2395_v54, %v2410_v33 }
 0x1df   : > { %v1288_v24 = vadd.f32 %v1287_v1, %v2481_v36  ;;  %v1811_v45 = vpop.f32.mrb[66].mxu0  ;;  %v1162_v61 = vadd.f32 %v1745_v29, %v1001_v60 }
 0x1e0   : > { %1369 = vst.msk [vmem:[%s2479_s23 + $0x90] sm:$0xff] %vm1350_vm1, %v1296_v22  ;;  %v1299_v15 = vadd.f32 %v1811_v45, %v2505_v48  ;;  %v1290_v9 = vpop.f32.mrb[67].mxu0  ;;  %v1009_v48 = vadd.f32 %v2397_v57, %v2410_v33 }
 0x1e1   : > { %1367 = vst.msk [vmem:[%s2479_s23 + $0x80] sm:$0xff] %vm1350_vm1, %v1288_v24  ;;  %v1291_v50 = vadd.f32 %v1290_v9, %v2485_v21  ;;  %v1746_v26 = vpop.f32.mrb[68].mxu1 }
 0x1e2   : > { %1370 = vst.msk [vmem:[%s2479_s23 + $0x98] sm:$0xff] %vm1350_vm1, %v1299_v15  ;;  %v1747_v6 = vpop.f32.mrb[69].mxu1 }
 0x1e3   : > { %1368 = vst.msk [vmem:[%s2479_s23 + $0x88] sm:$0xff] %vm1350_vm1, %v1291_v50  ;;  %v1748_v36 = vadd.f32 %v1747_v6, %v1746_v26  ;;  %v1749_v11 = vpop.f32.mrb[70].mxu1 }
 0x1e4   : > { %v1750_v3 = vpop.f32.mrb[71].mxu1 }
 0x1e5   : > { %v1751_v8 = vadd.f32 %v1750_v3, %v1749_v11  ;;  %v1814_v21 = vpop.f32.mrb[68].mxu0  ;;  %v1167_v7 = vadd.f32 %v1748_v36, %v1006_v31 }
 0x1e6   : > { %v1312_v58 = vadd.f32 %v1814_v21, %v1151_v20  ;;  %v1303_v27 = vpop.f32.mrb[69].mxu0 }
 0x1e7   : > { %v1304_v41 = vadd.f32 %v1303_v27, %v2521_v4  ;;  %v1815_v16 = vpop.f32.mrb[70].mxu0  ;;  %v1170_v54 = vadd.f32 %v1751_v8, %v1009_v48 }
 0x1e8   : > { %1373 = vst.msk [vmem:[%s2479_s23 + $0xb0] sm:$0xff] %vm1350_vm1, %v1312_v58  ;;  %v1315_v42 = vadd.f32 %v1815_v16, %v1154_v39  ;;  %v1306_v19 = vpop.f32.mrb[71].mxu0 }
 0x1e9   : > { %1371 = vst.msk [vmem:[%s2479_s23 + $0xa0] sm:$0xff] %vm1350_vm1, %v1304_v41  ;;  %v1307_v55 = vadd.f32 %v1306_v19, %v2525_v32  ;;  %v1752_v35 = vpop.f32.mrb[72].mxu1 }
 0x1ea   : > { %1374 = vst.msk [vmem:[%s2479_s23 + $0xb8] sm:$0xff] %vm1350_vm1, %v1315_v42  ;;  %v1753_v57 = vpop.f32.mrb[73].mxu1 }
 0x1eb   : > { %1372 = vst.msk [vmem:[%s2479_s23 + $0xa8] sm:$0xff] %vm1350_vm1, %v1307_v55  ;;  %v1754_v4 = vadd.f32 %v1753_v57, %v1752_v35  ;;  %v1755_v52 = vpop.f32.mrb[74].mxu1 }
 0x1ec   : > { %v1756_v5 = vpop.f32.mrb[75].mxu1 }
 0x1ed   : > { %v1757_v18 = vadd.f32 %v1756_v5, %v1755_v52  ;;  %v1818_v32 = vpop.f32.mrb[72].mxu0  ;;  %v1175_v62 = vadd.f32 %v1754_v4, %v1014_v47 }
 0x1ee   : > { %v1328_v63 = vadd.f32 %v1818_v32, %v1167_v7  ;;  %v1319_v10 = vpop.f32.mrb[73].mxu0 }
 0x1ef   : > { %v1320_v38 = vadd.f32 %v1319_v10, %v1159_v49  ;;  %v1819_v56 = vpop.f32.mrb[74].mxu0  ;;  %v1178_v20 = vadd.f32 %v1757_v18, %v1017_v37 }
 0x1f0   : > { %1377 = vst.msk [vmem:[%s2479_s23 + $0xd0] sm:$0xff] %vm1350_vm1, %v1328_v63  ;;  %v1331_v2 = vadd.f32 %v1819_v56, %v1170_v54  ;;  %v1322_v30 = vpop.f32.mrb[75].mxu0 }
 0x1f1   : > { %1375 = vst.msk [vmem:[%s2479_s23 + $0xc0] sm:$0xff] %vm1350_vm1, %v1320_v38  ;;  %v1323_v12 = vadd.f32 %v1322_v30, %v1162_v61  ;;  %v1758_v53 = vpop.f32.mrb[76].mxu1 }
 0x1f2   : > { %1378 = vst.msk [vmem:[%s2479_s23 + $0xd8] sm:$0xff] %vm1350_vm1, %v1331_v2  ;;  %v1759_v13 = vpop.f32.mrb[77].mxu1 }
 0x1f3   : > { %1376 = vst.msk [vmem:[%s2479_s23 + $0xc8] sm:$0xff] %vm1350_vm1, %v1323_v12  ;;  %v1760_v39 = vadd.f32 %v1759_v13, %v1758_v53  ;;  %v1761_v44 = vpop.f32.mrb[78].mxu1 }
 0x1f4   : > { %v1762_v46 = vpop.f32.mrb[79].mxu1 }
 0x1f5   : > { %v1763_v17 = vadd.f32 %v1762_v46, %v1761_v44  ;;  %v1183_v59 = vadd.f32 %v1760_v39, %v1022_v40  ;;  %v1822_v0 = vpop.f32.mrb[76].mxu0 }
 0x1f6   : > { %v1335_v34 = vpop.f32.mrb[77].mxu0 }
 0x1f7   : > { %v1344_v51 = vadd.f32 %v1822_v0, %v1183_v59  ;;  %v1336_v14 = vadd.f32 %v1335_v34, %v1175_v62  ;;  %v1186_v60 = vadd.f32 %v1763_v17, %v1025_v43  ;;  %v1823_v29 = vpop.f32.mrb[78].mxu0 }
 0x1f8   : > { %v1338_v23 = vpop.f32.mrb[79].mxu0 }
 0x1f9   : > { %1381 = vst.msk [vmem:[%s2479_s23 + $0xf0] sm:$0xff] %vm1350_vm1, %v1344_v51  ;;  %1379 = vst.msk [vmem:[%s2479_s23 + $0xe0] sm:$0xff] %vm1350_vm1, %v1336_v14  ;;  %v1347_v25 = vadd.f32 %v1823_v29, %v1186_v60  ;;  %v1339_v49 = vadd.f32 %v1338_v23, %v1178_v20 }
 0x1fb   : > { %1382 = vst.msk [vmem:[%s2479_s23 + $0xf8] sm:$0xff] %vm1350_vm1, %v1347_v25  ;;  %1380 = vst.msk [vmem:[%s2479_s23 + $0xe8] sm:$0xff] %vm1350_vm1, %v1339_v49 }
 0x1fc PF: > { %s13_s12 = sadd.s32 1, %s1945_s12  }
 0x1fd   : > { %p10_p5 = scmp.ge.s32.totalorder %s13_s12, 4  }
 0x1ff   :  { %12 = sbr.rel (!%p10_p5) target bundleno = 1 (0x1), region = 62 }

// kernel: myfcn_forward.25
= control target key start
LH: loop header
LB: loop body
LE: loop exit
PB: predicated region body
PF: predicated region fallthrough
CT: control target
= control target key end

     0   :  { %s1973_s14 = smov 0   ;;  %s2612_s0 = inlined_call_operand.vmem [shape: bf16[576,192], index: 0, kind: input, shape index: {}]   ;;  %s2613_s1 = inlined_call_operand.vmem [shape: bf16[576,1], index: 1, kind: input, shape index: {}]   ;;  %s2614_s2 = inlined_call_operand.<no memory space> [shape: f32[1,1], index: 2, kind: input, shape index: {}]   ;;  %s2615_s3 = inlined_call_operand.vmem [shape: f32[512,1], index: 3, kind: output, shape index: {}]  }
   0x1   :  { %v8_v0 = vstv %s2614_s2 }
   0x2   :  { %9 = vst [vmem:[#allocation2] sm:$0x1] %v8_v0 }
   0x3 LB: > { %s1441_s15 = sadd.s32 4294967295, %s1947_s14   ;;  %p1445_p0 = scmp.ge.s32.totalorder %s1947_s14, 1  ;;  %s1947_s14 = sphi %s1973_s14, %s15_s14  }
   0x4   : > { %p141_p1 = scmp.lt.s32.totalorder %s1947_s14, 3 }
   0x6   : > { %p142_p2 = pnand %p1445_p0, %p141_p1 }
   0x7   : > { %s166_s16 = smul.u32 (!%p142_p2), 36, %s1441_s15  ;;  %v1899_v1 = vld [vmem:[%s2613_s1 + $0x40] sm:$0xff] (!%p142_p2)   ;;  %v1901_v3 = vld [vmem:[%s2613_s1 + $0x48] sm:$0xff] (!%p142_p2)   ;;  %v1903_v5 = vld [vmem:[%s2613_s1 + $0x50] sm:$0xff] (!%p142_p2)   ;;  %s1949_s7 = smov (!%p142_p2), 64   ;;  %vm432_vm0 = vcmask (!%p142_p2), 523264  }
   0x8   : > { %145 = sbr.rel (%p142_p2) target bundleno = 510 (0x1fe), region = 32  ;;  %v1900_v2 = vld [vmem:[%s2613_s1] sm:$0xff] (!%p142_p2)   ;;  %1826 = vmatprep.subr.bf16.mxu1 (!%p142_p2), %v1899_v1  ;;  %1542 = vmatprep.subr.bf16.mxu0 (!%p142_p2), %v1899_v1  ;;  %v1902_v4 = vld [vmem:[%s2613_s1 + $0x8] sm:$0xff] (!%p142_p2)   ;;  %v1904_v6 = vld [vmem:[%s2613_s1 + $0x10] sm:$0xff] (!%p142_p2)   ;;  %vm1352_vm1 = vcmask (!%p142_p2), 7168  }
   0x9   : > { %p167_p3 = scmp.lt.s32.totalorder (!%p142_p2), %s166_s16, 71  ;;  %1834 = vmatpush3.bf16.msra.mxu1 (!%p142_p2), %v1900_v2  ;;  %1543 = vmatpush3.bf16.msra.mxu0 (!%p142_p2), %v1900_v2  ;;  %v1905_v7 = vld [vmem:[%s2613_s1 + $0x58] sm:$0xff] (!%p142_p2)   ;;  %v1907_v23 = vld [vmem:[%s2613_s1 + $0x60] sm:$0xff] (!%p142_p2)   ;;  %v1909_v25 = vld [vmem:[%s2613_s1 + $0x68] sm:$0xff] (!%p142_p2)  }
   0xa   : > { %1827 = vmatprep.subr.bf16.mxu1 (!%p142_p2), %v1901_v3  ;;  %1544 = vmatprep.subr.bf16.mxu0 (!%p142_p2), %v1901_v3  ;;  %v1906_v22 = vld [vmem:[%s2613_s1 + $0x18] sm:$0xff] (!%p142_p2)   ;;  %v1908_v24 = vld [vmem:[%s2613_s1 + $0x20] sm:$0xff] (!%p142_p2)   ;;  %v1910_v28 = vld [vmem:[%s2613_s1 + $0x28] sm:$0xff] (!%p142_p2)  }
   0xb   : > { %v1911_v29 = vld [vmem:[%s2613_s1 + $0x70] sm:$0xff] (!%p142_p2)   ;;  %v1913_v33 = vld [vmem:[%s2613_s1 + $0x78] sm:$0xff] (!%p142_p2)   ;;  %v1915_v37 = vld [vmem:[%s2613_s1 + $0xc0] sm:$0xff] (!%p142_p2)  }
   0xc   : > { %v1912_v32 = vld [vmem:[%s2613_s1 + $0x30] sm:$0xff] (!%p142_p2)   ;;  %v1914_v36 = vld [vmem:[%s2613_s1 + $0x38] sm:$0xff] (!%p142_p2)   ;;  %v1920_v38 = vld [vmem:[%s2613_s1 + $0x100] sm:$0xff] (!%p142_p2)  }
   0xd   : > { %1835 = vmatpush3.bf16.msra.mxu1 (!%p142_p2), %v1902_v4  ;;  %1545 = vmatpush3.bf16.msra.mxu0 (!%p142_p2), %v1902_v4  ;;  %v1916_v53 = vld [vmem:[%s2613_s1 + $0x80] sm:$0xff] (!%p142_p2)   ;;  %v1919_v56 = vld [vmem:[%s2613_s1 + $0xc8] sm:$0xff] (!%p142_p2)   ;;  %v1923_v63 = vld [vmem:[%s2613_s1 + $0xd0] sm:$0xff] (!%p142_p2)  }
   0xe   : > { %1828 = vmatprep.subr.bf16.mxu1 (!%p142_p2), %v1903_v5  ;;  %1546 = vmatprep.subr.bf16.mxu0 (!%p142_p2), %v1903_v5  ;;  %v1922_v60 = vld [vmem:[%s2613_s1 + $0x88] sm:$0xff] (!%p142_p2)   ;;  %v1924_v3 = vld [vmem:[%s2613_s1 + $0x90] sm:$0xff] (!%p142_p2)   ;;  %v1925_v4 = vld [vmem:[%s2613_s1 + $0xd8] sm:$0xff] (!%p142_p2)  }
   0xf   : > { %s2617_s16 = smov (!%p167_p3, %s166_s16), 71  ;;  %v1934_v1 = vld [vmem:[%s2613_s1 + $0x108] sm:$0xff]  }
  0x10   : > { %s1541_s26 = sshll.u32 %s2617_s16, 3 }
  0x11   : > { %s2004_s4 = scalar_lea.vmem %s2612_s0, %s1541_s26  ;;  %1836 = vmatpush3.bf16.msra.mxu1 %v1904_v6  ;;  %1547 = vmatpush3.bf16.msra.mxu0 %v1904_v6  ;;  %v1936_v6 = vld [vmem:[%s2613_s1 + $0x110] sm:$0xff]  }
  0x12   : > { %v2010_v8 = vld [vmem:[%s2004_s4 + $0xe0] ss:$8 sps:$4 sm:$0xff]   ;;  %v2013_v9 = vld [vmem:[%s2004_s4 + $0xd0] ss:$8 sps:$4 sm:$0xff]   ;;  %1829 = vmatprep.subr.bf16.mxu1 %v1905_v7  ;;  %1548 = vmatprep.subr.bf16.mxu0 %v1905_v7  ;;  %v2053_v17 = vld [vmem:[%s2004_s4 + $0x14] ss:$8 sps:$4 sm:$0xff]  }
  0x13   : > { %420 = vrot.lane.b32.xlu1 %v2010_v8, %s1949_s7  ;;  %v2018_v10 = vld [vmem:[%s2004_s4 + $0x20] ss:$8 sps:$4 sm:$0xff]   ;;  %416 = vrot.lane.b32.xlu0 %v2013_v9, %s1949_s7  ;;  %v2023_v11 = vld [vmem:[%s2004_s4 + $0x10] ss:$8 sps:$4 sm:$0xff]  }
  0x14   : > { %v2028_v12 = vld [vmem:[%s2004_s4 + $0x30] ss:$8 sps:$4 sm:$0xff]   ;;  %v2038_v14 = vld [vmem:[%s2004_s4 + $0x40] ss:$8 sps:$4 sm:$0xff]   ;;  %v2063_v19 = vld [vmem:[%s2004_s4 + $0x24] ss:$8 sps:$4 sm:$0xff]  }
  0x15   : > { %v2033_v13 = vld [vmem:[%s2004_s4 + $0xf0] ss:$8 sps:$4 sm:$0xff]   ;;  %v2043_v15 = vld [vmem:[%s2004_s4 + $0x100] ss:$8 sps:$4 sm:$0xff]   ;;  %v2069_v21 = vld [vmem:[%s2004_s4 + $0x34] ss:$8 sps:$4 sm:$0xff]   ;;  %1837 = vmatpush3.bf16.msra.mxu1 %v1906_v22  ;;  %1549 = vmatpush3.bf16.msra.mxu0 %v1906_v22 }
  0x16   : > { %v2048_v16 = vld [vmem:[%s2004_s4 + $0x50] ss:$8 sps:$4 sm:$0xff]   ;;  %v2058_v18 = vld [vmem:[%s2004_s4 + $0x60] ss:$8 sps:$4 sm:$0xff]   ;;  %1830 = vmatprep.subr.bf16.mxu1 %v1907_v23  ;;  %1550 = vmatprep.subr.bf16.mxu0 %v1907_v23  ;;  %v2093_v27 = vld [vmem:[%s2004_s4 + $0x44] ss:$8 sps:$4 sm:$0xff]  }
  0x17   : > { %372 = vrot.lane.b32.xlu1 %v2018_v10, %s1949_s7  ;;  %368 = vrot.lane.b32.xlu0 %v2023_v11, %s1949_s7  ;;  %v2066_v20 = vld [vmem:[%s2004_s4 + $0x70] ss:$8 sps:$4 sm:$0xff]   ;;  %v2088_v26 = vld [vmem:[%s2004_s4 + $0x80] ss:$8 sps:$4 sm:$0xff]  }
  0x18   : > { %v2104_v30 = vld [vmem:[%s2004_s4 + $0x90] ss:$8 sps:$4 sm:$0xff]   ;;  %v2109_v31 = vld [vmem:[%s2004_s4 + $0x54] ss:$8 sps:$4 sm:$0xff]   ;;  %v2122_v34 = vld [vmem:[%s2004_s4 + $0xa0] ss:$8 sps:$4 sm:$0xff]  }
  0x19   : > { %1838 = vmatpush3.bf16.msra.mxu1 %v1908_v24  ;;  %1551 = vmatpush3.bf16.msra.mxu0 %v1908_v24  ;;  %v2125_v35 = vld [vmem:[%s2004_s4 + $0x64] ss:$8 sps:$4 sm:$0xff]   ;;  %v2141_v39 = vld [vmem:[%s2004_s4 + $0xb0] ss:$8 sps:$4 sm:$0xff]   ;;  %v2146_v40 = vld [vmem:[%s2004_s4 + $0x74] ss:$8 sps:$4 sm:$0xff]  }
  0x1a   : > { %1831 = vmatprep.subr.bf16.mxu1 %v1909_v25  ;;  %1552 = vmatprep.subr.bf16.mxu0 %v1909_v25  ;;  %v2151_v41 = vld [vmem:[%s2004_s4 + $0xc0] ss:$8 sps:$4 sm:$0xff]   ;;  %v2156_v42 = vld [vmem:[%s2004_s4 + $0x84] ss:$8 sps:$4 sm:$0xff]   ;;  %v2166_v44 = vld [vmem:[%s2004_s4 + $0x94] ss:$8 sps:$4 sm:$0xff]  }
  0x1b   : > { %376 = vrot.lane.b32.xlu1 %v2028_v12, %s1949_s7  ;;  %424 = vrot.lane.b32.xlu0 %v2033_v13, %s1949_s7  ;;  %v2161_v43 = vld [vmem:[%s2004_s4 + $0xa4] ss:$8 sps:$4 sm:$0xff]   ;;  %v2176_v46 = vld [vmem:[%s2004_s4 + $0xb4] ss:$8 sps:$4 sm:$0xff]  }
  0x1c   : > { %v2169_v45 = vld [vmem:[%s2004_s4 + $0xc4] ss:$8 sps:$4 sm:$0xff]   ;;  %v2186_v48 = vld [vmem:[%s2004_s4 + $0xd4] ss:$8 sps:$4 sm:$0xff]   ;;  %v1921_v58 = vld [vmem:[%s2004_s4] ss:$8 sps:$4 sm:$0xff]  }
  0x1d   : > { %1839 = vmatpush3.bf16.msra.mxu1 %v1910_v28  ;;  %1553 = vmatpush3.bf16.msra.mxu0 %v1910_v28  ;;  %v2181_v47 = vld [vmem:[%s2004_s4 + $0xe4] ss:$8 sps:$4 sm:$0xff]   ;;  %v2196_v50 = vld [vmem:[%s2004_s4 + $0xf4] ss:$8 sps:$4 sm:$0xff]  }
  0x1e   : > { %1832 = vmatprep.subr.bf16.mxu1 %v1911_v29  ;;  %1554 = vmatprep.subr.bf16.mxu0 %v1911_v29  ;;  %v2191_v49 = vld [vmem:[%s2004_s4 + $0x104] ss:$8 sps:$4 sm:$0xff]   ;;  %v1937_v24 = vld [vmem:[%s2613_s1 + $0x118] sm:$0xff]  }
  0x1f   : > { %380 = vrot.lane.b32.xlu1 %v2038_v14, %s1949_s7  ;;  %428 = vrot.lane.b32.xlu0 %v2043_v15, %s1949_s7  ;;  %v1917_v55 = vld [vmem:[%s2004_s4 + $0x4] ss:$8 sps:$4 sm:$0xff]  }
  0x20   : > { %v1927_v22 = vld [vmem:[%s2613_s1 + $0xe0] sm:$0xff]   ;;  %v1929_v29 = vld [vmem:[%s2613_s1 + $0xe8] sm:$0xff]  }
  0x21   : > { %1840 = vmatpush3.bf16.msra.mxu1 %v1912_v32  ;;  %1555 = vmatpush3.bf16.msra.mxu0 %v1912_v32  ;;  %v1928_v28 = vld [vmem:[%s2613_s1 + $0xa0] sm:$0xff]  }
  0x22   : > { %1833 = vmatprep.subr.bf16.mxu1 %v1913_v33  ;;  %1556 = vmatprep.subr.bf16.mxu0 %v1913_v33  ;;  %v1930_v33 = vld [vmem:[%s2613_s1 + $0xa8] sm:$0xff]  }
  0x23   : > { %384 = vrot.lane.b32.xlu1 %v2048_v16, %s1949_s7  ;;  %370 = vrot.lane.b32.xlu0 %v2053_v17, %s1949_s7 }
  0x25   : > { %1841 = vmatpush3.bf16.msra.mxu1 %v1914_v36  ;;  %1557 = vmatpush3.bf16.msra.mxu0 %v1914_v36  ;;  %v1931_v36 = vld [vmem:[%s2613_s1 + $0xf0] sm:$0xff]  }
  0x26   : > { %1654 = vmatprep.subr.bf16.mxu1 %v1915_v37  ;;  %1786 = vmatprep.subr.bf16.mxu0 %v1920_v38 }
  0x27   : > { %388 = vrot.lane.b32.xlu1 %v2058_v18, %s1949_s7  ;;  %374 = vrot.lane.b32.xlu0 %v2063_v19, %s1949_s7 }
  0x2b   : > { %392 = vrot.lane.b32.xlu1 %v2066_v20, %s1949_s7  ;;  %378 = vrot.lane.b32.xlu0 %v2069_v21, %s1949_s7 }
  0x2f   : > { %396 = vrot.lane.b32.xlu1 %v2088_v26, %s1949_s7  ;;  %382 = vrot.lane.b32.xlu0 %v2093_v27, %s1949_s7 }
  0x33   : > { %400 = vrot.lane.b32.xlu1 %v2104_v30, %s1949_s7  ;;  %386 = vrot.lane.b32.xlu0 %v2109_v31, %s1949_s7 }
  0x37   : > { %404 = vrot.lane.b32.xlu1 %v2122_v34, %s1949_s7  ;;  %390 = vrot.lane.b32.xlu0 %v2125_v35, %s1949_s7 }
  0x3b   : > { %408 = vrot.lane.b32.xlu1 %v2141_v39, %s1949_s7  ;;  %394 = vrot.lane.b32.xlu0 %v2146_v40, %s1949_s7 }
  0x3f   : > { %412 = vrot.lane.b32.xlu1 %v2151_v41, %s1949_s7  ;;  %398 = vrot.lane.b32.xlu0 %v2156_v42, %s1949_s7 }
  0x43   : > { %406 = vrot.lane.b32.xlu1 %v2161_v43, %s1949_s7  ;;  %402 = vrot.lane.b32.xlu0 %v2166_v44, %s1949_s7 }
  0x47   : > { %414 = vrot.lane.b32.xlu1 %v2169_v45, %s1949_s7  ;;  %410 = vrot.lane.b32.xlu0 %v2176_v46, %s1949_s7 }
  0x4b   : > { %422 = vrot.lane.b32.xlu1 %v2181_v47, %s1949_s7  ;;  %418 = vrot.lane.b32.xlu0 %v2186_v48, %s1949_s7 }
  0x4f   : > { %430 = vrot.lane.b32.xlu1 %v2191_v49, %s1949_s7  ;;  %426 = vrot.lane.b32.xlu0 %v2196_v50, %s1949_s7 }
  0x85   : > { %v2202_v51 = vpop.permute.xlu1 %420  ;;  %v2204_v52 = vpop.permute.xlu0 %416 }
  0x86   : > { %v526_v54 = vsel %vm432_vm0, %v2169_v45, %v2204_v52  ;;  %v530_v57 = vsel %vm432_vm0, %v2186_v48, %v2202_v51 }
  0x87   : > { %997 = vmatprep.mubr.bf16.mxu1 %v526_v54 }
  0x88   : > { %998 = vmatmul.mubr.bf16.vlgmr.msra.gmra.mrb[0].mxu1 %v2151_v41 }
  0x89   : > { %1655 = vmatpush3.bf16.msra.mxu1 %v1916_v53  ;;  %v2221_v59 = vpop.permute.xlu0 %368  ;;  %1005 = vmatprep.mubr.bf16.mxu1 %v530_v57  ;;  %v2226_v61 = vpop.permute.xlu1 %372  ;;  %v1933_v53 = vld [vmem:[%s2613_s1 + $0xf8] sm:$0xff]  }
  0x8a   : > { %v478_v62 = vsel %vm432_vm0, %v1917_v55, %v2221_v59  ;;  %1656 = vmatprep.subr.bf16.mxu1 %v1919_v56  ;;  %v482_v0 = vsel %vm432_vm0, %v2053_v17, %v2226_v61  ;;  %v1926_v17 = vld [vmem:[%s2613_s1 + $0x98] sm:$0xff]  }
  0x8b   : > { %901 = vmatprep.mubr.bf16.mxu0 %v478_v62  ;;  %v1935_v55 = vld [vmem:[%s2613_s1 + $0xb8] sm:$0xff]  }
  0x8c   : > { %902 = vmatmul.mubr.bf16.vlgmr.msra.gmra.mrb[0].mxu0 %v1921_v58 }
  0x8d   : > { %1657 = vmatpush3.bf16.msra.mxu1 %v1922_v60  ;;  %1787 = vmatpush3.bf16.msra.mxu0 %v1920_v38  ;;  %v2239_v2 = vpop.permute.xlu0 %424  ;;  %v2254_v7 = vpop.permute.xlu1 %376  ;;  %v1932_v38 = vld [vmem:[%s2613_s1 + $0xb0] sm:$0xff]  }
  0x8e   : > { %1658 = vmatprep.subr.bf16.mxu1 %v1923_v63  ;;  %909 = vmatprep.mubr.bf16.mxu0 %v482_v0  ;;  %v534_v5 = vsel %vm432_vm0, %v2181_v47, %v2239_v2  ;;  %v486_v23 = vsel %vm432_vm0, %v2063_v19, %v2254_v7 }
  0x8f   : > { %1788 = vmatprep.subr.bf16.mxu0 %v1934_v1 }
  0x90   : > { %1006 = vmatmul.mubr.bf16.gmra.mrb[4].mxu1 %v2013_v9 }
  0x91   : > { %1659 = vmatpush3.bf16.msra.mxu1 %v1924_v3  ;;  %1013 = vmatprep.mubr.bf16.mxu1 %v534_v5  ;;  %v2269_v25 = vpop.permute.xlu0 %428 }
  0x92   : > { %1660 = vmatprep.subr.bf16.mxu1 %v1925_v4  ;;  %1789 = vmatpush3.bf16.msra.mxu0 %v1934_v1  ;;  %v538_v32 = vsel %vm432_vm0, %v2196_v50, %v2269_v25 }
  0x93   : > { %1790 = vmatprep.subr.bf16.mxu0 %v1936_v6 }
  0x94   : > { %910 = vmatmul.mubr.bf16.gmra.mrb[4].mxu0 %v2023_v11  ;;  %v381_v11 = vpop.permute.xlu1 %380 }
  0x95   : > { %1661 = vmatpush3.bf16.msra.mxu1 %v1926_v17  ;;  %917 = vmatprep.mubr.bf16.mxu0 %v486_v23  ;;  %v490_v37 = vsel %vm432_vm0, %v2069_v21, %v381_v11  ;;  %v371_v57 = vpop.permute.xlu0 %370 }
  0x96   : > { %1662 = vmatprep.subr.bf16.mxu1 %v1927_v22  ;;  %1791 = vmatpush3.bf16.msra.mxu0 %v1936_v6  ;;  %v433_v58 = vsel %vm432_vm0, %v2221_v59, %v371_v57 }
  0x97   : > { %1792 = vmatprep.subr.bf16.mxu0 %v1937_v24 }
  0x98   : > { %1014 = vmatmul.mubr.bf16.gmra.mrb[8].mxu1 %v2010_v8  ;;  %v385_v54 = vpop.permute.xlu1 %384 }
  0x99   : > { %1663 = vmatpush3.bf16.msra.mxu1 %v1928_v28  ;;  %1021 = vmatprep.mubr.bf16.mxu1 %v538_v32  ;;  %v494_v56 = vsel %vm432_vm0, %v2093_v27, %v385_v54 }
  0x9a   : > { %1664 = vmatprep.subr.bf16.mxu1 %v1929_v29  ;;  %1793 = vmatpush3.bf16.msra.mxu0 %v1937_v24 }
  0x9c   : > { %918 = vmatmul.mubr.bf16.gmra.mrb[8].mxu0 %v2018_v10  ;;  %v389_v60 = vpop.permute.xlu1 %388 }
  0x9d   : > { %1665 = vmatpush3.bf16.msra.mxu1 %v1930_v33  ;;  %925 = vmatprep.mubr.bf16.mxu0 %v490_v37  ;;  %v498_v62 = vsel %vm432_vm0, %v2109_v31, %v389_v60 }
  0x9e   : > { %1666 = vmatprep.subr.bf16.mxu1 %v1931_v36 }
  0xa0   : > { %1022 = vmatmul.mubr.bf16.gmra.mrb[12].mxu1 %v2033_v13  ;;  %v393_v0 = vpop.permute.xlu1 %392 }
  0xa1   : > { %1667 = vmatpush3.bf16.msra.mxu1 %v1932_v38  ;;  %1062 = vmatprep.mubr.bf16.mxu1 %v2018_v10  ;;  %v375_v10 = vpop.permute.xlu0 %374  ;;  %v502_v59 = vsel %vm432_vm0, %v2125_v35, %v393_v0 }
  0xa2   : > { %1668 = vmatprep.subr.bf16.mxu1 %v1933_v53  ;;  %v434_v63 = vsel %vm432_vm0, %v2226_v61, %v375_v10 }
  0xa4   : > { %926 = vmatmul.mubr.bf16.gmra.mrb[12].mxu0 %v2028_v12  ;;  %v397_v3 = vpop.permute.xlu1 %396 }
  0xa5   : > { %1669 = vmatpush3.bf16.msra.mxu1 %v1935_v55  ;;  %933 = vmatprep.mubr.bf16.mxu0 %v494_v56  ;;  %v379_v1 = vpop.permute.xlu0 %378  ;;  %v506_v61 = vsel %vm432_vm0, %v2146_v40, %v397_v3 }
  0xa8   : > { %1063 = vmatmul.mubr.bf16.vlgmr.msra.gmra.mrb[16].mxu1 %v433_v58  ;;  %v401_v5 = vpop.permute.xlu1 %400 }
  0xa9   : > { %1070 = vmatprep.mubr.bf16.mxu1 %v2028_v12  ;;  %v435_v12 = vsel %vm432_vm0, %v2254_v7, %v379_v1  ;;  %v383_v4 = vpop.permute.xlu0 %382  ;;  %v510_v6 = vsel %vm432_vm0, %v2156_v42, %v401_v5 }
  0xac   : > { %934 = vmatmul.mubr.bf16.gmra.mrb[16].mxu0 %v2038_v14  ;;  %v405_v17 = vpop.permute.xlu1 %404 }
  0xad   : > { %941 = vmatprep.mubr.bf16.mxu0 %v498_v62  ;;  %v514_v22 = vsel %vm432_vm0, %v2166_v44, %v405_v17 }
  0xb0   : > { %1071 = vmatmul.mubr.bf16.gmra.mrb[20].mxu1 %v434_v63  ;;  %v409_v24 = vpop.permute.xlu1 %408 }
  0xb1   : > { %1078 = vmatprep.mubr.bf16.mxu1 %v2038_v14  ;;  %v436_v14 = vsel %vm432_vm0, %v381_v11, %v383_v4  ;;  %v518_v28 = vsel %vm432_vm0, %v2161_v43, %v409_v24 }
  0xb4   : > { %942 = vmatmul.mubr.bf16.gmra.mrb[20].mxu0 %v2048_v16  ;;  %v413_v32 = vpop.permute.xlu1 %412 }
  0xb5   : > { %949 = vmatprep.mubr.bf16.mxu0 %v502_v59  ;;  %v522_v11 = vsel %vm432_vm0, %v2176_v46, %v413_v32 }
  0xb8   : > { %1079 = vmatmul.mubr.bf16.gmra.mrb[24].mxu1 %v435_v12  ;;  %v407_v37 = vpop.permute.xlu1 %406 }
  0xb9   : > { %1086 = vmatprep.mubr.bf16.mxu1 %v2048_v16  ;;  %v387_v16 = vpop.permute.xlu0 %386 }
  0xba   : > { %v437_v7 = vsel %vm432_vm0, %v385_v54, %v387_v16 }
  0xbc   : > { %950 = vmatmul.mubr.bf16.gmra.mrb[24].mxu0 %v2058_v18 }
  0xbd   : > { %957 = vmatprep.mubr.bf16.mxu0 %v506_v61 }
  0xc0   : > { %1087 = vmatmul.mubr.bf16.gmra.mrb[28].mxu1 %v436_v14 }
  0xc1   : > { %1094 = vmatprep.mubr.bf16.mxu1 %v2058_v18  ;;  %v391_v18 = vpop.permute.xlu0 %390 }
  0xc2   : > { %v438_v23 = vsel %vm432_vm0, %v389_v60, %v391_v18 }
  0xc4   : > { %958 = vmatmul.mubr.bf16.gmra.mrb[28].mxu0 %v2066_v20 }
  0xc5   : > { %965 = vmatprep.mubr.bf16.mxu0 %v510_v6 }
  0xc8   : > { %1095 = vmatmul.mubr.bf16.gmra.mrb[32].mxu1 %v437_v7 }
  0xc9   : > { %1102 = vmatprep.mubr.bf16.mxu1 %v2066_v20  ;;  %v395_v20 = vpop.permute.xlu0 %394 }
  0xca   : > { %v439_v29 = vsel %vm432_vm0, %v393_v0, %v395_v20 }
  0xcc   : > { %966 = vmatmul.mubr.bf16.gmra.mrb[32].mxu0 %v2088_v26 }
  0xcd   : > { %973 = vmatprep.mubr.bf16.mxu0 %v514_v22 }
  0xd0   : > { %1103 = vmatmul.mubr.bf16.gmra.mrb[36].mxu1 %v438_v23 }
  0xd1   : > { %1110 = vmatprep.mubr.bf16.mxu1 %v2088_v26  ;;  %v399_v26 = vpop.permute.xlu0 %398 }
  0xd2   : > { %v440_v33 = vsel %vm432_vm0, %v397_v3, %v399_v26 }
  0xd4   : > { %974 = vmatmul.mubr.bf16.gmra.mrb[36].mxu0 %v2104_v30 }
  0xd5   : > { %981 = vmatprep.mubr.bf16.mxu0 %v518_v28  ;;  %v403_v36 = vpop.permute.xlu0 %402 }
  0xd8   : > { %1111 = vmatmul.mubr.bf16.gmra.mrb[40].mxu1 %v439_v29 }
  0xd9   : > { %1118 = vmatprep.mubr.bf16.mxu1 %v2104_v30  ;;  %v441_v30 = vsel %vm432_vm0, %v401_v5, %v403_v36 }
  0xdc   : > { %982 = vmatmul.mubr.bf16.gmra.mrb[40].mxu0 %v2122_v34 }
  0xdd   : > { %989 = vmatprep.mubr.bf16.mxu0 %v522_v11 }
  0xe0   : > { %1119 = vmatmul.mubr.bf16.gmra.mrb[44].mxu1 %v440_v33 }
  0xe1   : > { %1126 = vmatprep.mubr.bf16.mxu1 %v2122_v34  ;;  %v442_v34 = vsel %vm432_vm0, %v405_v17, %v407_v37 }
  0xe4   : > { %990 = vmatmul.mubr.bf16.gmra.mrb[44].mxu0 %v2141_v39 }
  0xe5   : > { %1794 = vmatprep.mubr.msk.bf16.mxu0 %vm432_vm0, %v2063_v19  ;;  %v411_v19 = vpop.permute.xlu0 %410 }
  0xe8   : > { %1127 = vmatmul.mubr.bf16.gmra.mrb[48].mxu1 %v441_v30 }
  0xe9   : > { %1134 = vmatprep.mubr.bf16.mxu1 %v2141_v39  ;;  %v443_v39 = vsel %vm432_vm0, %v409_v24, %v411_v19 }
  0xec   : > { %1795 = vmatmul.mubr.msk.bf16.vlgmr.msra.gmra.mrb[48].mxu0 %vm432_vm0, %v2069_v21  ;;  %v415_v21 = vpop.permute.xlu1 %414 }
  0xed   : > { %1798 = vmatprep.mubr.msk.bf16.mxu0 %vm432_vm0, %v2093_v27  ;;  %v444_v27 = vsel %vm432_vm0, %v413_v32, %v415_v21 }
  0xf0   : > { %1135 = vmatmul.mubr.bf16.gmra.mrb[52].mxu1 %v442_v34  ;;  %v2412_v34 = vld [vmem:[#allocation2] ss:$0 sm:$0xff] }
  0xf1   : > { %1142 = vmatprep.mubr.bf16.mxu1 %v2151_v41 }
  0xf4   : > { %1799 = vmatmul.mubr.msk.bf16.gmra.mrb[52].mxu0 %vm432_vm0, %v2109_v31  ;;  %v419_v31 = vpop.permute.xlu0 %418 }
  0xf5   : > { %1802 = vmatprep.mubr.msk.bf16.mxu0 %vm432_vm0, %v2125_v35  ;;  %v423_v35 = vpop.permute.xlu1 %422 }
  0xf8   : > { %1143 = vmatmul.mubr.bf16.gmra.mrb[56].mxu1 %v443_v39 }
  0xf9   : > { %1150 = vmatprep.mubr.bf16.mxu1 %v2013_v9  ;;  %v445_v9 = vsel %vm432_vm0, %v2204_v52, %v419_v31 }
  0xfc   : > { %1803 = vmatmul.mubr.msk.bf16.gmra.mrb[56].mxu0 %vm432_vm0, %v2146_v40  ;;  %v427_v40 = vpop.permute.xlu0 %426 }
  0xfd   : > { %1806 = vmatprep.mubr.msk.bf16.mxu0 %vm432_vm0, %v2156_v42  ;;  %v447_v41 = vsel %vm432_vm0, %v2239_v2, %v427_v40  ;;  %v431_v42 = vpop.permute.xlu1 %430 }
 0x100   : > { %1151 = vmatmul.mubr.bf16.gmra.mrb[60].mxu1 %v444_v27 }
 0x101   : > { %1158 = vmatprep.mubr.bf16.mxu1 %v2010_v8  ;;  %v446_v8 = vsel %vm432_vm0, %v2202_v51, %v423_v35 }
 0x104   : > { %1807 = vmatmul.mubr.msk.bf16.gmra.mrb[60].mxu0 %vm432_vm0, %v2166_v44 }
 0x105   : > { %1810 = vmatprep.mubr.msk.bf16.mxu0 %vm432_vm0, %v2161_v43  ;;  %v1940_v43 = vld [vmem:[%s2004_s4 + $0x114] ss:$8 sps:$4 sm:$0xff]  }
 0x108   : > { %1159 = vmatmul.mubr.bf16.gmra.mrb[64].mxu1 %v445_v9 }
 0x109   : > { %1166 = vmatprep.mubr.bf16.mxu1 %v2033_v13  ;;  %v1938_v13 = vld [vmem:[%s2004_s4 + $0x110] ss:$8 sps:$4 sm:$0xff]   ;;  %s1448_s4 = sshll.u32 %s1441_s15, 5 }
 0x10a   : > { %p174_p4 = scmp.lt.s32.totalorder %s1448_s4, 63 }
 0x10c   : > { %1811 = vmatmul.mubr.msk.bf16.gmra.mrb[64].mxu0 %vm432_vm0, %v2176_v46  ;;  %s2619_s4 = smov (!%p174_p4, %s1448_s4), 63 }
 0x10d   : > { %1814 = vmatprep.mubr.msk.bf16.mxu0 %vm432_vm0, %v2169_v45  ;;  %s1449_s15 = sshll.u32 %s2619_s4, 3 }
 0x10e   : > { %s2481_s19 = scalar_lea.vmem %s2615_s3, %s1449_s15 }
 0x110   : > { %1167 = vmatmul.mubr.bf16.gmra.mrb[68].mxu1 %v446_v8 }
 0x111   : > { %1174 = vmatprep.mubr.bf16.mxu1 %v2043_v15  ;;  %v448_v15 = vsel %vm432_vm0, %v2269_v25, %v431_v42 }
 0x114   : > { %1815 = vmatmul.mubr.msk.bf16.gmra.mrb[68].mxu0 %vm432_vm0, %v2186_v48 }
 0x115   : > { %1818 = vmatprep.mubr.msk.bf16.mxu0 %vm432_vm0, %v2181_v47 }
 0x118   : > { %1175 = vmatmul.mubr.bf16.gmra.mrb[72].mxu1 %v447_v41 }
 0x119   : > { %1182 = vmatprep.mubr.bf16.mxu1 %v1938_v13 }
 0x11c   : > { %1819 = vmatmul.mubr.msk.bf16.gmra.mrb[72].mxu0 %vm432_vm0, %v2196_v50 }
 0x11d   : > { %1822 = vmatprep.mubr.msk.bf16.mxu0 %vm432_vm0, %v2191_v49 }
 0x120   : > { %1183 = vmatmul.mubr.bf16.gmra.mrb[76].mxu1 %v448_v15 }
 0x124   : > { %1823 = vmatmul.mubr.msk.bf16.gmra.mrb[76].mxu0 %vm432_vm0, %v1940_v43 }
 0x15b   : > { %v1630_v44 = vpop.f32.mrb[0].mxu1 }
 0x15c   : > { %v1631_v45 = vpop.f32.mrb[1].mxu1 }
 0x15d   : > { %v2396_v46 = vadd.f32 %v1631_v45, %v1630_v44  ;;  %v1633_v47 = vpop.f32.mrb[2].mxu1 }
 0x15e   : > { %v1634_v48 = vpop.f32.mrb[3].mxu1 }
 0x15f   : > { %v2398_v51 = vadd.f32 %v1634_v48, %v1633_v47  ;;  %v1558_v52 = vpop.f32.mrb[0].mxu0 }
 0x160   : > { %v1559_v50 = vpop.f32.mrb[1].mxu0 }
 0x161   : > { %v1560_v2 = vadd.f32 %v1559_v50, %v1558_v52  ;;  %v1561_v38 = vpop.f32.mrb[2].mxu0 }
 0x162   : > { %v1562_v49 = vpop.f32.mrb[3].mxu0 }
 0x163   : > { %v1563_v53 = vadd.f32 %v1562_v49, %v1561_v38  ;;  %v1636_v54 = vpop.f32.mrb[4].mxu1  ;;  %v904_v39 = vadd.f32 %v1560_v2, %v2412_v34 }
 0x164   : > { %v1637_v25 = vpop.f32.mrb[5].mxu1 }
 0x165   : > { %v2400_v55 = vadd.f32 %v1637_v25, %v1636_v54  ;;  %v1639_v56 = vpop.f32.mrb[6].mxu1  ;;  %v907_v9 = vadd.f32 %v1563_v53, %v2412_v34 }
 0x166   : > { %v1640_v57 = vpop.f32.mrb[7].mxu1 }
 0x167   : > { %v2402_v58 = vadd.f32 %v1640_v57, %v1639_v56  ;;  %v1564_v60 = vpop.f32.mrb[4].mxu0 }
 0x168   : > { %v1565_v62 = vpop.f32.mrb[5].mxu0 }
 0x169   : > { %v1566_v10 = vadd.f32 %v1565_v62, %v1564_v60  ;;  %v1567_v63 = vpop.f32.mrb[6].mxu0 }
 0x16a   : > { %v1568_v0 = vpop.f32.mrb[7].mxu0 }
 0x16b   : > { %v1569_v59 = vadd.f32 %v1568_v0, %v1567_v63  ;;  %v1642_v1 = vpop.f32.mrb[8].mxu1  ;;  %v912_v48 = vadd.f32 %v1566_v10, %v2412_v34 }
 0x16c   : > { %v1643_v12 = vpop.f32.mrb[9].mxu1 }
 0x16d   : > { %v2404_v3 = vadd.f32 %v1643_v12, %v1642_v1  ;;  %v1645_v61 = vpop.f32.mrb[10].mxu1  ;;  %v915_v38 = vadd.f32 %v1569_v59, %v2412_v34 }
 0x16e   : > { %v1646_v4 = vpop.f32.mrb[11].mxu1 }
 0x16f   : > { %v2406_v14 = vadd.f32 %v1646_v4, %v1645_v61  ;;  %v1570_v5 = vpop.f32.mrb[8].mxu0 }
 0x170   : > { %v1571_v6 = vpop.f32.mrb[9].mxu0 }
 0x171   : > { %v1572_v16 = vadd.f32 %v1571_v6, %v1570_v5  ;;  %v1573_v7 = vpop.f32.mrb[10].mxu0 }
 0x172   : > { %v1574_v17 = vpop.f32.mrb[11].mxu0 }
 0x173   : > { %v1575_v22 = vadd.f32 %v1574_v17, %v1573_v7  ;;  %v1648_v18 = vpop.f32.mrb[12].mxu1  ;;  %v920_v10 = vadd.f32 %v1572_v16, %v2412_v34 }
 0x174   : > { %v1649_v23 = vpop.f32.mrb[13].mxu1 }
 0x175   : > { %v2408_v24 = vadd.f32 %v1649_v23, %v1648_v18  ;;  %v1651_v28 = vpop.f32.mrb[14].mxu1  ;;  %v923_v59 = vadd.f32 %v1575_v22, %v2412_v34 }
 0x176   : > { %v1652_v20 = vpop.f32.mrb[15].mxu1 }
 0x177   : > { %v2410_v29 = vadd.f32 %v1652_v20, %v1651_v28  ;;  %v1576_v32 = vpop.f32.mrb[12].mxu0 }
 0x178   : > { %v1577_v11 = vpop.f32.mrb[13].mxu0 }
 0x179   : > { %v1578_v26 = vadd.f32 %v1577_v11, %v1576_v32  ;;  %v1579_v33 = vpop.f32.mrb[14].mxu0 }
 0x17a   : > { %v1580_v36 = vpop.f32.mrb[15].mxu0 }
 0x17b   : > { %v1581_v30 = vadd.f32 %v1580_v36, %v1579_v33  ;;  %v1670_v37 = vpop.f32.mrb[16].mxu1  ;;  %v928_v16 = vadd.f32 %v1578_v26, %v2412_v34 }
 0x17c   : > { %v1671_v19 = vpop.f32.mrb[17].mxu1 }
 0x17d   : > { %v1672_v21 = vadd.f32 %v1671_v19, %v1670_v37  ;;  %v1673_v27 = vpop.f32.mrb[18].mxu1  ;;  %v931_v22 = vadd.f32 %v1581_v30, %v2412_v34 }
 0x17e   : > { %v1674_v31 = vpop.f32.mrb[19].mxu1 }
 0x17f   : > { %v1675_v35 = vadd.f32 %v1674_v31, %v1673_v27  ;;  %v1582_v8 = vpop.f32.mrb[16].mxu0  ;;  %v2416_v40 = vadd.f32 %v1672_v21, %v904_v39 }
 0x180   : > { %v1583_v13 = vpop.f32.mrb[17].mxu0 }
 0x181   : > { %v1584_v41 = vadd.f32 %v1583_v13, %v1582_v8  ;;  %v1585_v42 = vpop.f32.mrb[18].mxu0  ;;  %v2418_v15 = vadd.f32 %v1675_v35, %v907_v9 }
 0x182   : > { %v1586_v43 = vpop.f32.mrb[19].mxu0 }
 0x183   : > { %v1587_v44 = vadd.f32 %v1586_v43, %v1585_v42  ;;  %v1676_v45 = vpop.f32.mrb[20].mxu1  ;;  %v936_v26 = vadd.f32 %v1584_v41, %v2412_v34 }
 0x184   : > { %v1677_v47 = vpop.f32.mrb[21].mxu1 }
 0x185   : > { %v1678_v52 = vadd.f32 %v1677_v47, %v1676_v45  ;;  %v1679_v50 = vpop.f32.mrb[22].mxu1  ;;  %v939_v30 = vadd.f32 %v1587_v44, %v2412_v34 }
 0x186   : > { %v1680_v2 = vpop.f32.mrb[23].mxu1 }
 0x187   : > { %v1681_v49 = vadd.f32 %v1680_v2, %v1679_v50  ;;  %v1588_v53 = vpop.f32.mrb[20].mxu0  ;;  %v2422_v54 = vadd.f32 %v1678_v52, %v912_v48 }
 0x188   : > { %v1589_v25 = vpop.f32.mrb[21].mxu0 }
 0x189   : > { %v1590_v56 = vadd.f32 %v1589_v25, %v1588_v53  ;;  %v1591_v57 = vpop.f32.mrb[22].mxu0  ;;  %v2424_v60 = vadd.f32 %v1681_v49, %v915_v38 }
 0x18a   : > { %v1592_v62 = vpop.f32.mrb[23].mxu0 }
 0x18b   : > { %v1593_v63 = vadd.f32 %v1592_v62, %v1591_v57  ;;  %v1682_v0 = vpop.f32.mrb[24].mxu1  ;;  %v944_v41 = vadd.f32 %v1590_v56, %v2412_v34 }
 0x18c   : > { %v1683_v1 = vpop.f32.mrb[25].mxu1 }
 0x18d   : > { %v1684_v12 = vadd.f32 %v1683_v1, %v1682_v0  ;;  %v1685_v61 = vpop.f32.mrb[26].mxu1  ;;  %v947_v44 = vadd.f32 %v1593_v63, %v2412_v34 }
 0x18e   : > { %v1686_v4 = vpop.f32.mrb[27].mxu1 }
 0x18f   : > { %v1687_v5 = vadd.f32 %v1686_v4, %v1685_v61  ;;  %v1594_v6 = vpop.f32.mrb[24].mxu0  ;;  %v2428_v7 = vadd.f32 %v1684_v12, %v920_v10 }
 0x190   : > { %v1595_v17 = vpop.f32.mrb[25].mxu0 }
 0x191   : > { %v1596_v18 = vadd.f32 %v1595_v17, %v1594_v6  ;;  %v1597_v23 = vpop.f32.mrb[26].mxu0  ;;  %v2430_v28 = vadd.f32 %v1687_v5, %v923_v59 }
 0x192   : > { %v1598_v20 = vpop.f32.mrb[27].mxu0 }
 0x193   : > { %v1599_v32 = vadd.f32 %v1598_v20, %v1597_v23  ;;  %v1688_v11 = vpop.f32.mrb[28].mxu1 }
 0x194   : > { %v1689_v33 = vpop.f32.mrb[29].mxu1 }
 0x195   : > { %v1690_v36 = vadd.f32 %v1689_v33, %v1688_v11  ;;  %v1691_v37 = vpop.f32.mrb[30].mxu1 }
 0x196   : > { %v1692_v19 = vpop.f32.mrb[31].mxu1 }
 0x197   : > { %v1693_v39 = vadd.f32 %v1692_v19, %v1691_v37  ;;  %v1600_v21 = vpop.f32.mrb[28].mxu0  ;;  %v2434_v27 = vadd.f32 %v1690_v36, %v928_v16  ;;  %v952_v37 = vadd.f32 %v1596_v18, %v2412_v34 }
 0x198   : > { %v1601_v31 = vpop.f32.mrb[29].mxu0 }
 0x199   : > { %v1602_v9 = vadd.f32 %v1601_v31, %v1600_v21  ;;  %v1603_v35 = vpop.f32.mrb[30].mxu0  ;;  %v2436_v8 = vadd.f32 %v1693_v39, %v931_v22  ;;  %v955_v39 = vadd.f32 %v1599_v32, %v2412_v34 }
 0x19a   : > { %v1604_v13 = vpop.f32.mrb[31].mxu0 }
 0x19b   : > { %v1605_v42 = vadd.f32 %v1604_v13, %v1603_v35  ;;  %v1694_v43 = vpop.f32.mrb[32].mxu1  ;;  %v960_v32 = vadd.f32 %v1602_v9, %v2412_v34 }
 0x19c   : > { %v1695_v45 = vpop.f32.mrb[33].mxu1 }
 0x19d   : > { %v1696_v47 = vadd.f32 %v1695_v45, %v1694_v43  ;;  %v1697_v48 = vpop.f32.mrb[34].mxu1 }
 0x19e   : > { %v1698_v52 = vpop.f32.mrb[35].mxu1 }
 0x19f   : > { %v1699_v50 = vadd.f32 %v1698_v52, %v1697_v48  ;;  %v1606_v2 = vpop.f32.mrb[32].mxu0  ;;  %v2440_v38 = vadd.f32 %v1696_v47, %v936_v26 }
 0x1a0   : > { %v1607_v49 = vpop.f32.mrb[33].mxu0 }
 0x1a1   : > { %v1608_v53 = vadd.f32 %v1607_v49, %v1606_v2  ;;  %v1609_v25 = vpop.f32.mrb[34].mxu0  ;;  %v2442_v57 = vadd.f32 %v1699_v50, %v939_v30  ;;  %v963_v49 = vadd.f32 %v1605_v42, %v2412_v34 }
 0x1a2   : > { %v1610_v62 = vpop.f32.mrb[35].mxu0 }
 0x1a3   : > { %v1611_v0 = vadd.f32 %v1610_v62, %v1609_v25  ;;  %v1700_v1 = vpop.f32.mrb[36].mxu1 }
 0x1a4   : > { %v1701_v10 = vpop.f32.mrb[37].mxu1 }
 0x1a5   : > { %v1702_v12 = vadd.f32 %v1701_v10, %v1700_v1  ;;  %v1703_v61 = vpop.f32.mrb[38].mxu1 }
 0x1a6   : > { %v1704_v4 = vpop.f32.mrb[39].mxu1 }
 0x1a7   : > { %v1705_v59 = vadd.f32 %v1704_v4, %v1703_v61  ;;  %v1612_v5 = vpop.f32.mrb[36].mxu0  ;;  %v2446_v6 = vadd.f32 %v1702_v12, %v944_v41 }
 0x1a8   : > { %v1613_v17 = vpop.f32.mrb[37].mxu0 }
 0x1a9   : > { %v2448_v23 = vadd.f32 %v1613_v17, %v1612_v5  ;;  %v1615_v20 = vpop.f32.mrb[38].mxu0  ;;  %v2450_v11 = vadd.f32 %v1705_v59, %v947_v44  ;;  %v968_v5 = vadd.f32 %v1608_v53, %v2412_v34 }
 0x1aa   : > { %v1616_v33 = vpop.f32.mrb[39].mxu0 }
 0x1ab   : > { %v2452_v16 = vadd.f32 %v1616_v33, %v1615_v20  ;;  %v1706_v56 = vpop.f32.mrb[40].mxu1  ;;  %v971_v33 = vadd.f32 %v1611_v0, %v2412_v34 }
 0x1ac   : > { %v1707_v36 = vpop.f32.mrb[41].mxu1 }
 0x1ad   : > { %v1708_v19 = vadd.f32 %v1707_v36, %v1706_v56  ;;  %v1709_v63 = vpop.f32.mrb[42].mxu1 }
 0x1ae   : > { %v1710_v22 = vpop.f32.mrb[43].mxu1 }
 0x1af   : > { %v1711_v21 = vadd.f32 %v1710_v22, %v1709_v63  ;;  %v1618_v31 = vpop.f32.mrb[40].mxu0  ;;  %v2456_v35 = vadd.f32 %v1708_v19, %v952_v37 }
 0x1b0   : > { %v1619_v13 = vpop.f32.mrb[41].mxu0 }
 0x1b1   : > { %v2458_v43 = vadd.f32 %v1619_v13, %v1618_v31  ;;  %v1621_v45 = vpop.f32.mrb[42].mxu0  ;;  %v2462_v26 = vadd.f32 %v1711_v21, %v955_v39 }
 0x1b2   : > { %v1622_v47 = vpop.f32.mrb[43].mxu0 }
 0x1b3   : > { %v2464_v48 = vadd.f32 %v1622_v47, %v1621_v45  ;;  %v1712_v18 = vpop.f32.mrb[44].mxu1 }
 0x1b4   : > { %v1713_v52 = vpop.f32.mrb[45].mxu1 }
 0x1b5   : > { %v1714_v30 = vadd.f32 %v1713_v52, %v1712_v18  ;;  %v1715_v50 = vpop.f32.mrb[46].mxu1 }
 0x1b6   : > { %v1716_v2 = vpop.f32.mrb[47].mxu1 }
 0x1b7   : > { %v1717_v25 = vadd.f32 %v1716_v2, %v1715_v50  ;;  %v1624_v62 = vpop.f32.mrb[44].mxu0  ;;  %v2468_v1 = vadd.f32 %v1714_v30, %v960_v32 }
 0x1b8   : > { %v1625_v10 = vpop.f32.mrb[45].mxu0 }
 0x1b9   : > { %v2470_v41 = vadd.f32 %v1625_v10, %v1624_v62  ;;  %v1627_v12 = vpop.f32.mrb[46].mxu0  ;;  %v2472_v61 = vadd.f32 %v1717_v25, %v963_v49 }
 0x1ba   : > { %v1628_v4 = vpop.f32.mrb[47].mxu0 }
 0x1bb   : > { %v2474_v44 = vadd.f32 %v1628_v4, %v1627_v12  ;;  %v1718_v9 = vpop.f32.mrb[48].mxu1 }
 0x1bc   : > { %v1719_v59 = vpop.f32.mrb[49].mxu1 }
 0x1bd   : > { %v1720_v42 = vadd.f32 %v1719_v59, %v1718_v9  ;;  %v1721_v17 = vpop.f32.mrb[50].mxu1 }
 0x1be   : > { %v1722_v20 = vpop.f32.mrb[51].mxu1 }
 0x1bf   : > { %v1723_v56 = vadd.f32 %v1722_v20, %v1721_v17  ;;  %v1796_v36 = vpop.f32.mrb[48].mxu0  ;;  %v2483_v37 = vadd.f32 %v1720_v42, %v968_v5 }
 0x1c0   : > { %v1234_v53 = vadd.f32 %v1796_v36, %v2422_v54  ;;  %v1225_v19 = vpop.f32.mrb[49].mxu0 }
 0x1c1   : > { %v1226_v63 = vadd.f32 %v1225_v19, %v2416_v40  ;;  %v1797_v0 = vpop.f32.mrb[50].mxu0  ;;  %v2487_v22 = vadd.f32 %v1723_v56, %v971_v33  ;;  %v976_v40 = vadd.f32 %v2448_v23, %v2412_v34 }
 0x1c2   : > { %1355 = vst.msk [vmem:[%s2481_s19 + $0x10] sm:$0xff] %vm1352_vm1, %v1234_v53  ;;  %v1237_v39 = vadd.f32 %v1797_v0, %v2424_v60  ;;  %v1228_v21 = vpop.f32.mrb[51].mxu0  ;;  %v979_v60 = vadd.f32 %v2452_v16, %v2412_v34 }
 0x1c3   : > { %1353 = vst.msk [vmem:[%s2481_s19] sm:$0xff] %vm1352_vm1, %v1226_v63  ;;  %v1229_v31 = vadd.f32 %v1228_v21, %v2418_v15  ;;  %v1724_v13 = vpop.f32.mrb[52].mxu1 }
 0x1c4   : > { %1356 = vst.msk [vmem:[%s2481_s19 + $0x18] sm:$0xff] %vm1352_vm1, %v1237_v39  ;;  %v1725_v54 = vpop.f32.mrb[53].mxu1 }
 0x1c5   : > { %1354 = vst.msk [vmem:[%s2481_s19 + $0x8] sm:$0xff] %vm1352_vm1, %v1229_v31  ;;  %v1726_v45 = vadd.f32 %v1725_v54, %v1724_v13  ;;  %v1727_v47 = vpop.f32.mrb[54].mxu1 }
 0x1c6   : > { %v1728_v18 = vpop.f32.mrb[55].mxu1 }
 0x1c7   : > { %v1729_v52 = vadd.f32 %v1728_v18, %v1727_v47  ;;  %v1800_v15 = vpop.f32.mrb[52].mxu0  ;;  %v2503_v32 = vadd.f32 %v1726_v45, %v976_v40 }
 0x1c8   : > { %v1250_v30 = vadd.f32 %v1800_v15, %v2434_v27  ;;  %v1241_v50 = vpop.f32.mrb[53].mxu0 }
 0x1c9   : > { %v1242_v23 = vadd.f32 %v1241_v50, %v2428_v7  ;;  %v1801_v2 = vpop.f32.mrb[54].mxu0  ;;  %v2507_v49 = vadd.f32 %v1729_v52, %v979_v60  ;;  %v984_v7 = vadd.f32 %v2458_v43, %v2412_v34 }
 0x1ca   : > { %1359 = vst.msk [vmem:[%s2481_s19 + $0x30] sm:$0xff] %vm1352_vm1, %v1250_v30  ;;  %v1253_v25 = vadd.f32 %v1801_v2, %v2436_v8  ;;  %v1244_v62 = vpop.f32.mrb[55].mxu0  ;;  %v987_v8 = vadd.f32 %v2464_v48, %v2412_v34 }
 0x1cb   : > { %1357 = vst.msk [vmem:[%s2481_s19 + $0x20] sm:$0xff] %vm1352_vm1, %v1242_v23  ;;  %v1245_v16 = vadd.f32 %v1244_v62, %v2430_v28  ;;  %v1730_v10 = vpop.f32.mrb[56].mxu1 }
 0x1cc   : > { %1360 = vst.msk [vmem:[%s2481_s19 + $0x38] sm:$0xff] %vm1352_vm1, %v1253_v25  ;;  %v1731_v27 = vpop.f32.mrb[57].mxu1 }
 0x1cd   : > { %1358 = vst.msk [vmem:[%s2481_s19 + $0x28] sm:$0xff] %vm1352_vm1, %v1245_v16  ;;  %v1732_v12 = vadd.f32 %v1731_v27, %v1730_v10  ;;  %v1733_v4 = vpop.f32.mrb[58].mxu1 }
 0x1ce   : > { %v1734_v9 = vpop.f32.mrb[59].mxu1 }
 0x1cf   : > { %v1735_v59 = vadd.f32 %v1734_v9, %v1733_v4  ;;  %v1804_v28 = vpop.f32.mrb[56].mxu0  ;;  %v2523_v5 = vadd.f32 %v1732_v12, %v984_v7 }
 0x1d0   : > { %v1266_v42 = vadd.f32 %v1804_v28, %v2446_v6  ;;  %v1257_v17 = vpop.f32.mrb[57].mxu0 }
 0x1d1   : > { %v1258_v43 = vadd.f32 %v1257_v17, %v2440_v38  ;;  %v1805_v20 = vpop.f32.mrb[58].mxu0  ;;  %v2527_v33 = vadd.f32 %v1735_v59, %v987_v8  ;;  %v992_v38 = vadd.f32 %v2470_v41, %v2412_v34 }
 0x1d2   : > { %1363 = vst.msk [vmem:[%s2481_s19 + $0x50] sm:$0xff] %vm1352_vm1, %v1266_v42  ;;  %v1269_v56 = vadd.f32 %v1805_v20, %v2450_v11  ;;  %v1260_v36 = vpop.f32.mrb[59].mxu0  ;;  %v995_v11 = vadd.f32 %v2474_v44, %v2412_v34 }
 0x1d3   : > { %1361 = vst.msk [vmem:[%s2481_s19 + $0x40] sm:$0xff] %vm1352_vm1, %v1258_v43  ;;  %v1261_v48 = vadd.f32 %v1260_v36, %v2442_v57  ;;  %v1736_v53 = vpop.f32.mrb[60].mxu1 }
 0x1d4   : > { %1364 = vst.msk [vmem:[%s2481_s19 + $0x58] sm:$0xff] %vm1352_vm1, %v1269_v56  ;;  %v1737_v6 = vpop.f32.mrb[61].mxu1 }
 0x1d5   : > { %1362 = vst.msk [vmem:[%s2481_s19 + $0x48] sm:$0xff] %vm1352_vm1, %v1261_v48  ;;  %v1738_v19 = vadd.f32 %v1737_v6, %v1736_v53  ;;  %v1739_v63 = vpop.f32.mrb[62].mxu1  ;;  %v1016_v48 = vadd.f32 %v2404_v3, %v2412_v34 }
 0x1d6   : > { %v1740_v0 = vpop.f32.mrb[63].mxu1 }
 0x1d7   : > { %v1741_v39 = vadd.f32 %v1740_v0, %v1739_v63  ;;  %v1808_v57 = vpop.f32.mrb[60].mxu0  ;;  %v1153_v21 = vadd.f32 %v1738_v19, %v992_v38  ;;  %v1019_v38 = vadd.f32 %v2406_v14, %v2412_v34 }
 0x1d8   : > { %v1282_v31 = vadd.f32 %v1808_v57, %v2468_v1  ;;  %v1273_v13 = vpop.f32.mrb[61].mxu0  ;;  %v1000_v1 = vadd.f32 %v2396_v46, %v2412_v34 }
 0x1d9   : > { %v1274_v54 = vadd.f32 %v1273_v13, %v2456_v35  ;;  %v1809_v41 = vpop.f32.mrb[62].mxu0  ;;  %v1156_v40 = vadd.f32 %v1741_v39, %v995_v11 }
 0x1da   : > { %1367 = vst.msk [vmem:[%s2481_s19 + $0x70] sm:$0xff] %vm1352_vm1, %v1282_v31  ;;  %v1285_v45 = vadd.f32 %v1809_v41, %v2472_v61  ;;  %v1276_v47 = vpop.f32.mrb[63].mxu0  ;;  %v1003_v61 = vadd.f32 %v2398_v51, %v2412_v34  ;;  %v1024_v41 = vadd.f32 %v2408_v24, %v2412_v34 }
 0x1db   : > { %1365 = vst.msk [vmem:[%s2481_s19 + $0x60] sm:$0xff] %vm1352_vm1, %v1274_v54  ;;  %v1277_v44 = vadd.f32 %v1276_v47, %v2462_v26  ;;  %v1742_v18 = vpop.f32.mrb[64].mxu1 }
 0x1dc   : > { %1368 = vst.msk [vmem:[%s2481_s19 + $0x78] sm:$0xff] %vm1352_vm1, %v1285_v45  ;;  %v1743_v60 = vpop.f32.mrb[65].mxu1 }
 0x1dd   : > { %1366 = vst.msk [vmem:[%s2481_s19 + $0x68] sm:$0xff] %vm1352_vm1, %v1277_v44  ;;  %v1744_v35 = vadd.f32 %v1743_v60, %v1742_v18  ;;  %v1745_v52 = vpop.f32.mrb[66].mxu1  ;;  %v1027_v44 = vadd.f32 %v2410_v29, %v2412_v34 }
 0x1de   : > { %v1746_v15 = vpop.f32.mrb[67].mxu1 }
 0x1df   : > { %v1747_v30 = vadd.f32 %v1746_v15, %v1745_v52  ;;  %v1812_v26 = vpop.f32.mrb[64].mxu0  ;;  %v1161_v50 = vadd.f32 %v1744_v35, %v1000_v1 }
 0x1e0   : > { %v1298_v23 = vadd.f32 %v1812_v26, %v2503_v32  ;;  %v1289_v2 = vpop.f32.mrb[65].mxu0  ;;  %v1008_v32 = vadd.f32 %v2400_v55, %v2412_v34 }
 0x1e1   : > { %v1290_v25 = vadd.f32 %v1289_v2, %v2483_v37  ;;  %v1813_v46 = vpop.f32.mrb[66].mxu0  ;;  %v1164_v62 = vadd.f32 %v1747_v30, %v1003_v61 }
 0x1e2   : > { %1371 = vst.msk [vmem:[%s2481_s19 + $0x90] sm:$0xff] %vm1352_vm1, %v1298_v23  ;;  %v1301_v16 = vadd.f32 %v1813_v46, %v2507_v49  ;;  %v1292_v10 = vpop.f32.mrb[67].mxu0  ;;  %v1011_v49 = vadd.f32 %v2402_v58, %v2412_v34 }
 0x1e3   : > { %1369 = vst.msk [vmem:[%s2481_s19 + $0x80] sm:$0xff] %vm1352_vm1, %v1290_v25  ;;  %v1293_v51 = vadd.f32 %v1292_v10, %v2487_v22  ;;  %v1748_v27 = vpop.f32.mrb[68].mxu1 }
 0x1e4   : > { %1372 = vst.msk [vmem:[%s2481_s19 + $0x98] sm:$0xff] %vm1352_vm1, %v1301_v16  ;;  %v1749_v7 = vpop.f32.mrb[69].mxu1 }
 0x1e5   : > { %1370 = vst.msk [vmem:[%s2481_s19 + $0x88] sm:$0xff] %vm1352_vm1, %v1293_v51  ;;  %v1750_v37 = vadd.f32 %v1749_v7, %v1748_v27  ;;  %v1751_v12 = vpop.f32.mrb[70].mxu1 }
 0x1e6   : > { %v1752_v4 = vpop.f32.mrb[71].mxu1 }
 0x1e7   : > { %v1753_v9 = vadd.f32 %v1752_v4, %v1751_v12  ;;  %v1816_v22 = vpop.f32.mrb[68].mxu0  ;;  %v1169_v8 = vadd.f32 %v1750_v37, %v1008_v32 }
 0x1e8   : > { %v1314_v59 = vadd.f32 %v1816_v22, %v1153_v21  ;;  %v1305_v28 = vpop.f32.mrb[69].mxu0 }
 0x1e9   : > { %v1306_v42 = vadd.f32 %v1305_v28, %v2523_v5  ;;  %v1817_v17 = vpop.f32.mrb[70].mxu0  ;;  %v1172_v55 = vadd.f32 %v1753_v9, %v1011_v49 }
 0x1ea   : > { %1375 = vst.msk [vmem:[%s2481_s19 + $0xb0] sm:$0xff] %vm1352_vm1, %v1314_v59  ;;  %v1317_v43 = vadd.f32 %v1817_v17, %v1156_v40  ;;  %v1308_v20 = vpop.f32.mrb[71].mxu0 }
 0x1eb   : > { %1373 = vst.msk [vmem:[%s2481_s19 + $0xa0] sm:$0xff] %vm1352_vm1, %v1306_v42  ;;  %v1309_v56 = vadd.f32 %v1308_v20, %v2527_v33  ;;  %v1754_v36 = vpop.f32.mrb[72].mxu1 }
 0x1ec   : > { %1376 = vst.msk [vmem:[%s2481_s19 + $0xb8] sm:$0xff] %vm1352_vm1, %v1317_v43  ;;  %v1755_v58 = vpop.f32.mrb[73].mxu1 }
 0x1ed   : > { %1374 = vst.msk [vmem:[%s2481_s19 + $0xa8] sm:$0xff] %vm1352_vm1, %v1309_v56  ;;  %v1756_v5 = vadd.f32 %v1755_v58, %v1754_v36  ;;  %v1757_v53 = vpop.f32.mrb[74].mxu1 }
 0x1ee   : > { %v1758_v6 = vpop.f32.mrb[75].mxu1 }
 0x1ef   : > { %v1759_v19 = vadd.f32 %v1758_v6, %v1757_v53  ;;  %v1820_v33 = vpop.f32.mrb[72].mxu0  ;;  %v1177_v63 = vadd.f32 %v1756_v5, %v1016_v48 }
 0x1f0   : > { %v1330_v0 = vadd.f32 %v1820_v33, %v1169_v8  ;;  %v1321_v11 = vpop.f32.mrb[73].mxu0 }
 0x1f1   : > { %v1322_v39 = vadd.f32 %v1321_v11, %v1161_v50  ;;  %v1821_v57 = vpop.f32.mrb[74].mxu0  ;;  %v1180_v21 = vadd.f32 %v1759_v19, %v1019_v38 }
 0x1f2   : > { %1379 = vst.msk [vmem:[%s2481_s19 + $0xd0] sm:$0xff] %vm1352_vm1, %v1330_v0  ;;  %v1333_v3 = vadd.f32 %v1821_v57, %v1172_v55  ;;  %v1324_v31 = vpop.f32.mrb[75].mxu0 }
 0x1f3   : > { %1377 = vst.msk [vmem:[%s2481_s19 + $0xc0] sm:$0xff] %vm1352_vm1, %v1322_v39  ;;  %v1325_v13 = vadd.f32 %v1324_v31, %v1164_v62  ;;  %v1760_v54 = vpop.f32.mrb[76].mxu1 }
 0x1f4   : > { %1380 = vst.msk [vmem:[%s2481_s19 + $0xd8] sm:$0xff] %vm1352_vm1, %v1333_v3  ;;  %v1761_v14 = vpop.f32.mrb[77].mxu1 }
 0x1f5   : > { %1378 = vst.msk [vmem:[%s2481_s19 + $0xc8] sm:$0xff] %vm1352_vm1, %v1325_v13  ;;  %v1762_v40 = vadd.f32 %v1761_v14, %v1760_v54  ;;  %v1763_v45 = vpop.f32.mrb[78].mxu1 }
 0x1f6   : > { %v1764_v47 = vpop.f32.mrb[79].mxu1 }
 0x1f7   : > { %v1765_v18 = vadd.f32 %v1764_v47, %v1763_v45  ;;  %v1185_v60 = vadd.f32 %v1762_v40, %v1024_v41  ;;  %v1824_v1 = vpop.f32.mrb[76].mxu0 }
 0x1f8   : > { %v1337_v35 = vpop.f32.mrb[77].mxu0 }
 0x1f9   : > { %v1346_v52 = vadd.f32 %v1824_v1, %v1185_v60  ;;  %v1338_v15 = vadd.f32 %v1337_v35, %v1177_v63  ;;  %v1188_v61 = vadd.f32 %v1765_v18, %v1027_v44  ;;  %v1825_v30 = vpop.f32.mrb[78].mxu0 }
 0x1fa   : > { %v1340_v24 = vpop.f32.mrb[79].mxu0 }
 0x1fb   : > { %1383 = vst.msk [vmem:[%s2481_s19 + $0xf0] sm:$0xff] %vm1352_vm1, %v1346_v52  ;;  %1381 = vst.msk [vmem:[%s2481_s19 + $0xe0] sm:$0xff] %vm1352_vm1, %v1338_v15  ;;  %v1349_v26 = vadd.f32 %v1825_v30, %v1188_v61  ;;  %v1341_v50 = vadd.f32 %v1340_v24, %v1180_v21 }
 0x1fd   : > { %1384 = vst.msk [vmem:[%s2481_s19 + $0xf8] sm:$0xff] %vm1352_vm1, %v1349_v26  ;;  %1382 = vst.msk [vmem:[%s2481_s19 + $0xe8] sm:$0xff] %vm1352_vm1, %v1341_v50 }
 0x1fe PF: > { %s15_s14 = sadd.s32 1, %s1947_s14  }
 0x1ff   : > { %p12_p5 = scmp.ge.s32.totalorder %s15_s14, 4  }
 0x201   :  { %14 = sbr.rel (!%p12_p5) target bundleno = 3 (0x3), region = 62 }

</bundles_post_ra>
